<compile_context>
chip_gen: v6e
topology: v6e:2x2x1
jax: 0.10.0
libtpu: 0.0.40
codegen_flags: <defaults>
</compile_context>

<pallas_src>
import jax
import jax.numpy as jnp
from jax.experimental import pallas as pl
from jax.experimental.pallas import tpu as pltpu

# ----- hyperparameters (stand-ins for args.*) -----
B = 2            # batch_size
W = 4            # context_window
L = 8            # seq_len
V = 64           # vocab_size
E = 16           # embedding_dim
H = 16           # utter_hidden   (bi-GRU output feature = 2H)
U = 32           # user_dim
R = 4            # max_roles

LW = L * W       # encoder rows per batch element (row = t*W + w)


# ---------------------------------------------------------------------------
# Fused kernel: bi-GRU encoder -> interaction layer -> select_way==1 head
# One batch element per grid step; everything stays on-chip.
# ---------------------------------------------------------------------------
def adr_selection_kernel(
        emb_ref, mask_ref, sel_spk_ref, sel_adr_ref, m_spk_ref, m_adr_ref,
        sel_res_ref, sel_tgt_ref,
        enc_wi_ref, enc_wh_ref, enc_bi_ref, enc_bh_ref,
        int_we_ref, int_wu_ref, int_wh_ref, int_bi_ref, int_bh_ref,
        wcf1_ref, bcf1_ref, fc2w_ref, fc2b_ref, fc3w_ref, fc3b_ref,
        out_ref, a_ref):
    f32 = jnp.float32
    emb = emb_ref[...]        # [L*W, E]   (row = t*W + w)
    mask = mask_ref[...]      # [L*W, 1]

    # ---------------- Stage 1: bidirectional GRU utterance encoder ----------------
    # Hoisted, time-invariant input projections: one [L*W, E] @ [E, H] matmul per
    # direction & gate (replaces 2*L tiny per-step matmuls).  Gate order: r, z, n.
    gx = [[jnp.dot(emb, enc_wi_ref[d, g], preferred_element_type=f32) + enc_bi_ref[d, g]
           for g in range(3)] for d in range(2)]              # each [L*W, H]
    wh = [[enc_wh_ref[d, g] for g in range(3)] for d in range(2)]
    bh = [[enc_bh_ref[d, g] for g in range(3)] for d in range(2)]

    h_f = jnp.zeros((W, H), f32)
    h_b = jnp.zeros((W, H), f32)
    for i in range(L):                        # fully unrolled; fwd & bwd interleaved
        tf, tb = i, L - 1 - i
        sf, sb = slice(tf * W, tf * W + W), slice(tb * W, tb * W + W)
        mf, mb = mask[sf], mask[sb]
        # forward direction
        gh_r = jnp.dot(h_f, wh[0][0], preferred_element_type=f32) + bh[0][0]
        gh_z = jnp.dot(h_f, wh[0][1], preferred_element_type=f32) + bh[0][1]
        gh_n = jnp.dot(h_f, wh[0][2], preferred_element_type=f32) + bh[0][2]
        r = jax.nn.sigmoid(gx[0][0][sf] + gh_r)
        z = jax.nn.sigmoid(gx[0][1][sf] + gh_z)
        n = jnp.tanh(gx[0][2][sf] + r * gh_n)
        h_new = (1.0 - z) * n + z * h_f
        h_f = mf * h_new + (1.0 - mf) * h_f
        # backward direction
        gh_r = jnp.dot(h_b, wh[1][0], preferred_element_type=f32) + bh[1][0]
        gh_z = jnp.dot(h_b, wh[1][1], preferred_element_type=f32) + bh[1][1]
        gh_n = jnp.dot(h_b, wh[1][2], preferred_element_type=f32) + bh[1][2]
        r = jax.nn.sigmoid(gx[1][0][sb] + gh_r)
        z = jax.nn.sigmoid(gx[1][1][sb] + gh_z)
        n = jnp.tanh(gx[1][2][sb] + r * gh_n)
        h_new = (1.0 - z) * n + z * h_b
        h_b = mb * h_new + (1.0 - mb) * h_b
    # encoder hidden of window w is [h_f[w] ; h_b[w]] (never materialized concatenated)

    # ---------------- Stage 2: interaction layer (GRUS / GRUA / GRUO) -------------
    # Hoisted enc projections for all 3 cells x 3 gates x W windows (weights pre-split
    # into fwd/bwd halves so no concat / lane-offset slicing is needed).
    gxe = [[jnp.dot(h_f, int_we_ref[c, g, 0], preferred_element_type=f32)
            + jnp.dot(h_b, int_we_ref[c, g, 1], preferred_element_type=f32)
            + int_bi_ref[c, g]
            for g in range(3)] for c in range(3)]             # each [W, U]
    wu = [[int_wu_ref[c, g] for g in range(3)] for c in range(2)]
    whh = [[int_wh_ref[c, g] for g in range(3)] for c in range(3)]
    bhh = [[int_bh_ref[c, g] for g in range(3)] for c in range(3)]

    def gru_update(c, T, x_in, h):
        # x_in: optional [1, U] extra input (adr vec for GRUS, spk vec for GRUA)
        gx_r = gxe[c][0][T:T + 1]
        gx_z = gxe[c][1][T:T + 1]
        gx_n = gxe[c][2][T:T + 1]
        if x_in is not None:
            gx_r = gx_r + jnp.dot(x_in, wu[c][0], preferred_element_type=f32)
            gx_z = gx_z + jnp.dot(x_in, wu[c][1], preferred_element_type=f32)
            gx_n = gx_n + jnp.dot(x_in, wu[c][2], preferred_element_type=f32)
        gh_r = jnp.dot(h, whh[c][0], preferred_element_type=f32) + bhh[c][0]
        gh_z = jnp.dot(h, whh[c][1], preferred_element_type=f32) + bhh[c][1]
        gh_n = jnp.dot(h, whh[c][2], preferred_element_type=f32) + bhh[c][2]
        r = jax.nn.sigmoid(gx_r + gh_r)
        z = jax.nn.sigmoid(gx_z + gh_z)
        n = jnp.tanh(gx_n + r * gh_n)
        return (1.0 - z) * n + z * h

    A = jnp.zeros((R, U), f32)                # role-state matrix, kept flat [R, U]
    for T in range(W):                        # fully unrolled context loop
        ms = m_spk_ref[T]                     # [R, 1] one-hot speaker column
        ma = m_adr_ref[T]                     # [R, 1] one-hot addressee column
        spk = jnp.dot(sel_spk_ref[T], A, preferred_element_type=f32)   # [1, U]
        adr = jnp.dot(sel_adr_ref[T], A, preferred_element_type=f32)   # [1, U]
        new_spk = gru_update(0, T, adr, spk)  # GRUS
        new_adr = gru_update(1, T, spk, adr)  # GRUA (uses pre-update speaker vec)
        new_oth = gru_update(2, T, None, A)   # GRUO applied to every role vector
        A = ms * new_spk + ma * new_adr + (1.0 - ms - ma) * new_oth
    a_ref[...] = A

    # ---------------- Stage 3: select_way == 1 head --------------------------------
    A_res = jnp.dot(sel_res_ref[...], A, preferred_element_type=f32)    # [1, U]
    p_tgt = jnp.dot(sel_tgt_ref[...], A, preferred_element_type=f32)    # [R-1, U]

    # Conv1d(k=2, s=2 over the 2H axis, channels = windows) + fc1, pre-folded into
    # wcf1 [W, 2(fw/bw half), H, U] and bcf1 [1, U] (see pack_params).
    fc1 = bcf1_ref[...]
    for T in range(W):
        fc1 = fc1 + jnp.dot(h_f[T:T + 1], wcf1_ref[T, 0], preferred_element_type=f32)
        fc1 = fc1 + jnp.dot(h_b[T:T + 1], wcf1_ref[T, 1], preferred_element_type=f32)
    fc1 = jnp.tanh(fc1)                                                 # [1, U]

    fc2 = jnp.tanh(jnp.dot(A_res, fc2w_ref[0], preferred_element_type=f32)
                   + jnp.dot(fc1, fc2w_ref[1], preferred_element_type=f32)
                   + fc2b_ref[...])                                     # [1, U]

    bmm = jnp.sum(p_tgt * fc2, axis=-1, keepdims=True)                  # [R-1, 1]
    out_ref[...] = (jnp.dot(fc3w_ref[...], bmm, preferred_element_type=f32)
                    + fc3b_ref[...])                                    # [R-1, 1]


# ---------------------------------------------------------------------------
# Wrapper: host-side glue (embedding gather, one-hot / selection-matrix prep)
# ---------------------------------------------------------------------------
@jax.jit
def adr_selection_forward(params, dig, dig_sent_length, dig_users, responder):
    f32 = jnp.float32
    emb = jnp.take(params['embedding'], dig, axis=0)                    # [B, W, L, E]
    emb_t = emb.transpose(0, 2, 1, 3).reshape(B, LW, E)                 # row = t*W + w
    mask = (jnp.arange(L)[None, :, None] < dig_sent_length[:, None, :]
            ).astype(f32).reshape(B, LW, 1)

    spk_oh = jax.nn.one_hot(dig_users[:, :, 0], R, dtype=f32)           # [B, W, R]
    adr_oh = jax.nn.one_hot(dig_users[:, :, 1], R, dtype=f32)
    sel_spk = spk_oh[:, :, None, :]                                     # [B, W, 1, R]
    sel_adr = adr_oh[:, :, None, :]
    m_spk = spk_oh[:, :, :, None]                                       # [B, W, R, 1]
    m_adr = adr_oh[:, :, :, None]

    sel_res = jax.nn.one_hot(responder, R, dtype=f32)[:, None, :]       # [B, 1, R]
    j = jnp.arange(R - 1)
    tgt_idx = j[None, :] + (j[None, :] >= responder[:, None]).astype(jnp.int32)
    sel_tgt = jax.nn.one_hot(tgt_idx, R, dtype=f32)                     # [B, R-1, R]

    def full(shape):
        return pl.BlockSpec(shape, lambda b, _s=shape: (0,) * len(_s))

    def per_b(shape):
        return pl.BlockSpec((None,) + shape, lambda b, _s=shape: (b,) + (0,) * len(_s))

    out_col, A = pl.pallas_call(
        adr_selection_kernel,
        grid=(B,),
        in_specs=[
            per_b((LW, E)), per_b((LW, 1)),
            per_b((W, 1, R)), per_b((W, 1, R)),
            per_b((W, R, 1)), per_b((W, R, 1)),
            per_b((1, R)), per_b((R - 1, R)),
            full((2, 3, E, H)), full((2, 3, H, H)),
            full((2, 3, 1, H)), full((2, 3, 1, H)),
            full((3, 3, 2, H, U)), full((2, 3, U, U)), full((3, 3, U, U)),
            full((3, 3, 1, U)), full((3, 3, 1, U)),
            full((W, 2, H, U)), full((1, U)),
            full((2, U, U)), full((1, U)),
            full((R - 1, R - 1)), full((R - 1, 1)),
        ],
        out_specs=(per_b((R - 1, 1)), per_b((R, U))),
        out_shape=(jax.ShapeDtypeStruct((B, R - 1, 1), f32),
                   jax.ShapeDtypeStruct((B, R, U), f32)),
        compiler_params=pltpu.CompilerParams(dimension_semantics=("parallel",)),
    )(emb_t, mask, sel_spk, sel_adr, m_spk, m_adr, sel_res, sel_tgt,
      params['enc_wi'], params['enc_wh'], params['enc_bi'], params['enc_bh'],
      params['int_we'], params['int_wu'], params['int_wh'],
      params['int_bi'], params['int_bh'],
      params['w_cf1'], params['b_cf1'], params['fc2_w'], params['fc2_b'],
      params['fc3_w'], params['fc3_b'])
    return out_col.reshape(B, R - 1), A


# ---------------------------------------------------------------------------
# Parameters: raw (PyTorch-style layouts) + one-time packing into kernel layout
# ---------------------------------------------------------------------------
def init_raw_params(key):
    ks = iter(jax.random.split(key, 40))

    def w(shape, scale=0.1):
        return (scale * jax.random.normal(next(ks), shape)).astype(jnp.float32)

    raw = {'embedding': w((V, E), 1.0)}
    # encoder bi-GRU, PyTorch layout [3H, in], gate order r, z, n
    for d in ('f', 'b'):
        raw[f'enc_w_ih_{d}'] = w((3 * H, E))
        raw[f'enc_w_hh_{d}'] = w((3 * H, H))
        raw[f'enc_b_ih_{d}'] = w((3 * H,))
        raw[f'enc_b_hh_{d}'] = w((3 * H,))
    # interaction GRU cells: speaker (input [enc; adr]), addressee ([enc; spk]), others (enc)
    raw['spk_w_ih'] = w((3 * U, 2 * H + U)); raw['spk_w_hh'] = w((3 * U, U))
    raw['spk_b_ih'] = w((3 * U,));           raw['spk_b_hh'] = w((3 * U,))
    raw['adr_w_ih'] = w((3 * U, 2 * H + U)); raw['adr_w_hh'] = w((3 * U, U))
    raw['adr_b_ih'] = w((3 * U,));           raw['adr_b_hh'] = w((3 * U,))
    raw['oth_w_ih'] = w((3 * U, 2 * H));     raw['oth_w_hh'] = w((3 * U, U))
    raw['oth_b_ih'] = w((3 * U,));           raw['oth_b_hh'] = w((3 * U,))
    # select_way == 1 head (torch layouts)
    raw['conv_w'] = w((W, W, 2)); raw['conv_b'] = w((W,))
    raw['fc1_w'] = w((U, W * H)); raw['fc1_b'] = w((U,))
    raw['fc2_w'] = w((U, 2 * U)); raw['fc2_b'] = w((U,))
    raw['fc3_w'] = w((R - 1, R - 1)); raw['fc3_b'] = w((R - 1,))
    return raw


def pack_params(raw):
    """One-time repack into the kernel's per-gate / pre-split / pre-fused layouts."""
    def gates_t(wm):                 # [3X, In] -> [3, In, X] (right-multiply, per gate)
        x = wm.shape[0] // 3
        return jnp.stack([wm[g * x:(g + 1) * x, :].T for g in range(3)])

    def gates_b(bv):                 # [3X] -> [3, 1, X]
        x = bv.shape[0] // 3
        return jnp.stack([bv[g * x:(g + 1) * x][None, :] for g in range(3)])

    p = {'embedding': raw['embedding']}

    p['enc_wi'] = jnp.stack([gates_t(raw['enc_w_ih_f']), gates_t(raw['enc_w_ih_b'])])
    p['enc_wh'] = jnp.stack([gates_t(raw['enc_w_hh_f']), gates_t(raw['enc_w_hh_b'])])
    p['enc_bi'] = jnp.stack([gates_b(raw['enc_b_ih_f']), gates_b(raw['enc_b_ih_b'])])
    p['enc_bh'] = jnp.stack([gates_b(raw['enc_b_hh_f']), gates_b(raw['enc_b_hh_b'])])

    def enc_halves(wg):              # [3, 2H, U] -> [3, 2, H, U] (fw / bw halves)
        return jnp.stack([wg[:, :H, :], wg[:, H:, :]], axis=1)

    we, wu, whh, bi, bh = [], [], [], [], []
    for name, has_u in (('spk', True), ('adr', True), ('oth', False)):
        w_ih = raw[f'{name}_w_ih']
        we.append(enc_halves(gates_t(w_ih[:, :2 * H])))
        if has_u:
            wu.append(gates_t(w_ih[:, 2 * H:]))
        whh.append(gates_t(raw[f'{name}_w_hh']))
        bi.append(gates_b(raw[f'{name}_b_ih']))
        bh.append(gates_b(raw[f'{name}_b_hh']))
    p['int_we'] = jnp.stack(we)      # [3, 3, 2, H, U]
    p['int_wu'] = jnp.stack(wu)      # [2, 3, U, U]
    p['int_wh'] = jnp.stack(whh)     # [3, 3, U, U]
    p['int_bi'] = jnp.stack(bi)      # [3, 3, 1, U]
    p['int_bh'] = jnp.stack(bh)      # [3, 3, 1, U]

    # Fold Conv1d(k=2, s=2 over the 2H axis, channels = windows) into fc1:
    #   fc1[u] = f1b[u] + sum_co,j f1w[u, co*H+j] * conv_b[co]
    #            + sum_ci,f enc[ci, f] * Wcf[ci, f, u],  Wcf[ci, 2j+k, u] = sum_co f1w3[u,co,j]*cw[co,ci,k]
    f1w3 = raw['fc1_w'].reshape(U, W, H)                              # [u, c_out, j]
    wcf = jnp.einsum('ucj,cik->ijku', f1w3, raw['conv_w']).reshape(W, 2 * H, U)
    p['w_cf1'] = jnp.stack([wcf[:, :H, :], wcf[:, H:, :]], axis=1)    # [W, 2, H, U]
    p['b_cf1'] = (raw['fc1_b'] + jnp.einsum('ucj,c->u', f1w3, raw['conv_b']))[None, :]

    # fc2 on concat([A_res, fc1]) -> split halves, transposed for right-multiply
    p['fc2_w'] = jnp.stack([raw['fc2_w'][:, :U].T, raw['fc2_w'][:, U:].T])   # [2, U, U]
    p['fc2_b'] = raw['fc2_b'][None, :]
    p['fc3_w'] = raw['fc3_w']            # [R-1, R-1], applied as W @ bmm_col
    p['fc3_b'] = raw['fc3_b'][:, None]   # [R-1, 1]
    return p


# ---------------------------------------------------------------------------
# Pure-JAX reference (same semantics), used only to validate the fused kernel
# ---------------------------------------------------------------------------
def _ref_gru_cell(x, h, w_ih, w_hh, b_ih, b_hh, hid):
    gx = x @ w_ih.T + b_ih
    gh = h @ w_hh.T + b_hh
    r = jax.nn.sigmoid(gx[:, :hid] + gh[:, :hid])
    z = jax.nn.sigmoid(gx[:, hid:2 * hid] + gh[:, hid:2 * hid])
    n = jnp.tanh(gx[:, 2 * hid:] + r * gh[:, 2 * hid:])
    return (1.0 - z) * n + z * h


def reference_forward(raw, dig, dig_sent_length, dig_users, responder):
    x_all = jnp.take(raw['embedding'], dig, axis=0).reshape(B * W, L, E)
    lens = dig_sent_length.reshape(B * W)
    h_f = jnp.zeros((B * W, H), jnp.float32)
    h_b = jnp.zeros((B * W, H), jnp.float32)
    for t in range(L):
        m = (t < lens).astype(jnp.float32)[:, None]
        h_new = _ref_gru_cell(x_all[:, t], h_f, raw['enc_w_ih_f'], raw['enc_w_hh_f'],
                              raw['enc_b_ih_f'], raw['enc_b_hh_f'], H)
        h_f = m * h_new + (1.0 - m) * h_f
    for t in range(L - 1, -1, -1):
        m = (t < lens).astype(jnp.float32)[:, None]
        h_new = _ref_gru_cell(x_all[:, t], h_b, raw['enc_w_ih_b'], raw['enc_w_hh_b'],
                              raw['enc_b_ih_b'], raw['enc_b_hh_b'], H)
        h_b = m * h_new + (1.0 - m) * h_b
    enc = jnp.concatenate([h_f, h_b], axis=-1).reshape(B, W, 2 * H)

    A = jnp.zeros((B, R, U), jnp.float32)
    for T in range(W):
        e = enc[:, T, :]
        s_oh = jax.nn.one_hot(dig_users[:, T, 0], R, dtype=jnp.float32)
        a_oh = jax.nn.one_hot(dig_users[:, T, 1], R, dtype=jnp.float32)
        spk = jnp.einsum('br,bru->bu', s_oh, A)
        adr = jnp.einsum('br,bru->bu', a_oh, A)
        new_spk = _ref_gru_cell(jnp.concatenate([e, adr], -1), spk,
                                raw['spk_w_ih'], raw['spk_w_hh'],
                                raw['spk_b_ih'], raw['spk_b_hh'], U)
        new_adr = _ref_gru_cell(jnp.concatenate([e, spk], -1), adr,
                                raw['adr_w_ih'], raw['adr_w_hh'],
                                raw['adr_b_ih'], raw['adr_b_hh'], U)
        e_b = jnp.broadcast_to(e[:, None, :], (B, R, 2 * H)).reshape(B * R, 2 * H)
        new_oth = _ref_gru_cell(e_b, A.reshape(B * R, U),
                                raw['oth_w_ih'], raw['oth_w_hh'],
                                raw['oth_b_ih'], raw['oth_b_hh'], U).reshape(B, R, U)
        oth = 1.0 - s_oh - a_oh
        A = (s_oh[..., None] * new_spk[:, None, :]
             + a_oh[..., None] * new_adr[:, None, :]
             + oth[..., None] * new_oth)

    resp_oh = jax.nn.one_hot(responder, R, dtype=jnp.float32)
    A_res = jnp.einsum('br,bru->bu', resp_oh, A)
    j = jnp.arange(R - 1)
    tgt_idx = j[None, :] + (j[None, :] >= responder[:, None]).astype(jnp.int32)
    p_tgt = jnp.take_along_axis(A, tgt_idx[..., None], axis=1)

    xr = enc.reshape(B, W, H, 2)                                  # x[..., 2j + k]
    conv = jnp.einsum('oik,bijk->boj', raw['conv_w'], xr) + raw['conv_b'][None, :, None]
    fc1 = jnp.tanh(conv.reshape(B, W * H) @ raw['fc1_w'].T + raw['fc1_b'])
    fc2 = jnp.tanh(jnp.concatenate([A_res, fc1], -1) @ raw['fc2_w'].T + raw['fc2_b'])
    bmm = jnp.einsum('bju,bu->bj', p_tgt, fc2)
    out = bmm @ raw['fc3_w'].T + raw['fc3_b']
    return out, A


if __name__ == "__main__":
    key = jax.random.PRNGKey(0)
    kp, kd, kl, ks, ka, kr = jax.random.split(key, 6)
    raw = init_raw_params(kp)
    params = pack_params(raw)

    dig = jax.random.randint(kd, (B, W, L), 0, V)                 # [batch, window, seq_len]
    dig_sent_length = jax.random.randint(kl, (B, W), 1, L + 1)    # valid lengths >= 1
    spk = jax.random.randint(ks, (B, W), 0, R)
    adr = (spk + jax.random.randint(ka, (B, W), 1, R)) % R        # distinct from speaker
    dig_users = jnp.stack([spk, adr], axis=-1)                    # [batch, window, 2]
    responder = jax.random.randint(kr, (B,), 0, R)

    output, A = adr_selection_forward(params, dig, dig_sent_length, dig_users, responder)
    jax.block_until_ready((output, A))

    assert output.shape == (B, R - 1) and A.shape == (B, R, U)
    assert bool(jnp.all(jnp.isfinite(output))) and bool(jnp.all(jnp.isfinite(A)))

    with jax.default_matmul_precision("float32"):
        ref_out, ref_A = reference_forward(raw, dig, dig_sent_length, dig_users, responder)
    max_err = max(float(jnp.max(jnp.abs(output - ref_out))),
                  float(jnp.max(jnp.abs(A - ref_A))))
    assert max_err < 5e-3, f"kernel / pure-JAX reference mismatch: {max_err}"
    print("KERNEL_OK")
</pallas_src>

<mosaic_0001>
module attributes {stable_mosaic.version = 11 : i64} {
  func.func @adr_selection_kernel(%arg0: i32, %arg1: memref<1x32x16xf32, #tpu.memory_space<vmem>>, %arg2: memref<1x32x1xf32, #tpu.memory_space<vmem>>, %arg3: memref<1x4x1x4xf32, #tpu.memory_space<vmem>>, %arg4: memref<1x4x1x4xf32, #tpu.memory_space<vmem>>, %arg5: memref<1x4x4x1xf32, #tpu.memory_space<vmem>>, %arg6: memref<1x4x4x1xf32, #tpu.memory_space<vmem>>, %arg7: memref<1x1x4xf32, #tpu.memory_space<vmem>>, %arg8: memref<1x3x4xf32, #tpu.memory_space<vmem>>, %arg9: memref<2x3x16x16xf32, #tpu.memory_space<vmem>>, %arg10: memref<2x3x16x16xf32, #tpu.memory_space<vmem>>, %arg11: memref<2x3x1x16xf32, #tpu.memory_space<vmem>>, %arg12: memref<2x3x1x16xf32, #tpu.memory_space<vmem>>, %arg13: memref<3x3x2x16x32xf32, #tpu.memory_space<vmem>>, %arg14: memref<2x3x32x32xf32, #tpu.memory_space<vmem>>, %arg15: memref<3x3x32x32xf32, #tpu.memory_space<vmem>>, %arg16: memref<3x3x1x32xf32, #tpu.memory_space<vmem>>, %arg17: memref<3x3x1x32xf32, #tpu.memory_space<vmem>>, %arg18: memref<4x2x16x32xf32, #tpu.memory_space<vmem>>, %arg19: memref<1x32xf32, #tpu.memory_space<vmem>>, %arg20: memref<2x32x32xf32, #tpu.memory_space<vmem>>, %arg21: memref<1x32xf32, #tpu.memory_space<vmem>>, %arg22: memref<3x3xf32, #tpu.memory_space<vmem>>, %arg23: memref<3x1xf32, #tpu.memory_space<vmem>>, %arg24: memref<1x3x1xf32, #tpu.memory_space<vmem>>, %arg25: memref<1x4x32xf32, #tpu.memory_space<vmem>>) attributes {dimension_semantics = [#tpu.dimension_semantics<parallel>], iteration_bounds = array<i64: 2>, scalar_prefetch = 0 : i64, scratch_operands = 0 : i64, tpu.core_type = #tpu.core_type<tc>, window_params = [{transform_indices = @transform_0, window_bounds = array<i64: 1, 32, 16>}, {transform_indices = @transform_1, window_bounds = array<i64: 1, 32, 1>}, {transform_indices = @transform_2, window_bounds = array<i64: 1, 4, 1, 4>}, {transform_indices = @transform_3, window_bounds = array<i64: 1, 4, 1, 4>}, {transform_indices = @transform_4, window_bounds = array<i64: 1, 4, 4, 1>}, {transform_indices = @transform_5, window_bounds = array<i64: 1, 4, 4, 1>}, {transform_indices = @transform_6, window_bounds = array<i64: 1, 1, 4>}, {transform_indices = @transform_7, window_bounds = array<i64: 1, 3, 4>}, {pipeline_mode = #tpu.pipeline_mode<synchronous>, transform_indices = @transform_8, window_bounds = array<i64: 2, 3, 16, 16>}, {pipeline_mode = #tpu.pipeline_mode<synchronous>, transform_indices = @transform_9, window_bounds = array<i64: 2, 3, 16, 16>}, {pipeline_mode = #tpu.pipeline_mode<synchronous>, transform_indices = @transform_10, window_bounds = array<i64: 2, 3, 1, 16>}, {pipeline_mode = #tpu.pipeline_mode<synchronous>, transform_indices = @transform_11, window_bounds = array<i64: 2, 3, 1, 16>}, {pipeline_mode = #tpu.pipeline_mode<synchronous>, transform_indices = @transform_12, window_bounds = array<i64: 3, 3, 2, 16, 32>}, {pipeline_mode = #tpu.pipeline_mode<synchronous>, transform_indices = @transform_13, window_bounds = array<i64: 2, 3, 32, 32>}, {pipeline_mode = #tpu.pipeline_mode<synchronous>, transform_indices = @transform_14, window_bounds = array<i64: 3, 3, 32, 32>}, {pipeline_mode = #tpu.pipeline_mode<synchronous>, transform_indices = @transform_15, window_bounds = array<i64: 3, 3, 1, 32>}, {pipeline_mode = #tpu.pipeline_mode<synchronous>, transform_indices = @transform_16, window_bounds = array<i64: 3, 3, 1, 32>}, {pipeline_mode = #tpu.pipeline_mode<synchronous>, transform_indices = @transform_17, window_bounds = array<i64: 4, 2, 16, 32>}, {pipeline_mode = #tpu.pipeline_mode<synchronous>, transform_indices = @transform_18, window_bounds = array<i64: 1, 32>}, {pipeline_mode = #tpu.pipeline_mode<synchronous>, transform_indices = @transform_19, window_bounds = array<i64: 2, 32, 32>}, {pipeline_mode = #tpu.pipeline_mode<synchronous>, transform_indices = @transform_20, window_bounds = array<i64: 1, 32>}, {pipeline_mode = #tpu.pipeline_mode<synchronous>, transform_indices = @transform_21, window_bounds = array<i64: 3, 3>}, {pipeline_mode = #tpu.pipeline_mode<synchronous>, transform_indices = @transform_22, window_bounds = array<i64: 3, 1>}, {transform_indices = @transform_23, window_bounds = array<i64: 1, 3, 1>}, {transform_indices = @transform_24, window_bounds = array<i64: 1, 4, 32>}]} {
    %c0 = arith.constant 0 : index
    %c0_0 = arith.constant 0 : index
    %c0_1 = arith.constant 0 : index
    %0 = vector.load %arg1[%c0, %c0_0, %c0_1] : memref<1x32x16xf32, #tpu.memory_space<vmem>>, vector<1x32x16xf32>
    %1 = vector.shape_cast %0 : vector<1x32x16xf32> to vector<32x16xf32>
    %c0_2 = arith.constant 0 : index
    %c0_3 = arith.constant 0 : index
    %c0_4 = arith.constant 0 : index
    %2 = vector.load %arg2[%c0_2, %c0_3, %c0_4] : memref<1x32x1xf32, #tpu.memory_space<vmem>>, vector<1x32x1xf32>
    %3 = vector.shape_cast %2 : vector<1x32x1xf32> to vector<32x1xf32>
    %c0_5 = arith.constant 0 : index
    %c0_6 = arith.constant 0 : index
    %c0_7 = arith.constant 0 : index
    %c0_8 = arith.constant 0 : index
    %4 = vector.load %arg9[%c0_5, %c0_6, %c0_7, %c0_8] : memref<2x3x16x16xf32, #tpu.memory_space<vmem>>, vector<1x1x16x16xf32>
    %5 = vector.shape_cast %4 : vector<1x1x16x16xf32> to vector<16x16xf32>
    %cst = arith.constant dense<0.000000e+00> : vector<32x16xf32>
    %6 = tpu.matmul %1, %5, %cst {dimension_numbers = #tpu.dot_dimension_numbers<[1], [0], [0], [1], [0, 0, 1, 1], [], []>} : vector<32x16xf32>, vector<16x16xf32>, vector<32x16xf32> -> vector<32x16xf32>
    %c0_9 = arith.constant 0 : index
    %c0_10 = arith.constant 0 : index
    %c0_11 = arith.constant 0 : index
    %c0_12 = arith.constant 0 : index
    %7 = vector.load %arg11[%c0_9, %c0_10, %c0_11, %c0_12] : memref<2x3x1x16xf32, #tpu.memory_space<vmem>>, vector<1x1x1x16xf32>
    %8 = vector.shape_cast %7 : vector<1x1x1x16xf32> to vector<1x16xf32>
    %9 = vector.broadcast %8 : vector<1x16xf32> to vector<32x16xf32>
    %10 = arith.addf %6, %9 : vector<32x16xf32>
    %c0_13 = arith.constant 0 : index
    %c1 = arith.constant 1 : index
    %c0_14 = arith.constant 0 : index
    %c0_15 = arith.constant 0 : index
    %11 = vector.load %arg9[%c0_13, %c1, %c0_14, %c0_15] : memref<2x3x16x16xf32, #tpu.memory_space<vmem>>, vector<1x1x16x16xf32>
    %12 = vector.shape_cast %11 : vector<1x1x16x16xf32> to vector<16x16xf32>
    %cst_16 = arith.constant dense<0.000000e+00> : vector<32x16xf32>
    %13 = tpu.matmul %1, %12, %cst_16 {dimension_numbers = #tpu.dot_dimension_numbers<[1], [0], [0], [1], [0, 0, 1, 1], [], []>} : vector<32x16xf32>, vector<16x16xf32>, vector<32x16xf32> -> vector<32x16xf32>
    %c0_17 = arith.constant 0 : index
    %c1_18 = arith.constant 1 : index
    %c0_19 = arith.constant 0 : index
    %c0_20 = arith.constant 0 : index
    %14 = vector.load %arg11[%c0_17, %c1_18, %c0_19, %c0_20] : memref<2x3x1x16xf32, #tpu.memory_space<vmem>>, vector<1x1x1x16xf32>
    %15 = vector.shape_cast %14 : vector<1x1x1x16xf32> to vector<1x16xf32>
    %16 = vector.broadcast %15 : vector<1x16xf32> to vector<32x16xf32>
    %17 = arith.addf %13, %16 : vector<32x16xf32>
    %c0_21 = arith.constant 0 : index
    %c2 = arith.constant 2 : index
    %c0_22 = arith.constant 0 : index
    %c0_23 = arith.constant 0 : index
    %18 = vector.load %arg9[%c0_21, %c2, %c0_22, %c0_23] : memref<2x3x16x16xf32, #tpu.memory_space<vmem>>, vector<1x1x16x16xf32>
    %19 = vector.shape_cast %18 : vector<1x1x16x16xf32> to vector<16x16xf32>
    %cst_24 = arith.constant dense<0.000000e+00> : vector<32x16xf32>
    %20 = tpu.matmul %1, %19, %cst_24 {dimension_numbers = #tpu.dot_dimension_numbers<[1], [0], [0], [1], [0, 0, 1, 1], [], []>} : vector<32x16xf32>, vector<16x16xf32>, vector<32x16xf32> -> vector<32x16xf32>
    %c0_25 = arith.constant 0 : index
    %c2_26 = arith.constant 2 : index
    %c0_27 = arith.constant 0 : index
    %c0_28 = arith.constant 0 : index
    %21 = vector.load %arg11[%c0_25, %c2_26, %c0_27, %c0_28] : memref<2x3x1x16xf32, #tpu.memory_space<vmem>>, vector<1x1x1x16xf32>
    %22 = vector.shape_cast %21 : vector<1x1x1x16xf32> to vector<1x16xf32>
    %23 = vector.broadcast %22 : vector<1x16xf32> to vector<32x16xf32>
    %24 = arith.addf %20, %23 : vector<32x16xf32>
    %c1_29 = arith.constant 1 : index
    %c0_30 = arith.constant 0 : index
    %c0_31 = arith.constant 0 : index
    %c0_32 = arith.constant 0 : index
    %25 = vector.load %arg9[%c1_29, %c0_30, %c0_31, %c0_32] : memref<2x3x16x16xf32, #tpu.memory_space<vmem>>, vector<1x1x16x16xf32>
    %26 = vector.shape_cast %25 : vector<1x1x16x16xf32> to vector<16x16xf32>
    %cst_33 = arith.constant dense<0.000000e+00> : vector<32x16xf32>
    %27 = tpu.matmul %1, %26, %cst_33 {dimension_numbers = #tpu.dot_dimension_numbers<[1], [0], [0], [1], [0, 0, 1, 1], [], []>} : vector<32x16xf32>, vector<16x16xf32>, vector<32x16xf32> -> vector<32x16xf32>
    %c1_34 = arith.constant 1 : index
    %c0_35 = arith.constant 0 : index
    %c0_36 = arith.constant 0 : index
    %c0_37 = arith.constant 0 : index
    %28 = vector.load %arg11[%c1_34, %c0_35, %c0_36, %c0_37] : memref<2x3x1x16xf32, #tpu.memory_space<vmem>>, vector<1x1x1x16xf32>
    %29 = vector.shape_cast %28 : vector<1x1x1x16xf32> to vector<1x16xf32>
    %30 = vector.broadcast %29 : vector<1x16xf32> to vector<32x16xf32>
    %31 = arith.addf %27, %30 : vector<32x16xf32>
    %c1_38 = arith.constant 1 : index
    %c1_39 = arith.constant 1 : index
    %c0_40 = arith.constant 0 : index
    %c0_41 = arith.constant 0 : index
    %32 = vector.load %arg9[%c1_38, %c1_39, %c0_40, %c0_41] : memref<2x3x16x16xf32, #tpu.memory_space<vmem>>, vector<1x1x16x16xf32>
    %33 = vector.shape_cast %32 : vector<1x1x16x16xf32> to vector<16x16xf32>
    %cst_42 = arith.constant dense<0.000000e+00> : vector<32x16xf32>
    %34 = tpu.matmul %1, %33, %cst_42 {dimension_numbers = #tpu.dot_dimension_numbers<[1], [0], [0], [1], [0, 0, 1, 1], [], []>} : vector<32x16xf32>, vector<16x16xf32>, vector<32x16xf32> -> vector<32x16xf32>
    %c1_43 = arith.constant 1 : index
    %c1_44 = arith.constant 1 : index
    %c0_45 = arith.constant 0 : index
    %c0_46 = arith.constant 0 : index
    %35 = vector.load %arg11[%c1_43, %c1_44, %c0_45, %c0_46] : memref<2x3x1x16xf32, #tpu.memory_space<vmem>>, vector<1x1x1x16xf32>
    %36 = vector.shape_cast %35 : vector<1x1x1x16xf32> to vector<1x16xf32>
    %37 = vector.broadcast %36 : vector<1x16xf32> to vector<32x16xf32>
    %38 = arith.addf %34, %37 : vector<32x16xf32>
    %c1_47 = arith.constant 1 : index
    %c2_48 = arith.constant 2 : index
    %c0_49 = arith.constant 0 : index
    %c0_50 = arith.constant 0 : index
    %39 = vector.load %arg9[%c1_47, %c2_48, %c0_49, %c0_50] : memref<2x3x16x16xf32, #tpu.memory_space<vmem>>, vector<1x1x16x16xf32>
    %40 = vector.shape_cast %39 : vector<1x1x16x16xf32> to vector<16x16xf32>
    %cst_51 = arith.constant dense<0.000000e+00> : vector<32x16xf32>
    %41 = tpu.matmul %1, %40, %cst_51 {dimension_numbers = #tpu.dot_dimension_numbers<[1], [0], [0], [1], [0, 0, 1, 1], [], []>} : vector<32x16xf32>, vector<16x16xf32>, vector<32x16xf32> -> vector<32x16xf32>
    %c1_52 = arith.constant 1 : index
    %c2_53 = arith.constant 2 : index
    %c0_54 = arith.constant 0 : index
    %c0_55 = arith.constant 0 : index
    %42 = vector.load %arg11[%c1_52, %c2_53, %c0_54, %c0_55] : memref<2x3x1x16xf32, #tpu.memory_space<vmem>>, vector<1x1x1x16xf32>
    %43 = vector.shape_cast %42 : vector<1x1x1x16xf32> to vector<1x16xf32>
    %44 = vector.broadcast %43 : vector<1x16xf32> to vector<32x16xf32>
    %45 = arith.addf %41, %44 : vector<32x16xf32>
    %c0_56 = arith.constant 0 : index
    %c0_57 = arith.constant 0 : index
    %c0_58 = arith.constant 0 : index
    %c0_59 = arith.constant 0 : index
    %46 = vector.load %arg10[%c0_56, %c0_57, %c0_58, %c0_59] : memref<2x3x16x16xf32, #tpu.memory_space<vmem>>, vector<1x1x16x16xf32>
    %47 = vector.shape_cast %46 : vector<1x1x16x16xf32> to vector<16x16xf32>
    %c0_60 = arith.constant 0 : index
    %c1_61 = arith.constant 1 : index
    %c0_62 = arith.constant 0 : index
    %c0_63 = arith.constant 0 : index
    %48 = vector.load %arg10[%c0_60, %c1_61, %c0_62, %c0_63] : memref<2x3x16x16xf32, #tpu.memory_space<vmem>>, vector<1x1x16x16xf32>
    %49 = vector.shape_cast %48 : vector<1x1x16x16xf32> to vector<16x16xf32>
    %c0_64 = arith.constant 0 : index
    %c2_65 = arith.constant 2 : index
    %c0_66 = arith.constant 0 : index
    %c0_67 = arith.constant 0 : index
    %50 = vector.load %arg10[%c0_64, %c2_65, %c0_66, %c0_67] : memref<2x3x16x16xf32, #tpu.memory_space<vmem>>, vector<1x1x16x16xf32>
    %51 = vector.shape_cast %50 : vector<1x1x16x16xf32> to vector<16x16xf32>
    %c1_68 = arith.constant 1 : index
    %c0_69 = arith.constant 0 : index
    %c0_70 = arith.constant 0 : index
    %c0_71 = arith.constant 0 : index
    %52 = vector.load %arg10[%c1_68, %c0_69, %c0_70, %c0_71] : memref<2x3x16x16xf32, #tpu.memory_space<vmem>>, vector<1x1x16x16xf32>
    %53 = vector.shape_cast %52 : vector<1x1x16x16xf32> to vector<16x16xf32>
    %c1_72 = arith.constant 1 : index
    %c1_73 = arith.constant 1 : index
    %c0_74 = arith.constant 0 : index
    %c0_75 = arith.constant 0 : index
    %54 = vector.load %arg10[%c1_72, %c1_73, %c0_74, %c0_75] : memref<2x3x16x16xf32, #tpu.memory_space<vmem>>, vector<1x1x16x16xf32>
    %55 = vector.shape_cast %54 : vector<1x1x16x16xf32> to vector<16x16xf32>
    %c1_76 = arith.constant 1 : index
    %c2_77 = arith.constant 2 : index
    %c0_78 = arith.constant 0 : index
    %c0_79 = arith.constant 0 : index
    %56 = vector.load %arg10[%c1_76, %c2_77, %c0_78, %c0_79] : memref<2x3x16x16xf32, #tpu.memory_space<vmem>>, vector<1x1x16x16xf32>
    %57 = vector.shape_cast %56 : vector<1x1x16x16xf32> to vector<16x16xf32>
    %c0_80 = arith.constant 0 : index
    %c0_81 = arith.constant 0 : index
    %c0_82 = arith.constant 0 : index
    %c0_83 = arith.constant 0 : index
    %58 = vector.load %arg12[%c0_80, %c0_81, %c0_82, %c0_83] : memref<2x3x1x16xf32, #tpu.memory_space<vmem>>, vector<1x1x1x16xf32>
    %59 = vector.shape_cast %58 : vector<1x1x1x16xf32> to vector<1x16xf32>
    %c0_84 = arith.constant 0 : index
    %c1_85 = arith.constant 1 : index
    %c0_86 = arith.constant 0 : index
    %c0_87 = arith.constant 0 : index
    %60 = vector.load %arg12[%c0_84, %c1_85, %c0_86, %c0_87] : memref<2x3x1x16xf32, #tpu.memory_space<vmem>>, vector<1x1x1x16xf32>
    %61 = vector.shape_cast %60 : vector<1x1x1x16xf32> to vector<1x16xf32>
    %c0_88 = arith.constant 0 : index
    %c2_89 = arith.constant 2 : index
    %c0_90 = arith.constant 0 : index
    %c0_91 = arith.constant 0 : index
    %62 = vector.load %arg12[%c0_88, %c2_89, %c0_90, %c0_91] : memref<2x3x1x16xf32, #tpu.memory_space<vmem>>, vector<1x1x1x16xf32>
    %63 = vector.shape_cast %62 : vector<1x1x1x16xf32> to vector<1x16xf32>
    %c1_92 = arith.constant 1 : index
    %c0_93 = arith.constant 0 : index
    %c0_94 = arith.constant 0 : index
    %c0_95 = arith.constant 0 : index
    %64 = vector.load %arg12[%c1_92, %c0_93, %c0_94, %c0_95] : memref<2x3x1x16xf32, #tpu.memory_space<vmem>>, vector<1x1x1x16xf32>
    %65 = vector.shape_cast %64 : vector<1x1x1x16xf32> to vector<1x16xf32>
    %c1_96 = arith.constant 1 : index
    %c1_97 = arith.constant 1 : index
    %c0_98 = arith.constant 0 : index
    %c0_99 = arith.constant 0 : index
    %66 = vector.load %arg12[%c1_96, %c1_97, %c0_98, %c0_99] : memref<2x3x1x16xf32, #tpu.memory_space<vmem>>, vector<1x1x1x16xf32>
    %67 = vector.shape_cast %66 : vector<1x1x1x16xf32> to vector<1x16xf32>
    %c1_100 = arith.constant 1 : index
    %c2_101 = arith.constant 2 : index
    %c0_102 = arith.constant 0 : index
    %c0_103 = arith.constant 0 : index
    %68 = vector.load %arg12[%c1_100, %c2_101, %c0_102, %c0_103] : memref<2x3x1x16xf32, #tpu.memory_space<vmem>>, vector<1x1x1x16xf32>
    %69 = vector.shape_cast %68 : vector<1x1x1x16xf32> to vector<1x16xf32>
    %cst_104 = arith.constant 0.000000e+00 : f32
    %70 = vector.broadcast %cst_104 : f32 to vector<4x16xf32>
    %cst_105 = arith.constant 0.000000e+00 : f32
    %71 = vector.broadcast %cst_105 : f32 to vector<4x16xf32>
    %72 = vector.extract_strided_slice %3 {offsets = [0, 0], sizes = [4, 1], strides = [1, 1]} : vector<32x1xf32> to vector<4x1xf32>
    %73 = vector.extract_strided_slice %3 {offsets = [28, 0], sizes = [4, 1], strides = [1, 1]} : vector<32x1xf32> to vector<4x1xf32>
    %cst_106 = arith.constant dense<0.000000e+00> : vector<4x16xf32>
    %74 = tpu.matmul %70, %47, %cst_106 {dimension_numbers = #tpu.dot_dimension_numbers<[1], [0], [0], [1], [0, 0, 1, 1], [], []>} : vector<4x16xf32>, vector<16x16xf32>, vector<4x16xf32> -> vector<4x16xf32>
    %75 = vector.broadcast %59 : vector<1x16xf32> to vector<4x16xf32>
    %76 = arith.addf %74, %75 : vector<4x16xf32>
    %cst_107 = arith.constant dense<0.000000e+00> : vector<4x16xf32>
    %77 = tpu.matmul %70, %49, %cst_107 {dimension_numbers = #tpu.dot_dimension_numbers<[1], [0], [0], [1], [0, 0, 1, 1], [], []>} : vector<4x16xf32>, vector<16x16xf32>, vector<4x16xf32> -> vector<4x16xf32>
    %78 = vector.broadcast %61 : vector<1x16xf32> to vector<4x16xf32>
    %79 = arith.addf %77, %78 : vector<4x16xf32>
    %cst_108 = arith.constant dense<0.000000e+00> : vector<4x16xf32>
    %80 = tpu.matmul %70, %51, %cst_108 {dimension_numbers = #tpu.dot_dimension_numbers<[1], [0], [0], [1], [0, 0, 1, 1], [], []>} : vector<4x16xf32>, vector<16x16xf32>, vector<4x16xf32> -> vector<4x16xf32>
    %81 = vector.broadcast %63 : vector<1x16xf32> to vector<4x16xf32>
    %82 = arith.addf %80, %81 : vector<4x16xf32>
    %83 = vector.extract_strided_slice %10 {offsets = [0, 0], sizes = [4, 16], strides = [1, 1]} : vector<32x16xf32> to vector<4x16xf32>
    %84 = arith.addf %83, %76 : vector<4x16xf32>
    %85 = arith.negf %84 : vector<4x16xf32>
    %86 = math.exp %85 : vector<4x16xf32>
    %cst_109 = arith.constant 1.000000e+00 : f32
    %87 = vector.broadcast %cst_109 : f32 to vector<4x16xf32>
    %88 = arith.addf %87, %86 : vector<4x16xf32>
    %89 = arith.divf %87, %88 : vector<4x16xf32>
    %90 = vector.extract_strided_slice %17 {offsets = [0, 0], sizes = [4, 16], strides = [1, 1]} : vector<32x16xf32> to vector<4x16xf32>
    %91 = arith.addf %90, %79 : vector<4x16xf32>
    %92 = arith.negf %91 : vector<4x16xf32>
    %93 = math.exp %92 : vector<4x16xf32>
    %cst_110 = arith.constant 1.000000e+00 : f32
    %94 = vector.broadcast %cst_110 : f32 to vector<4x16xf32>
    %95 = arith.addf %94, %93 : vector<4x16xf32>
    %96 = arith.divf %94, %95 : vector<4x16xf32>
    %97 = vector.extract_strided_slice %24 {offsets = [0, 0], sizes = [4, 16], strides = [1, 1]} : vector<32x16xf32> to vector<4x16xf32>
    %98 = arith.mulf %89, %82 : vector<4x16xf32>
    %99 = arith.addf %97, %98 : vector<4x16xf32>
    %100 = math.tanh %99 : vector<4x16xf32>
    %cst_111 = arith.constant 1.000000e+00 : f32
    %101 = vector.broadcast %cst_111 : f32 to vector<4x16xf32>
    %102 = arith.subf %101, %96 : vector<4x16xf32>
    %103 = arith.mulf %102, %100 : vector<4x16xf32>
    %104 = arith.mulf %96, %70 : vector<4x16xf32>
    %105 = arith.addf %103, %104 : vector<4x16xf32>
    %106 = vector.broadcast %72 : vector<4x1xf32> to vector<4x16xf32>
    %107 = arith.mulf %106, %105 : vector<4x16xf32>
    %cst_112 = arith.constant 1.000000e+00 : f32
    %108 = vector.broadcast %cst_112 : f32 to vector<4x1xf32>
    %109 = arith.subf %108, %72 : vector<4x1xf32>
    %110 = vector.broadcast %109 : vector<4x1xf32> to vector<4x16xf32>
    %111 = arith.mulf %110, %70 : vector<4x16xf32>
    %112 = arith.addf %107, %111 : vector<4x16xf32>
    %cst_113 = arith.constant dense<0.000000e+00> : vector<4x16xf32>
    %113 = tpu.matmul %71, %53, %cst_113 {dimension_numbers = #tpu.dot_dimension_numbers<[1], [0], [0], [1], [0, 0, 1, 1], [], []>} : vector<4x16xf32>, vector<16x16xf32>, vector<4x16xf32> -> vector<4x16xf32>
    %114 = vector.broadcast %65 : vector<1x16xf32> to vector<4x16xf32>
    %115 = arith.addf %113, %114 : vector<4x16xf32>
    %cst_114 = arith.constant dense<0.000000e+00> : vector<4x16xf32>
    %116 = tpu.matmul %71, %55, %cst_114 {dimension_numbers = #tpu.dot_dimension_numbers<[1], [0], [0], [1], [0, 0, 1, 1], [], []>} : vector<4x16xf32>, vector<16x16xf32>, vector<4x16xf32> -> vector<4x16xf32>
    %117 = vector.broadcast %67 : vector<1x16xf32> to vector<4x16xf32>
    %118 = arith.addf %116, %117 : vector<4x16xf32>
    %cst_115 = arith.constant dense<0.000000e+00> : vector<4x16xf32>
    %119 = tpu.matmul %71, %57, %cst_115 {dimension_numbers = #tpu.dot_dimension_numbers<[1], [0], [0], [1], [0, 0, 1, 1], [], []>} : vector<4x16xf32>, vector<16x16xf32>, vector<4x16xf32> -> vector<4x16xf32>
    %120 = vector.broadcast %69 : vector<1x16xf32> to vector<4x16xf32>
    %121 = arith.addf %119, %120 : vector<4x16xf32>
    %122 = vector.extract_strided_slice %31 {offsets = [28, 0], sizes = [4, 16], strides = [1, 1]} : vector<32x16xf32> to vector<4x16xf32>
    %123 = arith.addf %122, %115 : vector<4x16xf32>
    %124 = arith.negf %123 : vector<4x16xf32>
    %125 = math.exp %124 : vector<4x16xf32>
    %cst_116 = arith.constant 1.000000e+00 : f32
    %126 = vector.broadcast %cst_116 : f32 to vector<4x16xf32>
    %127 = arith.addf %126, %125 : vector<4x16xf32>
    %128 = arith.divf %126, %127 : vector<4x16xf32>
    %129 = vector.extract_strided_slice %38 {offsets = [28, 0], sizes = [4, 16], strides = [1, 1]} : vector<32x16xf32> to vector<4x16xf32>
    %130 = arith.addf %129, %118 : vector<4x16xf32>
    %131 = arith.negf %130 : vector<4x16xf32>
    %132 = math.exp %131 : vector<4x16xf32>
    %cst_117 = arith.constant 1.000000e+00 : f32
    %133 = vector.broadcast %cst_117 : f32 to vector<4x16xf32>
    %134 = arith.addf %133, %132 : vector<4x16xf32>
    %135 = arith.divf %133, %134 : vector<4x16xf32>
    %136 = vector.extract_strided_slice %45 {offsets = [28, 0], sizes = [4, 16], strides = [1, 1]} : vector<32x16xf32> to vector<4x16xf32>
    %137 = arith.mulf %128, %121 : vector<4x16xf32>
    %138 = arith.addf %136, %137 : vector<4x16xf32>
    %139 = math.tanh %138 : vector<4x16xf32>
    %cst_118 = arith.constant 1.000000e+00 : f32
    %140 = vector.broadcast %cst_118 : f32 to vector<4x16xf32>
    %141 = arith.subf %140, %135 : vector<4x16xf32>
    %142 = arith.mulf %141, %139 : vector<4x16xf32>
    %143 = arith.mulf %135, %71 : vector<4x16xf32>
    %144 = arith.addf %142, %143 : vector<4x16xf32>
    %145 = vector.broadcast %73 : vector<4x1xf32> to vector<4x16xf32>
    %146 = arith.mulf %145, %144 : vector<4x16xf32>
    %cst_119 = arith.constant 1.000000e+00 : f32
    %147 = vector.broadcast %cst_119 : f32 to vector<4x1xf32>
    %148 = arith.subf %147, %73 : vector<4x1xf32>
    %149 = vector.broadcast %148 : vector<4x1xf32> to vector<4x16xf32>
    %150 = arith.mulf %149, %71 : vector<4x16xf32>
    %151 = arith.addf %146, %150 : vector<4x16xf32>
    %152 = vector.extract_strided_slice %3 {offsets = [4, 0], sizes = [4, 1], strides = [1, 1]} : vector<32x1xf32> to vector<4x1xf32>
    %153 = vector.extract_strided_slice %3 {offsets = [24, 0], sizes = [4, 1], strides = [1, 1]} : vector<32x1xf32> to vector<4x1xf32>
    %cst_120 = arith.constant dense<0.000000e+00> : vector<4x16xf32>
    %154 = tpu.matmul %112, %47, %cst_120 {dimension_numbers = #tpu.dot_dimension_numbers<[1], [0], [0], [1], [0, 0, 1, 1], [], []>} : vector<4x16xf32>, vector<16x16xf32>, vector<4x16xf32> -> vector<4x16xf32>
    %155 = vector.broadcast %59 : vector<1x16xf32> to vector<4x16xf32>
    %156 = arith.addf %154, %155 : vector<4x16xf32>
    %cst_121 = arith.constant dense<0.000000e+00> : vector<4x16xf32>
    %157 = tpu.matmul %112, %49, %cst_121 {dimension_numbers = #tpu.dot_dimension_numbers<[1], [0], [0], [1], [0, 0, 1, 1], [], []>} : vector<4x16xf32>, vector<16x16xf32>, vector<4x16xf32> -> vector<4x16xf32>
    %158 = vector.broadcast %61 : vector<1x16xf32> to vector<4x16xf32>
    %159 = arith.addf %157, %158 : vector<4x16xf32>
    %cst_122 = arith.constant dense<0.000000e+00> : vector<4x16xf32>
    %160 = tpu.matmul %112, %51, %cst_122 {dimension_numbers = #tpu.dot_dimension_numbers<[1], [0], [0], [1], [0, 0, 1, 1], [], []>} : vector<4x16xf32>, vector<16x16xf32>, vector<4x16xf32> -> vector<4x16xf32>
    %161 = vector.broadcast %63 : vector<1x16xf32> to vector<4x16xf32>
    %162 = arith.addf %160, %161 : vector<4x16xf32>
    %163 = vector.extract_strided_slice %10 {offsets = [4, 0], sizes = [4, 16], strides = [1, 1]} : vector<32x16xf32> to vector<4x16xf32>
    %164 = arith.addf %163, %156 : vector<4x16xf32>
    %165 = arith.negf %164 : vector<4x16xf32>
    %166 = math.exp %165 : vector<4x16xf32>
    %cst_123 = arith.constant 1.000000e+00 : f32
    %167 = vector.broadcast %cst_123 : f32 to vector<4x16xf32>
    %168 = arith.addf %167, %166 : vector<4x16xf32>
    %169 = arith.divf %167, %168 : vector<4x16xf32>
    %170 = vector.extract_strided_slice %17 {offsets = [4, 0], sizes = [4, 16], strides = [1, 1]} : vector<32x16xf32> to vector<4x16xf32>
    %171 = arith.addf %170, %159 : vector<4x16xf32>
    %172 = arith.negf %171 : vector<4x16xf32>
    %173 = math.exp %172 : vector<4x16xf32>
    %cst_124 = arith.constant 1.000000e+00 : f32
    %174 = vector.broadcast %cst_124 : f32 to vector<4x16xf32>
    %175 = arith.addf %174, %173 : vector<4x16xf32>
    %176 = arith.divf %174, %175 : vector<4x16xf32>
    %177 = vector.extract_strided_slice %24 {offsets = [4, 0], sizes = [4, 16], strides = [1, 1]} : vector<32x16xf32> to vector<4x16xf32>
    %178 = arith.mulf %169, %162 : vector<4x16xf32>
    %179 = arith.addf %177, %178 : vector<4x16xf32>
    %180 = math.tanh %179 : vector<4x16xf32>
    %cst_125 = arith.constant 1.000000e+00 : f32
    %181 = vector.broadcast %cst_125 : f32 to vector<4x16xf32>
    %182 = arith.subf %181, %176 : vector<4x16xf32>
    %183 = arith.mulf %182, %180 : vector<4x16xf32>
    %184 = arith.mulf %176, %112 : vector<4x16xf32>
    %185 = arith.addf %183, %184 : vector<4x16xf32>
    %186 = vector.broadcast %152 : vector<4x1xf32> to vector<4x16xf32>
    %187 = arith.mulf %186, %185 : vector<4x16xf32>
    %cst_126 = arith.constant 1.000000e+00 : f32
    %188 = vector.broadcast %cst_126 : f32 to vector<4x1xf32>
    %189 = arith.subf %188, %152 : vector<4x1xf32>
    %190 = vector.broadcast %189 : vector<4x1xf32> to vector<4x16xf32>
    %191 = arith.mulf %190, %112 : vector<4x16xf32>
    %192 = arith.addf %187, %191 : vector<4x16xf32>
    %cst_127 = arith.constant dense<0.000000e+00> : vector<4x16xf32>
    %193 = tpu.matmul %151, %53, %cst_127 {dimension_numbers = #tpu.dot_dimension_numbers<[1], [0], [0], [1], [0, 0, 1, 1], [], []>} : vector<4x16xf32>, vector<16x16xf32>, vector<4x16xf32> -> vector<4x16xf32>
    %194 = vector.broadcast %65 : vector<1x16xf32> to vector<4x16xf32>
    %195 = arith.addf %193, %194 : vector<4x16xf32>
    %cst_128 = arith.constant dense<0.000000e+00> : vector<4x16xf32>
    %196 = tpu.matmul %151, %55, %cst_128 {dimension_numbers = #tpu.dot_dimension_numbers<[1], [0], [0], [1], [0, 0, 1, 1], [], []>} : vector<4x16xf32>, vector<16x16xf32>, vector<4x16xf32> -> vector<4x16xf32>
    %197 = vector.broadcast %67 : vector<1x16xf32> to vector<4x16xf32>
    %198 = arith.addf %196, %197 : vector<4x16xf32>
    %cst_129 = arith.constant dense<0.000000e+00> : vector<4x16xf32>
    %199 = tpu.matmul %151, %57, %cst_129 {dimension_numbers = #tpu.dot_dimension_numbers<[1], [0], [0], [1], [0, 0, 1, 1], [], []>} : vector<4x16xf32>, vector<16x16xf32>, vector<4x16xf32> -> vector<4x16xf32>
    %200 = vector.broadcast %69 : vector<1x16xf32> to vector<4x16xf32>
    %201 = arith.addf %199, %200 : vector<4x16xf32>
    %202 = vector.extract_strided_slice %31 {offsets = [24, 0], sizes = [4, 16], strides = [1, 1]} : vector<32x16xf32> to vector<4x16xf32>
    %203 = arith.addf %202, %195 : vector<4x16xf32>
    %204 = arith.negf %203 : vector<4x16xf32>
    %205 = math.exp %204 : vector<4x16xf32>
    %cst_130 = arith.constant 1.000000e+00 : f32
    %206 = vector.broadcast %cst_130 : f32 to vector<4x16xf32>
    %207 = arith.addf %206, %205 : vector<4x16xf32>
    %208 = arith.divf %206, %207 : vector<4x16xf32>
    %209 = vector.extract_strided_slice %38 {offsets = [24, 0], sizes = [4, 16], strides = [1, 1]} : vector<32x16xf32> to vector<4x16xf32>
    %210 = arith.addf %209, %198 : vector<4x16xf32>
    %211 = arith.negf %210 : vector<4x16xf32>
    %212 = math.exp %211 : vector<4x16xf32>
    %cst_131 = arith.constant 1.000000e+00 : f32
    %213 = vector.broadcast %cst_131 : f32 to vector<4x16xf32>
    %214 = arith.addf %213, %212 : vector<4x16xf32>
    %215 = arith.divf %213, %214 : vector<4x16xf32>
    %216 = vector.extract_strided_slice %45 {offsets = [24, 0], sizes = [4, 16], strides = [1, 1]} : vector<32x16xf32> to vector<4x16xf32>
    %217 = arith.mulf %208, %201 : vector<4x16xf32>
    %218 = arith.addf %216, %217 : vector<4x16xf32>
    %219 = math.tanh %218 : vector<4x16xf32>
    %cst_132 = arith.constant 1.000000e+00 : f32
    %220 = vector.broadcast %cst_132 : f32 to vector<4x16xf32>
    %221 = arith.subf %220, %215 : vector<4x16xf32>
    %222 = arith.mulf %221, %219 : vector<4x16xf32>
    %223 = arith.mulf %215, %151 : vector<4x16xf32>
    %224 = arith.addf %222, %223 : vector<4x16xf32>
    %225 = vector.broadcast %153 : vector<4x1xf32> to vector<4x16xf32>
    %226 = arith.mulf %225, %224 : vector<4x16xf32>
    %cst_133 = arith.constant 1.000000e+00 : f32
    %227 = vector.broadcast %cst_133 : f32 to vector<4x1xf32>
    %228 = arith.subf %227, %153 : vector<4x1xf32>
    %229 = vector.broadcast %228 : vector<4x1xf32> to vector<4x16xf32>
    %230 = arith.mulf %229, %151 : vector<4x16xf32>
    %231 = arith.addf %226, %230 : vector<4x16xf32>
    %232 = vector.extract_strided_slice %3 {offsets = [8, 0], sizes = [4, 1], strides = [1, 1]} : vector<32x1xf32> to vector<4x1xf32>
    %233 = vector.extract_strided_slice %3 {offsets = [20, 0], sizes = [4, 1], strides = [1, 1]} : vector<32x1xf32> to vector<4x1xf32>
    %cst_134 = arith.constant dense<0.000000e+00> : vector<4x16xf32>
    %234 = tpu.matmul %192, %47, %cst_134 {dimension_numbers = #tpu.dot_dimension_numbers<[1], [0], [0], [1], [0, 0, 1, 1], [], []>} : vector<4x16xf32>, vector<16x16xf32>, vector<4x16xf32> -> vector<4x16xf32>
    %235 = vector.broadcast %59 : vector<1x16xf32> to vector<4x16xf32>
    %236 = arith.addf %234, %235 : vector<4x16xf32>
    %cst_135 = arith.constant dense<0.000000e+00> : vector<4x16xf32>
    %237 = tpu.matmul %192, %49, %cst_135 {dimension_numbers = #tpu.dot_dimension_numbers<[1], [0], [0], [1], [0, 0, 1, 1], [], []>} : vector<4x16xf32>, vector<16x16xf32>, vector<4x16xf32> -> vector<4x16xf32>
    %238 = vector.broadcast %61 : vector<1x16xf32> to vector<4x16xf32>
    %239 = arith.addf %237, %238 : vector<4x16xf32>
    %cst_136 = arith.constant dense<0.000000e+00> : vector<4x16xf32>
    %240 = tpu.matmul %192, %51, %cst_136 {dimension_numbers = #tpu.dot_dimension_numbers<[1], [0], [0], [1], [0, 0, 1, 1], [], []>} : vector<4x16xf32>, vector<16x16xf32>, vector<4x16xf32> -> vector<4x16xf32>
    %241 = vector.broadcast %63 : vector<1x16xf32> to vector<4x16xf32>
    %242 = arith.addf %240, %241 : vector<4x16xf32>
    %243 = vector.extract_strided_slice %10 {offsets = [8, 0], sizes = [4, 16], strides = [1, 1]} : vector<32x16xf32> to vector<4x16xf32>
    %244 = arith.addf %243, %236 : vector<4x16xf32>
    %245 = arith.negf %244 : vector<4x16xf32>
    %246 = math.exp %245 : vector<4x16xf32>
    %cst_137 = arith.constant 1.000000e+00 : f32
    %247 = vector.broadcast %cst_137 : f32 to vector<4x16xf32>
    %248 = arith.addf %247, %246 : vector<4x16xf32>
    %249 = arith.divf %247, %248 : vector<4x16xf32>
    %250 = vector.extract_strided_slice %17 {offsets = [8, 0], sizes = [4, 16], strides = [1, 1]} : vector<32x16xf32> to vector<4x16xf32>
    %251 = arith.addf %250, %239 : vector<4x16xf32>
    %252 = arith.negf %251 : vector<4x16xf32>
    %253 = math.exp %252 : vector<4x16xf32>
    %cst_138 = arith.constant 1.000000e+00 : f32
    %254 = vector.broadcast %cst_138 : f32 to vector<4x16xf32>
    %255 = arith.addf %254, %253 : vector<4x16xf32>
    %256 = arith.divf %254, %255 : vector<4x16xf32>
    %257 = vector.extract_strided_slice %24 {offsets = [8, 0], sizes = [4, 16], strides = [1, 1]} : vector<32x16xf32> to vector<4x16xf32>
    %258 = arith.mulf %249, %242 : vector<4x16xf32>
    %259 = arith.addf %257, %258 : vector<4x16xf32>
    %260 = math.tanh %259 : vector<4x16xf32>
    %cst_139 = arith.constant 1.000000e+00 : f32
    %261 = vector.broadcast %cst_139 : f32 to vector<4x16xf32>
    %262 = arith.subf %261, %256 : vector<4x16xf32>
    %263 = arith.mulf %262, %260 : vector<4x16xf32>
    %264 = arith.mulf %256, %192 : vector<4x16xf32>
    %265 = arith.addf %263, %264 : vector<4x16xf32>
    %266 = vector.broadcast %232 : vector<4x1xf32> to vector<4x16xf32>
    %267 = arith.mulf %266, %265 : vector<4x16xf32>
    %cst_140 = arith.constant 1.000000e+00 : f32
    %268 = vector.broadcast %cst_140 : f32 to vector<4x1xf32>
    %269 = arith.subf %268, %232 : vector<4x1xf32>
    %270 = vector.broadcast %269 : vector<4x1xf32> to vector<4x16xf32>
    %271 = arith.mulf %270, %192 : vector<4x16xf32>
    %272 = arith.addf %267, %271 : vector<4x16xf32>
    %cst_141 = arith.constant dense<0.000000e+00> : vector<4x16xf32>
    %273 = tpu.matmul %231, %53, %cst_141 {dimension_numbers = #tpu.dot_dimension_numbers<[1], [0], [0], [1], [0, 0, 1, 1], [], []>} : vector<4x16xf32>, vector<16x16xf32>, vector<4x16xf32> -> vector<4x16xf32>
    %274 = vector.broadcast %65 : vector<1x16xf32> to vector<4x16xf32>
    %275 = arith.addf %273, %274 : vector<4x16xf32>
    %cst_142 = arith.constant dense<0.000000e+00> : vector<4x16xf32>
    %276 = tpu.matmul %231, %55, %cst_142 {dimension_numbers = #tpu.dot_dimension_numbers<[1], [0], [0], [1], [0, 0, 1, 1], [], []>} : vector<4x16xf32>, vector<16x16xf32>, vector<4x16xf32> -> vector<4x16xf32>
    %277 = vector.broadcast %67 : vector<1x16xf32> to vector<4x16xf32>
    %278 = arith.addf %276, %277 : vector<4x16xf32>
    %cst_143 = arith.constant dense<0.000000e+00> : vector<4x16xf32>
    %279 = tpu.matmul %231, %57, %cst_143 {dimension_numbers = #tpu.dot_dimension_numbers<[1], [0], [0], [1], [0, 0, 1, 1], [], []>} : vector<4x16xf32>, vector<16x16xf32>, vector<4x16xf32> -> vector<4x16xf32>
    %280 = vector.broadcast %69 : vector<1x16xf32> to vector<4x16xf32>
    %281 = arith.addf %279, %280 : vector<4x16xf32>
    %282 = vector.extract_strided_slice %31 {offsets = [20, 0], sizes = [4, 16], strides = [1, 1]} : vector<32x16xf32> to vector<4x16xf32>
    %283 = arith.addf %282, %275 : vector<4x16xf32>
    %284 = arith.negf %283 : vector<4x16xf32>
    %285 = math.exp %284 : vector<4x16xf32>
    %cst_144 = arith.constant 1.000000e+00 : f32
    %286 = vector.broadcast %cst_144 : f32 to vector<4x16xf32>
    %287 = arith.addf %286, %285 : vector<4x16xf32>
    %288 = arith.divf %286, %287 : vector<4x16xf32>
    %289 = vector.extract_strided_slice %38 {offsets = [20, 0], sizes = [4, 16], strides = [1, 1]} : vector<32x16xf32> to vector<4x16xf32>
    %290 = arith.addf %289, %278 : vector<4x16xf32>
    %291 = arith.negf %290 : vector<4x16xf32>
    %292 = math.exp %291 : vector<4x16xf32>
    %cst_145 = arith.constant 1.000000e+00 : f32
    %293 = vector.broadcast %cst_145 : f32 to vector<4x16xf32>
    %294 = arith.addf %293, %292 : vector<4x16xf32>
    %295 = arith.divf %293, %294 : vector<4x16xf32>
    %296 = vector.extract_strided_slice %45 {offsets = [20, 0], sizes = [4, 16], strides = [1, 1]} : vector<32x16xf32> to vector<4x16xf32>
    %297 = arith.mulf %288, %281 : vector<4x16xf32>
    %298 = arith.addf %296, %297 : vector<4x16xf32>
    %299 = math.tanh %298 : vector<4x16xf32>
    %cst_146 = arith.constant 1.000000e+00 : f32
    %300 = vector.broadcast %cst_146 : f32 to vector<4x16xf32>
    %301 = arith.subf %300, %295 : vector<4x16xf32>
    %302 = arith.mulf %301, %299 : vector<4x16xf32>
    %303 = arith.mulf %295, %231 : vector<4x16xf32>
    %304 = arith.addf %302, %303 : vector<4x16xf32>
    %305 = vector.broadcast %233 : vector<4x1xf32> to vector<4x16xf32>
    %306 = arith.mulf %305, %304 : vector<4x16xf32>
    %cst_147 = arith.constant 1.000000e+00 : f32
    %307 = vector.broadcast %cst_147 : f32 to vector<4x1xf32>
    %308 = arith.subf %307, %233 : vector<4x1xf32>
    %309 = vector.broadcast %308 : vector<4x1xf32> to vector<4x16xf32>
    %310 = arith.mulf %309, %231 : vector<4x16xf32>
    %311 = arith.addf %306, %310 : vector<4x16xf32>
    %312 = vector.extract_strided_slice %3 {offsets = [12, 0], sizes = [4, 1], strides = [1, 1]} : vector<32x1xf32> to vector<4x1xf32>
    %313 = vector.extract_strided_slice %3 {offsets = [16, 0], sizes = [4, 1], strides = [1, 1]} : vector<32x1xf32> to vector<4x1xf32>
    %cst_148 = arith.constant dense<0.000000e+00> : vector<4x16xf32>
    %314 = tpu.matmul %272, %47, %cst_148 {dimension_numbers = #tpu.dot_dimension_numbers<[1], [0], [0], [1], [0, 0, 1, 1], [], []>} : vector<4x16xf32>, vector<16x16xf32>, vector<4x16xf32> -> vector<4x16xf32>
    %315 = vector.broadcast %59 : vector<1x16xf32> to vector<4x16xf32>
    %316 = arith.addf %314, %315 : vector<4x16xf32>
    %cst_149 = arith.constant dense<0.000000e+00> : vector<4x16xf32>
    %317 = tpu.matmul %272, %49, %cst_149 {dimension_numbers = #tpu.dot_dimension_numbers<[1], [0], [0], [1], [0, 0, 1, 1], [], []>} : vector<4x16xf32>, vector<16x16xf32>, vector<4x16xf32> -> vector<4x16xf32>
    %318 = vector.broadcast %61 : vector<1x16xf32> to vector<4x16xf32>
    %319 = arith.addf %317, %318 : vector<4x16xf32>
    %cst_150 = arith.constant dense<0.000000e+00> : vector<4x16xf32>
    %320 = tpu.matmul %272, %51, %cst_150 {dimension_numbers = #tpu.dot_dimension_numbers<[1], [0], [0], [1], [0, 0, 1, 1], [], []>} : vector<4x16xf32>, vector<16x16xf32>, vector<4x16xf32> -> vector<4x16xf32>
    %321 = vector.broadcast %63 : vector<1x16xf32> to vector<4x16xf32>
    %322 = arith.addf %320, %321 : vector<4x16xf32>
    %323 = vector.extract_strided_slice %10 {offsets = [12, 0], sizes = [4, 16], strides = [1, 1]} : vector<32x16xf32> to vector<4x16xf32>
    %324 = arith.addf %323, %316 : vector<4x16xf32>
    %325 = arith.negf %324 : vector<4x16xf32>
    %326 = math.exp %325 : vector<4x16xf32>
    %cst_151 = arith.constant 1.000000e+00 : f32
    %327 = vector.broadcast %cst_151 : f32 to vector<4x16xf32>
    %328 = arith.addf %327, %326 : vector<4x16xf32>
    %329 = arith.divf %327, %328 : vector<4x16xf32>
    %330 = vector.extract_strided_slice %17 {offsets = [12, 0], sizes = [4, 16], strides = [1, 1]} : vector<32x16xf32> to vector<4x16xf32>
    %331 = arith.addf %330, %319 : vector<4x16xf32>
    %332 = arith.negf %331 : vector<4x16xf32>
    %333 = math.exp %332 : vector<4x16xf32>
    %cst_152 = arith.constant 1.000000e+00 : f32
    %334 = vector.broadcast %cst_152 : f32 to vector<4x16xf32>
    %335 = arith.addf %334, %333 : vector<4x16xf32>
    %336 = arith.divf %334, %335 : vector<4x16xf32>
    %337 = vector.extract_strided_slice %24 {offsets = [12, 0], sizes = [4, 16], strides = [1, 1]} : vector<32x16xf32> to vector<4x16xf32>
    %338 = arith.mulf %329, %322 : vector<4x16xf32>
    %339 = arith.addf %337, %338 : vector<4x16xf32>
    %340 = math.tanh %339 : vector<4x16xf32>
    %cst_153 = arith.constant 1.000000e+00 : f32
    %341 = vector.broadcast %cst_153 : f32 to vector<4x16xf32>
    %342 = arith.subf %341, %336 : vector<4x16xf32>
    %343 = arith.mulf %342, %340 : vector<4x16xf32>
    %344 = arith.mulf %336, %272 : vector<4x16xf32>
    %345 = arith.addf %343, %344 : vector<4x16xf32>
    %346 = vector.broadcast %312 : vector<4x1xf32> to vector<4x16xf32>
    %347 = arith.mulf %346, %345 : vector<4x16xf32>
    %cst_154 = arith.constant 1.000000e+00 : f32
    %348 = vector.broadcast %cst_154 : f32 to vector<4x1xf32>
    %349 = arith.subf %348, %312 : vector<4x1xf32>
    %350 = vector.broadcast %349 : vector<4x1xf32> to vector<4x16xf32>
    %351 = arith.mulf %350, %272 : vector<4x16xf32>
    %352 = arith.addf %347, %351 : vector<4x16xf32>
    %cst_155 = arith.constant dense<0.000000e+00> : vector<4x16xf32>
    %353 = tpu.matmul %311, %53, %cst_155 {dimension_numbers = #tpu.dot_dimension_numbers<[1], [0], [0], [1], [0, 0, 1, 1], [], []>} : vector<4x16xf32>, vector<16x16xf32>, vector<4x16xf32> -> vector<4x16xf32>
    %354 = vector.broadcast %65 : vector<1x16xf32> to vector<4x16xf32>
    %355 = arith.addf %353, %354 : vector<4x16xf32>
    %cst_156 = arith.constant dense<0.000000e+00> : vector<4x16xf32>
    %356 = tpu.matmul %311, %55, %cst_156 {dimension_numbers = #tpu.dot_dimension_numbers<[1], [0], [0], [1], [0, 0, 1, 1], [], []>} : vector<4x16xf32>, vector<16x16xf32>, vector<4x16xf32> -> vector<4x16xf32>
    %357 = vector.broadcast %67 : vector<1x16xf32> to vector<4x16xf32>
    %358 = arith.addf %356, %357 : vector<4x16xf32>
    %cst_157 = arith.constant dense<0.000000e+00> : vector<4x16xf32>
    %359 = tpu.matmul %311, %57, %cst_157 {dimension_numbers = #tpu.dot_dimension_numbers<[1], [0], [0], [1], [0, 0, 1, 1], [], []>} : vector<4x16xf32>, vector<16x16xf32>, vector<4x16xf32> -> vector<4x16xf32>
    %360 = vector.broadcast %69 : vector<1x16xf32> to vector<4x16xf32>
    %361 = arith.addf %359, %360 : vector<4x16xf32>
    %362 = vector.extract_strided_slice %31 {offsets = [16, 0], sizes = [4, 16], strides = [1, 1]} : vector<32x16xf32> to vector<4x16xf32>
    %363 = arith.addf %362, %355 : vector<4x16xf32>
    %364 = arith.negf %363 : vector<4x16xf32>
    %365 = math.exp %364 : vector<4x16xf32>
    %cst_158 = arith.constant 1.000000e+00 : f32
    %366 = vector.broadcast %cst_158 : f32 to vector<4x16xf32>
    %367 = arith.addf %366, %365 : vector<4x16xf32>
    %368 = arith.divf %366, %367 : vector<4x16xf32>
    %369 = vector.extract_strided_slice %38 {offsets = [16, 0], sizes = [4, 16], strides = [1, 1]} : vector<32x16xf32> to vector<4x16xf32>
    %370 = arith.addf %369, %358 : vector<4x16xf32>
    %371 = arith.negf %370 : vector<4x16xf32>
    %372 = math.exp %371 : vector<4x16xf32>
    %cst_159 = arith.constant 1.000000e+00 : f32
    %373 = vector.broadcast %cst_159 : f32 to vector<4x16xf32>
    %374 = arith.addf %373, %372 : vector<4x16xf32>
    %375 = arith.divf %373, %374 : vector<4x16xf32>
    %376 = vector.extract_strided_slice %45 {offsets = [16, 0], sizes = [4, 16], strides = [1, 1]} : vector<32x16xf32> to vector<4x16xf32>
    %377 = arith.mulf %368, %361 : vector<4x16xf32>
    %378 = arith.addf %376, %377 : vector<4x16xf32>
    %379 = math.tanh %378 : vector<4x16xf32>
    %cst_160 = arith.constant 1.000000e+00 : f32
    %380 = vector.broadcast %cst_160 : f32 to vector<4x16xf32>
    %381 = arith.subf %380, %375 : vector<4x16xf32>
    %382 = arith.mulf %381, %379 : vector<4x16xf32>
    %383 = arith.mulf %375, %311 : vector<4x16xf32>
    %384 = arith.addf %382, %383 : vector<4x16xf32>
    %385 = vector.broadcast %313 : vector<4x1xf32> to vector<4x16xf32>
    %386 = arith.mulf %385, %384 : vector<4x16xf32>
    %cst_161 = arith.constant 1.000000e+00 : f32
    %387 = vector.broadcast %cst_161 : f32 to vector<4x1xf32>
    %388 = arith.subf %387, %313 : vector<4x1xf32>
    %389 = vector.broadcast %388 : vector<4x1xf32> to vector<4x16xf32>
    %390 = arith.mulf %389, %311 : vector<4x16xf32>
    %391 = arith.addf %386, %390 : vector<4x16xf32>
    %392 = vector.extract_strided_slice %3 {offsets = [16, 0], sizes = [4, 1], strides = [1, 1]} : vector<32x1xf32> to vector<4x1xf32>
    %393 = vector.extract_strided_slice %3 {offsets = [12, 0], sizes = [4, 1], strides = [1, 1]} : vector<32x1xf32> to vector<4x1xf32>
    %cst_162 = arith.constant dense<0.000000e+00> : vector<4x16xf32>
    %394 = tpu.matmul %352, %47, %cst_162 {dimension_numbers = #tpu.dot_dimension_numbers<[1], [0], [0], [1], [0, 0, 1, 1], [], []>} : vector<4x16xf32>, vector<16x16xf32>, vector<4x16xf32> -> vector<4x16xf32>
    %395 = vector.broadcast %59 : vector<1x16xf32> to vector<4x16xf32>
    %396 = arith.addf %394, %395 : vector<4x16xf32>
    %cst_163 = arith.constant dense<0.000000e+00> : vector<4x16xf32>
    %397 = tpu.matmul %352, %49, %cst_163 {dimension_numbers = #tpu.dot_dimension_numbers<[1], [0], [0], [1], [0, 0, 1, 1], [], []>} : vector<4x16xf32>, vector<16x16xf32>, vector<4x16xf32> -> vector<4x16xf32>
    %398 = vector.broadcast %61 : vector<1x16xf32> to vector<4x16xf32>
    %399 = arith.addf %397, %398 : vector<4x16xf32>
    %cst_164 = arith.constant dense<0.000000e+00> : vector<4x16xf32>
    %400 = tpu.matmul %352, %51, %cst_164 {dimension_numbers = #tpu.dot_dimension_numbers<[1], [0], [0], [1], [0, 0, 1, 1], [], []>} : vector<4x16xf32>, vector<16x16xf32>, vector<4x16xf32> -> vector<4x16xf32>
    %401 = vector.broadcast %63 : vector<1x16xf32> to vector<4x16xf32>
    %402 = arith.addf %400, %401 : vector<4x16xf32>
    %403 = vector.extract_strided_slice %10 {offsets = [16, 0], sizes = [4, 16], strides = [1, 1]} : vector<32x16xf32> to vector<4x16xf32>
    %404 = arith.addf %403, %396 : vector<4x16xf32>
    %405 = arith.negf %404 : vector<4x16xf32>
    %406 = math.exp %405 : vector<4x16xf32>
    %cst_165 = arith.constant 1.000000e+00 : f32
    %407 = vector.broadcast %cst_165 : f32 to vector<4x16xf32>
    %408 = arith.addf %407, %406 : vector<4x16xf32>
    %409 = arith.divf %407, %408 : vector<4x16xf32>
    %410 = vector.extract_strided_slice %17 {offsets = [16, 0], sizes = [4, 16], strides = [1, 1]} : vector<32x16xf32> to vector<4x16xf32>
    %411 = arith.addf %410, %399 : vector<4x16xf32>
    %412 = arith.negf %411 : vector<4x16xf32>
    %413 = math.exp %412 : vector<4x16xf32>
    %cst_166 = arith.constant 1.000000e+00 : f32
    %414 = vector.broadcast %cst_166 : f32 to vector<4x16xf32>
    %415 = arith.addf %414, %413 : vector<4x16xf32>
    %416 = arith.divf %414, %415 : vector<4x16xf32>
    %417 = vector.extract_strided_slice %24 {offsets = [16, 0], sizes = [4, 16], strides = [1, 1]} : vector<32x16xf32> to vector<4x16xf32>
    %418 = arith.mulf %409, %402 : vector<4x16xf32>
    %419 = arith.addf %417, %418 : vector<4x16xf32>
    %420 = math.tanh %419 : vector<4x16xf32>
    %cst_167 = arith.constant 1.000000e+00 : f32
    %421 = vector.broadcast %cst_167 : f32 to vector<4x16xf32>
    %422 = arith.subf %421, %416 : vector<4x16xf32>
    %423 = arith.mulf %422, %420 : vector<4x16xf32>
    %424 = arith.mulf %416, %352 : vector<4x16xf32>
    %425 = arith.addf %423, %424 : vector<4x16xf32>
    %426 = vector.broadcast %392 : vector<4x1xf32> to vector<4x16xf32>
    %427 = arith.mulf %426, %425 : vector<4x16xf32>
    %cst_168 = arith.constant 1.000000e+00 : f32
    %428 = vector.broadcast %cst_168 : f32 to vector<4x1xf32>
    %429 = arith.subf %428, %392 : vector<4x1xf32>
    %430 = vector.broadcast %429 : vector<4x1xf32> to vector<4x16xf32>
    %431 = arith.mulf %430, %352 : vector<4x16xf32>
    %432 = arith.addf %427, %431 : vector<4x16xf32>
    %cst_169 = arith.constant dense<0.000000e+00> : vector<4x16xf32>
    %433 = tpu.matmul %391, %53, %cst_169 {dimension_numbers = #tpu.dot_dimension_numbers<[1], [0], [0], [1], [0, 0, 1, 1], [], []>} : vector<4x16xf32>, vector<16x16xf32>, vector<4x16xf32> -> vector<4x16xf32>
    %434 = vector.broadcast %65 : vector<1x16xf32> to vector<4x16xf32>
    %435 = arith.addf %433, %434 : vector<4x16xf32>
    %cst_170 = arith.constant dense<0.000000e+00> : vector<4x16xf32>
    %436 = tpu.matmul %391, %55, %cst_170 {dimension_numbers = #tpu.dot_dimension_numbers<[1], [0], [0], [1], [0, 0, 1, 1], [], []>} : vector<4x16xf32>, vector<16x16xf32>, vector<4x16xf32> -> vector<4x16xf32>
    %437 = vector.broadcast %67 : vector<1x16xf32> to vector<4x16xf32>
    %438 = arith.addf %436, %437 : vector<4x16xf32>
    %cst_171 = arith.constant dense<0.000000e+00> : vector<4x16xf32>
    %439 = tpu.matmul %391, %57, %cst_171 {dimension_numbers = #tpu.dot_dimension_numbers<[1], [0], [0], [1], [0, 0, 1, 1], [], []>} : vector<4x16xf32>, vector<16x16xf32>, vector<4x16xf32> -> vector<4x16xf32>
    %440 = vector.broadcast %69 : vector<1x16xf32> to vector<4x16xf32>
    %441 = arith.addf %439, %440 : vector<4x16xf32>
    %442 = vector.extract_strided_slice %31 {offsets = [12, 0], sizes = [4, 16], strides = [1, 1]} : vector<32x16xf32> to vector<4x16xf32>
    %443 = arith.addf %442, %435 : vector<4x16xf32>
    %444 = arith.negf %443 : vector<4x16xf32>
    %445 = math.exp %444 : vector<4x16xf32>
    %cst_172 = arith.constant 1.000000e+00 : f32
    %446 = vector.broadcast %cst_172 : f32 to vector<4x16xf32>
    %447 = arith.addf %446, %445 : vector<4x16xf32>
    %448 = arith.divf %446, %447 : vector<4x16xf32>
    %449 = vector.extract_strided_slice %38 {offsets = [12, 0], sizes = [4, 16], strides = [1, 1]} : vector<32x16xf32> to vector<4x16xf32>
    %450 = arith.addf %449, %438 : vector<4x16xf32>
    %451 = arith.negf %450 : vector<4x16xf32>
    %452 = math.exp %451 : vector<4x16xf32>
    %cst_173 = arith.constant 1.000000e+00 : f32
    %453 = vector.broadcast %cst_173 : f32 to vector<4x16xf32>
    %454 = arith.addf %453, %452 : vector<4x16xf32>
    %455 = arith.divf %453, %454 : vector<4x16xf32>
    %456 = vector.extract_strided_slice %45 {offsets = [12, 0], sizes = [4, 16], strides = [1, 1]} : vector<32x16xf32> to vector<4x16xf32>
    %457 = arith.mulf %448, %441 : vector<4x16xf32>
    %458 = arith.addf %456, %457 : vector<4x16xf32>
    %459 = math.tanh %458 : vector<4x16xf32>
    %cst_174 = arith.constant 1.000000e+00 : f32
    %460 = vector.broadcast %cst_174 : f32 to vector<4x16xf32>
    %461 = arith.subf %460, %455 : vector<4x16xf32>
    %462 = arith.mulf %461, %459 : vector<4x16xf32>
    %463 = arith.mulf %455, %391 : vector<4x16xf32>
    %464 = arith.addf %462, %463 : vector<4x16xf32>
    %465 = vector.broadcast %393 : vector<4x1xf32> to vector<4x16xf32>
    %466 = arith.mulf %465, %464 : vector<4x16xf32>
    %cst_175 = arith.constant 1.000000e+00 : f32
    %467 = vector.broadcast %cst_175 : f32 to vector<4x1xf32>
    %468 = arith.subf %467, %393 : vector<4x1xf32>
    %469 = vector.broadcast %468 : vector<4x1xf32> to vector<4x16xf32>
    %470 = arith.mulf %469, %391 : vector<4x16xf32>
    %471 = arith.addf %466, %470 : vector<4x16xf32>
    %472 = vector.extract_strided_slice %3 {offsets = [20, 0], sizes = [4, 1], strides = [1, 1]} : vector<32x1xf32> to vector<4x1xf32>
    %473 = vector.extract_strided_slice %3 {offsets = [8, 0], sizes = [4, 1], strides = [1, 1]} : vector<32x1xf32> to vector<4x1xf32>
    %cst_176 = arith.constant dense<0.000000e+00> : vector<4x16xf32>
    %474 = tpu.matmul %432, %47, %cst_176 {dimension_numbers = #tpu.dot_dimension_numbers<[1], [0], [0], [1], [0, 0, 1, 1], [], []>} : vector<4x16xf32>, vector<16x16xf32>, vector<4x16xf32> -> vector<4x16xf32>
    %475 = vector.broadcast %59 : vector<1x16xf32> to vector<4x16xf32>
    %476 = arith.addf %474, %475 : vector<4x16xf32>
    %cst_177 = arith.constant dense<0.000000e+00> : vector<4x16xf32>
    %477 = tpu.matmul %432, %49, %cst_177 {dimension_numbers = #tpu.dot_dimension_numbers<[1], [0], [0], [1], [0, 0, 1, 1], [], []>} : vector<4x16xf32>, vector<16x16xf32>, vector<4x16xf32> -> vector<4x16xf32>
    %478 = vector.broadcast %61 : vector<1x16xf32> to vector<4x16xf32>
    %479 = arith.addf %477, %478 : vector<4x16xf32>
    %cst_178 = arith.constant dense<0.000000e+00> : vector<4x16xf32>
    %480 = tpu.matmul %432, %51, %cst_178 {dimension_numbers = #tpu.dot_dimension_numbers<[1], [0], [0], [1], [0, 0, 1, 1], [], []>} : vector<4x16xf32>, vector<16x16xf32>, vector<4x16xf32> -> vector<4x16xf32>
    %481 = vector.broadcast %63 : vector<1x16xf32> to vector<4x16xf32>
    %482 = arith.addf %480, %481 : vector<4x16xf32>
    %483 = vector.extract_strided_slice %10 {offsets = [20, 0], sizes = [4, 16], strides = [1, 1]} : vector<32x16xf32> to vector<4x16xf32>
    %484 = arith.addf %483, %476 : vector<4x16xf32>
    %485 = arith.negf %484 : vector<4x16xf32>
    %486 = math.exp %485 : vector<4x16xf32>
    %cst_179 = arith.constant 1.000000e+00 : f32
    %487 = vector.broadcast %cst_179 : f32 to vector<4x16xf32>
    %488 = arith.addf %487, %486 : vector<4x16xf32>
    %489 = arith.divf %487, %488 : vector<4x16xf32>
    %490 = vector.extract_strided_slice %17 {offsets = [20, 0], sizes = [4, 16], strides = [1, 1]} : vector<32x16xf32> to vector<4x16xf32>
    %491 = arith.addf %490, %479 : vector<4x16xf32>
    %492 = arith.negf %491 : vector<4x16xf32>
    %493 = math.exp %492 : vector<4x16xf32>
    %cst_180 = arith.constant 1.000000e+00 : f32
    %494 = vector.broadcast %cst_180 : f32 to vector<4x16xf32>
    %495 = arith.addf %494, %493 : vector<4x16xf32>
    %496 = arith.divf %494, %495 : vector<4x16xf32>
    %497 = vector.extract_strided_slice %24 {offsets = [20, 0], sizes = [4, 16], strides = [1, 1]} : vector<32x16xf32> to vector<4x16xf32>
    %498 = arith.mulf %489, %482 : vector<4x16xf32>
    %499 = arith.addf %497, %498 : vector<4x16xf32>
    %500 = math.tanh %499 : vector<4x16xf32>
    %cst_181 = arith.constant 1.000000e+00 : f32
    %501 = vector.broadcast %cst_181 : f32 to vector<4x16xf32>
    %502 = arith.subf %501, %496 : vector<4x16xf32>
    %503 = arith.mulf %502, %500 : vector<4x16xf32>
    %504 = arith.mulf %496, %432 : vector<4x16xf32>
    %505 = arith.addf %503, %504 : vector<4x16xf32>
    %506 = vector.broadcast %472 : vector<4x1xf32> to vector<4x16xf32>
    %507 = arith.mulf %506, %505 : vector<4x16xf32>
    %cst_182 = arith.constant 1.000000e+00 : f32
    %508 = vector.broadcast %cst_182 : f32 to vector<4x1xf32>
    %509 = arith.subf %508, %472 : vector<4x1xf32>
    %510 = vector.broadcast %509 : vector<4x1xf32> to vector<4x16xf32>
    %511 = arith.mulf %510, %432 : vector<4x16xf32>
    %512 = arith.addf %507, %511 : vector<4x16xf32>
    %cst_183 = arith.constant dense<0.000000e+00> : vector<4x16xf32>
    %513 = tpu.matmul %471, %53, %cst_183 {dimension_numbers = #tpu.dot_dimension_numbers<[1], [0], [0], [1], [0, 0, 1, 1], [], []>} : vector<4x16xf32>, vector<16x16xf32>, vector<4x16xf32> -> vector<4x16xf32>
    %514 = vector.broadcast %65 : vector<1x16xf32> to vector<4x16xf32>
    %515 = arith.addf %513, %514 : vector<4x16xf32>
    %cst_184 = arith.constant dense<0.000000e+00> : vector<4x16xf32>
    %516 = tpu.matmul %471, %55, %cst_184 {dimension_numbers = #tpu.dot_dimension_numbers<[1], [0], [0], [1], [0, 0, 1, 1], [], []>} : vector<4x16xf32>, vector<16x16xf32>, vector<4x16xf32> -> vector<4x16xf32>
    %517 = vector.broadcast %67 : vector<1x16xf32> to vector<4x16xf32>
    %518 = arith.addf %516, %517 : vector<4x16xf32>
    %cst_185 = arith.constant dense<0.000000e+00> : vector<4x16xf32>
    %519 = tpu.matmul %471, %57, %cst_185 {dimension_numbers = #tpu.dot_dimension_numbers<[1], [0], [0], [1], [0, 0, 1, 1], [], []>} : vector<4x16xf32>, vector<16x16xf32>, vector<4x16xf32> -> vector<4x16xf32>
    %520 = vector.broadcast %69 : vector<1x16xf32> to vector<4x16xf32>
    %521 = arith.addf %519, %520 : vector<4x16xf32>
    %522 = vector.extract_strided_slice %31 {offsets = [8, 0], sizes = [4, 16], strides = [1, 1]} : vector<32x16xf32> to vector<4x16xf32>
    %523 = arith.addf %522, %515 : vector<4x16xf32>
    %524 = arith.negf %523 : vector<4x16xf32>
    %525 = math.exp %524 : vector<4x16xf32>
    %cst_186 = arith.constant 1.000000e+00 : f32
    %526 = vector.broadcast %cst_186 : f32 to vector<4x16xf32>
    %527 = arith.addf %526, %525 : vector<4x16xf32>
    %528 = arith.divf %526, %527 : vector<4x16xf32>
    %529 = vector.extract_strided_slice %38 {offsets = [8, 0], sizes = [4, 16], strides = [1, 1]} : vector<32x16xf32> to vector<4x16xf32>
    %530 = arith.addf %529, %518 : vector<4x16xf32>
    %531 = arith.negf %530 : vector<4x16xf32>
    %532 = math.exp %531 : vector<4x16xf32>
    %cst_187 = arith.constant 1.000000e+00 : f32
    %533 = vector.broadcast %cst_187 : f32 to vector<4x16xf32>
    %534 = arith.addf %533, %532 : vector<4x16xf32>
    %535 = arith.divf %533, %534 : vector<4x16xf32>
    %536 = vector.extract_strided_slice %45 {offsets = [8, 0], sizes = [4, 16], strides = [1, 1]} : vector<32x16xf32> to vector<4x16xf32>
    %537 = arith.mulf %528, %521 : vector<4x16xf32>
    %538 = arith.addf %536, %537 : vector<4x16xf32>
    %539 = math.tanh %538 : vector<4x16xf32>
    %cst_188 = arith.constant 1.000000e+00 : f32
    %540 = vector.broadcast %cst_188 : f32 to vector<4x16xf32>
    %541 = arith.subf %540, %535 : vector<4x16xf32>
    %542 = arith.mulf %541, %539 : vector<4x16xf32>
    %543 = arith.mulf %535, %471 : vector<4x16xf32>
    %544 = arith.addf %542, %543 : vector<4x16xf32>
    %545 = vector.broadcast %473 : vector<4x1xf32> to vector<4x16xf32>
    %546 = arith.mulf %545, %544 : vector<4x16xf32>
    %cst_189 = arith.constant 1.000000e+00 : f32
    %547 = vector.broadcast %cst_189 : f32 to vector<4x1xf32>
    %548 = arith.subf %547, %473 : vector<4x1xf32>
    %549 = vector.broadcast %548 : vector<4x1xf32> to vector<4x16xf32>
    %550 = arith.mulf %549, %471 : vector<4x16xf32>
    %551 = arith.addf %546, %550 : vector<4x16xf32>
    %552 = vector.extract_strided_slice %3 {offsets = [24, 0], sizes = [4, 1], strides = [1, 1]} : vector<32x1xf32> to vector<4x1xf32>
    %553 = vector.extract_strided_slice %3 {offsets = [4, 0], sizes = [4, 1], strides = [1, 1]} : vector<32x1xf32> to vector<4x1xf32>
    %cst_190 = arith.constant dense<0.000000e+00> : vector<4x16xf32>
    %554 = tpu.matmul %512, %47, %cst_190 {dimension_numbers = #tpu.dot_dimension_numbers<[1], [0], [0], [1], [0, 0, 1, 1], [], []>} : vector<4x16xf32>, vector<16x16xf32>, vector<4x16xf32> -> vector<4x16xf32>
    %555 = vector.broadcast %59 : vector<1x16xf32> to vector<4x16xf32>
    %556 = arith.addf %554, %555 : vector<4x16xf32>
    %cst_191 = arith.constant dense<0.000000e+00> : vector<4x16xf32>
    %557 = tpu.matmul %512, %49, %cst_191 {dimension_numbers = #tpu.dot_dimension_numbers<[1], [0], [0], [1], [0, 0, 1, 1], [], []>} : vector<4x16xf32>, vector<16x16xf32>, vector<4x16xf32> -> vector<4x16xf32>
    %558 = vector.broadcast %61 : vector<1x16xf32> to vector<4x16xf32>
    %559 = arith.addf %557, %558 : vector<4x16xf32>
    %cst_192 = arith.constant dense<0.000000e+00> : vector<4x16xf32>
    %560 = tpu.matmul %512, %51, %cst_192 {dimension_numbers = #tpu.dot_dimension_numbers<[1], [0], [0], [1], [0, 0, 1, 1], [], []>} : vector<4x16xf32>, vector<16x16xf32>, vector<4x16xf32> -> vector<4x16xf32>
    %561 = vector.broadcast %63 : vector<1x16xf32> to vector<4x16xf32>
    %562 = arith.addf %560, %561 : vector<4x16xf32>
    %563 = vector.extract_strided_slice %10 {offsets = [24, 0], sizes = [4, 16], strides = [1, 1]} : vector<32x16xf32> to vector<4x16xf32>
    %564 = arith.addf %563, %556 : vector<4x16xf32>
    %565 = arith.negf %564 : vector<4x16xf32>
    %566 = math.exp %565 : vector<4x16xf32>
    %cst_193 = arith.constant 1.000000e+00 : f32
    %567 = vector.broadcast %cst_193 : f32 to vector<4x16xf32>
    %568 = arith.addf %567, %566 : vector<4x16xf32>
    %569 = arith.divf %567, %568 : vector<4x16xf32>
    %570 = vector.extract_strided_slice %17 {offsets = [24, 0], sizes = [4, 16], strides = [1, 1]} : vector<32x16xf32> to vector<4x16xf32>
    %571 = arith.addf %570, %559 : vector<4x16xf32>
    %572 = arith.negf %571 : vector<4x16xf32>
    %573 = math.exp %572 : vector<4x16xf32>
    %cst_194 = arith.constant 1.000000e+00 : f32
    %574 = vector.broadcast %cst_194 : f32 to vector<4x16xf32>
    %575 = arith.addf %574, %573 : vector<4x16xf32>
    %576 = arith.divf %574, %575 : vector<4x16xf32>
    %577 = vector.extract_strided_slice %24 {offsets = [24, 0], sizes = [4, 16], strides = [1, 1]} : vector<32x16xf32> to vector<4x16xf32>
    %578 = arith.mulf %569, %562 : vector<4x16xf32>
    %579 = arith.addf %577, %578 : vector<4x16xf32>
    %580 = math.tanh %579 : vector<4x16xf32>
    %cst_195 = arith.constant 1.000000e+00 : f32
    %581 = vector.broadcast %cst_195 : f32 to vector<4x16xf32>
    %582 = arith.subf %581, %576 : vector<4x16xf32>
    %583 = arith.mulf %582, %580 : vector<4x16xf32>
    %584 = arith.mulf %576, %512 : vector<4x16xf32>
    %585 = arith.addf %583, %584 : vector<4x16xf32>
    %586 = vector.broadcast %552 : vector<4x1xf32> to vector<4x16xf32>
    %587 = arith.mulf %586, %585 : vector<4x16xf32>
    %cst_196 = arith.constant 1.000000e+00 : f32
    %588 = vector.broadcast %cst_196 : f32 to vector<4x1xf32>
    %589 = arith.subf %588, %552 : vector<4x1xf32>
    %590 = vector.broadcast %589 : vector<4x1xf32> to vector<4x16xf32>
    %591 = arith.mulf %590, %512 : vector<4x16xf32>
    %592 = arith.addf %587, %591 : vector<4x16xf32>
    %cst_197 = arith.constant dense<0.000000e+00> : vector<4x16xf32>
    %593 = tpu.matmul %551, %53, %cst_197 {dimension_numbers = #tpu.dot_dimension_numbers<[1], [0], [0], [1], [0, 0, 1, 1], [], []>} : vector<4x16xf32>, vector<16x16xf32>, vector<4x16xf32> -> vector<4x16xf32>
    %594 = vector.broadcast %65 : vector<1x16xf32> to vector<4x16xf32>
    %595 = arith.addf %593, %594 : vector<4x16xf32>
    %cst_198 = arith.constant dense<0.000000e+00> : vector<4x16xf32>
    %596 = tpu.matmul %551, %55, %cst_198 {dimension_numbers = #tpu.dot_dimension_numbers<[1], [0], [0], [1], [0, 0, 1, 1], [], []>} : vector<4x16xf32>, vector<16x16xf32>, vector<4x16xf32> -> vector<4x16xf32>
    %597 = vector.broadcast %67 : vector<1x16xf32> to vector<4x16xf32>
    %598 = arith.addf %596, %597 : vector<4x16xf32>
    %cst_199 = arith.constant dense<0.000000e+00> : vector<4x16xf32>
    %599 = tpu.matmul %551, %57, %cst_199 {dimension_numbers = #tpu.dot_dimension_numbers<[1], [0], [0], [1], [0, 0, 1, 1], [], []>} : vector<4x16xf32>, vector<16x16xf32>, vector<4x16xf32> -> vector<4x16xf32>
    %600 = vector.broadcast %69 : vector<1x16xf32> to vector<4x16xf32>
    %601 = arith.addf %599, %600 : vector<4x16xf32>
    %602 = vector.extract_strided_slice %31 {offsets = [4, 0], sizes = [4, 16], strides = [1, 1]} : vector<32x16xf32> to vector<4x16xf32>
    %603 = arith.addf %602, %595 : vector<4x16xf32>
    %604 = arith.negf %603 : vector<4x16xf32>
    %605 = math.exp %604 : vector<4x16xf32>
    %cst_200 = arith.constant 1.000000e+00 : f32
    %606 = vector.broadcast %cst_200 : f32 to vector<4x16xf32>
    %607 = arith.addf %606, %605 : vector<4x16xf32>
    %608 = arith.divf %606, %607 : vector<4x16xf32>
    %609 = vector.extract_strided_slice %38 {offsets = [4, 0], sizes = [4, 16], strides = [1, 1]} : vector<32x16xf32> to vector<4x16xf32>
    %610 = arith.addf %609, %598 : vector<4x16xf32>
    %611 = arith.negf %610 : vector<4x16xf32>
    %612 = math.exp %611 : vector<4x16xf32>
    %cst_201 = arith.constant 1.000000e+00 : f32
    %613 = vector.broadcast %cst_201 : f32 to vector<4x16xf32>
    %614 = arith.addf %613, %612 : vector<4x16xf32>
    %615 = arith.divf %613, %614 : vector<4x16xf32>
    %616 = vector.extract_strided_slice %45 {offsets = [4, 0], sizes = [4, 16], strides = [1, 1]} : vector<32x16xf32> to vector<4x16xf32>
    %617 = arith.mulf %608, %601 : vector<4x16xf32>
    %618 = arith.addf %616, %617 : vector<4x16xf32>
    %619 = math.tanh %618 : vector<4x16xf32>
    %cst_202 = arith.constant 1.000000e+00 : f32
    %620 = vector.broadcast %cst_202 : f32 to vector<4x16xf32>
    %621 = arith.subf %620, %615 : vector<4x16xf32>
    %622 = arith.mulf %621, %619 : vector<4x16xf32>
    %623 = arith.mulf %615, %551 : vector<4x16xf32>
    %624 = arith.addf %622, %623 : vector<4x16xf32>
    %625 = vector.broadcast %553 : vector<4x1xf32> to vector<4x16xf32>
    %626 = arith.mulf %625, %624 : vector<4x16xf32>
    %cst_203 = arith.constant 1.000000e+00 : f32
    %627 = vector.broadcast %cst_203 : f32 to vector<4x1xf32>
    %628 = arith.subf %627, %553 : vector<4x1xf32>
    %629 = vector.broadcast %628 : vector<4x1xf32> to vector<4x16xf32>
    %630 = arith.mulf %629, %551 : vector<4x16xf32>
    %631 = arith.addf %626, %630 : vector<4x16xf32>
    %632 = vector.extract_strided_slice %3 {offsets = [28, 0], sizes = [4, 1], strides = [1, 1]} : vector<32x1xf32> to vector<4x1xf32>
    %633 = vector.extract_strided_slice %3 {offsets = [0, 0], sizes = [4, 1], strides = [1, 1]} : vector<32x1xf32> to vector<4x1xf32>
    %cst_204 = arith.constant dense<0.000000e+00> : vector<4x16xf32>
    %634 = tpu.matmul %592, %47, %cst_204 {dimension_numbers = #tpu.dot_dimension_numbers<[1], [0], [0], [1], [0, 0, 1, 1], [], []>} : vector<4x16xf32>, vector<16x16xf32>, vector<4x16xf32> -> vector<4x16xf32>
    %635 = vector.broadcast %59 : vector<1x16xf32> to vector<4x16xf32>
    %636 = arith.addf %634, %635 : vector<4x16xf32>
    %cst_205 = arith.constant dense<0.000000e+00> : vector<4x16xf32>
    %637 = tpu.matmul %592, %49, %cst_205 {dimension_numbers = #tpu.dot_dimension_numbers<[1], [0], [0], [1], [0, 0, 1, 1], [], []>} : vector<4x16xf32>, vector<16x16xf32>, vector<4x16xf32> -> vector<4x16xf32>
    %638 = vector.broadcast %61 : vector<1x16xf32> to vector<4x16xf32>
    %639 = arith.addf %637, %638 : vector<4x16xf32>
    %cst_206 = arith.constant dense<0.000000e+00> : vector<4x16xf32>
    %640 = tpu.matmul %592, %51, %cst_206 {dimension_numbers = #tpu.dot_dimension_numbers<[1], [0], [0], [1], [0, 0, 1, 1], [], []>} : vector<4x16xf32>, vector<16x16xf32>, vector<4x16xf32> -> vector<4x16xf32>
    %641 = vector.broadcast %63 : vector<1x16xf32> to vector<4x16xf32>
    %642 = arith.addf %640, %641 : vector<4x16xf32>
    %643 = vector.extract_strided_slice %10 {offsets = [28, 0], sizes = [4, 16], strides = [1, 1]} : vector<32x16xf32> to vector<4x16xf32>
    %644 = arith.addf %643, %636 : vector<4x16xf32>
    %645 = arith.negf %644 : vector<4x16xf32>
    %646 = math.exp %645 : vector<4x16xf32>
    %cst_207 = arith.constant 1.000000e+00 : f32
    %647 = vector.broadcast %cst_207 : f32 to vector<4x16xf32>
    %648 = arith.addf %647, %646 : vector<4x16xf32>
    %649 = arith.divf %647, %648 : vector<4x16xf32>
    %650 = vector.extract_strided_slice %17 {offsets = [28, 0], sizes = [4, 16], strides = [1, 1]} : vector<32x16xf32> to vector<4x16xf32>
    %651 = arith.addf %650, %639 : vector<4x16xf32>
    %652 = arith.negf %651 : vector<4x16xf32>
    %653 = math.exp %652 : vector<4x16xf32>
    %cst_208 = arith.constant 1.000000e+00 : f32
    %654 = vector.broadcast %cst_208 : f32 to vector<4x16xf32>
    %655 = arith.addf %654, %653 : vector<4x16xf32>
    %656 = arith.divf %654, %655 : vector<4x16xf32>
    %657 = vector.extract_strided_slice %24 {offsets = [28, 0], sizes = [4, 16], strides = [1, 1]} : vector<32x16xf32> to vector<4x16xf32>
    %658 = arith.mulf %649, %642 : vector<4x16xf32>
    %659 = arith.addf %657, %658 : vector<4x16xf32>
    %660 = math.tanh %659 : vector<4x16xf32>
    %cst_209 = arith.constant 1.000000e+00 : f32
    %661 = vector.broadcast %cst_209 : f32 to vector<4x16xf32>
    %662 = arith.subf %661, %656 : vector<4x16xf32>
    %663 = arith.mulf %662, %660 : vector<4x16xf32>
    %664 = arith.mulf %656, %592 : vector<4x16xf32>
    %665 = arith.addf %663, %664 : vector<4x16xf32>
    %666 = vector.broadcast %632 : vector<4x1xf32> to vector<4x16xf32>
    %667 = arith.mulf %666, %665 : vector<4x16xf32>
    %cst_210 = arith.constant 1.000000e+00 : f32
    %668 = vector.broadcast %cst_210 : f32 to vector<4x1xf32>
    %669 = arith.subf %668, %632 : vector<4x1xf32>
    %670 = vector.broadcast %669 : vector<4x1xf32> to vector<4x16xf32>
    %671 = arith.mulf %670, %592 : vector<4x16xf32>
    %672 = arith.addf %667, %671 : vector<4x16xf32>
    %cst_211 = arith.constant dense<0.000000e+00> : vector<4x16xf32>
    %673 = tpu.matmul %631, %53, %cst_211 {dimension_numbers = #tpu.dot_dimension_numbers<[1], [0], [0], [1], [0, 0, 1, 1], [], []>} : vector<4x16xf32>, vector<16x16xf32>, vector<4x16xf32> -> vector<4x16xf32>
    %674 = vector.broadcast %65 : vector<1x16xf32> to vector<4x16xf32>
    %675 = arith.addf %673, %674 : vector<4x16xf32>
    %cst_212 = arith.constant dense<0.000000e+00> : vector<4x16xf32>
    %676 = tpu.matmul %631, %55, %cst_212 {dimension_numbers = #tpu.dot_dimension_numbers<[1], [0], [0], [1], [0, 0, 1, 1], [], []>} : vector<4x16xf32>, vector<16x16xf32>, vector<4x16xf32> -> vector<4x16xf32>
    %677 = vector.broadcast %67 : vector<1x16xf32> to vector<4x16xf32>
    %678 = arith.addf %676, %677 : vector<4x16xf32>
    %cst_213 = arith.constant dense<0.000000e+00> : vector<4x16xf32>
    %679 = tpu.matmul %631, %57, %cst_213 {dimension_numbers = #tpu.dot_dimension_numbers<[1], [0], [0], [1], [0, 0, 1, 1], [], []>} : vector<4x16xf32>, vector<16x16xf32>, vector<4x16xf32> -> vector<4x16xf32>
    %680 = vector.broadcast %69 : vector<1x16xf32> to vector<4x16xf32>
    %681 = arith.addf %679, %680 : vector<4x16xf32>
    %682 = vector.extract_strided_slice %31 {offsets = [0, 0], sizes = [4, 16], strides = [1, 1]} : vector<32x16xf32> to vector<4x16xf32>
    %683 = arith.addf %682, %675 : vector<4x16xf32>
    %684 = arith.negf %683 : vector<4x16xf32>
    %685 = math.exp %684 : vector<4x16xf32>
    %cst_214 = arith.constant 1.000000e+00 : f32
    %686 = vector.broadcast %cst_214 : f32 to vector<4x16xf32>
    %687 = arith.addf %686, %685 : vector<4x16xf32>
    %688 = arith.divf %686, %687 : vector<4x16xf32>
    %689 = vector.extract_strided_slice %38 {offsets = [0, 0], sizes = [4, 16], strides = [1, 1]} : vector<32x16xf32> to vector<4x16xf32>
    %690 = arith.addf %689, %678 : vector<4x16xf32>
    %691 = arith.negf %690 : vector<4x16xf32>
    %692 = math.exp %691 : vector<4x16xf32>
    %cst_215 = arith.constant 1.000000e+00 : f32
    %693 = vector.broadcast %cst_215 : f32 to vector<4x16xf32>
    %694 = arith.addf %693, %692 : vector<4x16xf32>
    %695 = arith.divf %693, %694 : vector<4x16xf32>
    %696 = vector.extract_strided_slice %45 {offsets = [0, 0], sizes = [4, 16], strides = [1, 1]} : vector<32x16xf32> to vector<4x16xf32>
    %697 = arith.mulf %688, %681 : vector<4x16xf32>
    %698 = arith.addf %696, %697 : vector<4x16xf32>
    %699 = math.tanh %698 : vector<4x16xf32>
    %cst_216 = arith.constant 1.000000e+00 : f32
    %700 = vector.broadcast %cst_216 : f32 to vector<4x16xf32>
    %701 = arith.subf %700, %695 : vector<4x16xf32>
    %702 = arith.mulf %701, %699 : vector<4x16xf32>
    %703 = arith.mulf %695, %631 : vector<4x16xf32>
    %704 = arith.addf %702, %703 : vector<4x16xf32>
    %705 = vector.broadcast %633 : vector<4x1xf32> to vector<4x16xf32>
    %706 = arith.mulf %705, %704 : vector<4x16xf32>
    %cst_217 = arith.constant 1.000000e+00 : f32
    %707 = vector.broadcast %cst_217 : f32 to vector<4x1xf32>
    %708 = arith.subf %707, %633 : vector<4x1xf32>
    %709 = vector.broadcast %708 : vector<4x1xf32> to vector<4x16xf32>
    %710 = arith.mulf %709, %631 : vector<4x16xf32>
    %711 = arith.addf %706, %710 : vector<4x16xf32>
    %c0_218 = arith.constant 0 : index
    %c0_219 = arith.constant 0 : index
    %c0_220 = arith.constant 0 : index
    %c0_221 = arith.constant 0 : index
    %c0_222 = arith.constant 0 : index
    %712 = vector.load %arg13[%c0_218, %c0_219, %c0_220, %c0_221, %c0_222] : memref<3x3x2x16x32xf32, #tpu.memory_space<vmem>>, vector<1x1x1x16x32xf32>
    %713 = vector.shape_cast %712 : vector<1x1x1x16x32xf32> to vector<16x32xf32>
    %cst_223 = arith.constant dense<0.000000e+00> : vector<4x32xf32>
    %714 = tpu.matmul %672, %713, %cst_223 {dimension_numbers = #tpu.dot_dimension_numbers<[1], [0], [0], [1], [0, 0, 1, 1], [], []>} : vector<4x16xf32>, vector<16x32xf32>, vector<4x32xf32> -> vector<4x32xf32>
    %c0_224 = arith.constant 0 : index
    %c0_225 = arith.constant 0 : index
    %c1_226 = arith.constant 1 : index
    %c0_227 = arith.constant 0 : index
    %c0_228 = arith.constant 0 : index
    %715 = vector.load %arg13[%c0_224, %c0_225, %c1_226, %c0_227, %c0_228] : memref<3x3x2x16x32xf32, #tpu.memory_space<vmem>>, vector<1x1x1x16x32xf32>
    %716 = vector.shape_cast %715 : vector<1x1x1x16x32xf32> to vector<16x32xf32>
    %cst_229 = arith.constant dense<0.000000e+00> : vector<4x32xf32>
    %717 = tpu.matmul %711, %716, %cst_229 {dimension_numbers = #tpu.dot_dimension_numbers<[1], [0], [0], [1], [0, 0, 1, 1], [], []>} : vector<4x16xf32>, vector<16x32xf32>, vector<4x32xf32> -> vector<4x32xf32>
    %718 = arith.addf %714, %717 : vector<4x32xf32>
    %c0_230 = arith.constant 0 : index
    %c0_231 = arith.constant 0 : index
    %c0_232 = arith.constant 0 : index
    %c0_233 = arith.constant 0 : index
    %719 = vector.load %arg16[%c0_230, %c0_231, %c0_232, %c0_233] : memref<3x3x1x32xf32, #tpu.memory_space<vmem>>, vector<1x1x1x32xf32>
    %720 = vector.shape_cast %719 : vector<1x1x1x32xf32> to vector<1x32xf32>
    %721 = vector.broadcast %720 : vector<1x32xf32> to vector<4x32xf32>
    %722 = arith.addf %718, %721 : vector<4x32xf32>
    %c0_234 = arith.constant 0 : index
    %c1_235 = arith.constant 1 : index
    %c0_236 = arith.constant 0 : index
    %c0_237 = arith.constant 0 : index
    %c0_238 = arith.constant 0 : index
    %723 = vector.load %arg13[%c0_234, %c1_235, %c0_236, %c0_237, %c0_238] : memref<3x3x2x16x32xf32, #tpu.memory_space<vmem>>, vector<1x1x1x16x32xf32>
    %724 = vector.shape_cast %723 : vector<1x1x1x16x32xf32> to vector<16x32xf32>
    %cst_239 = arith.constant dense<0.000000e+00> : vector<4x32xf32>
    %725 = tpu.matmul %672, %724, %cst_239 {dimension_numbers = #tpu.dot_dimension_numbers<[1], [0], [0], [1], [0, 0, 1, 1], [], []>} : vector<4x16xf32>, vector<16x32xf32>, vector<4x32xf32> -> vector<4x32xf32>
    %c0_240 = arith.constant 0 : index
    %c1_241 = arith.constant 1 : index
    %c1_242 = arith.constant 1 : index
    %c0_243 = arith.constant 0 : index
    %c0_244 = arith.constant 0 : index
    %726 = vector.load %arg13[%c0_240, %c1_241, %c1_242, %c0_243, %c0_244] : memref<3x3x2x16x32xf32, #tpu.memory_space<vmem>>, vector<1x1x1x16x32xf32>
    %727 = vector.shape_cast %726 : vector<1x1x1x16x32xf32> to vector<16x32xf32>
    %cst_245 = arith.constant dense<0.000000e+00> : vector<4x32xf32>
    %728 = tpu.matmul %711, %727, %cst_245 {dimension_numbers = #tpu.dot_dimension_numbers<[1], [0], [0], [1], [0, 0, 1, 1], [], []>} : vector<4x16xf32>, vector<16x32xf32>, vector<4x32xf32> -> vector<4x32xf32>
    %729 = arith.addf %725, %728 : vector<4x32xf32>
    %c0_246 = arith.constant 0 : index
    %c1_247 = arith.constant 1 : index
    %c0_248 = arith.constant 0 : index
    %c0_249 = arith.constant 0 : index
    %730 = vector.load %arg16[%c0_246, %c1_247, %c0_248, %c0_249] : memref<3x3x1x32xf32, #tpu.memory_space<vmem>>, vector<1x1x1x32xf32>
    %731 = vector.shape_cast %730 : vector<1x1x1x32xf32> to vector<1x32xf32>
    %732 = vector.broadcast %731 : vector<1x32xf32> to vector<4x32xf32>
    %733 = arith.addf %729, %732 : vector<4x32xf32>
    %c0_250 = arith.constant 0 : index
    %c2_251 = arith.constant 2 : index
    %c0_252 = arith.constant 0 : index
    %c0_253 = arith.constant 0 : index
    %c0_254 = arith.constant 0 : index
    %734 = vector.load %arg13[%c0_250, %c2_251, %c0_252, %c0_253, %c0_254] : memref<3x3x2x16x32xf32, #tpu.memory_space<vmem>>, vector<1x1x1x16x32xf32>
    %735 = vector.shape_cast %734 : vector<1x1x1x16x32xf32> to vector<16x32xf32>
    %cst_255 = arith.constant dense<0.000000e+00> : vector<4x32xf32>
    %736 = tpu.matmul %672, %735, %cst_255 {dimension_numbers = #tpu.dot_dimension_numbers<[1], [0], [0], [1], [0, 0, 1, 1], [], []>} : vector<4x16xf32>, vector<16x32xf32>, vector<4x32xf32> -> vector<4x32xf32>
    %c0_256 = arith.constant 0 : index
    %c2_257 = arith.constant 2 : index
    %c1_258 = arith.constant 1 : index
    %c0_259 = arith.constant 0 : index
    %c0_260 = arith.constant 0 : index
    %737 = vector.load %arg13[%c0_256, %c2_257, %c1_258, %c0_259, %c0_260] : memref<3x3x2x16x32xf32, #tpu.memory_space<vmem>>, vector<1x1x1x16x32xf32>
    %738 = vector.shape_cast %737 : vector<1x1x1x16x32xf32> to vector<16x32xf32>
    %cst_261 = arith.constant dense<0.000000e+00> : vector<4x32xf32>
    %739 = tpu.matmul %711, %738, %cst_261 {dimension_numbers = #tpu.dot_dimension_numbers<[1], [0], [0], [1], [0, 0, 1, 1], [], []>} : vector<4x16xf32>, vector<16x32xf32>, vector<4x32xf32> -> vector<4x32xf32>
    %740 = arith.addf %736, %739 : vector<4x32xf32>
    %c0_262 = arith.constant 0 : index
    %c2_263 = arith.constant 2 : index
    %c0_264 = arith.constant 0 : index
    %c0_265 = arith.constant 0 : index
    %741 = vector.load %arg16[%c0_262, %c2_263, %c0_264, %c0_265] : memref<3x3x1x32xf32, #tpu.memory_space<vmem>>, vector<1x1x1x32xf32>
    %742 = vector.shape_cast %741 : vector<1x1x1x32xf32> to vector<1x32xf32>
    %743 = vector.broadcast %742 : vector<1x32xf32> to vector<4x32xf32>
    %744 = arith.addf %740, %743 : vector<4x32xf32>
    %c1_266 = arith.constant 1 : index
    %c0_267 = arith.constant 0 : index
    %c0_268 = arith.constant 0 : index
    %c0_269 = arith.constant 0 : index
    %c0_270 = arith.constant 0 : index
    %745 = vector.load %arg13[%c1_266, %c0_267, %c0_268, %c0_269, %c0_270] : memref<3x3x2x16x32xf32, #tpu.memory_space<vmem>>, vector<1x1x1x16x32xf32>
    %746 = vector.shape_cast %745 : vector<1x1x1x16x32xf32> to vector<16x32xf32>
    %cst_271 = arith.constant dense<0.000000e+00> : vector<4x32xf32>
    %747 = tpu.matmul %672, %746, %cst_271 {dimension_numbers = #tpu.dot_dimension_numbers<[1], [0], [0], [1], [0, 0, 1, 1], [], []>} : vector<4x16xf32>, vector<16x32xf32>, vector<4x32xf32> -> vector<4x32xf32>
    %c1_272 = arith.constant 1 : index
    %c0_273 = arith.constant 0 : index
    %c1_274 = arith.constant 1 : index
    %c0_275 = arith.constant 0 : index
    %c0_276 = arith.constant 0 : index
    %748 = vector.load %arg13[%c1_272, %c0_273, %c1_274, %c0_275, %c0_276] : memref<3x3x2x16x32xf32, #tpu.memory_space<vmem>>, vector<1x1x1x16x32xf32>
    %749 = vector.shape_cast %748 : vector<1x1x1x16x32xf32> to vector<16x32xf32>
    %cst_277 = arith.constant dense<0.000000e+00> : vector<4x32xf32>
    %750 = tpu.matmul %711, %749, %cst_277 {dimension_numbers = #tpu.dot_dimension_numbers<[1], [0], [0], [1], [0, 0, 1, 1], [], []>} : vector<4x16xf32>, vector<16x32xf32>, vector<4x32xf32> -> vector<4x32xf32>
    %751 = arith.addf %747, %750 : vector<4x32xf32>
    %c1_278 = arith.constant 1 : index
    %c0_279 = arith.constant 0 : index
    %c0_280 = arith.constant 0 : index
    %c0_281 = arith.constant 0 : index
    %752 = vector.load %arg16[%c1_278, %c0_279, %c0_280, %c0_281] : memref<3x3x1x32xf32, #tpu.memory_space<vmem>>, vector<1x1x1x32xf32>
    %753 = vector.shape_cast %752 : vector<1x1x1x32xf32> to vector<1x32xf32>
    %754 = vector.broadcast %753 : vector<1x32xf32> to vector<4x32xf32>
    %755 = arith.addf %751, %754 : vector<4x32xf32>
    %c1_282 = arith.constant 1 : index
    %c1_283 = arith.constant 1 : index
    %c0_284 = arith.constant 0 : index
    %c0_285 = arith.constant 0 : index
    %c0_286 = arith.constant 0 : index
    %756 = vector.load %arg13[%c1_282, %c1_283, %c0_284, %c0_285, %c0_286] : memref<3x3x2x16x32xf32, #tpu.memory_space<vmem>>, vector<1x1x1x16x32xf32>
    %757 = vector.shape_cast %756 : vector<1x1x1x16x32xf32> to vector<16x32xf32>
    %cst_287 = arith.constant dense<0.000000e+00> : vector<4x32xf32>
    %758 = tpu.matmul %672, %757, %cst_287 {dimension_numbers = #tpu.dot_dimension_numbers<[1], [0], [0], [1], [0, 0, 1, 1], [], []>} : vector<4x16xf32>, vector<16x32xf32>, vector<4x32xf32> -> vector<4x32xf32>
    %c1_288 = arith.constant 1 : index
    %c1_289 = arith.constant 1 : index
    %c1_290 = arith.constant 1 : index
    %c0_291 = arith.constant 0 : index
    %c0_292 = arith.constant 0 : index
    %759 = vector.load %arg13[%c1_288, %c1_289, %c1_290, %c0_291, %c0_292] : memref<3x3x2x16x32xf32, #tpu.memory_space<vmem>>, vector<1x1x1x16x32xf32>
    %760 = vector.shape_cast %759 : vector<1x1x1x16x32xf32> to vector<16x32xf32>
    %cst_293 = arith.constant dense<0.000000e+00> : vector<4x32xf32>
    %761 = tpu.matmul %711, %760, %cst_293 {dimension_numbers = #tpu.dot_dimension_numbers<[1], [0], [0], [1], [0, 0, 1, 1], [], []>} : vector<4x16xf32>, vector<16x32xf32>, vector<4x32xf32> -> vector<4x32xf32>
    %762 = arith.addf %758, %761 : vector<4x32xf32>
    %c1_294 = arith.constant 1 : index
    %c1_295 = arith.constant 1 : index
    %c0_296 = arith.constant 0 : index
    %c0_297 = arith.constant 0 : index
    %763 = vector.load %arg16[%c1_294, %c1_295, %c0_296, %c0_297] : memref<3x3x1x32xf32, #tpu.memory_space<vmem>>, vector<1x1x1x32xf32>
    %764 = vector.shape_cast %763 : vector<1x1x1x32xf32> to vector<1x32xf32>
    %765 = vector.broadcast %764 : vector<1x32xf32> to vector<4x32xf32>
    %766 = arith.addf %762, %765 : vector<4x32xf32>
    %c1_298 = arith.constant 1 : index
    %c2_299 = arith.constant 2 : index
    %c0_300 = arith.constant 0 : index
    %c0_301 = arith.constant 0 : index
    %c0_302 = arith.constant 0 : index
    %767 = vector.load %arg13[%c1_298, %c2_299, %c0_300, %c0_301, %c0_302] : memref<3x3x2x16x32xf32, #tpu.memory_space<vmem>>, vector<1x1x1x16x32xf32>
    %768 = vector.shape_cast %767 : vector<1x1x1x16x32xf32> to vector<16x32xf32>
    %cst_303 = arith.constant dense<0.000000e+00> : vector<4x32xf32>
    %769 = tpu.matmul %672, %768, %cst_303 {dimension_numbers = #tpu.dot_dimension_numbers<[1], [0], [0], [1], [0, 0, 1, 1], [], []>} : vector<4x16xf32>, vector<16x32xf32>, vector<4x32xf32> -> vector<4x32xf32>
    %c1_304 = arith.constant 1 : index
    %c2_305 = arith.constant 2 : index
    %c1_306 = arith.constant 1 : index
    %c0_307 = arith.constant 0 : index
    %c0_308 = arith.constant 0 : index
    %770 = vector.load %arg13[%c1_304, %c2_305, %c1_306, %c0_307, %c0_308] : memref<3x3x2x16x32xf32, #tpu.memory_space<vmem>>, vector<1x1x1x16x32xf32>
    %771 = vector.shape_cast %770 : vector<1x1x1x16x32xf32> to vector<16x32xf32>
    %cst_309 = arith.constant dense<0.000000e+00> : vector<4x32xf32>
    %772 = tpu.matmul %711, %771, %cst_309 {dimension_numbers = #tpu.dot_dimension_numbers<[1], [0], [0], [1], [0, 0, 1, 1], [], []>} : vector<4x16xf32>, vector<16x32xf32>, vector<4x32xf32> -> vector<4x32xf32>
    %773 = arith.addf %769, %772 : vector<4x32xf32>
    %c1_310 = arith.constant 1 : index
    %c2_311 = arith.constant 2 : index
    %c0_312 = arith.constant 0 : index
    %c0_313 = arith.constant 0 : index
    %774 = vector.load %arg16[%c1_310, %c2_311, %c0_312, %c0_313] : memref<3x3x1x32xf32, #tpu.memory_space<vmem>>, vector<1x1x1x32xf32>
    %775 = vector.shape_cast %774 : vector<1x1x1x32xf32> to vector<1x32xf32>
    %776 = vector.broadcast %775 : vector<1x32xf32> to vector<4x32xf32>
    %777 = arith.addf %773, %776 : vector<4x32xf32>
    %c2_314 = arith.constant 2 : index
    %c0_315 = arith.constant 0 : index
    %c0_316 = arith.constant 0 : index
    %c0_317 = arith.constant 0 : index
    %c0_318 = arith.constant 0 : index
    %778 = vector.load %arg13[%c2_314, %c0_315, %c0_316, %c0_317, %c0_318] : memref<3x3x2x16x32xf32, #tpu.memory_space<vmem>>, vector<1x1x1x16x32xf32>
    %779 = vector.shape_cast %778 : vector<1x1x1x16x32xf32> to vector<16x32xf32>
    %cst_319 = arith.constant dense<0.000000e+00> : vector<4x32xf32>
    %780 = tpu.matmul %672, %779, %cst_319 {dimension_numbers = #tpu.dot_dimension_numbers<[1], [0], [0], [1], [0, 0, 1, 1], [], []>} : vector<4x16xf32>, vector<16x32xf32>, vector<4x32xf32> -> vector<4x32xf32>
    %c2_320 = arith.constant 2 : index
    %c0_321 = arith.constant 0 : index
    %c1_322 = arith.constant 1 : index
    %c0_323 = arith.constant 0 : index
    %c0_324 = arith.constant 0 : index
    %781 = vector.load %arg13[%c2_320, %c0_321, %c1_322, %c0_323, %c0_324] : memref<3x3x2x16x32xf32, #tpu.memory_space<vmem>>, vector<1x1x1x16x32xf32>
    %782 = vector.shape_cast %781 : vector<1x1x1x16x32xf32> to vector<16x32xf32>
    %cst_325 = arith.constant dense<0.000000e+00> : vector<4x32xf32>
    %783 = tpu.matmul %711, %782, %cst_325 {dimension_numbers = #tpu.dot_dimension_numbers<[1], [0], [0], [1], [0, 0, 1, 1], [], []>} : vector<4x16xf32>, vector<16x32xf32>, vector<4x32xf32> -> vector<4x32xf32>
    %784 = arith.addf %780, %783 : vector<4x32xf32>
    %c2_326 = arith.constant 2 : index
    %c0_327 = arith.constant 0 : index
    %c0_328 = arith.constant 0 : index
    %c0_329 = arith.constant 0 : index
    %785 = vector.load %arg16[%c2_326, %c0_327, %c0_328, %c0_329] : memref<3x3x1x32xf32, #tpu.memory_space<vmem>>, vector<1x1x1x32xf32>
    %786 = vector.shape_cast %785 : vector<1x1x1x32xf32> to vector<1x32xf32>
    %787 = vector.broadcast %786 : vector<1x32xf32> to vector<4x32xf32>
    %788 = arith.addf %784, %787 : vector<4x32xf32>
    %c2_330 = arith.constant 2 : index
    %c1_331 = arith.constant 1 : index
    %c0_332 = arith.constant 0 : index
    %c0_333 = arith.constant 0 : index
    %c0_334 = arith.constant 0 : index
    %789 = vector.load %arg13[%c2_330, %c1_331, %c0_332, %c0_333, %c0_334] : memref<3x3x2x16x32xf32, #tpu.memory_space<vmem>>, vector<1x1x1x16x32xf32>
    %790 = vector.shape_cast %789 : vector<1x1x1x16x32xf32> to vector<16x32xf32>
    %cst_335 = arith.constant dense<0.000000e+00> : vector<4x32xf32>
    %791 = tpu.matmul %672, %790, %cst_335 {dimension_numbers = #tpu.dot_dimension_numbers<[1], [0], [0], [1], [0, 0, 1, 1], [], []>} : vector<4x16xf32>, vector<16x32xf32>, vector<4x32xf32> -> vector<4x32xf32>
    %c2_336 = arith.constant 2 : index
    %c1_337 = arith.constant 1 : index
    %c1_338 = arith.constant 1 : index
    %c0_339 = arith.constant 0 : index
    %c0_340 = arith.constant 0 : index
    %792 = vector.load %arg13[%c2_336, %c1_337, %c1_338, %c0_339, %c0_340] : memref<3x3x2x16x32xf32, #tpu.memory_space<vmem>>, vector<1x1x1x16x32xf32>
    %793 = vector.shape_cast %792 : vector<1x1x1x16x32xf32> to vector<16x32xf32>
    %cst_341 = arith.constant dense<0.000000e+00> : vector<4x32xf32>
    %794 = tpu.matmul %711, %793, %cst_341 {dimension_numbers = #tpu.dot_dimension_numbers<[1], [0], [0], [1], [0, 0, 1, 1], [], []>} : vector<4x16xf32>, vector<16x32xf32>, vector<4x32xf32> -> vector<4x32xf32>
    %795 = arith.addf %791, %794 : vector<4x32xf32>
    %c2_342 = arith.constant 2 : index
    %c1_343 = arith.constant 1 : index
    %c0_344 = arith.constant 0 : index
    %c0_345 = arith.constant 0 : index
    %796 = vector.load %arg16[%c2_342, %c1_343, %c0_344, %c0_345] : memref<3x3x1x32xf32, #tpu.memory_space<vmem>>, vector<1x1x1x32xf32>
    %797 = vector.shape_cast %796 : vector<1x1x1x32xf32> to vector<1x32xf32>
    %798 = vector.broadcast %797 : vector<1x32xf32> to vector<4x32xf32>
    %799 = arith.addf %795, %798 : vector<4x32xf32>
    %c2_346 = arith.constant 2 : index
    %c2_347 = arith.constant 2 : index
    %c0_348 = arith.constant 0 : index
    %c0_349 = arith.constant 0 : index
    %c0_350 = arith.constant 0 : index
    %800 = vector.load %arg13[%c2_346, %c2_347, %c0_348, %c0_349, %c0_350] : memref<3x3x2x16x32xf32, #tpu.memory_space<vmem>>, vector<1x1x1x16x32xf32>
    %801 = vector.shape_cast %800 : vector<1x1x1x16x32xf32> to vector<16x32xf32>
    %cst_351 = arith.constant dense<0.000000e+00> : vector<4x32xf32>
    %802 = tpu.matmul %672, %801, %cst_351 {dimension_numbers = #tpu.dot_dimension_numbers<[1], [0], [0], [1], [0, 0, 1, 1], [], []>} : vector<4x16xf32>, vector<16x32xf32>, vector<4x32xf32> -> vector<4x32xf32>
    %c2_352 = arith.constant 2 : index
    %c2_353 = arith.constant 2 : index
    %c1_354 = arith.constant 1 : index
    %c0_355 = arith.constant 0 : index
    %c0_356 = arith.constant 0 : index
    %803 = vector.load %arg13[%c2_352, %c2_353, %c1_354, %c0_355, %c0_356] : memref<3x3x2x16x32xf32, #tpu.memory_space<vmem>>, vector<1x1x1x16x32xf32>
    %804 = vector.shape_cast %803 : vector<1x1x1x16x32xf32> to vector<16x32xf32>
    %cst_357 = arith.constant dense<0.000000e+00> : vector<4x32xf32>
    %805 = tpu.matmul %711, %804, %cst_357 {dimension_numbers = #tpu.dot_dimension_numbers<[1], [0], [0], [1], [0, 0, 1, 1], [], []>} : vector<4x16xf32>, vector<16x32xf32>, vector<4x32xf32> -> vector<4x32xf32>
    %806 = arith.addf %802, %805 : vector<4x32xf32>
    %c2_358 = arith.constant 2 : index
    %c2_359 = arith.constant 2 : index
    %c0_360 = arith.constant 0 : index
    %c0_361 = arith.constant 0 : index
    %807 = vector.load %arg16[%c2_358, %c2_359, %c0_360, %c0_361] : memref<3x3x1x32xf32, #tpu.memory_space<vmem>>, vector<1x1x1x32xf32>
    %808 = vector.shape_cast %807 : vector<1x1x1x32xf32> to vector<1x32xf32>
    %809 = vector.broadcast %808 : vector<1x32xf32> to vector<4x32xf32>
    %810 = arith.addf %806, %809 : vector<4x32xf32>
    %c0_362 = arith.constant 0 : index
    %c0_363 = arith.constant 0 : index
    %c0_364 = arith.constant 0 : index
    %c0_365 = arith.constant 0 : index
    %811 = vector.load %arg14[%c0_362, %c0_363, %c0_364, %c0_365] : memref<2x3x32x32xf32, #tpu.memory_space<vmem>>, vector<1x1x32x32xf32>
    %812 = vector.shape_cast %811 : vector<1x1x32x32xf32> to vector<32x32xf32>
    %c0_366 = arith.constant 0 : index
    %c1_367 = arith.constant 1 : index
    %c0_368 = arith.constant 0 : index
    %c0_369 = arith.constant 0 : index
    %813 = vector.load %arg14[%c0_366, %c1_367, %c0_368, %c0_369] : memref<2x3x32x32xf32, #tpu.memory_space<vmem>>, vector<1x1x32x32xf32>
    %814 = vector.shape_cast %813 : vector<1x1x32x32xf32> to vector<32x32xf32>
    %c0_370 = arith.constant 0 : index
    %c2_371 = arith.constant 2 : index
    %c0_372 = arith.constant 0 : index
    %c0_373 = arith.constant 0 : index
    %815 = vector.load %arg14[%c0_370, %c2_371, %c0_372, %c0_373] : memref<2x3x32x32xf32, #tpu.memory_space<vmem>>, vector<1x1x32x32xf32>
    %816 = vector.shape_cast %815 : vector<1x1x32x32xf32> to vector<32x32xf32>
    %c1_374 = arith.constant 1 : index
    %c0_375 = arith.constant 0 : index
    %c0_376 = arith.constant 0 : index
    %c0_377 = arith.constant 0 : index
    %817 = vector.load %arg14[%c1_374, %c0_375, %c0_376, %c0_377] : memref<2x3x32x32xf32, #tpu.memory_space<vmem>>, vector<1x1x32x32xf32>
    %818 = vector.shape_cast %817 : vector<1x1x32x32xf32> to vector<32x32xf32>
    %c1_378 = arith.constant 1 : index
    %c1_379 = arith.constant 1 : index
    %c0_380 = arith.constant 0 : index
    %c0_381 = arith.constant 0 : index
    %819 = vector.load %arg14[%c1_378, %c1_379, %c0_380, %c0_381] : memref<2x3x32x32xf32, #tpu.memory_space<vmem>>, vector<1x1x32x32xf32>
    %820 = vector.shape_cast %819 : vector<1x1x32x32xf32> to vector<32x32xf32>
    %c1_382 = arith.constant 1 : index
    %c2_383 = arith.constant 2 : index
    %c0_384 = arith.constant 0 : index
    %c0_385 = arith.constant 0 : index
    %821 = vector.load %arg14[%c1_382, %c2_383, %c0_384, %c0_385] : memref<2x3x32x32xf32, #tpu.memory_space<vmem>>, vector<1x1x32x32xf32>
    %822 = vector.shape_cast %821 : vector<1x1x32x32xf32> to vector<32x32xf32>
    %c0_386 = arith.constant 0 : index
    %c0_387 = arith.constant 0 : index
    %c0_388 = arith.constant 0 : index
    %c0_389 = arith.constant 0 : index
    %823 = vector.load %arg15[%c0_386, %c0_387, %c0_388, %c0_389] : memref<3x3x32x32xf32, #tpu.memory_space<vmem>>, vector<1x1x32x32xf32>
    %824 = vector.shape_cast %823 : vector<1x1x32x32xf32> to vector<32x32xf32>
    %c0_390 = arith.constant 0 : index
    %c1_391 = arith.constant 1 : index
    %c0_392 = arith.constant 0 : index
    %c0_393 = arith.constant 0 : index
    %825 = vector.load %arg15[%c0_390, %c1_391, %c0_392, %c0_393] : memref<3x3x32x32xf32, #tpu.memory_space<vmem>>, vector<1x1x32x32xf32>
    %826 = vector.shape_cast %825 : vector<1x1x32x32xf32> to vector<32x32xf32>
    %c0_394 = arith.constant 0 : index
    %c2_395 = arith.constant 2 : index
    %c0_396 = arith.constant 0 : index
    %c0_397 = arith.constant 0 : index
    %827 = vector.load %arg15[%c0_394, %c2_395, %c0_396, %c0_397] : memref<3x3x32x32xf32, #tpu.memory_space<vmem>>, vector<1x1x32x32xf32>
    %828 = vector.shape_cast %827 : vector<1x1x32x32xf32> to vector<32x32xf32>
    %c1_398 = arith.constant 1 : index
    %c0_399 = arith.constant 0 : index
    %c0_400 = arith.constant 0 : index
    %c0_401 = arith.constant 0 : index
    %829 = vector.load %arg15[%c1_398, %c0_399, %c0_400, %c0_401] : memref<3x3x32x32xf32, #tpu.memory_space<vmem>>, vector<1x1x32x32xf32>
    %830 = vector.shape_cast %829 : vector<1x1x32x32xf32> to vector<32x32xf32>
    %c1_402 = arith.constant 1 : index
    %c1_403 = arith.constant 1 : index
    %c0_404 = arith.constant 0 : index
    %c0_405 = arith.constant 0 : index
    %831 = vector.load %arg15[%c1_402, %c1_403, %c0_404, %c0_405] : memref<3x3x32x32xf32, #tpu.memory_space<vmem>>, vector<1x1x32x32xf32>
    %832 = vector.shape_cast %831 : vector<1x1x32x32xf32> to vector<32x32xf32>
    %c1_406 = arith.constant 1 : index
    %c2_407 = arith.constant 2 : index
    %c0_408 = arith.constant 0 : index
    %c0_409 = arith.constant 0 : index
    %833 = vector.load %arg15[%c1_406, %c2_407, %c0_408, %c0_409] : memref<3x3x32x32xf32, #tpu.memory_space<vmem>>, vector<1x1x32x32xf32>
    %834 = vector.shape_cast %833 : vector<1x1x32x32xf32> to vector<32x32xf32>
    %c2_410 = arith.constant 2 : index
    %c0_411 = arith.constant 0 : index
    %c0_412 = arith.constant 0 : index
    %c0_413 = arith.constant 0 : index
    %835 = vector.load %arg15[%c2_410, %c0_411, %c0_412, %c0_413] : memref<3x3x32x32xf32, #tpu.memory_space<vmem>>, vector<1x1x32x32xf32>
    %836 = vector.shape_cast %835 : vector<1x1x32x32xf32> to vector<32x32xf32>
    %c2_414 = arith.constant 2 : index
    %c1_415 = arith.constant 1 : index
    %c0_416 = arith.constant 0 : index
    %c0_417 = arith.constant 0 : index
    %837 = vector.load %arg15[%c2_414, %c1_415, %c0_416, %c0_417] : memref<3x3x32x32xf32, #tpu.memory_space<vmem>>, vector<1x1x32x32xf32>
    %838 = vector.shape_cast %837 : vector<1x1x32x32xf32> to vector<32x32xf32>
    %c2_418 = arith.constant 2 : index
    %c2_419 = arith.constant 2 : index
    %c0_420 = arith.constant 0 : index
    %c0_421 = arith.constant 0 : index
    %839 = vector.load %arg15[%c2_418, %c2_419, %c0_420, %c0_421] : memref<3x3x32x32xf32, #tpu.memory_space<vmem>>, vector<1x1x32x32xf32>
    %840 = vector.shape_cast %839 : vector<1x1x32x32xf32> to vector<32x32xf32>
    %c0_422 = arith.constant 0 : index
    %c0_423 = arith.constant 0 : index
    %c0_424 = arith.constant 0 : index
    %c0_425 = arith.constant 0 : index
    %841 = vector.load %arg17[%c0_422, %c0_423, %c0_424, %c0_425] : memref<3x3x1x32xf32, #tpu.memory_space<vmem>>, vector<1x1x1x32xf32>
    %842 = vector.shape_cast %841 : vector<1x1x1x32xf32> to vector<1x32xf32>
    %c0_426 = arith.constant 0 : index
    %c1_427 = arith.constant 1 : index
    %c0_428 = arith.constant 0 : index
    %c0_429 = arith.constant 0 : index
    %843 = vector.load %arg17[%c0_426, %c1_427, %c0_428, %c0_429] : memref<3x3x1x32xf32, #tpu.memory_space<vmem>>, vector<1x1x1x32xf32>
    %844 = vector.shape_cast %843 : vector<1x1x1x32xf32> to vector<1x32xf32>
    %c0_430 = arith.constant 0 : index
    %c2_431 = arith.constant 2 : index
    %c0_432 = arith.constant 0 : index
    %c0_433 = arith.constant 0 : index
    %845 = vector.load %arg17[%c0_430, %c2_431, %c0_432, %c0_433] : memref<3x3x1x32xf32, #tpu.memory_space<vmem>>, vector<1x1x1x32xf32>
    %846 = vector.shape_cast %845 : vector<1x1x1x32xf32> to vector<1x32xf32>
    %c1_434 = arith.constant 1 : index
    %c0_435 = arith.constant 0 : index
    %c0_436 = arith.constant 0 : index
    %c0_437 = arith.constant 0 : index
    %847 = vector.load %arg17[%c1_434, %c0_435, %c0_436, %c0_437] : memref<3x3x1x32xf32, #tpu.memory_space<vmem>>, vector<1x1x1x32xf32>
    %848 = vector.shape_cast %847 : vector<1x1x1x32xf32> to vector<1x32xf32>
    %c1_438 = arith.constant 1 : index
    %c1_439 = arith.constant 1 : index
    %c0_440 = arith.constant 0 : index
    %c0_441 = arith.constant 0 : index
    %849 = vector.load %arg17[%c1_438, %c1_439, %c0_440, %c0_441] : memref<3x3x1x32xf32, #tpu.memory_space<vmem>>, vector<1x1x1x32xf32>
    %850 = vector.shape_cast %849 : vector<1x1x1x32xf32> to vector<1x32xf32>
    %c1_442 = arith.constant 1 : index
    %c2_443 = arith.constant 2 : index
    %c0_444 = arith.constant 0 : index
    %c0_445 = arith.constant 0 : index
    %851 = vector.load %arg17[%c1_442, %c2_443, %c0_444, %c0_445] : memref<3x3x1x32xf32, #tpu.memory_space<vmem>>, vector<1x1x1x32xf32>
    %852 = vector.shape_cast %851 : vector<1x1x1x32xf32> to vector<1x32xf32>
    %c2_446 = arith.constant 2 : index
    %c0_447 = arith.constant 0 : index
    %c0_448 = arith.constant 0 : index
    %c0_449 = arith.constant 0 : index
    %853 = vector.load %arg17[%c2_446, %c0_447, %c0_448, %c0_449] : memref<3x3x1x32xf32, #tpu.memory_space<vmem>>, vector<1x1x1x32xf32>
    %854 = vector.shape_cast %853 : vector<1x1x1x32xf32> to vector<1x32xf32>
    %c2_450 = arith.constant 2 : index
    %c1_451 = arith.constant 1 : index
    %c0_452 = arith.constant 0 : index
    %c0_453 = arith.constant 0 : index
    %855 = vector.load %arg17[%c2_450, %c1_451, %c0_452, %c0_453] : memref<3x3x1x32xf32, #tpu.memory_space<vmem>>, vector<1x1x1x32xf32>
    %856 = vector.shape_cast %855 : vector<1x1x1x32xf32> to vector<1x32xf32>
    %c2_454 = arith.constant 2 : index
    %c2_455 = arith.constant 2 : index
    %c0_456 = arith.constant 0 : index
    %c0_457 = arith.constant 0 : index
    %857 = vector.load %arg17[%c2_454, %c2_455, %c0_456, %c0_457] : memref<3x3x1x32xf32, #tpu.memory_space<vmem>>, vector<1x1x1x32xf32>
    %858 = vector.shape_cast %857 : vector<1x1x1x32xf32> to vector<1x32xf32>
    %cst_458 = arith.constant 0.000000e+00 : f32
    %859 = vector.broadcast %cst_458 : f32 to vector<4x32xf32>
    %c0_459 = arith.constant 0 : index
    %c0_460 = arith.constant 0 : index
    %c0_461 = arith.constant 0 : index
    %c0_462 = arith.constant 0 : index
    %860 = vector.load %arg5[%c0_459, %c0_460, %c0_461, %c0_462] : memref<1x4x4x1xf32, #tpu.memory_space<vmem>>, vector<1x1x4x1xf32>
    %861 = vector.shape_cast %860 : vector<1x1x4x1xf32> to vector<4x1xf32>
    %c0_463 = arith.constant 0 : index
    %c0_464 = arith.constant 0 : index
    %c0_465 = arith.constant 0 : index
    %c0_466 = arith.constant 0 : index
    %862 = vector.load %arg6[%c0_463, %c0_464, %c0_465, %c0_466] : memref<1x4x4x1xf32, #tpu.memory_space<vmem>>, vector<1x1x4x1xf32>
    %863 = vector.shape_cast %862 : vector<1x1x4x1xf32> to vector<4x1xf32>
    %c0_467 = arith.constant 0 : index
    %c0_468 = arith.constant 0 : index
    %c0_469 = arith.constant 0 : index
    %c0_470 = arith.constant 0 : index
    %864 = vector.load %arg3[%c0_467, %c0_468, %c0_469, %c0_470] : memref<1x4x1x4xf32, #tpu.memory_space<vmem>>, vector<1x1x1x4xf32>
    %865 = vector.shape_cast %864 : vector<1x1x1x4xf32> to vector<1x4xf32>
    %cst_471 = arith.constant dense<0.000000e+00> : vector<1x32xf32>
    %866 = tpu.matmul %865, %859, %cst_471 {dimension_numbers = #tpu.dot_dimension_numbers<[1], [0], [0], [1], [0, 0, 1, 1], [], []>} : vector<1x4xf32>, vector<4x32xf32>, vector<1x32xf32> -> vector<1x32xf32>
    %c0_472 = arith.constant 0 : index
    %c0_473 = arith.constant 0 : index
    %c0_474 = arith.constant 0 : index
    %c0_475 = arith.constant 0 : index
    %867 = vector.load %arg4[%c0_472, %c0_473, %c0_474, %c0_475] : memref<1x4x1x4xf32, #tpu.memory_space<vmem>>, vector<1x1x1x4xf32>
    %868 = vector.shape_cast %867 : vector<1x1x1x4xf32> to vector<1x4xf32>
    %cst_476 = arith.constant dense<0.000000e+00> : vector<1x32xf32>
    %869 = tpu.matmul %868, %859, %cst_476 {dimension_numbers = #tpu.dot_dimension_numbers<[1], [0], [0], [1], [0, 0, 1, 1], [], []>} : vector<1x4xf32>, vector<4x32xf32>, vector<1x32xf32> -> vector<1x32xf32>
    %870 = vector.extract_strided_slice %722 {offsets = [0, 0], sizes = [1, 32], strides = [1, 1]} : vector<4x32xf32> to vector<1x32xf32>
    %871 = vector.extract_strided_slice %733 {offsets = [0, 0], sizes = [1, 32], strides = [1, 1]} : vector<4x32xf32> to vector<1x32xf32>
    %872 = vector.extract_strided_slice %744 {offsets = [0, 0], sizes = [1, 32], strides = [1, 1]} : vector<4x32xf32> to vector<1x32xf32>
    %cst_477 = arith.constant dense<0.000000e+00> : vector<1x32xf32>
    %873 = tpu.matmul %869, %812, %cst_477 {dimension_numbers = #tpu.dot_dimension_numbers<[1], [0], [0], [1], [0, 0, 1, 1], [], []>} : vector<1x32xf32>, vector<32x32xf32>, vector<1x32xf32> -> vector<1x32xf32>
    %874 = arith.addf %870, %873 : vector<1x32xf32>
    %cst_478 = arith.constant dense<0.000000e+00> : vector<1x32xf32>
    %875 = tpu.matmul %869, %814, %cst_478 {dimension_numbers = #tpu.dot_dimension_numbers<[1], [0], [0], [1], [0, 0, 1, 1], [], []>} : vector<1x32xf32>, vector<32x32xf32>, vector<1x32xf32> -> vector<1x32xf32>
    %876 = arith.addf %871, %875 : vector<1x32xf32>
    %cst_479 = arith.constant dense<0.000000e+00> : vector<1x32xf32>
    %877 = tpu.matmul %869, %816, %cst_479 {dimension_numbers = #tpu.dot_dimension_numbers<[1], [0], [0], [1], [0, 0, 1, 1], [], []>} : vector<1x32xf32>, vector<32x32xf32>, vector<1x32xf32> -> vector<1x32xf32>
    %878 = arith.addf %872, %877 : vector<1x32xf32>
    %cst_480 = arith.constant dense<0.000000e+00> : vector<1x32xf32>
    %879 = tpu.matmul %866, %824, %cst_480 {dimension_numbers = #tpu.dot_dimension_numbers<[1], [0], [0], [1], [0, 0, 1, 1], [], []>} : vector<1x32xf32>, vector<32x32xf32>, vector<1x32xf32> -> vector<1x32xf32>
    %880 = arith.addf %879, %842 : vector<1x32xf32>
    %cst_481 = arith.constant dense<0.000000e+00> : vector<1x32xf32>
    %881 = tpu.matmul %866, %826, %cst_481 {dimension_numbers = #tpu.dot_dimension_numbers<[1], [0], [0], [1], [0, 0, 1, 1], [], []>} : vector<1x32xf32>, vector<32x32xf32>, vector<1x32xf32> -> vector<1x32xf32>
    %882 = arith.addf %881, %844 : vector<1x32xf32>
    %cst_482 = arith.constant dense<0.000000e+00> : vector<1x32xf32>
    %883 = tpu.matmul %866, %828, %cst_482 {dimension_numbers = #tpu.dot_dimension_numbers<[1], [0], [0], [1], [0, 0, 1, 1], [], []>} : vector<1x32xf32>, vector<32x32xf32>, vector<1x32xf32> -> vector<1x32xf32>
    %884 = arith.addf %883, %846 : vector<1x32xf32>
    %885 = arith.addf %874, %880 : vector<1x32xf32>
    %886 = arith.negf %885 : vector<1x32xf32>
    %887 = math.exp %886 : vector<1x32xf32>
    %cst_483 = arith.constant 1.000000e+00 : f32
    %888 = vector.broadcast %cst_483 : f32 to vector<1x32xf32>
    %889 = arith.addf %888, %887 : vector<1x32xf32>
    %890 = arith.divf %888, %889 : vector<1x32xf32>
    %891 = arith.addf %876, %882 : vector<1x32xf32>
    %892 = arith.negf %891 : vector<1x32xf32>
    %893 = math.exp %892 : vector<1x32xf32>
    %cst_484 = arith.constant 1.000000e+00 : f32
    %894 = vector.broadcast %cst_484 : f32 to vector<1x32xf32>
    %895 = arith.addf %894, %893 : vector<1x32xf32>
    %896 = arith.divf %894, %895 : vector<1x32xf32>
    %897 = arith.mulf %890, %884 : vector<1x32xf32>
    %898 = arith.addf %878, %897 : vector<1x32xf32>
    %899 = math.tanh %898 : vector<1x32xf32>
    %cst_485 = arith.constant 1.000000e+00 : f32
    %900 = vector.broadcast %cst_485 : f32 to vector<1x32xf32>
    %901 = arith.subf %900, %896 : vector<1x32xf32>
    %902 = arith.mulf %901, %899 : vector<1x32xf32>
    %903 = arith.mulf %896, %866 : vector<1x32xf32>
    %904 = arith.addf %902, %903 : vector<1x32xf32>
    %905 = vector.extract_strided_slice %755 {offsets = [0, 0], sizes = [1, 32], strides = [1, 1]} : vector<4x32xf32> to vector<1x32xf32>
    %906 = vector.extract_strided_slice %766 {offsets = [0, 0], sizes = [1, 32], strides = [1, 1]} : vector<4x32xf32> to vector<1x32xf32>
    %907 = vector.extract_strided_slice %777 {offsets = [0, 0], sizes = [1, 32], strides = [1, 1]} : vector<4x32xf32> to vector<1x32xf32>
    %cst_486 = arith.constant dense<0.000000e+00> : vector<1x32xf32>
    %908 = tpu.matmul %866, %818, %cst_486 {dimension_numbers = #tpu.dot_dimension_numbers<[1], [0], [0], [1], [0, 0, 1, 1], [], []>} : vector<1x32xf32>, vector<32x32xf32>, vector<1x32xf32> -> vector<1x32xf32>
    %909 = arith.addf %905, %908 : vector<1x32xf32>
    %cst_487 = arith.constant dense<0.000000e+00> : vector<1x32xf32>
    %910 = tpu.matmul %866, %820, %cst_487 {dimension_numbers = #tpu.dot_dimension_numbers<[1], [0], [0], [1], [0, 0, 1, 1], [], []>} : vector<1x32xf32>, vector<32x32xf32>, vector<1x32xf32> -> vector<1x32xf32>
    %911 = arith.addf %906, %910 : vector<1x32xf32>
    %cst_488 = arith.constant dense<0.000000e+00> : vector<1x32xf32>
    %912 = tpu.matmul %866, %822, %cst_488 {dimension_numbers = #tpu.dot_dimension_numbers<[1], [0], [0], [1], [0, 0, 1, 1], [], []>} : vector<1x32xf32>, vector<32x32xf32>, vector<1x32xf32> -> vector<1x32xf32>
    %913 = arith.addf %907, %912 : vector<1x32xf32>
    %cst_489 = arith.constant dense<0.000000e+00> : vector<1x32xf32>
    %914 = tpu.matmul %869, %830, %cst_489 {dimension_numbers = #tpu.dot_dimension_numbers<[1], [0], [0], [1], [0, 0, 1, 1], [], []>} : vector<1x32xf32>, vector<32x32xf32>, vector<1x32xf32> -> vector<1x32xf32>
    %915 = arith.addf %914, %848 : vector<1x32xf32>
    %cst_490 = arith.constant dense<0.000000e+00> : vector<1x32xf32>
    %916 = tpu.matmul %869, %832, %cst_490 {dimension_numbers = #tpu.dot_dimension_numbers<[1], [0], [0], [1], [0, 0, 1, 1], [], []>} : vector<1x32xf32>, vector<32x32xf32>, vector<1x32xf32> -> vector<1x32xf32>
    %917 = arith.addf %916, %850 : vector<1x32xf32>
    %cst_491 = arith.constant dense<0.000000e+00> : vector<1x32xf32>
    %918 = tpu.matmul %869, %834, %cst_491 {dimension_numbers = #tpu.dot_dimension_numbers<[1], [0], [0], [1], [0, 0, 1, 1], [], []>} : vector<1x32xf32>, vector<32x32xf32>, vector<1x32xf32> -> vector<1x32xf32>
    %919 = arith.addf %918, %852 : vector<1x32xf32>
    %920 = arith.addf %909, %915 : vector<1x32xf32>
    %921 = arith.negf %920 : vector<1x32xf32>
    %922 = math.exp %921 : vector<1x32xf32>
    %cst_492 = arith.constant 1.000000e+00 : f32
    %923 = vector.broadcast %cst_492 : f32 to vector<1x32xf32>
    %924 = arith.addf %923, %922 : vector<1x32xf32>
    %925 = arith.divf %923, %924 : vector<1x32xf32>
    %926 = arith.addf %911, %917 : vector<1x32xf32>
    %927 = arith.negf %926 : vector<1x32xf32>
    %928 = math.exp %927 : vector<1x32xf32>
    %cst_493 = arith.constant 1.000000e+00 : f32
    %929 = vector.broadcast %cst_493 : f32 to vector<1x32xf32>
    %930 = arith.addf %929, %928 : vector<1x32xf32>
    %931 = arith.divf %929, %930 : vector<1x32xf32>
    %932 = arith.mulf %925, %919 : vector<1x32xf32>
    %933 = arith.addf %913, %932 : vector<1x32xf32>
    %934 = math.tanh %933 : vector<1x32xf32>
    %cst_494 = arith.constant 1.000000e+00 : f32
    %935 = vector.broadcast %cst_494 : f32 to vector<1x32xf32>
    %936 = arith.subf %935, %931 : vector<1x32xf32>
    %937 = arith.mulf %936, %934 : vector<1x32xf32>
    %938 = arith.mulf %931, %869 : vector<1x32xf32>
    %939 = arith.addf %937, %938 : vector<1x32xf32>
    %940 = vector.extract_strided_slice %788 {offsets = [0, 0], sizes = [1, 32], strides = [1, 1]} : vector<4x32xf32> to vector<1x32xf32>
    %941 = vector.extract_strided_slice %799 {offsets = [0, 0], sizes = [1, 32], strides = [1, 1]} : vector<4x32xf32> to vector<1x32xf32>
    %942 = vector.extract_strided_slice %810 {offsets = [0, 0], sizes = [1, 32], strides = [1, 1]} : vector<4x32xf32> to vector<1x32xf32>
    %cst_495 = arith.constant dense<0.000000e+00> : vector<4x32xf32>
    %943 = tpu.matmul %859, %836, %cst_495 {dimension_numbers = #tpu.dot_dimension_numbers<[1], [0], [0], [1], [0, 0, 1, 1], [], []>} : vector<4x32xf32>, vector<32x32xf32>, vector<4x32xf32> -> vector<4x32xf32>
    %944 = vector.broadcast %854 : vector<1x32xf32> to vector<4x32xf32>
    %945 = arith.addf %943, %944 : vector<4x32xf32>
    %cst_496 = arith.constant dense<0.000000e+00> : vector<4x32xf32>
    %946 = tpu.matmul %859, %838, %cst_496 {dimension_numbers = #tpu.dot_dimension_numbers<[1], [0], [0], [1], [0, 0, 1, 1], [], []>} : vector<4x32xf32>, vector<32x32xf32>, vector<4x32xf32> -> vector<4x32xf32>
    %947 = vector.broadcast %856 : vector<1x32xf32> to vector<4x32xf32>
    %948 = arith.addf %946, %947 : vector<4x32xf32>
    %cst_497 = arith.constant dense<0.000000e+00> : vector<4x32xf32>
    %949 = tpu.matmul %859, %840, %cst_497 {dimension_numbers = #tpu.dot_dimension_numbers<[1], [0], [0], [1], [0, 0, 1, 1], [], []>} : vector<4x32xf32>, vector<32x32xf32>, vector<4x32xf32> -> vector<4x32xf32>
    %950 = vector.broadcast %858 : vector<1x32xf32> to vector<4x32xf32>
    %951 = arith.addf %949, %950 : vector<4x32xf32>
    %952 = vector.broadcast %940 : vector<1x32xf32> to vector<4x32xf32>
    %953 = arith.addf %952, %945 : vector<4x32xf32>
    %954 = arith.negf %953 : vector<4x32xf32>
    %955 = math.exp %954 : vector<4x32xf32>
    %cst_498 = arith.constant 1.000000e+00 : f32
    %956 = vector.broadcast %cst_498 : f32 to vector<4x32xf32>
    %957 = arith.addf %956, %955 : vector<4x32xf32>
    %958 = arith.divf %956, %957 : vector<4x32xf32>
    %959 = vector.broadcast %941 : vector<1x32xf32> to vector<4x32xf32>
    %960 = arith.addf %959, %948 : vector<4x32xf32>
    %961 = arith.negf %960 : vector<4x32xf32>
    %962 = math.exp %961 : vector<4x32xf32>
    %cst_499 = arith.constant 1.000000e+00 : f32
    %963 = vector.broadcast %cst_499 : f32 to vector<4x32xf32>
    %964 = arith.addf %963, %962 : vector<4x32xf32>
    %965 = arith.divf %963, %964 : vector<4x32xf32>
    %966 = arith.mulf %958, %951 : vector<4x32xf32>
    %967 = vector.broadcast %942 : vector<1x32xf32> to vector<4x32xf32>
    %968 = arith.addf %967, %966 : vector<4x32xf32>
    %969 = math.tanh %968 : vector<4x32xf32>
    %cst_500 = arith.constant 1.000000e+00 : f32
    %970 = vector.broadcast %cst_500 : f32 to vector<4x32xf32>
    %971 = arith.subf %970, %965 : vector<4x32xf32>
    %972 = arith.mulf %971, %969 : vector<4x32xf32>
    %973 = arith.mulf %965, %859 : vector<4x32xf32>
    %974 = arith.addf %972, %973 : vector<4x32xf32>
    %975 = vector.broadcast %861 : vector<4x1xf32> to vector<4x32xf32>
    %976 = vector.broadcast %904 : vector<1x32xf32> to vector<4x32xf32>
    %977 = arith.mulf %975, %976 : vector<4x32xf32>
    %978 = vector.broadcast %863 : vector<4x1xf32> to vector<4x32xf32>
    %979 = vector.broadcast %939 : vector<1x32xf32> to vector<4x32xf32>
    %980 = arith.mulf %978, %979 : vector<4x32xf32>
    %981 = arith.addf %977, %980 : vector<4x32xf32>
    %cst_501 = arith.constant 1.000000e+00 : f32
    %982 = vector.broadcast %cst_501 : f32 to vector<4x1xf32>
    %983 = arith.subf %982, %861 : vector<4x1xf32>
    %984 = arith.subf %983, %863 : vector<4x1xf32>
    %985 = vector.broadcast %984 : vector<4x1xf32> to vector<4x32xf32>
    %986 = arith.mulf %985, %974 : vector<4x32xf32>
    %987 = arith.addf %981, %986 : vector<4x32xf32>
    %c0_502 = arith.constant 0 : index
    %c1_503 = arith.constant 1 : index
    %c0_504 = arith.constant 0 : index
    %c0_505 = arith.constant 0 : index
    %988 = vector.load %arg5[%c0_502, %c1_503, %c0_504, %c0_505] : memref<1x4x4x1xf32, #tpu.memory_space<vmem>>, vector<1x1x4x1xf32>
    %989 = vector.shape_cast %988 : vector<1x1x4x1xf32> to vector<4x1xf32>
    %c0_506 = arith.constant 0 : index
    %c1_507 = arith.constant 1 : index
    %c0_508 = arith.constant 0 : index
    %c0_509 = arith.constant 0 : index
    %990 = vector.load %arg6[%c0_506, %c1_507, %c0_508, %c0_509] : memref<1x4x4x1xf32, #tpu.memory_space<vmem>>, vector<1x1x4x1xf32>
    %991 = vector.shape_cast %990 : vector<1x1x4x1xf32> to vector<4x1xf32>
    %c0_510 = arith.constant 0 : index
    %c1_511 = arith.constant 1 : index
    %c0_512 = arith.constant 0 : index
    %c0_513 = arith.constant 0 : index
    %992 = vector.load %arg3[%c0_510, %c1_511, %c0_512, %c0_513] : memref<1x4x1x4xf32, #tpu.memory_space<vmem>>, vector<1x1x1x4xf32>
    %993 = vector.shape_cast %992 : vector<1x1x1x4xf32> to vector<1x4xf32>
    %cst_514 = arith.constant dense<0.000000e+00> : vector<1x32xf32>
    %994 = tpu.matmul %993, %987, %cst_514 {dimension_numbers = #tpu.dot_dimension_numbers<[1], [0], [0], [1], [0, 0, 1, 1], [], []>} : vector<1x4xf32>, vector<4x32xf32>, vector<1x32xf32> -> vector<1x32xf32>
    %c0_515 = arith.constant 0 : index
    %c1_516 = arith.constant 1 : index
    %c0_517 = arith.constant 0 : index
    %c0_518 = arith.constant 0 : index
    %995 = vector.load %arg4[%c0_515, %c1_516, %c0_517, %c0_518] : memref<1x4x1x4xf32, #tpu.memory_space<vmem>>, vector<1x1x1x4xf32>
    %996 = vector.shape_cast %995 : vector<1x1x1x4xf32> to vector<1x4xf32>
    %cst_519 = arith.constant dense<0.000000e+00> : vector<1x32xf32>
    %997 = tpu.matmul %996, %987, %cst_519 {dimension_numbers = #tpu.dot_dimension_numbers<[1], [0], [0], [1], [0, 0, 1, 1], [], []>} : vector<1x4xf32>, vector<4x32xf32>, vector<1x32xf32> -> vector<1x32xf32>
    %998 = vector.extract_strided_slice %722 {offsets = [1, 0], sizes = [1, 32], strides = [1, 1]} : vector<4x32xf32> to vector<1x32xf32>
    %999 = vector.extract_strided_slice %733 {offsets = [1, 0], sizes = [1, 32], strides = [1, 1]} : vector<4x32xf32> to vector<1x32xf32>
    %1000 = vector.extract_strided_slice %744 {offsets = [1, 0], sizes = [1, 32], strides = [1, 1]} : vector<4x32xf32> to vector<1x32xf32>
    %cst_520 = arith.constant dense<0.000000e+00> : vector<1x32xf32>
    %1001 = tpu.matmul %997, %812, %cst_520 {dimension_numbers = #tpu.dot_dimension_numbers<[1], [0], [0], [1], [0, 0, 1, 1], [], []>} : vector<1x32xf32>, vector<32x32xf32>, vector<1x32xf32> -> vector<1x32xf32>
    %1002 = arith.addf %998, %1001 : vector<1x32xf32>
    %cst_521 = arith.constant dense<0.000000e+00> : vector<1x32xf32>
    %1003 = tpu.matmul %997, %814, %cst_521 {dimension_numbers = #tpu.dot_dimension_numbers<[1], [0], [0], [1], [0, 0, 1, 1], [], []>} : vector<1x32xf32>, vector<32x32xf32>, vector<1x32xf32> -> vector<1x32xf32>
    %1004 = arith.addf %999, %1003 : vector<1x32xf32>
    %cst_522 = arith.constant dense<0.000000e+00> : vector<1x32xf32>
    %1005 = tpu.matmul %997, %816, %cst_522 {dimension_numbers = #tpu.dot_dimension_numbers<[1], [0], [0], [1], [0, 0, 1, 1], [], []>} : vector<1x32xf32>, vector<32x32xf32>, vector<1x32xf32> -> vector<1x32xf32>
    %1006 = arith.addf %1000, %1005 : vector<1x32xf32>
    %cst_523 = arith.constant dense<0.000000e+00> : vector<1x32xf32>
    %1007 = tpu.matmul %994, %824, %cst_523 {dimension_numbers = #tpu.dot_dimension_numbers<[1], [0], [0], [1], [0, 0, 1, 1], [], []>} : vector<1x32xf32>, vector<32x32xf32>, vector<1x32xf32> -> vector<1x32xf32>
    %1008 = arith.addf %1007, %842 : vector<1x32xf32>
    %cst_524 = arith.constant dense<0.000000e+00> : vector<1x32xf32>
    %1009 = tpu.matmul %994, %826, %cst_524 {dimension_numbers = #tpu.dot_dimension_numbers<[1], [0], [0], [1], [0, 0, 1, 1], [], []>} : vector<1x32xf32>, vector<32x32xf32>, vector<1x32xf32> -> vector<1x32xf32>
    %1010 = arith.addf %1009, %844 : vector<1x32xf32>
    %cst_525 = arith.constant dense<0.000000e+00> : vector<1x32xf32>
    %1011 = tpu.matmul %994, %828, %cst_525 {dimension_numbers = #tpu.dot_dimension_numbers<[1], [0], [0], [1], [0, 0, 1, 1], [], []>} : vector<1x32xf32>, vector<32x32xf32>, vector<1x32xf32> -> vector<1x32xf32>
    %1012 = arith.addf %1011, %846 : vector<1x32xf32>
    %1013 = arith.addf %1002, %1008 : vector<1x32xf32>
    %1014 = arith.negf %1013 : vector<1x32xf32>
    %1015 = math.exp %1014 : vector<1x32xf32>
    %cst_526 = arith.constant 1.000000e+00 : f32
    %1016 = vector.broadcast %cst_526 : f32 to vector<1x32xf32>
    %1017 = arith.addf %1016, %1015 : vector<1x32xf32>
    %1018 = arith.divf %1016, %1017 : vector<1x32xf32>
    %1019 = arith.addf %1004, %1010 : vector<1x32xf32>
    %1020 = arith.negf %1019 : vector<1x32xf32>
    %1021 = math.exp %1020 : vector<1x32xf32>
    %cst_527 = arith.constant 1.000000e+00 : f32
    %1022 = vector.broadcast %cst_527 : f32 to vector<1x32xf32>
    %1023 = arith.addf %1022, %1021 : vector<1x32xf32>
    %1024 = arith.divf %1022, %1023 : vector<1x32xf32>
    %1025 = arith.mulf %1018, %1012 : vector<1x32xf32>
    %1026 = arith.addf %1006, %1025 : vector<1x32xf32>
    %1027 = math.tanh %1026 : vector<1x32xf32>
    %cst_528 = arith.constant 1.000000e+00 : f32
    %1028 = vector.broadcast %cst_528 : f32 to vector<1x32xf32>
    %1029 = arith.subf %1028, %1024 : vector<1x32xf32>
    %1030 = arith.mulf %1029, %1027 : vector<1x32xf32>
    %1031 = arith.mulf %1024, %994 : vector<1x32xf32>
    %1032 = arith.addf %1030, %1031 : vector<1x32xf32>
    %1033 = vector.extract_strided_slice %755 {offsets = [1, 0], sizes = [1, 32], strides = [1, 1]} : vector<4x32xf32> to vector<1x32xf32>
    %1034 = vector.extract_strided_slice %766 {offsets = [1, 0], sizes = [1, 32], strides = [1, 1]} : vector<4x32xf32> to vector<1x32xf32>
    %1035 = vector.extract_strided_slice %777 {offsets = [1, 0], sizes = [1, 32], strides = [1, 1]} : vector<4x32xf32> to vector<1x32xf32>
    %cst_529 = arith.constant dense<0.000000e+00> : vector<1x32xf32>
    %1036 = tpu.matmul %994, %818, %cst_529 {dimension_numbers = #tpu.dot_dimension_numbers<[1], [0], [0], [1], [0, 0, 1, 1], [], []>} : vector<1x32xf32>, vector<32x32xf32>, vector<1x32xf32> -> vector<1x32xf32>
    %1037 = arith.addf %1033, %1036 : vector<1x32xf32>
    %cst_530 = arith.constant dense<0.000000e+00> : vector<1x32xf32>
    %1038 = tpu.matmul %994, %820, %cst_530 {dimension_numbers = #tpu.dot_dimension_numbers<[1], [0], [0], [1], [0, 0, 1, 1], [], []>} : vector<1x32xf32>, vector<32x32xf32>, vector<1x32xf32> -> vector<1x32xf32>
    %1039 = arith.addf %1034, %1038 : vector<1x32xf32>
    %cst_531 = arith.constant dense<0.000000e+00> : vector<1x32xf32>
    %1040 = tpu.matmul %994, %822, %cst_531 {dimension_numbers = #tpu.dot_dimension_numbers<[1], [0], [0], [1], [0, 0, 1, 1], [], []>} : vector<1x32xf32>, vector<32x32xf32>, vector<1x32xf32> -> vector<1x32xf32>
    %1041 = arith.addf %1035, %1040 : vector<1x32xf32>
    %cst_532 = arith.constant dense<0.000000e+00> : vector<1x32xf32>
    %1042 = tpu.matmul %997, %830, %cst_532 {dimension_numbers = #tpu.dot_dimension_numbers<[1], [0], [0], [1], [0, 0, 1, 1], [], []>} : vector<1x32xf32>, vector<32x32xf32>, vector<1x32xf32> -> vector<1x32xf32>
    %1043 = arith.addf %1042, %848 : vector<1x32xf32>
    %cst_533 = arith.constant dense<0.000000e+00> : vector<1x32xf32>
    %1044 = tpu.matmul %997, %832, %cst_533 {dimension_numbers = #tpu.dot_dimension_numbers<[1], [0], [0], [1], [0, 0, 1, 1], [], []>} : vector<1x32xf32>, vector<32x32xf32>, vector<1x32xf32> -> vector<1x32xf32>
    %1045 = arith.addf %1044, %850 : vector<1x32xf32>
    %cst_534 = arith.constant dense<0.000000e+00> : vector<1x32xf32>
    %1046 = tpu.matmul %997, %834, %cst_534 {dimension_numbers = #tpu.dot_dimension_numbers<[1], [0], [0], [1], [0, 0, 1, 1], [], []>} : vector<1x32xf32>, vector<32x32xf32>, vector<1x32xf32> -> vector<1x32xf32>
    %1047 = arith.addf %1046, %852 : vector<1x32xf32>
    %1048 = arith.addf %1037, %1043 : vector<1x32xf32>
    %1049 = arith.negf %1048 : vector<1x32xf32>
    %1050 = math.exp %1049 : vector<1x32xf32>
    %cst_535 = arith.constant 1.000000e+00 : f32
    %1051 = vector.broadcast %cst_535 : f32 to vector<1x32xf32>
    %1052 = arith.addf %1051, %1050 : vector<1x32xf32>
    %1053 = arith.divf %1051, %1052 : vector<1x32xf32>
    %1054 = arith.addf %1039, %1045 : vector<1x32xf32>
    %1055 = arith.negf %1054 : vector<1x32xf32>
    %1056 = math.exp %1055 : vector<1x32xf32>
    %cst_536 = arith.constant 1.000000e+00 : f32
    %1057 = vector.broadcast %cst_536 : f32 to vector<1x32xf32>
    %1058 = arith.addf %1057, %1056 : vector<1x32xf32>
    %1059 = arith.divf %1057, %1058 : vector<1x32xf32>
    %1060 = arith.mulf %1053, %1047 : vector<1x32xf32>
    %1061 = arith.addf %1041, %1060 : vector<1x32xf32>
    %1062 = math.tanh %1061 : vector<1x32xf32>
    %cst_537 = arith.constant 1.000000e+00 : f32
    %1063 = vector.broadcast %cst_537 : f32 to vector<1x32xf32>
    %1064 = arith.subf %1063, %1059 : vector<1x32xf32>
    %1065 = arith.mulf %1064, %1062 : vector<1x32xf32>
    %1066 = arith.mulf %1059, %997 : vector<1x32xf32>
    %1067 = arith.addf %1065, %1066 : vector<1x32xf32>
    %1068 = vector.extract_strided_slice %788 {offsets = [1, 0], sizes = [1, 32], strides = [1, 1]} : vector<4x32xf32> to vector<1x32xf32>
    %1069 = vector.extract_strided_slice %799 {offsets = [1, 0], sizes = [1, 32], strides = [1, 1]} : vector<4x32xf32> to vector<1x32xf32>
    %1070 = vector.extract_strided_slice %810 {offsets = [1, 0], sizes = [1, 32], strides = [1, 1]} : vector<4x32xf32> to vector<1x32xf32>
    %cst_538 = arith.constant dense<0.000000e+00> : vector<4x32xf32>
    %1071 = tpu.matmul %987, %836, %cst_538 {dimension_numbers = #tpu.dot_dimension_numbers<[1], [0], [0], [1], [0, 0, 1, 1], [], []>} : vector<4x32xf32>, vector<32x32xf32>, vector<4x32xf32> -> vector<4x32xf32>
    %1072 = vector.broadcast %854 : vector<1x32xf32> to vector<4x32xf32>
    %1073 = arith.addf %1071, %1072 : vector<4x32xf32>
    %cst_539 = arith.constant dense<0.000000e+00> : vector<4x32xf32>
    %1074 = tpu.matmul %987, %838, %cst_539 {dimension_numbers = #tpu.dot_dimension_numbers<[1], [0], [0], [1], [0, 0, 1, 1], [], []>} : vector<4x32xf32>, vector<32x32xf32>, vector<4x32xf32> -> vector<4x32xf32>
    %1075 = vector.broadcast %856 : vector<1x32xf32> to vector<4x32xf32>
    %1076 = arith.addf %1074, %1075 : vector<4x32xf32>
    %cst_540 = arith.constant dense<0.000000e+00> : vector<4x32xf32>
    %1077 = tpu.matmul %987, %840, %cst_540 {dimension_numbers = #tpu.dot_dimension_numbers<[1], [0], [0], [1], [0, 0, 1, 1], [], []>} : vector<4x32xf32>, vector<32x32xf32>, vector<4x32xf32> -> vector<4x32xf32>
    %1078 = vector.broadcast %858 : vector<1x32xf32> to vector<4x32xf32>
    %1079 = arith.addf %1077, %1078 : vector<4x32xf32>
    %1080 = vector.broadcast %1068 : vector<1x32xf32> to vector<4x32xf32>
    %1081 = arith.addf %1080, %1073 : vector<4x32xf32>
    %1082 = arith.negf %1081 : vector<4x32xf32>
    %1083 = math.exp %1082 : vector<4x32xf32>
    %cst_541 = arith.constant 1.000000e+00 : f32
    %1084 = vector.broadcast %cst_541 : f32 to vector<4x32xf32>
    %1085 = arith.addf %1084, %1083 : vector<4x32xf32>
    %1086 = arith.divf %1084, %1085 : vector<4x32xf32>
    %1087 = vector.broadcast %1069 : vector<1x32xf32> to vector<4x32xf32>
    %1088 = arith.addf %1087, %1076 : vector<4x32xf32>
    %1089 = arith.negf %1088 : vector<4x32xf32>
    %1090 = math.exp %1089 : vector<4x32xf32>
    %cst_542 = arith.constant 1.000000e+00 : f32
    %1091 = vector.broadcast %cst_542 : f32 to vector<4x32xf32>
    %1092 = arith.addf %1091, %1090 : vector<4x32xf32>
    %1093 = arith.divf %1091, %1092 : vector<4x32xf32>
    %1094 = arith.mulf %1086, %1079 : vector<4x32xf32>
    %1095 = vector.broadcast %1070 : vector<1x32xf32> to vector<4x32xf32>
    %1096 = arith.addf %1095, %1094 : vector<4x32xf32>
    %1097 = math.tanh %1096 : vector<4x32xf32>
    %cst_543 = arith.constant 1.000000e+00 : f32
    %1098 = vector.broadcast %cst_543 : f32 to vector<4x32xf32>
    %1099 = arith.subf %1098, %1093 : vector<4x32xf32>
    %1100 = arith.mulf %1099, %1097 : vector<4x32xf32>
    %1101 = arith.mulf %1093, %987 : vector<4x32xf32>
    %1102 = arith.addf %1100, %1101 : vector<4x32xf32>
    %1103 = vector.broadcast %989 : vector<4x1xf32> to vector<4x32xf32>
    %1104 = vector.broadcast %1032 : vector<1x32xf32> to vector<4x32xf32>
    %1105 = arith.mulf %1103, %1104 : vector<4x32xf32>
    %1106 = vector.broadcast %991 : vector<4x1xf32> to vector<4x32xf32>
    %1107 = vector.broadcast %1067 : vector<1x32xf32> to vector<4x32xf32>
    %1108 = arith.mulf %1106, %1107 : vector<4x32xf32>
    %1109 = arith.addf %1105, %1108 : vector<4x32xf32>
    %cst_544 = arith.constant 1.000000e+00 : f32
    %1110 = vector.broadcast %cst_544 : f32 to vector<4x1xf32>
    %1111 = arith.subf %1110, %989 : vector<4x1xf32>
    %1112 = arith.subf %1111, %991 : vector<4x1xf32>
    %1113 = vector.broadcast %1112 : vector<4x1xf32> to vector<4x32xf32>
    %1114 = arith.mulf %1113, %1102 : vector<4x32xf32>
    %1115 = arith.addf %1109, %1114 : vector<4x32xf32>
    %c0_545 = arith.constant 0 : index
    %c2_546 = arith.constant 2 : index
    %c0_547 = arith.constant 0 : index
    %c0_548 = arith.constant 0 : index
    %1116 = vector.load %arg5[%c0_545, %c2_546, %c0_547, %c0_548] : memref<1x4x4x1xf32, #tpu.memory_space<vmem>>, vector<1x1x4x1xf32>
    %1117 = vector.shape_cast %1116 : vector<1x1x4x1xf32> to vector<4x1xf32>
    %c0_549 = arith.constant 0 : index
    %c2_550 = arith.constant 2 : index
    %c0_551 = arith.constant 0 : index
    %c0_552 = arith.constant 0 : index
    %1118 = vector.load %arg6[%c0_549, %c2_550, %c0_551, %c0_552] : memref<1x4x4x1xf32, #tpu.memory_space<vmem>>, vector<1x1x4x1xf32>
    %1119 = vector.shape_cast %1118 : vector<1x1x4x1xf32> to vector<4x1xf32>
    %c0_553 = arith.constant 0 : index
    %c2_554 = arith.constant 2 : index
    %c0_555 = arith.constant 0 : index
    %c0_556 = arith.constant 0 : index
    %1120 = vector.load %arg3[%c0_553, %c2_554, %c0_555, %c0_556] : memref<1x4x1x4xf32, #tpu.memory_space<vmem>>, vector<1x1x1x4xf32>
    %1121 = vector.shape_cast %1120 : vector<1x1x1x4xf32> to vector<1x4xf32>
    %cst_557 = arith.constant dense<0.000000e+00> : vector<1x32xf32>
    %1122 = tpu.matmul %1121, %1115, %cst_557 {dimension_numbers = #tpu.dot_dimension_numbers<[1], [0], [0], [1], [0, 0, 1, 1], [], []>} : vector<1x4xf32>, vector<4x32xf32>, vector<1x32xf32> -> vector<1x32xf32>
    %c0_558 = arith.constant 0 : index
    %c2_559 = arith.constant 2 : index
    %c0_560 = arith.constant 0 : index
    %c0_561 = arith.constant 0 : index
    %1123 = vector.load %arg4[%c0_558, %c2_559, %c0_560, %c0_561] : memref<1x4x1x4xf32, #tpu.memory_space<vmem>>, vector<1x1x1x4xf32>
    %1124 = vector.shape_cast %1123 : vector<1x1x1x4xf32> to vector<1x4xf32>
    %cst_562 = arith.constant dense<0.000000e+00> : vector<1x32xf32>
    %1125 = tpu.matmul %1124, %1115, %cst_562 {dimension_numbers = #tpu.dot_dimension_numbers<[1], [0], [0], [1], [0, 0, 1, 1], [], []>} : vector<1x4xf32>, vector<4x32xf32>, vector<1x32xf32> -> vector<1x32xf32>
    %1126 = vector.extract_strided_slice %722 {offsets = [2, 0], sizes = [1, 32], strides = [1, 1]} : vector<4x32xf32> to vector<1x32xf32>
    %1127 = vector.extract_strided_slice %733 {offsets = [2, 0], sizes = [1, 32], strides = [1, 1]} : vector<4x32xf32> to vector<1x32xf32>
    %1128 = vector.extract_strided_slice %744 {offsets = [2, 0], sizes = [1, 32], strides = [1, 1]} : vector<4x32xf32> to vector<1x32xf32>
    %cst_563 = arith.constant dense<0.000000e+00> : vector<1x32xf32>
    %1129 = tpu.matmul %1125, %812, %cst_563 {dimension_numbers = #tpu.dot_dimension_numbers<[1], [0], [0], [1], [0, 0, 1, 1], [], []>} : vector<1x32xf32>, vector<32x32xf32>, vector<1x32xf32> -> vector<1x32xf32>
    %1130 = arith.addf %1126, %1129 : vector<1x32xf32>
    %cst_564 = arith.constant dense<0.000000e+00> : vector<1x32xf32>
    %1131 = tpu.matmul %1125, %814, %cst_564 {dimension_numbers = #tpu.dot_dimension_numbers<[1], [0], [0], [1], [0, 0, 1, 1], [], []>} : vector<1x32xf32>, vector<32x32xf32>, vector<1x32xf32> -> vector<1x32xf32>
    %1132 = arith.addf %1127, %1131 : vector<1x32xf32>
    %cst_565 = arith.constant dense<0.000000e+00> : vector<1x32xf32>
    %1133 = tpu.matmul %1125, %816, %cst_565 {dimension_numbers = #tpu.dot_dimension_numbers<[1], [0], [0], [1], [0, 0, 1, 1], [], []>} : vector<1x32xf32>, vector<32x32xf32>, vector<1x32xf32> -> vector<1x32xf32>
    %1134 = arith.addf %1128, %1133 : vector<1x32xf32>
    %cst_566 = arith.constant dense<0.000000e+00> : vector<1x32xf32>
    %1135 = tpu.matmul %1122, %824, %cst_566 {dimension_numbers = #tpu.dot_dimension_numbers<[1], [0], [0], [1], [0, 0, 1, 1], [], []>} : vector<1x32xf32>, vector<32x32xf32>, vector<1x32xf32> -> vector<1x32xf32>
    %1136 = arith.addf %1135, %842 : vector<1x32xf32>
    %cst_567 = arith.constant dense<0.000000e+00> : vector<1x32xf32>
    %1137 = tpu.matmul %1122, %826, %cst_567 {dimension_numbers = #tpu.dot_dimension_numbers<[1], [0], [0], [1], [0, 0, 1, 1], [], []>} : vector<1x32xf32>, vector<32x32xf32>, vector<1x32xf32> -> vector<1x32xf32>
    %1138 = arith.addf %1137, %844 : vector<1x32xf32>
    %cst_568 = arith.constant dense<0.000000e+00> : vector<1x32xf32>
    %1139 = tpu.matmul %1122, %828, %cst_568 {dimension_numbers = #tpu.dot_dimension_numbers<[1], [0], [0], [1], [0, 0, 1, 1], [], []>} : vector<1x32xf32>, vector<32x32xf32>, vector<1x32xf32> -> vector<1x32xf32>
    %1140 = arith.addf %1139, %846 : vector<1x32xf32>
    %1141 = arith.addf %1130, %1136 : vector<1x32xf32>
    %1142 = arith.negf %1141 : vector<1x32xf32>
    %1143 = math.exp %1142 : vector<1x32xf32>
    %cst_569 = arith.constant 1.000000e+00 : f32
    %1144 = vector.broadcast %cst_569 : f32 to vector<1x32xf32>
    %1145 = arith.addf %1144, %1143 : vector<1x32xf32>
    %1146 = arith.divf %1144, %1145 : vector<1x32xf32>
    %1147 = arith.addf %1132, %1138 : vector<1x32xf32>
    %1148 = arith.negf %1147 : vector<1x32xf32>
    %1149 = math.exp %1148 : vector<1x32xf32>
    %cst_570 = arith.constant 1.000000e+00 : f32
    %1150 = vector.broadcast %cst_570 : f32 to vector<1x32xf32>
    %1151 = arith.addf %1150, %1149 : vector<1x32xf32>
    %1152 = arith.divf %1150, %1151 : vector<1x32xf32>
    %1153 = arith.mulf %1146, %1140 : vector<1x32xf32>
    %1154 = arith.addf %1134, %1153 : vector<1x32xf32>
    %1155 = math.tanh %1154 : vector<1x32xf32>
    %cst_571 = arith.constant 1.000000e+00 : f32
    %1156 = vector.broadcast %cst_571 : f32 to vector<1x32xf32>
    %1157 = arith.subf %1156, %1152 : vector<1x32xf32>
    %1158 = arith.mulf %1157, %1155 : vector<1x32xf32>
    %1159 = arith.mulf %1152, %1122 : vector<1x32xf32>
    %1160 = arith.addf %1158, %1159 : vector<1x32xf32>
    %1161 = vector.extract_strided_slice %755 {offsets = [2, 0], sizes = [1, 32], strides = [1, 1]} : vector<4x32xf32> to vector<1x32xf32>
    %1162 = vector.extract_strided_slice %766 {offsets = [2, 0], sizes = [1, 32], strides = [1, 1]} : vector<4x32xf32> to vector<1x32xf32>
    %1163 = vector.extract_strided_slice %777 {offsets = [2, 0], sizes = [1, 32], strides = [1, 1]} : vector<4x32xf32> to vector<1x32xf32>
    %cst_572 = arith.constant dense<0.000000e+00> : vector<1x32xf32>
    %1164 = tpu.matmul %1122, %818, %cst_572 {dimension_numbers = #tpu.dot_dimension_numbers<[1], [0], [0], [1], [0, 0, 1, 1], [], []>} : vector<1x32xf32>, vector<32x32xf32>, vector<1x32xf32> -> vector<1x32xf32>
    %1165 = arith.addf %1161, %1164 : vector<1x32xf32>
    %cst_573 = arith.constant dense<0.000000e+00> : vector<1x32xf32>
    %1166 = tpu.matmul %1122, %820, %cst_573 {dimension_numbers = #tpu.dot_dimension_numbers<[1], [0], [0], [1], [0, 0, 1, 1], [], []>} : vector<1x32xf32>, vector<32x32xf32>, vector<1x32xf32> -> vector<1x32xf32>
    %1167 = arith.addf %1162, %1166 : vector<1x32xf32>
    %cst_574 = arith.constant dense<0.000000e+00> : vector<1x32xf32>
    %1168 = tpu.matmul %1122, %822, %cst_574 {dimension_numbers = #tpu.dot_dimension_numbers<[1], [0], [0], [1], [0, 0, 1, 1], [], []>} : vector<1x32xf32>, vector<32x32xf32>, vector<1x32xf32> -> vector<1x32xf32>
    %1169 = arith.addf %1163, %1168 : vector<1x32xf32>
    %cst_575 = arith.constant dense<0.000000e+00> : vector<1x32xf32>
    %1170 = tpu.matmul %1125, %830, %cst_575 {dimension_numbers = #tpu.dot_dimension_numbers<[1], [0], [0], [1], [0, 0, 1, 1], [], []>} : vector<1x32xf32>, vector<32x32xf32>, vector<1x32xf32> -> vector<1x32xf32>
    %1171 = arith.addf %1170, %848 : vector<1x32xf32>
    %cst_576 = arith.constant dense<0.000000e+00> : vector<1x32xf32>
    %1172 = tpu.matmul %1125, %832, %cst_576 {dimension_numbers = #tpu.dot_dimension_numbers<[1], [0], [0], [1], [0, 0, 1, 1], [], []>} : vector<1x32xf32>, vector<32x32xf32>, vector<1x32xf32> -> vector<1x32xf32>
    %1173 = arith.addf %1172, %850 : vector<1x32xf32>
    %cst_577 = arith.constant dense<0.000000e+00> : vector<1x32xf32>
    %1174 = tpu.matmul %1125, %834, %cst_577 {dimension_numbers = #tpu.dot_dimension_numbers<[1], [0], [0], [1], [0, 0, 1, 1], [], []>} : vector<1x32xf32>, vector<32x32xf32>, vector<1x32xf32> -> vector<1x32xf32>
    %1175 = arith.addf %1174, %852 : vector<1x32xf32>
    %1176 = arith.addf %1165, %1171 : vector<1x32xf32>
    %1177 = arith.negf %1176 : vector<1x32xf32>
    %1178 = math.exp %1177 : vector<1x32xf32>
    %cst_578 = arith.constant 1.000000e+00 : f32
    %1179 = vector.broadcast %cst_578 : f32 to vector<1x32xf32>
    %1180 = arith.addf %1179, %1178 : vector<1x32xf32>
    %1181 = arith.divf %1179, %1180 : vector<1x32xf32>
    %1182 = arith.addf %1167, %1173 : vector<1x32xf32>
    %1183 = arith.negf %1182 : vector<1x32xf32>
    %1184 = math.exp %1183 : vector<1x32xf32>
    %cst_579 = arith.constant 1.000000e+00 : f32
    %1185 = vector.broadcast %cst_579 : f32 to vector<1x32xf32>
    %1186 = arith.addf %1185, %1184 : vector<1x32xf32>
    %1187 = arith.divf %1185, %1186 : vector<1x32xf32>
    %1188 = arith.mulf %1181, %1175 : vector<1x32xf32>
    %1189 = arith.addf %1169, %1188 : vector<1x32xf32>
    %1190 = math.tanh %1189 : vector<1x32xf32>
    %cst_580 = arith.constant 1.000000e+00 : f32
    %1191 = vector.broadcast %cst_580 : f32 to vector<1x32xf32>
    %1192 = arith.subf %1191, %1187 : vector<1x32xf32>
    %1193 = arith.mulf %1192, %1190 : vector<1x32xf32>
    %1194 = arith.mulf %1187, %1125 : vector<1x32xf32>
    %1195 = arith.addf %1193, %1194 : vector<1x32xf32>
    %1196 = vector.extract_strided_slice %788 {offsets = [2, 0], sizes = [1, 32], strides = [1, 1]} : vector<4x32xf32> to vector<1x32xf32>
    %1197 = vector.extract_strided_slice %799 {offsets = [2, 0], sizes = [1, 32], strides = [1, 1]} : vector<4x32xf32> to vector<1x32xf32>
    %1198 = vector.extract_strided_slice %810 {offsets = [2, 0], sizes = [1, 32], strides = [1, 1]} : vector<4x32xf32> to vector<1x32xf32>
    %cst_581 = arith.constant dense<0.000000e+00> : vector<4x32xf32>
    %1199 = tpu.matmul %1115, %836, %cst_581 {dimension_numbers = #tpu.dot_dimension_numbers<[1], [0], [0], [1], [0, 0, 1, 1], [], []>} : vector<4x32xf32>, vector<32x32xf32>, vector<4x32xf32> -> vector<4x32xf32>
    %1200 = vector.broadcast %854 : vector<1x32xf32> to vector<4x32xf32>
    %1201 = arith.addf %1199, %1200 : vector<4x32xf32>
    %cst_582 = arith.constant dense<0.000000e+00> : vector<4x32xf32>
    %1202 = tpu.matmul %1115, %838, %cst_582 {dimension_numbers = #tpu.dot_dimension_numbers<[1], [0], [0], [1], [0, 0, 1, 1], [], []>} : vector<4x32xf32>, vector<32x32xf32>, vector<4x32xf32> -> vector<4x32xf32>
    %1203 = vector.broadcast %856 : vector<1x32xf32> to vector<4x32xf32>
    %1204 = arith.addf %1202, %1203 : vector<4x32xf32>
    %cst_583 = arith.constant dense<0.000000e+00> : vector<4x32xf32>
    %1205 = tpu.matmul %1115, %840, %cst_583 {dimension_numbers = #tpu.dot_dimension_numbers<[1], [0], [0], [1], [0, 0, 1, 1], [], []>} : vector<4x32xf32>, vector<32x32xf32>, vector<4x32xf32> -> vector<4x32xf32>
    %1206 = vector.broadcast %858 : vector<1x32xf32> to vector<4x32xf32>
    %1207 = arith.addf %1205, %1206 : vector<4x32xf32>
    %1208 = vector.broadcast %1196 : vector<1x32xf32> to vector<4x32xf32>
    %1209 = arith.addf %1208, %1201 : vector<4x32xf32>
    %1210 = arith.negf %1209 : vector<4x32xf32>
    %1211 = math.exp %1210 : vector<4x32xf32>
    %cst_584 = arith.constant 1.000000e+00 : f32
    %1212 = vector.broadcast %cst_584 : f32 to vector<4x32xf32>
    %1213 = arith.addf %1212, %1211 : vector<4x32xf32>
    %1214 = arith.divf %1212, %1213 : vector<4x32xf32>
    %1215 = vector.broadcast %1197 : vector<1x32xf32> to vector<4x32xf32>
    %1216 = arith.addf %1215, %1204 : vector<4x32xf32>
    %1217 = arith.negf %1216 : vector<4x32xf32>
    %1218 = math.exp %1217 : vector<4x32xf32>
    %cst_585 = arith.constant 1.000000e+00 : f32
    %1219 = vector.broadcast %cst_585 : f32 to vector<4x32xf32>
    %1220 = arith.addf %1219, %1218 : vector<4x32xf32>
    %1221 = arith.divf %1219, %1220 : vector<4x32xf32>
    %1222 = arith.mulf %1214, %1207 : vector<4x32xf32>
    %1223 = vector.broadcast %1198 : vector<1x32xf32> to vector<4x32xf32>
    %1224 = arith.addf %1223, %1222 : vector<4x32xf32>
    %1225 = math.tanh %1224 : vector<4x32xf32>
    %cst_586 = arith.constant 1.000000e+00 : f32
    %1226 = vector.broadcast %cst_586 : f32 to vector<4x32xf32>
    %1227 = arith.subf %1226, %1221 : vector<4x32xf32>
    %1228 = arith.mulf %1227, %1225 : vector<4x32xf32>
    %1229 = arith.mulf %1221, %1115 : vector<4x32xf32>
    %1230 = arith.addf %1228, %1229 : vector<4x32xf32>
    %1231 = vector.broadcast %1117 : vector<4x1xf32> to vector<4x32xf32>
    %1232 = vector.broadcast %1160 : vector<1x32xf32> to vector<4x32xf32>
    %1233 = arith.mulf %1231, %1232 : vector<4x32xf32>
    %1234 = vector.broadcast %1119 : vector<4x1xf32> to vector<4x32xf32>
    %1235 = vector.broadcast %1195 : vector<1x32xf32> to vector<4x32xf32>
    %1236 = arith.mulf %1234, %1235 : vector<4x32xf32>
    %1237 = arith.addf %1233, %1236 : vector<4x32xf32>
    %cst_587 = arith.constant 1.000000e+00 : f32
    %1238 = vector.broadcast %cst_587 : f32 to vector<4x1xf32>
    %1239 = arith.subf %1238, %1117 : vector<4x1xf32>
    %1240 = arith.subf %1239, %1119 : vector<4x1xf32>
    %1241 = vector.broadcast %1240 : vector<4x1xf32> to vector<4x32xf32>
    %1242 = arith.mulf %1241, %1230 : vector<4x32xf32>
    %1243 = arith.addf %1237, %1242 : vector<4x32xf32>
    %c0_588 = arith.constant 0 : index
    %c3 = arith.constant 3 : index
    %c0_589 = arith.constant 0 : index
    %c0_590 = arith.constant 0 : index
    %1244 = vector.load %arg5[%c0_588, %c3, %c0_589, %c0_590] : memref<1x4x4x1xf32, #tpu.memory_space<vmem>>, vector<1x1x4x1xf32>
    %1245 = vector.shape_cast %1244 : vector<1x1x4x1xf32> to vector<4x1xf32>
    %c0_591 = arith.constant 0 : index
    %c3_592 = arith.constant 3 : index
    %c0_593 = arith.constant 0 : index
    %c0_594 = arith.constant 0 : index
    %1246 = vector.load %arg6[%c0_591, %c3_592, %c0_593, %c0_594] : memref<1x4x4x1xf32, #tpu.memory_space<vmem>>, vector<1x1x4x1xf32>
    %1247 = vector.shape_cast %1246 : vector<1x1x4x1xf32> to vector<4x1xf32>
    %c0_595 = arith.constant 0 : index
    %c3_596 = arith.constant 3 : index
    %c0_597 = arith.constant 0 : index
    %c0_598 = arith.constant 0 : index
    %1248 = vector.load %arg3[%c0_595, %c3_596, %c0_597, %c0_598] : memref<1x4x1x4xf32, #tpu.memory_space<vmem>>, vector<1x1x1x4xf32>
    %1249 = vector.shape_cast %1248 : vector<1x1x1x4xf32> to vector<1x4xf32>
    %cst_599 = arith.constant dense<0.000000e+00> : vector<1x32xf32>
    %1250 = tpu.matmul %1249, %1243, %cst_599 {dimension_numbers = #tpu.dot_dimension_numbers<[1], [0], [0], [1], [0, 0, 1, 1], [], []>} : vector<1x4xf32>, vector<4x32xf32>, vector<1x32xf32> -> vector<1x32xf32>
    %c0_600 = arith.constant 0 : index
    %c3_601 = arith.constant 3 : index
    %c0_602 = arith.constant 0 : index
    %c0_603 = arith.constant 0 : index
    %1251 = vector.load %arg4[%c0_600, %c3_601, %c0_602, %c0_603] : memref<1x4x1x4xf32, #tpu.memory_space<vmem>>, vector<1x1x1x4xf32>
    %1252 = vector.shape_cast %1251 : vector<1x1x1x4xf32> to vector<1x4xf32>
    %cst_604 = arith.constant dense<0.000000e+00> : vector<1x32xf32>
    %1253 = tpu.matmul %1252, %1243, %cst_604 {dimension_numbers = #tpu.dot_dimension_numbers<[1], [0], [0], [1], [0, 0, 1, 1], [], []>} : vector<1x4xf32>, vector<4x32xf32>, vector<1x32xf32> -> vector<1x32xf32>
    %1254 = vector.extract_strided_slice %722 {offsets = [3, 0], sizes = [1, 32], strides = [1, 1]} : vector<4x32xf32> to vector<1x32xf32>
    %1255 = vector.extract_strided_slice %733 {offsets = [3, 0], sizes = [1, 32], strides = [1, 1]} : vector<4x32xf32> to vector<1x32xf32>
    %1256 = vector.extract_strided_slice %744 {offsets = [3, 0], sizes = [1, 32], strides = [1, 1]} : vector<4x32xf32> to vector<1x32xf32>
    %cst_605 = arith.constant dense<0.000000e+00> : vector<1x32xf32>
    %1257 = tpu.matmul %1253, %812, %cst_605 {dimension_numbers = #tpu.dot_dimension_numbers<[1], [0], [0], [1], [0, 0, 1, 1], [], []>} : vector<1x32xf32>, vector<32x32xf32>, vector<1x32xf32> -> vector<1x32xf32>
    %1258 = arith.addf %1254, %1257 : vector<1x32xf32>
    %cst_606 = arith.constant dense<0.000000e+00> : vector<1x32xf32>
    %1259 = tpu.matmul %1253, %814, %cst_606 {dimension_numbers = #tpu.dot_dimension_numbers<[1], [0], [0], [1], [0, 0, 1, 1], [], []>} : vector<1x32xf32>, vector<32x32xf32>, vector<1x32xf32> -> vector<1x32xf32>
    %1260 = arith.addf %1255, %1259 : vector<1x32xf32>
    %cst_607 = arith.constant dense<0.000000e+00> : vector<1x32xf32>
    %1261 = tpu.matmul %1253, %816, %cst_607 {dimension_numbers = #tpu.dot_dimension_numbers<[1], [0], [0], [1], [0, 0, 1, 1], [], []>} : vector<1x32xf32>, vector<32x32xf32>, vector<1x32xf32> -> vector<1x32xf32>
    %1262 = arith.addf %1256, %1261 : vector<1x32xf32>
    %cst_608 = arith.constant dense<0.000000e+00> : vector<1x32xf32>
    %1263 = tpu.matmul %1250, %824, %cst_608 {dimension_numbers = #tpu.dot_dimension_numbers<[1], [0], [0], [1], [0, 0, 1, 1], [], []>} : vector<1x32xf32>, vector<32x32xf32>, vector<1x32xf32> -> vector<1x32xf32>
    %1264 = arith.addf %1263, %842 : vector<1x32xf32>
    %cst_609 = arith.constant dense<0.000000e+00> : vector<1x32xf32>
    %1265 = tpu.matmul %1250, %826, %cst_609 {dimension_numbers = #tpu.dot_dimension_numbers<[1], [0], [0], [1], [0, 0, 1, 1], [], []>} : vector<1x32xf32>, vector<32x32xf32>, vector<1x32xf32> -> vector<1x32xf32>
    %1266 = arith.addf %1265, %844 : vector<1x32xf32>
    %cst_610 = arith.constant dense<0.000000e+00> : vector<1x32xf32>
    %1267 = tpu.matmul %1250, %828, %cst_610 {dimension_numbers = #tpu.dot_dimension_numbers<[1], [0], [0], [1], [0, 0, 1, 1], [], []>} : vector<1x32xf32>, vector<32x32xf32>, vector<1x32xf32> -> vector<1x32xf32>
    %1268 = arith.addf %1267, %846 : vector<1x32xf32>
    %1269 = arith.addf %1258, %1264 : vector<1x32xf32>
    %1270 = arith.negf %1269 : vector<1x32xf32>
    %1271 = math.exp %1270 : vector<1x32xf32>
    %cst_611 = arith.constant 1.000000e+00 : f32
    %1272 = vector.broadcast %cst_611 : f32 to vector<1x32xf32>
    %1273 = arith.addf %1272, %1271 : vector<1x32xf32>
    %1274 = arith.divf %1272, %1273 : vector<1x32xf32>
    %1275 = arith.addf %1260, %1266 : vector<1x32xf32>
    %1276 = arith.negf %1275 : vector<1x32xf32>
    %1277 = math.exp %1276 : vector<1x32xf32>
    %cst_612 = arith.constant 1.000000e+00 : f32
    %1278 = vector.broadcast %cst_612 : f32 to vector<1x32xf32>
    %1279 = arith.addf %1278, %1277 : vector<1x32xf32>
    %1280 = arith.divf %1278, %1279 : vector<1x32xf32>
    %1281 = arith.mulf %1274, %1268 : vector<1x32xf32>
    %1282 = arith.addf %1262, %1281 : vector<1x32xf32>
    %1283 = math.tanh %1282 : vector<1x32xf32>
    %cst_613 = arith.constant 1.000000e+00 : f32
    %1284 = vector.broadcast %cst_613 : f32 to vector<1x32xf32>
    %1285 = arith.subf %1284, %1280 : vector<1x32xf32>
    %1286 = arith.mulf %1285, %1283 : vector<1x32xf32>
    %1287 = arith.mulf %1280, %1250 : vector<1x32xf32>
    %1288 = arith.addf %1286, %1287 : vector<1x32xf32>
    %1289 = vector.extract_strided_slice %755 {offsets = [3, 0], sizes = [1, 32], strides = [1, 1]} : vector<4x32xf32> to vector<1x32xf32>
    %1290 = vector.extract_strided_slice %766 {offsets = [3, 0], sizes = [1, 32], strides = [1, 1]} : vector<4x32xf32> to vector<1x32xf32>
    %1291 = vector.extract_strided_slice %777 {offsets = [3, 0], sizes = [1, 32], strides = [1, 1]} : vector<4x32xf32> to vector<1x32xf32>
    %cst_614 = arith.constant dense<0.000000e+00> : vector<1x32xf32>
    %1292 = tpu.matmul %1250, %818, %cst_614 {dimension_numbers = #tpu.dot_dimension_numbers<[1], [0], [0], [1], [0, 0, 1, 1], [], []>} : vector<1x32xf32>, vector<32x32xf32>, vector<1x32xf32> -> vector<1x32xf32>
    %1293 = arith.addf %1289, %1292 : vector<1x32xf32>
    %cst_615 = arith.constant dense<0.000000e+00> : vector<1x32xf32>
    %1294 = tpu.matmul %1250, %820, %cst_615 {dimension_numbers = #tpu.dot_dimension_numbers<[1], [0], [0], [1], [0, 0, 1, 1], [], []>} : vector<1x32xf32>, vector<32x32xf32>, vector<1x32xf32> -> vector<1x32xf32>
    %1295 = arith.addf %1290, %1294 : vector<1x32xf32>
    %cst_616 = arith.constant dense<0.000000e+00> : vector<1x32xf32>
    %1296 = tpu.matmul %1250, %822, %cst_616 {dimension_numbers = #tpu.dot_dimension_numbers<[1], [0], [0], [1], [0, 0, 1, 1], [], []>} : vector<1x32xf32>, vector<32x32xf32>, vector<1x32xf32> -> vector<1x32xf32>
    %1297 = arith.addf %1291, %1296 : vector<1x32xf32>
    %cst_617 = arith.constant dense<0.000000e+00> : vector<1x32xf32>
    %1298 = tpu.matmul %1253, %830, %cst_617 {dimension_numbers = #tpu.dot_dimension_numbers<[1], [0], [0], [1], [0, 0, 1, 1], [], []>} : vector<1x32xf32>, vector<32x32xf32>, vector<1x32xf32> -> vector<1x32xf32>
    %1299 = arith.addf %1298, %848 : vector<1x32xf32>
    %cst_618 = arith.constant dense<0.000000e+00> : vector<1x32xf32>
    %1300 = tpu.matmul %1253, %832, %cst_618 {dimension_numbers = #tpu.dot_dimension_numbers<[1], [0], [0], [1], [0, 0, 1, 1], [], []>} : vector<1x32xf32>, vector<32x32xf32>, vector<1x32xf32> -> vector<1x32xf32>
    %1301 = arith.addf %1300, %850 : vector<1x32xf32>
    %cst_619 = arith.constant dense<0.000000e+00> : vector<1x32xf32>
    %1302 = tpu.matmul %1253, %834, %cst_619 {dimension_numbers = #tpu.dot_dimension_numbers<[1], [0], [0], [1], [0, 0, 1, 1], [], []>} : vector<1x32xf32>, vector<32x32xf32>, vector<1x32xf32> -> vector<1x32xf32>
    %1303 = arith.addf %1302, %852 : vector<1x32xf32>
    %1304 = arith.addf %1293, %1299 : vector<1x32xf32>
    %1305 = arith.negf %1304 : vector<1x32xf32>
    %1306 = math.exp %1305 : vector<1x32xf32>
    %cst_620 = arith.constant 1.000000e+00 : f32
    %1307 = vector.broadcast %cst_620 : f32 to vector<1x32xf32>
    %1308 = arith.addf %1307, %1306 : vector<1x32xf32>
    %1309 = arith.divf %1307, %1308 : vector<1x32xf32>
    %1310 = arith.addf %1295, %1301 : vector<1x32xf32>
    %1311 = arith.negf %1310 : vector<1x32xf32>
    %1312 = math.exp %1311 : vector<1x32xf32>
    %cst_621 = arith.constant 1.000000e+00 : f32
    %1313 = vector.broadcast %cst_621 : f32 to vector<1x32xf32>
    %1314 = arith.addf %1313, %1312 : vector<1x32xf32>
    %1315 = arith.divf %1313, %1314 : vector<1x32xf32>
    %1316 = arith.mulf %1309, %1303 : vector<1x32xf32>
    %1317 = arith.addf %1297, %1316 : vector<1x32xf32>
    %1318 = math.tanh %1317 : vector<1x32xf32>
    %cst_622 = arith.constant 1.000000e+00 : f32
    %1319 = vector.broadcast %cst_622 : f32 to vector<1x32xf32>
    %1320 = arith.subf %1319, %1315 : vector<1x32xf32>
    %1321 = arith.mulf %1320, %1318 : vector<1x32xf32>
    %1322 = arith.mulf %1315, %1253 : vector<1x32xf32>
    %1323 = arith.addf %1321, %1322 : vector<1x32xf32>
    %1324 = vector.extract_strided_slice %788 {offsets = [3, 0], sizes = [1, 32], strides = [1, 1]} : vector<4x32xf32> to vector<1x32xf32>
    %1325 = vector.extract_strided_slice %799 {offsets = [3, 0], sizes = [1, 32], strides = [1, 1]} : vector<4x32xf32> to vector<1x32xf32>
    %1326 = vector.extract_strided_slice %810 {offsets = [3, 0], sizes = [1, 32], strides = [1, 1]} : vector<4x32xf32> to vector<1x32xf32>
    %cst_623 = arith.constant dense<0.000000e+00> : vector<4x32xf32>
    %1327 = tpu.matmul %1243, %836, %cst_623 {dimension_numbers = #tpu.dot_dimension_numbers<[1], [0], [0], [1], [0, 0, 1, 1], [], []>} : vector<4x32xf32>, vector<32x32xf32>, vector<4x32xf32> -> vector<4x32xf32>
    %1328 = vector.broadcast %854 : vector<1x32xf32> to vector<4x32xf32>
    %1329 = arith.addf %1327, %1328 : vector<4x32xf32>
    %cst_624 = arith.constant dense<0.000000e+00> : vector<4x32xf32>
    %1330 = tpu.matmul %1243, %838, %cst_624 {dimension_numbers = #tpu.dot_dimension_numbers<[1], [0], [0], [1], [0, 0, 1, 1], [], []>} : vector<4x32xf32>, vector<32x32xf32>, vector<4x32xf32> -> vector<4x32xf32>
    %1331 = vector.broadcast %856 : vector<1x32xf32> to vector<4x32xf32>
    %1332 = arith.addf %1330, %1331 : vector<4x32xf32>
    %cst_625 = arith.constant dense<0.000000e+00> : vector<4x32xf32>
    %1333 = tpu.matmul %1243, %840, %cst_625 {dimension_numbers = #tpu.dot_dimension_numbers<[1], [0], [0], [1], [0, 0, 1, 1], [], []>} : vector<4x32xf32>, vector<32x32xf32>, vector<4x32xf32> -> vector<4x32xf32>
    %1334 = vector.broadcast %858 : vector<1x32xf32> to vector<4x32xf32>
    %1335 = arith.addf %1333, %1334 : vector<4x32xf32>
    %1336 = vector.broadcast %1324 : vector<1x32xf32> to vector<4x32xf32>
    %1337 = arith.addf %1336, %1329 : vector<4x32xf32>
    %1338 = arith.negf %1337 : vector<4x32xf32>
    %1339 = math.exp %1338 : vector<4x32xf32>
    %cst_626 = arith.constant 1.000000e+00 : f32
    %1340 = vector.broadcast %cst_626 : f32 to vector<4x32xf32>
    %1341 = arith.addf %1340, %1339 : vector<4x32xf32>
    %1342 = arith.divf %1340, %1341 : vector<4x32xf32>
    %1343 = vector.broadcast %1325 : vector<1x32xf32> to vector<4x32xf32>
    %1344 = arith.addf %1343, %1332 : vector<4x32xf32>
    %1345 = arith.negf %1344 : vector<4x32xf32>
    %1346 = math.exp %1345 : vector<4x32xf32>
    %cst_627 = arith.constant 1.000000e+00 : f32
    %1347 = vector.broadcast %cst_627 : f32 to vector<4x32xf32>
    %1348 = arith.addf %1347, %1346 : vector<4x32xf32>
    %1349 = arith.divf %1347, %1348 : vector<4x32xf32>
    %1350 = arith.mulf %1342, %1335 : vector<4x32xf32>
    %1351 = vector.broadcast %1326 : vector<1x32xf32> to vector<4x32xf32>
    %1352 = arith.addf %1351, %1350 : vector<4x32xf32>
    %1353 = math.tanh %1352 : vector<4x32xf32>
    %cst_628 = arith.constant 1.000000e+00 : f32
    %1354 = vector.broadcast %cst_628 : f32 to vector<4x32xf32>
    %1355 = arith.subf %1354, %1349 : vector<4x32xf32>
    %1356 = arith.mulf %1355, %1353 : vector<4x32xf32>
    %1357 = arith.mulf %1349, %1243 : vector<4x32xf32>
    %1358 = arith.addf %1356, %1357 : vector<4x32xf32>
    %1359 = vector.broadcast %1245 : vector<4x1xf32> to vector<4x32xf32>
    %1360 = vector.broadcast %1288 : vector<1x32xf32> to vector<4x32xf32>
    %1361 = arith.mulf %1359, %1360 : vector<4x32xf32>
    %1362 = vector.broadcast %1247 : vector<4x1xf32> to vector<4x32xf32>
    %1363 = vector.broadcast %1323 : vector<1x32xf32> to vector<4x32xf32>
    %1364 = arith.mulf %1362, %1363 : vector<4x32xf32>
    %1365 = arith.addf %1361, %1364 : vector<4x32xf32>
    %cst_629 = arith.constant 1.000000e+00 : f32
    %1366 = vector.broadcast %cst_629 : f32 to vector<4x1xf32>
    %1367 = arith.subf %1366, %1245 : vector<4x1xf32>
    %1368 = arith.subf %1367, %1247 : vector<4x1xf32>
    %1369 = vector.broadcast %1368 : vector<4x1xf32> to vector<4x32xf32>
    %1370 = arith.mulf %1369, %1358 : vector<4x32xf32>
    %1371 = arith.addf %1365, %1370 : vector<4x32xf32>
    %c0_630 = arith.constant 0 : index
    %c0_631 = arith.constant 0 : index
    %c0_632 = arith.constant 0 : index
    %1372 = vector.load %arg25[%c0_630, %c0_631, %c0_632] : memref<1x4x32xf32, #tpu.memory_space<vmem>>, vector<1x4x32xf32>
    %1373 = vector.shape_cast %1372 : vector<1x4x32xf32> to vector<4x32xf32>
    %1374 = vector.shape_cast %1371 : vector<4x32xf32> to vector<1x4x32xf32>
    tpu.vector_store %arg25[%c0_630, %c0_631, %c0_632], %1374 {strides = array<i32>} : memref<1x4x32xf32, #tpu.memory_space<vmem>>, vector<1x4x32xf32>,
    %c0_633 = arith.constant 0 : index
    %c0_634 = arith.constant 0 : index
    %c0_635 = arith.constant 0 : index
    %1375 = vector.load %arg7[%c0_633, %c0_634, %c0_635] : memref<1x1x4xf32, #tpu.memory_space<vmem>>, vector<1x1x4xf32>
    %1376 = vector.shape_cast %1375 : vector<1x1x4xf32> to vector<1x4xf32>
    %cst_636 = arith.constant dense<0.000000e+00> : vector<1x32xf32>
    %1377 = tpu.matmul %1376, %1371, %cst_636 {dimension_numbers = #tpu.dot_dimension_numbers<[1], [0], [0], [1], [0, 0, 1, 1], [], []>} : vector<1x4xf32>, vector<4x32xf32>, vector<1x32xf32> -> vector<1x32xf32>
    %c0_637 = arith.constant 0 : index
    %c0_638 = arith.constant 0 : index
    %c0_639 = arith.constant 0 : index
    %1378 = vector.load %arg8[%c0_637, %c0_638, %c0_639] : memref<1x3x4xf32, #tpu.memory_space<vmem>>, vector<1x3x4xf32>
    %1379 = vector.shape_cast %1378 : vector<1x3x4xf32> to vector<3x4xf32>
    %cst_640 = arith.constant dense<0.000000e+00> : vector<3x32xf32>
    %1380 = tpu.matmul %1379, %1371, %cst_640 {dimension_numbers = #tpu.dot_dimension_numbers<[1], [0], [0], [1], [0, 0, 1, 1], [], []>} : vector<3x4xf32>, vector<4x32xf32>, vector<3x32xf32> -> vector<3x32xf32>
    %c0_641 = arith.constant 0 : index
    %c0_642 = arith.constant 0 : index
    %1381 = vector.load %arg19[%c0_641, %c0_642] : memref<1x32xf32, #tpu.memory_space<vmem>>, vector<1x32xf32>
    %1382 = vector.extract_strided_slice %672 {offsets = [0, 0], sizes = [1, 16], strides = [1, 1]} : vector<4x16xf32> to vector<1x16xf32>
    %c0_643 = arith.constant 0 : index
    %c0_644 = arith.constant 0 : index
    %c0_645 = arith.constant 0 : index
    %c0_646 = arith.constant 0 : index
    %1383 = vector.load %arg18[%c0_643, %c0_644, %c0_645, %c0_646] : memref<4x2x16x32xf32, #tpu.memory_space<vmem>>, vector<1x1x16x32xf32>
    %1384 = vector.shape_cast %1383 : vector<1x1x16x32xf32> to vector<16x32xf32>
    %cst_647 = arith.constant dense<0.000000e+00> : vector<1x32xf32>
    %1385 = tpu.matmul %1382, %1384, %cst_647 {dimension_numbers = #tpu.dot_dimension_numbers<[1], [0], [0], [1], [0, 0, 1, 1], [], []>} : vector<1x16xf32>, vector<16x32xf32>, vector<1x32xf32> -> vector<1x32xf32>
    %1386 = arith.addf %1381, %1385 : vector<1x32xf32>
    %1387 = vector.extract_strided_slice %711 {offsets = [0, 0], sizes = [1, 16], strides = [1, 1]} : vector<4x16xf32> to vector<1x16xf32>
    %c0_648 = arith.constant 0 : index
    %c1_649 = arith.constant 1 : index
    %c0_650 = arith.constant 0 : index
    %c0_651 = arith.constant 0 : index
    %1388 = vector.load %arg18[%c0_648, %c1_649, %c0_650, %c0_651] : memref<4x2x16x32xf32, #tpu.memory_space<vmem>>, vector<1x1x16x32xf32>
    %1389 = vector.shape_cast %1388 : vector<1x1x16x32xf32> to vector<16x32xf32>
    %cst_652 = arith.constant dense<0.000000e+00> : vector<1x32xf32>
    %1390 = tpu.matmul %1387, %1389, %cst_652 {dimension_numbers = #tpu.dot_dimension_numbers<[1], [0], [0], [1], [0, 0, 1, 1], [], []>} : vector<1x16xf32>, vector<16x32xf32>, vector<1x32xf32> -> vector<1x32xf32>
    %1391 = arith.addf %1386, %1390 : vector<1x32xf32>
    %1392 = vector.extract_strided_slice %672 {offsets = [1, 0], sizes = [1, 16], strides = [1, 1]} : vector<4x16xf32> to vector<1x16xf32>
    %c1_653 = arith.constant 1 : index
    %c0_654 = arith.constant 0 : index
    %c0_655 = arith.constant 0 : index
    %c0_656 = arith.constant 0 : index
    %1393 = vector.load %arg18[%c1_653, %c0_654, %c0_655, %c0_656] : memref<4x2x16x32xf32, #tpu.memory_space<vmem>>, vector<1x1x16x32xf32>
    %1394 = vector.shape_cast %1393 : vector<1x1x16x32xf32> to vector<16x32xf32>
    %cst_657 = arith.constant dense<0.000000e+00> : vector<1x32xf32>
    %1395 = tpu.matmul %1392, %1394, %cst_657 {dimension_numbers = #tpu.dot_dimension_numbers<[1], [0], [0], [1], [0, 0, 1, 1], [], []>} : vector<1x16xf32>, vector<16x32xf32>, vector<1x32xf32> -> vector<1x32xf32>
    %1396 = arith.addf %1391, %1395 : vector<1x32xf32>
    %1397 = vector.extract_strided_slice %711 {offsets = [1, 0], sizes = [1, 16], strides = [1, 1]} : vector<4x16xf32> to vector<1x16xf32>
    %c1_658 = arith.constant 1 : index
    %c1_659 = arith.constant 1 : index
    %c0_660 = arith.constant 0 : index
    %c0_661 = arith.constant 0 : index
    %1398 = vector.load %arg18[%c1_658, %c1_659, %c0_660, %c0_661] : memref<4x2x16x32xf32, #tpu.memory_space<vmem>>, vector<1x1x16x32xf32>
    %1399 = vector.shape_cast %1398 : vector<1x1x16x32xf32> to vector<16x32xf32>
    %cst_662 = arith.constant dense<0.000000e+00> : vector<1x32xf32>
    %1400 = tpu.matmul %1397, %1399, %cst_662 {dimension_numbers = #tpu.dot_dimension_numbers<[1], [0], [0], [1], [0, 0, 1, 1], [], []>} : vector<1x16xf32>, vector<16x32xf32>, vector<1x32xf32> -> vector<1x32xf32>
    %1401 = arith.addf %1396, %1400 : vector<1x32xf32>
    %1402 = vector.extract_strided_slice %672 {offsets = [2, 0], sizes = [1, 16], strides = [1, 1]} : vector<4x16xf32> to vector<1x16xf32>
    %c2_663 = arith.constant 2 : index
    %c0_664 = arith.constant 0 : index
    %c0_665 = arith.constant 0 : index
    %c0_666 = arith.constant 0 : index
    %1403 = vector.load %arg18[%c2_663, %c0_664, %c0_665, %c0_666] : memref<4x2x16x32xf32, #tpu.memory_space<vmem>>, vector<1x1x16x32xf32>
    %1404 = vector.shape_cast %1403 : vector<1x1x16x32xf32> to vector<16x32xf32>
    %cst_667 = arith.constant dense<0.000000e+00> : vector<1x32xf32>
    %1405 = tpu.matmul %1402, %1404, %cst_667 {dimension_numbers = #tpu.dot_dimension_numbers<[1], [0], [0], [1], [0, 0, 1, 1], [], []>} : vector<1x16xf32>, vector<16x32xf32>, vector<1x32xf32> -> vector<1x32xf32>
    %1406 = arith.addf %1401, %1405 : vector<1x32xf32>
    %1407 = vector.extract_strided_slice %711 {offsets = [2, 0], sizes = [1, 16], strides = [1, 1]} : vector<4x16xf32> to vector<1x16xf32>
    %c2_668 = arith.constant 2 : index
    %c1_669 = arith.constant 1 : index
    %c0_670 = arith.constant 0 : index
    %c0_671 = arith.constant 0 : index
    %1408 = vector.load %arg18[%c2_668, %c1_669, %c0_670, %c0_671] : memref<4x2x16x32xf32, #tpu.memory_space<vmem>>, vector<1x1x16x32xf32>
    %1409 = vector.shape_cast %1408 : vector<1x1x16x32xf32> to vector<16x32xf32>
    %cst_672 = arith.constant dense<0.000000e+00> : vector<1x32xf32>
    %1410 = tpu.matmul %1407, %1409, %cst_672 {dimension_numbers = #tpu.dot_dimension_numbers<[1], [0], [0], [1], [0, 0, 1, 1], [], []>} : vector<1x16xf32>, vector<16x32xf32>, vector<1x32xf32> -> vector<1x32xf32>
    %1411 = arith.addf %1406, %1410 : vector<1x32xf32>
    %1412 = vector.extract_strided_slice %672 {offsets = [3, 0], sizes = [1, 16], strides = [1, 1]} : vector<4x16xf32> to vector<1x16xf32>
    %c3_673 = arith.constant 3 : index
    %c0_674 = arith.constant 0 : index
    %c0_675 = arith.constant 0 : index
    %c0_676 = arith.constant 0 : index
    %1413 = vector.load %arg18[%c3_673, %c0_674, %c0_675, %c0_676] : memref<4x2x16x32xf32, #tpu.memory_space<vmem>>, vector<1x1x16x32xf32>
    %1414 = vector.shape_cast %1413 : vector<1x1x16x32xf32> to vector<16x32xf32>
    %cst_677 = arith.constant dense<0.000000e+00> : vector<1x32xf32>
    %1415 = tpu.matmul %1412, %1414, %cst_677 {dimension_numbers = #tpu.dot_dimension_numbers<[1], [0], [0], [1], [0, 0, 1, 1], [], []>} : vector<1x16xf32>, vector<16x32xf32>, vector<1x32xf32> -> vector<1x32xf32>
    %1416 = arith.addf %1411, %1415 : vector<1x32xf32>
    %1417 = vector.extract_strided_slice %711 {offsets = [3, 0], sizes = [1, 16], strides = [1, 1]} : vector<4x16xf32> to vector<1x16xf32>
    %c3_678 = arith.constant 3 : index
    %c1_679 = arith.constant 1 : index
    %c0_680 = arith.constant 0 : index
    %c0_681 = arith.constant 0 : index
    %1418 = vector.load %arg18[%c3_678, %c1_679, %c0_680, %c0_681] : memref<4x2x16x32xf32, #tpu.memory_space<vmem>>, vector<1x1x16x32xf32>
    %1419 = vector.shape_cast %1418 : vector<1x1x16x32xf32> to vector<16x32xf32>
    %cst_682 = arith.constant dense<0.000000e+00> : vector<1x32xf32>
    %1420 = tpu.matmul %1417, %1419, %cst_682 {dimension_numbers = #tpu.dot_dimension_numbers<[1], [0], [0], [1], [0, 0, 1, 1], [], []>} : vector<1x16xf32>, vector<16x32xf32>, vector<1x32xf32> -> vector<1x32xf32>
    %1421 = arith.addf %1416, %1420 : vector<1x32xf32>
    %1422 = math.tanh %1421 : vector<1x32xf32>
    %c0_683 = arith.constant 0 : index
    %c0_684 = arith.constant 0 : index
    %c0_685 = arith.constant 0 : index
    %1423 = vector.load %arg20[%c0_683, %c0_684, %c0_685] : memref<2x32x32xf32, #tpu.memory_space<vmem>>, vector<1x32x32xf32>
    %1424 = vector.shape_cast %1423 : vector<1x32x32xf32> to vector<32x32xf32>
    %cst_686 = arith.constant dense<0.000000e+00> : vector<1x32xf32>
    %1425 = tpu.matmul %1377, %1424, %cst_686 {dimension_numbers = #tpu.dot_dimension_numbers<[1], [0], [0], [1], [0, 0, 1, 1], [], []>} : vector<1x32xf32>, vector<32x32xf32>, vector<1x32xf32> -> vector<1x32xf32>
    %c1_687 = arith.constant 1 : index
    %c0_688 = arith.constant 0 : index
    %c0_689 = arith.constant 0 : index
    %1426 = vector.load %arg20[%c1_687, %c0_688, %c0_689] : memref<2x32x32xf32, #tpu.memory_space<vmem>>, vector<1x32x32xf32>
    %1427 = vector.shape_cast %1426 : vector<1x32x32xf32> to vector<32x32xf32>
    %cst_690 = arith.constant dense<0.000000e+00> : vector<1x32xf32>
    %1428 = tpu.matmul %1422, %1427, %cst_690 {dimension_numbers = #tpu.dot_dimension_numbers<[1], [0], [0], [1], [0, 0, 1, 1], [], []>} : vector<1x32xf32>, vector<32x32xf32>, vector<1x32xf32> -> vector<1x32xf32>
    %1429 = arith.addf %1425, %1428 : vector<1x32xf32>
    %c0_691 = arith.constant 0 : index
    %c0_692 = arith.constant 0 : index
    %1430 = vector.load %arg21[%c0_691, %c0_692] : memref<1x32xf32, #tpu.memory_space<vmem>>, vector<1x32xf32>
    %1431 = arith.addf %1429, %1430 : vector<1x32xf32>
    %1432 = math.tanh %1431 : vector<1x32xf32>
    %1433 = vector.broadcast %1432 : vector<1x32xf32> to vector<3x32xf32>
    %1434 = arith.mulf %1380, %1433 : vector<3x32xf32>
    %cst_693 = arith.constant dense<0.000000e+00> : vector<3xf32>
    %1435 = vector.multi_reduction <add>, %1434, %cst_693 [1] : vector<3x32xf32> to vector<3xf32>
    %1436 = vector.shape_cast %1435 : vector<3xf32> to vector<3x1xf32>
    %c0_694 = arith.constant 0 : index
    %c0_695 = arith.constant 0 : index
    %1437 = vector.load %arg22[%c0_694, %c0_695] : memref<3x3xf32, #tpu.memory_space<vmem>>, vector<3x3xf32>
    %cst_696 = arith.constant dense<0.000000e+00> : vector<3x1xf32>
    %1438 = tpu.matmul %1437, %1436, %cst_696 {dimension_numbers = #tpu.dot_dimension_numbers<[1], [0], [0], [1], [0, 0, 1, 1], [], []>} : vector<3x3xf32>, vector<3x1xf32>, vector<3x1xf32> -> vector<3x1xf32>
    %c0_697 = arith.constant 0 : index
    %c0_698 = arith.constant 0 : index
    %1439 = vector.load %arg23[%c0_697, %c0_698] : memref<3x1xf32, #tpu.memory_space<vmem>>, vector<3x1xf32>
    %1440 = arith.addf %1438, %1439 : vector<3x1xf32>
    %c0_699 = arith.constant 0 : index
    %c0_700 = arith.constant 0 : index
    %c0_701 = arith.constant 0 : index
    %1441 = vector.load %arg24[%c0_699, %c0_700, %c0_701] : memref<1x3x1xf32, #tpu.memory_space<vmem>>, vector<1x3x1xf32>
    %1442 = vector.shape_cast %1441 : vector<1x3x1xf32> to vector<3x1xf32>
    %1443 = vector.shape_cast %1440 : vector<3x1xf32> to vector<1x3x1xf32>
    tpu.vector_store %arg24[%c0_699, %c0_700, %c0_701], %1443 {strides = array<i32>} : memref<1x3x1xf32, #tpu.memory_space<vmem>>, vector<1x3x1xf32>,
    return
  }
  func.func @transform_0(%arg0: i32) -> (i32, i32, i32) {
    %c0_i32 = arith.constant 0 : i32
    %c0_i32_0 = arith.constant 0 : i32
    %c0_i32_1 = arith.constant 0 : i32
    return %arg0, %c0_i32, %c0_i32_0 : i32, i32, i32
  }
  func.func @transform_1(%arg0: i32) -> (i32, i32, i32) {
    %c0_i32 = arith.constant 0 : i32
    %c0_i32_0 = arith.constant 0 : i32
    %c0_i32_1 = arith.constant 0 : i32
    return %arg0, %c0_i32, %c0_i32_0 : i32, i32, i32
  }
  func.func @transform_2(%arg0: i32) -> (i32, i32, i32, i32) {
    %c0_i32 = arith.constant 0 : i32
    %c0_i32_0 = arith.constant 0 : i32
    %c0_i32_1 = arith.constant 0 : i32
    %c0_i32_2 = arith.constant 0 : i32
    return %arg0, %c0_i32, %c0_i32_0, %c0_i32_1 : i32, i32, i32, i32
  }
  func.func @transform_3(%arg0: i32) -> (i32, i32, i32, i32) {
    %c0_i32 = arith.constant 0 : i32
    %c0_i32_0 = arith.constant 0 : i32
    %c0_i32_1 = arith.constant 0 : i32
    %c0_i32_2 = arith.constant 0 : i32
    return %arg0, %c0_i32, %c0_i32_0, %c0_i32_1 : i32, i32, i32, i32
  }
  func.func @transform_4(%arg0: i32) -> (i32, i32, i32, i32) {
    %c0_i32 = arith.constant 0 : i32
    %c0_i32_0 = arith.constant 0 : i32
    %c0_i32_1 = arith.constant 0 : i32
    %c0_i32_2 = arith.constant 0 : i32
    return %arg0, %c0_i32, %c0_i32_0, %c0_i32_1 : i32, i32, i32, i32
  }
  func.func @transform_5(%arg0: i32) -> (i32, i32, i32, i32) {
    %c0_i32 = arith.constant 0 : i32
    %c0_i32_0 = arith.constant 0 : i32
    %c0_i32_1 = arith.constant 0 : i32
    %c0_i32_2 = arith.constant 0 : i32
    return %arg0, %c0_i32, %c0_i32_0, %c0_i32_1 : i32, i32, i32, i32
  }
  func.func @transform_6(%arg0: i32) -> (i32, i32, i32) {
    %c0_i32 = arith.constant 0 : i32
    %c0_i32_0 = arith.constant 0 : i32
    %c0_i32_1 = arith.constant 0 : i32
    return %arg0, %c0_i32, %c0_i32_0 : i32, i32, i32
  }
  func.func @transform_7(%arg0: i32) -> (i32, i32, i32) {
    %c0_i32 = arith.constant 0 : i32
    %c0_i32_0 = arith.constant 0 : i32
    %c0_i32_1 = arith.constant 0 : i32
    return %arg0, %c0_i32, %c0_i32_0 : i32, i32, i32
  }
  func.func @transform_8(%arg0: i32) -> (i32, i32, i32, i32) {
    %c0_i32 = arith.constant 0 : i32
    %c0_i32_0 = arith.constant 0 : i32
    %c0_i32_1 = arith.constant 0 : i32
    %c0_i32_2 = arith.constant 0 : i32
    %c0_i32_3 = arith.constant 0 : i32
    return %c0_i32, %c0_i32_0, %c0_i32_1, %c0_i32_2 : i32, i32, i32, i32
  }
  func.func @transform_9(%arg0: i32) -> (i32, i32, i32, i32) {
    %c0_i32 = arith.constant 0 : i32
    %c0_i32_0 = arith.constant 0 : i32
    %c0_i32_1 = arith.constant 0 : i32
    %c0_i32_2 = arith.constant 0 : i32
    %c0_i32_3 = arith.constant 0 : i32
    return %c0_i32, %c0_i32_0, %c0_i32_1, %c0_i32_2 : i32, i32, i32, i32
  }
  func.func @transform_10(%arg0: i32) -> (i32, i32, i32, i32) {
    %c0_i32 = arith.constant 0 : i32
    %c0_i32_0 = arith.constant 0 : i32
    %c0_i32_1 = arith.constant 0 : i32
    %c0_i32_2 = arith.constant 0 : i32
    %c0_i32_3 = arith.constant 0 : i32
    return %c0_i32, %c0_i32_0, %c0_i32_1, %c0_i32_2 : i32, i32, i32, i32
  }
  func.func @transform_11(%arg0: i32) -> (i32, i32, i32, i32) {
    %c0_i32 = arith.constant 0 : i32
    %c0_i32_0 = arith.constant 0 : i32
    %c0_i32_1 = arith.constant 0 : i32
    %c0_i32_2 = arith.constant 0 : i32
    %c0_i32_3 = arith.constant 0 : i32
    return %c0_i32, %c0_i32_0, %c0_i32_1, %c0_i32_2 : i32, i32, i32, i32
  }
  func.func @transform_12(%arg0: i32) -> (i32, i32, i32, i32, i32) {
    %c0_i32 = arith.constant 0 : i32
    %c0_i32_0 = arith.constant 0 : i32
    %c0_i32_1 = arith.constant 0 : i32
    %c0_i32_2 = arith.constant 0 : i32
    %c0_i32_3 = arith.constant 0 : i32
    %c0_i32_4 = arith.constant 0 : i32
    return %c0_i32, %c0_i32_0, %c0_i32_1, %c0_i32_2, %c0_i32_3 : i32, i32, i32, i32, i32
  }
  func.func @transform_13(%arg0: i32) -> (i32, i32, i32, i32) {
    %c0_i32 = arith.constant 0 : i32
    %c0_i32_0 = arith.constant 0 : i32
    %c0_i32_1 = arith.constant 0 : i32
    %c0_i32_2 = arith.constant 0 : i32
    %c0_i32_3 = arith.constant 0 : i32
    return %c0_i32, %c0_i32_0, %c0_i32_1, %c0_i32_2 : i32, i32, i32, i32
  }
  func.func @transform_14(%arg0: i32) -> (i32, i32, i32, i32) {
    %c0_i32 = arith.constant 0 : i32
    %c0_i32_0 = arith.constant 0 : i32
    %c0_i32_1 = arith.constant 0 : i32
    %c0_i32_2 = arith.constant 0 : i32
    %c0_i32_3 = arith.constant 0 : i32
    return %c0_i32, %c0_i32_0, %c0_i32_1, %c0_i32_2 : i32, i32, i32, i32
  }
  func.func @transform_15(%arg0: i32) -> (i32, i32, i32, i32) {
    %c0_i32 = arith.constant 0 : i32
    %c0_i32_0 = arith.constant 0 : i32
    %c0_i32_1 = arith.constant 0 : i32
    %c0_i32_2 = arith.constant 0 : i32
    %c0_i32_3 = arith.constant 0 : i32
    return %c0_i32, %c0_i32_0, %c0_i32_1, %c0_i32_2 : i32, i32, i32, i32
  }
  func.func @transform_16(%arg0: i32) -> (i32, i32, i32, i32) {
    %c0_i32 = arith.constant 0 : i32
    %c0_i32_0 = arith.constant 0 : i32
    %c0_i32_1 = arith.constant 0 : i32
    %c0_i32_2 = arith.constant 0 : i32
    %c0_i32_3 = arith.constant 0 : i32
    return %c0_i32, %c0_i32_0, %c0_i32_1, %c0_i32_2 : i32, i32, i32, i32
  }
  func.func @transform_17(%arg0: i32) -> (i32, i32, i32, i32) {
    %c0_i32 = arith.constant 0 : i32
    %c0_i32_0 = arith.constant 0 : i32
    %c0_i32_1 = arith.constant 0 : i32
    %c0_i32_2 = arith.constant 0 : i32
    %c0_i32_3 = arith.constant 0 : i32
    return %c0_i32, %c0_i32_0, %c0_i32_1, %c0_i32_2 : i32, i32, i32, i32
  }
  func.func @transform_18(%arg0: i32) -> (i32, i32) {
    %c0_i32 = arith.constant 0 : i32
    %c0_i32_0 = arith.constant 0 : i32
    %c0_i32_1 = arith.constant 0 : i32
    return %c0_i32, %c0_i32_0 : i32, i32
  }
  func.func @transform_19(%arg0: i32) -> (i32, i32, i32) {
    %c0_i32 = arith.constant 0 : i32
    %c0_i32_0 = arith.constant 0 : i32
    %c0_i32_1 = arith.constant 0 : i32
    %c0_i32_2 = arith.constant 0 : i32
    return %c0_i32, %c0_i32_0, %c0_i32_1 : i32, i32, i32
  }
  func.func @transform_20(%arg0: i32) -> (i32, i32) {
    %c0_i32 = arith.constant 0 : i32
    %c0_i32_0 = arith.constant 0 : i32
    %c0_i32_1 = arith.constant 0 : i32
    return %c0_i32, %c0_i32_0 : i32, i32
  }
  func.func @transform_21(%arg0: i32) -> (i32, i32) {
    %c0_i32 = arith.constant 0 : i32
    %c0_i32_0 = arith.constant 0 : i32
    %c0_i32_1 = arith.constant 0 : i32
    return %c0_i32, %c0_i32_0 : i32, i32
  }
  func.func @transform_22(%arg0: i32) -> (i32, i32) {
    %c0_i32 = arith.constant 0 : i32
    %c0_i32_0 = arith.constant 0 : i32
    %c0_i32_1 = arith.constant 0 : i32
    return %c0_i32, %c0_i32_0 : i32, i32
  }
  func.func @transform_23(%arg0: i32) -> (i32, i32, i32) {
    %c0_i32 = arith.constant 0 : i32
    %c0_i32_0 = arith.constant 0 : i32
    %c0_i32_1 = arith.constant 0 : i32
    return %arg0, %c0_i32, %c0_i32_0 : i32, i32, i32
  }
  func.func @transform_24(%arg0: i32) -> (i32, i32, i32) {
    %c0_i32 = arith.constant 0 : i32
    %c0_i32_0 = arith.constant 0 : i32
    %c0_i32_1 = arith.constant 0 : i32
    return %arg0, %c0_i32, %c0_i32_0 : i32, i32, i32
  }
}

</mosaic_0001>

<bundles_post_ra>
// kernel: adr_selection_forward.1
= control target key start
LH: loop header
LB: loop body
LE: loop exit
PB: predicated region body
PF: predicated region fallthrough
CT: control target
= control target key end

     0   :  { %s19750_s0 = inlined_call_operand.vmem [shape: f32[2,32,16], index: 0, kind: input, shape index: {}]   ;;  %s19751_s1 = inlined_call_operand.vmem [shape: f32[2,32,1], index: 1, kind: input, shape index: {}]   ;;  %s19752_s2 = inlined_call_operand.vmem [shape: f32[2,4,1,4], index: 2, kind: input, shape index: {}]   ;;  %s19753_s3 = inlined_call_operand.vmem [shape: f32[2,4,1,4], index: 3, kind: input, shape index: {}]   ;;  %s19754_s4 = inlined_call_operand.vmem [shape: f32[2,4,4,1], index: 4, kind: input, shape index: {}]   ;;  %s19755_s5 = inlined_call_operand.vmem [shape: f32[2,4,4,1], index: 5, kind: input, shape index: {}]   ;;  %s19756_s6 = inlined_call_operand.vmem [shape: f32[2,1,4], index: 6, kind: input, shape index: {}]   ;;  %s19757_s7 = inlined_call_operand.vmem [shape: f32[2,3,4], index: 7, kind: input, shape index: {}]   ;;  %s19758_s8 = inlined_call_operand.vmem [shape: f32[2,3,16,16], index: 8, kind: input, shape index: {}]   ;;  %s19759_s9 = inlined_call_operand.vmem [shape: f32[2,3,16,16], index: 9, kind: input, shape index: {}]   ;;  %s19760_s10 = inlined_call_operand.vmem [shape: f32[2,3,1,16], index: 10, kind: input, shape index: {}]   ;;  %s19761_s11 = inlined_call_operand.vmem [shape: f32[2,3,1,16], index: 11, kind: input, shape index: {}]   ;;  %s19762_s12 = inlined_call_operand.vmem [shape: f32[3,3,2,16,32], index: 12, kind: input, shape index: {}]   ;;  %s19763_s13 = inlined_call_operand.vmem [shape: f32[2,3,32,32], index: 13, kind: input, shape index: {}]   ;;  %s19764_s14 = inlined_call_operand.vmem [shape: f32[3,3,32,32], index: 14, kind: input, shape index: {}]   ;;  %s19765_s15 = inlined_call_operand.vmem [shape: f32[3,3,1,32], index: 15, kind: input, shape index: {}]   ;;  %s19766_s16 = inlined_call_operand.vmem [shape: f32[3,3,1,32], index: 16, kind: input, shape index: {}]   ;;  %s19767_s17 = inlined_call_operand.vmem [shape: f32[4,2,16,32], index: 17, kind: input, shape index: {}]   ;;  %s19768_s18 = inlined_call_operand.vmem [shape: f32[1,32], index: 18, kind: input, shape index: {}]   ;;  %s19769_s19 = inlined_call_operand.vmem [shape: f32[2,32,32], index: 19, kind: input, shape index: {}]   ;;  %s19770_s20 = inlined_call_operand.vmem [shape: f32[1,32], index: 20, kind: input, shape index: {}]   ;;  %s19771_s21 = inlined_call_operand.vmem [shape: f32[3,3], index: 21, kind: input, shape index: {}]   ;;  %s19772_s22 = inlined_call_operand.vmem [shape: f32[3,1], index: 22, kind: input, shape index: {}]   ;;  %s19773_s23 = inlined_call_operand.vmem [shape: f32[2,3,1], index: 23, kind: output, shape index: {0}]   ;;  %s19774_s24 = inlined_call_operand.hbm [shape: f32[2,4,32], index: 24, kind: output, shape index: {1}]  }
   0x1   :  { %19873 = sst [smem:[#allocation52_spill]] %s19750_s0 }
   0x2   :  { %19874 = sst [smem:[#allocation53_spill]] %s19751_s1 }
   0x3   :  { %19875 = sst [smem:[#allocation54_spill]] %s19752_s2 }
   0x4   :  { %19876 = sst [smem:[#allocation55_spill]] %s19753_s3 }
   0x5   :  { %19877 = sst [smem:[#allocation56_spill]] %s19754_s4 }
   0x6   :  { %19878 = sst [smem:[#allocation57_spill]] %s19755_s5 }
   0x7   :  { %19879 = sst [smem:[#allocation58_spill]] %s19756_s6 }
   0x8   :  { %19880 = sst [smem:[#allocation59_spill]] %s19757_s7 }
   0x9   :  { %19881 = sst [smem:[#allocation60_spill]] %s19758_s8 }
   0xa   :  { %19882 = sst [smem:[#allocation61_spill]] %s19759_s9 }
   0xb   :  { %19883 = sst [smem:[#allocation62_spill]] %s19760_s10 }
   0xc   :  { %19884 = sst [smem:[#allocation63_spill]] %s19761_s11 }
   0xd   :  { %30 = vsyncpa [#allocation3], 0 }
   0xe   :  { %32 = vsyncpa [#allocation3 + $0x1], 0  ;;  %s16545_s5 = smov 0   ;;  %s16547_s26 = smov 0  }
   0xf   :  { %s16549_s27 = smov 0   ;;  %s16551_s28 = smov 0  }
  0x10 LB: > { %19885 = sst [smem:[#allocation5_spill]] %s16402_s5  ;;  %s16566_s6 = sadd.s32 4294967295, %s16414_s28   ;;  %s16414_s28 = sphi %s16551_s28, %s20077_s28   ;;  %s16410_s27 = sphi %s16549_s27, %s20079_s27   ;;  %s16406_s26 = sphi %s16547_s26, %s20081_s26   ;;  %s16402_s5 = sphi %s16545_s5, %s20080_s5  }
  0x11   : > { %19886 = sst [smem:[#allocation6_spill]] %s16410_s27  ;;  %s13592_s2 = sadd.s32 4294967294, %s16414_s28  }
  0x12   : > { %s16570_s29 = sadd.s32 1, %s16414_s28   ;;  %s594_s0 = sadd.s32 1, %s16410_s27 }
  0x13   : > { %19887 = sst [smem:[#allocation7_spill]] %s16570_s29  ;;  %s591_s7 = ssub.s32 %s16414_s28, %s16570_s29 }
  0x14   : > { %p604_p0 = scmp.ne.s32.totalorder %s16410_s27, %s16406_s26  ;;  %p592_p1 = scmp.eq.s32.totalorder %s591_s7, 0 }
  0x15   : > { %p605_p2 = scmp.eq.s32.totalorder %s16566_s6, 1  ;;  %p610_p3 = scmp.ne.s32.totalorder %s16406_s26, %s16402_s5 }
  0x16   : > { %p611_p4 = scmp.eq.s32.totalorder %s13592_s2, 1  ;;  %p13595_p7 = scmp.ge.s32.totalorder %s16414_s28, 1 }
  0x17   : > { %s16581_s30 = scalar_select %p592_p1, %s16410_s27, %s594_s0  }
  0x18   : > { %p16583_p5 = por %p605_p2, %p604_p0  ;;  %p16587_p6 = por %p611_p4, %p610_p3 }
  0x19   : > { %19888 = sst [smem:[#allocation8_spill]] %s16581_s30  ;;  %p733_p8 = scmp.lt.s32.totalorder %s16414_s28, 3 }
  0x1a   : > { %s19890_s25 = scalar_select %p16587_p6, 1, 0 }
  0x1b   : > { %p734_p9 = pnand %p13595_p7, %p733_p8 }
  0x1c   : > { %19891 = sst [smem:[#allocation9_spill]] %s19890_s25 }
  0x1d   : > { %737 = sbr.rel (%p734_p9) target bundleno = 5005 (0x138d), region = 112 }
  0x22   : > { %s19892_s1 = sld [smem:[#allocation60_spill]]  ;;  %p833_p10 = scmp.lt.s32.totalorder %s16566_s6, 1  ;;  %vm889_vm0 = vcmask 130048   ;;  %v16416_v9 = vmov 0   ;;  %v19781_v17 = vmov 0.0   ;;  %vm16418_vm1 = vmmov 0  }
  0x23   : > { %s19893_s7 = sld [smem:[#allocation52_spill]]  ;;  %15977 = vset.pattern.permute.xlu0 %v16416_v9  ;;  %15978 = vset.pattern.permute.xlu1 %v16416_v9  ;;  %vm6957_vm2 = vcmask 31744   ;;  %vm7108_vm3 = vcmask 261120   ;;  %vm6961_vm4 = vcmask 1043456   ;;  %vm12394_vm5 = vcmask 257024   ;;  %s14023_s4 = sshll.u32 %s16566_s6, 6 }
  0x24   : > { %s16607_s8 = scalar_select %p833_p10, %s16566_s6, 1  ;;  %vm13321_vm6 = vcmask 256000   ;;  %vm13331_vm7 = vcmask 1042432   ;;  %vm13327_vm8 = vcmask 23552  }
  0x25   : > { %s19894_s9 = sld [smem:[#allocation61_spill]] }
  0x26   : > { %s14026_s0 = sshll.u32 %s16607_s8, 5  ;;  %s19895_s2 = sld [smem:[#allocation53_spill]] }
  0x27   : > { %s19897_s25 = sld [smem:[#allocation57_spill]] }
  0x28   : > { %v881_v0 = vld [vmem:[%s19892_s1 + $0x8] sm:$0xff]  ;;  %v13615_v1 = vld [vmem:[%s19892_s1 + $0x18] sm:$0xff]  ;;  %v880_v2 = vld [vmem:[%s19892_s1] sm:$0xff]  ;;  %s19898_s10 = sld [smem:[#allocation62_spill]] }
  0x29   : > { %14620 = vmatprep.subr.mxu0 %v881_v0  ;;  %14630 = vmatprep.subr.mxu1 %v13615_v1  ;;  %v13614_v3 = vld [vmem:[%s19892_s1 + $0x10] sm:$0xff]  ;;  %v13623_v4 = vld [vmem:[%s19892_s1 + $0x28] sm:$0xff]  ;;  %v13631_v5 = vld [vmem:[%s19892_s1 + $0x38] sm:$0xff]  ;;  %s837_s5 = scalar_lea.vmem %s19893_s7, %s14026_s0  ;;  %s19907_s11 = sld [smem:[#allocation63_spill]] }
  0x2a   : > { %14621 = vmatpush3.msra.mxu0 %v881_v0  ;;  %14631 = vmatpush3.msra.mxu1 %v13615_v1  ;;  %v872_v6 = vld [vmem:[%s837_s5] sm:$0xff]  ;;  %v873_v7 = vld [vmem:[%s837_s5 + $0x8] sm:$0xff]  ;;  %v874_v8 = vld [vmem:[%s837_s5 + $0x10] sm:$0xff]  ;;  %s19920_s7 = sld [smem:[#allocation55_spill]] }
  0x2b   : > { %14622 = vmatprep.subr.mxu0 %v880_v2  ;;  %14632 = vmatprep.subr.mxu1 %v13614_v3  ;;  %v13622_v10 = vld [vmem:[%s19892_s1 + $0x20] sm:$0xff]  ;;  %v13630_v11 = vld [vmem:[%s19892_s1 + $0x30] sm:$0xff]  ;;  %v875_v12 = vld [vmem:[%s837_s5 + $0x18] sm:$0xff] }
  0x2c   : > { %14623 = vmatpush3.msra.mxu0 %v880_v2  ;;  %14633 = vmatpush3.msra.mxu1 %v13614_v3  ;;  %v13639_v13 = vld [vmem:[%s19892_s1 + $0x48] sm:$0xff]  ;;  %v13647_v14 = vld [vmem:[%s19892_s1 + $0x58] sm:$0xff]  ;;  %v13638_v15 = vld [vmem:[%s19892_s1 + $0x40] sm:$0xff]  ;;  %s16746_s30 = scalar_lea.vmem %s19895_s2, %s14026_s0  ;;  %s14028_s0 = sshll.u32 %s16607_s8, 4 }
  0x2d   : > { %14640 = vmatprep.subr.mxu0 %v13623_v4  ;;  %14650 = vmatprep.subr.mxu1 %v13631_v5  ;;  %v13646_v16 = vld [vmem:[%s19892_s1 + $0x50] sm:$0xff]  ;;  %v16661_v18 = vld [vmem:[%s19894_s9 + $0x8] sm:$0xff]  ;;  %v16667_v19 = vld [vmem:[%s19894_s9 + $0x18] sm:$0xff]  ;;  %s19896_s2 = sld [smem:[#allocation56_spill]]  ;;  %s860_s5 = scalar_lea.vmem %s19897_s25, %s14028_s0 }
  0x2e   : > { %14624 = vmatprep.mubr.msk.f32.mxu0 %vm889_vm0, %v872_v6  ;;  %14634 = vmatprep.mubr.msk.f32.mxu1 %vm889_vm0, %v872_v6  ;;  %v16678_v20 = vld [vmem:[%s19894_s9] sm:$0xff]  ;;  %v16685_v21 = vld [vmem:[%s19894_s9 + $0x10] sm:$0xff]  ;;  %v16698_v22 = vld [vmem:[%s19894_s9 + $0x28] sm:$0xff] }
  0x2f   : > { %14625 = vmatmul.mubr.msk.f32.vlgmr.msra.gmra.mxu0 %vm889_vm0, %v873_v7  ;;  %14635 = vmatmul.mubr.msk.f32.vlgmr.msra.gmra.mxu1 %vm889_vm0, %v873_v7  ;;  %v16703_v23 = vld [vmem:[%s19894_s9 + $0x38] sm:$0xff]  ;;  %v16712_v24 = vld [vmem:[%s19894_s9 + $0x20] sm:$0xff]  ;;  %v16719_v25 = vld [vmem:[%s19894_s9 + $0x30] sm:$0xff] }
  0x30   : > { %14627 = vmatprep.mubr.msk.f32.mxu0 %vm889_vm0, %v874_v8  ;;  %14637 = vmatprep.mubr.msk.f32.mxu1 %vm889_vm0, %v874_v8  ;;  %v16732_v26 = vld [vmem:[%s19894_s9 + $0x48] sm:$0xff]  ;;  %v16739_v27 = vld [vmem:[%s19894_s9 + $0x58] sm:$0xff]  ;;  %v16752_v28 = vld [vmem:[%s19894_s9 + $0x40] sm:$0xff] }
  0x31   : > { %14641 = vmatpush3.msra.mxu0 %v13623_v4  ;;  %14651 = vmatpush3.msra.mxu1 %v13631_v5  ;;  %v16761_v29 = vld [vmem:[%s19894_s9 + $0x50] sm:$0xff]  ;;  %v876_v30 = vld [vmem:[%s16746_s30] sm:$0xff]  ;;  %v879_v31 = vld [vmem:[%s16746_s30 + $0x18] sm:$0xff] }
  0x32   : > { %14642 = vmatprep.subr.mxu0 %v13622_v10  ;;  %14652 = vmatprep.subr.mxu1 %v13630_v11  ;;  %v1753_v32 = vsub.f32 1.0, %v876_v30  ;;  %v2025_v33 = vsub.f32 1.0, %v879_v31  ;;  %v877_v34 = vld [vmem:[%s16746_s30 + $0x8] sm:$0xff]  ;;  %v878_v36 = vld [vmem:[%s16746_s30 + $0x10] sm:$0xff]  ;;  %v6955_v40 = vld [vmem:[%s860_s5] sm:$0xf] }
  0x33   : > { %14628 = vmatmul.mubr.msk.f32.gmra.mxu0 %vm889_vm0, %v875_v12  ;;  %14638 = vmatmul.mubr.msk.f32.gmra.mxu1 %vm889_vm0, %v875_v12  ;;  %v2762_v35 = vsub.f32 1.0, %v877_v34  ;;  %s16785_s27 = scalar_lea.vmem %s19896_s2, %s14028_s0  ;;  %v3021_v37 = vsub.f32 1.0, %v878_v36  ;;  %v13902_v44 = vld [vmem:[%s860_s5 + $0x4] sm:$0xf]  ;;  %v13931_v48 = vld [vmem:[%s860_s5 + $0x8] sm:$0xf] }
  0x34   : > { %14643 = vmatpush3.msra.mxu0 %v13622_v10  ;;  %14644 = vmatprep.mubr.msk.f32.mxu0 %vm889_vm0, %v872_v6  ;;  %v6954_v38 = vld [vmem:[%s16785_s27] sm:$0xf]  ;;  %v13901_v41 = vld [vmem:[%s16785_s27 + $0x4] sm:$0xf]  ;;  %v13930_v45 = vld [vmem:[%s16785_s27 + $0x8] sm:$0xf] }
  0x35   : > { %14653 = vmatpush3.msra.mxu1 %v13630_v11  ;;  %14654 = vmatprep.mubr.msk.f32.mxu1 %vm889_vm0, %v872_v6  ;;  %v8287_v39 = vsub.f32 1.0, %v6954_v38  ;;  %v9653_v43 = vsub.f32 1.0, %v13901_v41  ;;  %v11019_v47 = vsub.f32 1.0, %v13930_v45  ;;  %v13959_v49 = vld [vmem:[%s16785_s27 + $0xc] sm:$0xf]  ;;  %s17784_s0 = sshll.u32 %s16607_s8, 2 }
  0x36   : > { %14660 = vmatprep.subr.mxu0 %v13639_v13  ;;  %14670 = vmatprep.subr.mxu1 %v13647_v14  ;;  %v12385_v51 = vsub.f32 1.0, %v13959_v49  ;;  %v13960_v52 = vld [vmem:[%s860_s5 + $0xc] sm:$0xf]  ;;  %v16806_v54 = vld [vmem:[%s19898_s10] ss:$0 sm:$0xff]  ;;  %s17800_s25 = scalar_lea.vmem %s19920_s7, %s17784_s0  ;;  %s19921_s27 = sld [smem:[#allocation54_spill]] }
  0x37   : > { %14645 = vmatmul.mubr.msk.f32.vlgmr.msra.gmra.mxu0 %vm889_vm0, %v873_v7  ;;  %14655 = vmatmul.mubr.msk.f32.vlgmr.msra.gmra.mxu1 %vm889_vm0, %v873_v7  ;;  %v8288_v42 = vsub.f32 %v8287_v39, %v6955_v40  ;;  %v9654_v46 = vsub.f32 %v9653_v43, %v13902_v44  ;;  %v11020_v50 = vsub.f32 %v11019_v47, %v13931_v48  ;;  %v16811_v55 = vld [vmem:[%s19898_s10 + $0x1] ss:$0 sm:$0xff]  ;;  %v16832_v4 = vld [vmem:[%s19898_s10 + $0x2] ss:$0 sm:$0xff]  ;;  %v16837_v5 = vld [vmem:[%s19898_s10 + $0x3] ss:$0 sm:$0xff] }
  0x38   : > { %14647 = vmatprep.mubr.msk.f32.mxu0 %vm889_vm0, %v874_v8  ;;  %14657 = vmatprep.mubr.msk.f32.mxu1 %vm889_vm0, %v874_v8  ;;  %v12386_v53 = vsub.f32 %v12385_v51, %v13960_v52  ;;  %v16894_v47 = vld [vmem:[%s19907_s11 + $0x1] ss:$0 sm:$0xff]  ;;  %v16900_v51 = vld [vmem:[%s19907_s11 + $0x3] ss:$0 sm:$0xff]  ;;  %s20072_s7 = sld [smem:[#allocation59_spill]] }
  0x39   : > { %14661 = vmatpush3.msra.mxu0 %v13639_v13  ;;  %14671 = vmatpush3.msra.mxu1 %v13647_v14 }
  0x3a   : > { %14662 = vmatprep.subr.mxu0 %v13638_v15  ;;  %14672 = vmatprep.subr.mxu1 %v13646_v16 }
  0x3b   : > { %14648 = vmatmul.mubr.msk.f32.gmra.mxu0 %vm889_vm0, %v875_v12  ;;  %14658 = vmatmul.mubr.msk.f32.gmra.mxu1 %vm889_vm0, %v875_v12 }
  0x3c   : > { %14663 = vmatpush3.msra.mxu0 %v13638_v15  ;;  %14664 = vmatprep.mubr.msk.f32.mxu0 %vm889_vm0, %v872_v6  ;;  %s17817_s29 = scalar_lea.vmem %s19921_s27, %s17784_s0  ;;  %s13426_s27 = scalar_lea.hbm %s19774_s24, %s14023_s4 }
  0x3d   : > { %14673 = vmatpush3.msra.mxu1 %v13646_v16  ;;  %14674 = vmatprep.mubr.msk.f32.mxu1 %vm889_vm0, %v872_v6 }
  0x3e   : > { %14680 = vmatprep.subr.mxu0 %v19781_v17  ;;  %14687 = vmatprep.subr.mxu1 %v19781_v17  ;;  %s867_s5 = scalar_lea.vmem %s20072_s7, %s17784_s0 }
  0x3f   : > { %14665 = vmatmul.mubr.msk.f32.vlgmr.msra.gmra.mxu0 %vm889_vm0, %v873_v7  ;;  %14675 = vmatmul.mubr.msk.f32.vlgmr.msra.gmra.mxu1 %vm889_vm0, %v873_v7 }
  0x40   : > { %14667 = vmatprep.mubr.msk.f32.mxu0 %vm889_vm0, %v874_v8  ;;  %14677 = vmatprep.mubr.msk.f32.mxu1 %vm889_vm0, %v874_v8 }
  0x41   : > { %14681 = vmatpush3.msra.mxu0 %v16661_v18  ;;  %14688 = vmatpush3.msra.mxu1 %v16667_v19 }
  0x42   : > { %14682 = vmatprep.subr.mxu0 %v19781_v17  ;;  %14689 = vmatprep.subr.mxu1 %v19781_v17 }
  0x43   : > { %14668 = vmatmul.mubr.msk.f32.gmra.mxu0 %vm889_vm0, %v875_v12  ;;  %14678 = vmatmul.mubr.msk.f32.gmra.mxu1 %vm889_vm0, %v875_v12 }
  0x44   : > { %14683 = vmatpush3.msra.mxu0 %v16678_v20  ;;  %14684 = vmatprep.mubr.msk.f32.mxu0 %vm16418_vm1, %v19781_v17 }
  0x45   : > { %14690 = vmatpush3.msra.mxu1 %v16685_v21  ;;  %14691 = vmatprep.mubr.msk.f32.mxu1 %vm16418_vm1, %v19781_v17 }
  0x46   : > { %14694 = vmatprep.subr.mxu0 %v19781_v17  ;;  %14701 = vmatprep.subr.mxu1 %v19781_v17 }
  0x47   : > { %14685 = vmatmul.mubr.f32.vlgmr.msra.gmra.mxu0 %v19781_v17  ;;  %14692 = vmatmul.mubr.f32.vlgmr.msra.gmra.mxu1 %v19781_v17 }
  0x48   : > { %14695 = vmatpush3.msra.mxu0 %v16698_v22  ;;  %14702 = vmatpush3.msra.mxu1 %v16703_v23 }
  0x49   : > { %14696 = vmatprep.subr.mxu0 %v19781_v17  ;;  %14703 = vmatprep.subr.mxu1 %v19781_v17 }
  0x4a   : > { %14697 = vmatpush3.msra.mxu0 %v16712_v24  ;;  %14698 = vmatprep.mubr.msk.f32.mxu0 %vm16418_vm1, %v19781_v17 }
  0x4b   : > { %14704 = vmatpush3.msra.mxu1 %v16719_v25  ;;  %14705 = vmatprep.mubr.msk.f32.mxu1 %vm16418_vm1, %v19781_v17 }
  0x4c   : > { %14699 = vmatmul.mubr.f32.vlgmr.msra.gmra.mxu0 %v19781_v17  ;;  %14706 = vmatmul.mubr.f32.vlgmr.msra.gmra.mxu1 %v19781_v17 }
  0x4d   : > { %14708 = vmatprep.subr.mxu0 %v19781_v17  ;;  %14712 = vmatprep.mubr.msk.f32.mxu0 %vm16418_vm1, %v19781_v17 }
  0x4e   : > { %14709 = vmatpush3.msra.mxu0 %v16732_v26  ;;  %14715 = vmatprep.subr.mxu1 %v19781_v17 }
  0x4f   : > { %14710 = vmatprep.subr.mxu0 %v19781_v17  ;;  %14716 = vmatpush3.msra.mxu1 %v16739_v27 }
  0x50   : > { %14711 = vmatpush3.msra.mxu0 %v16752_v28  ;;  %14717 = vmatprep.subr.mxu1 %v19781_v17 }
  0x51   : > { %14713 = vmatmul.mubr.f32.vlgmr.msra.gmra.mxu0 %v19781_v17  ;;  %14718 = vmatpush3.msra.mxu1 %v16761_v29 }
  0x52   : > { %14719 = vmatprep.mubr.msk.f32.mxu1 %vm16418_vm1, %v19781_v17  ;;  %1749 = vperm.xlu0 %15977, %v876_v30   ;;  %v16859_v30 = vld [vmem:[%s19898_s10 + $0x4] ss:$0 sm:$0xff] }
  0x53   : > { %14720 = vmatmul.mubr.f32.vlgmr.msra.gmra.mxu1 %v19781_v17  ;;  %2021 = vperm.xlu1 %15978, %v879_v31   ;;  %v16864_v31 = vld [vmem:[%s19898_s10 + $0x5] ss:$0 sm:$0xff] }
  0x54   : > { %14722 = vmatprep.subr.mxu0 %v19781_v17  ;;  %14729 = vmatprep.subr.mxu1 %v19781_v17 }
  0x55   : > { %14723 = vmatpush3.msra.mxu0 %v16661_v18  ;;  %14730 = vmatpush3.msra.mxu1 %v16667_v19 }
  0x56   : > { %1756 = vperm.xlu0 %15977, %v1753_v32   ;;  %14724 = vmatprep.subr.mxu0 %v19781_v17 }
  0x57   : > { %2028 = vperm.xlu1 %15978, %v2025_v33   ;;  %14731 = vmatprep.subr.mxu1 %v19781_v17 }
  0x58   : > { %14725 = vmatpush3.msra.mxu0 %v16678_v20  ;;  %14726 = vmatprep.mubr.msk.f32.mxu0 %vm16418_vm1, %v19781_v17 }
  0x59   : > { %14732 = vmatpush3.msra.mxu1 %v16685_v21  ;;  %14733 = vmatprep.mubr.msk.f32.mxu1 %vm16418_vm1, %v19781_v17 }
  0x5a   : > { %2758 = vperm.xlu0 %15977, %v877_v34   ;;  %14736 = vmatprep.subr.mxu0 %v19781_v17 }
  0x5b   : > { %2765 = vperm.xlu1 %15978, %v2762_v35   ;;  %14743 = vmatprep.subr.mxu1 %v19781_v17 }
  0x5e   : > { %3017 = vperm.xlu0 %15977, %v878_v36  }
  0x5f   : > { %3024 = vperm.xlu1 %15978, %v3021_v37  }
  0x62   : > { %8268 = vperm.xlu0 %15977, %v6954_v38  }
  0x63   : > { %8278 = vperm.xlu1 %15978, %v6955_v40  }
  0x66   : > { %8291 = vperm.xlu0 %15977, %v8288_v42   ;;  %v16885_v42 = vld [vmem:[%s19907_s11] ss:$0 sm:$0xff] }
  0x67   : > { %9634 = vperm.xlu1 %15978, %v13901_v41  }
  0x6a   : > { %9644 = vperm.xlu0 %15977, %v13902_v44  }
  0x6b   : > { %9657 = vperm.xlu1 %15978, %v9654_v46  }
  0x6e   : > { %11000 = vperm.xlu0 %15977, %v13930_v45  }
  0x6f   : > { %11010 = vperm.xlu1 %15978, %v13931_v48  }
  0x72   : > { %11023 = vperm.xlu0 %15977, %v11020_v50  }
  0x73   : > { %12366 = vperm.xlu1 %15978, %v13959_v49  }
  0x76   : > { %12376 = vperm.xlu0 %15977, %v13960_v52  }
  0x77   : > { %12389 = vperm.xlu1 %15978, %v12386_v53  }
  0xef   : > { %v14626_v56 = vpop.f32.mrf.mxu0  ;;  %v14636_v57 = vpop.f32.mrf.mxu1 }
  0xf0   : > { %v16814_v58 = vadd.f32 %v14626_v56, %v16806_v54  ;;  %v16817_v59 = vadd.f32 %v14636_v57, %v16811_v55 }
  0xf1   : > { %v968_v60 = vpop.f32.mrf.mxu0  ;;  %v1064_v61 = vpop.f32.mrf.mxu1 }
  0xf2   : > { %v16888_v45 = vadd.f32 %v16806_v54, %v968_v60 }
  0xf3   : > { %v14629_v62 = vpop.f32.mrf.mxu0  ;;  %v14639_v63 = vpop.f32.mrf.mxu1 }
  0xf4   : > { %v16820_v0 = vadd.f32 %v14629_v62, %v16806_v54  ;;  %v16823_v1 = vadd.f32 %v14639_v63, %v16811_v55  ;;  %v16905_v62 = vadd.f32 %v16811_v55, %v1064_v61 }
  0xf5   : > { %v16825_v2 = vpop.f32.mrf.mxu0  ;;  %v16827_v3 = vpop.f32.mrf.mxu1 }
  0xf6   : > { %19899 = vst [vmem:[#allocation10_spill] sm:$0xff] %v16820_v0  ;;  %19900 = vst [vmem:[#allocation11_spill] sm:$0xff] %v16823_v1 }
  0xf7   : > { %v14646_v6 = vpop.f32.mrf.mxu0  ;;  %v14656_v7 = vpop.f32.mrf.mxu1 }
  0xf8   : > { %v16840_v8 = vadd.f32 %v14646_v6, %v16832_v4  ;;  %v16843_v9 = vadd.f32 %v14656_v7, %v16837_v5 }
  0xf9   : > { %v16845_v10 = vpop.f32.mrf.mxu0  ;;  %v16847_v11 = vpop.f32.mrf.mxu1 }
  0xfa   : > { %19901 = vst [vmem:[#allocation12_spill] sm:$0xff] %v16847_v11 }
  0xfb   : > { %v14649_v12 = vpop.f32.mrf.mxu0  ;;  %v14659_v13 = vpop.f32.mrf.mxu1 }
  0xfc   : > { %v16850_v14 = vadd.f32 %v14649_v12, %v16832_v4  ;;  %v16908_v7 = vadd.f32 %v14659_v13, %v16837_v5 }
  0xfd   : > { %v16852_v15 = vpop.f32.mrf.mxu0  ;;  %v16854_v16 = vpop.f32.mrf.mxu1 }
  0xfe   : > { %19902 = vst [vmem:[#allocation13_spill] sm:$0xff] %v16850_v14  ;;  %19903 = vst [vmem:[#allocation14_spill] sm:$0xff] %v16852_v15 }
  0xff   : > { %v14666_v32 = vpop.f32.mrf.mxu0  ;;  %v14676_v33 = vpop.f32.mrf.mxu1 }
 0x100   : > { %v16867_v34 = vadd.f32 %v14666_v32, %v16859_v30  ;;  %v16870_v35 = vadd.f32 %v14676_v33, %v16864_v31  ;;  %v16913_v32 = vld [vmem:[%s19907_s11 + $0x4] ss:$0 sm:$0xff] }
 0x101   : > { %v16872_v36 = vpop.f32.mrf.mxu0  ;;  %v16874_v37 = vpop.f32.mrf.mxu1 }
 0x102   : > { %19904 = vst [vmem:[#allocation15_spill] sm:$0xff] %v16870_v35  ;;  %19905 = vst [vmem:[#allocation16_spill] sm:$0xff] %v16872_v36 }
 0x103   : > { %19906 = vst [vmem:[#allocation17_spill] sm:$0xff] %v16874_v37  ;;  %v14669_v38 = vpop.f32.mrf.mxu0  ;;  %v16876_v39 = vpop.f32.mrf.mxu1 }
 0x104   : > { %v16919_v13 = vadd.f32 %v14669_v38, %v16859_v30 }
 0x105   : > { %v16878_v40 = vpop.f32.mrf.mxu0  ;;  %v16880_v41 = vpop.f32.mrf.mxu1 }
 0x107   : > { %v1570_v43 = vpop.f32.mrf.mxu0  ;;  %v1646_v44 = vpop.f32.mrf.mxu1 }
 0x108   : > { %v1571_v46 = vadd.f32 %v16885_v42, %v1570_v43  ;;  %v1647_v53 = vadd.f32 %v16894_v47, %v1646_v44 }
 0x109   : > { %v14686_v48 = vpop.f32.mrf.mxu0  ;;  %v14693_v49 = vpop.f32.mrf.mxu1 }
 0x10a   : > { %v1726_v50 = vadd.f32 %v1571_v46, %v16888_v45  ;;  %v1733_v33 = vadd.f32 %v1647_v53, %v16905_v62 }
 0x10c   : > { %v13672_v52 = vmul.f32 -1.442695, %v1726_v50  ;;  %v1722_v56 = vpop.f32.mrf.mxu0  ;;  %v1833_v57 = vpop.f32.mrf.mxu1  ;;  %v13673_v50 = vmul.f32 -1.442695, %v1733_v33  ;;  %v16925_v33 = vld [vmem:[%s19907_s11 + $0x2] ss:$0 sm:$0xff] }
 0x10d   : > { %v1834_v60 = vadd.f32 %v16900_v51, %v1833_v57 }
 0x10e   : > { %15979 = vpow2.f32 %v13672_v52  ;;  %v14700_v63 = vpop.f32.mrf.mxu0  ;;  %v14707_v6 = vpop.f32.mrf.mxu1 }
 0x10f   : > { %v1990_v12 = vrot.slane %v1834_v60, 4 }
 0x111   : > { %v1992_v43 = vadd.f32 %v1990_v12, %v16908_v7  ;;  %v1909_v44 = vpop.f32.mrf.mxu0 }
 0x112   : > { %v1910_v61 = vadd.f32 %v16913_v32, %v1909_v44 }
 0x113   : > { %v13677_v46 = vmul.f32 -1.442695, %v1992_v43  ;;  %v14714_v48 = vpop.f32.mrf.mxu0  ;;  %v1985_v49 = vpop.f32.mrf.mxu1 }
 0x114   : > { %v2000_v52 = vrot.slane %v1910_v61, 4  ;;  %v16930_v61 = vld [vmem:[%s19907_s11 + $0x5] ss:$0 sm:$0xff] }
 0x115   : > { %15981 = vpow2.f32 %v13677_v46  ;;  %v14721_v57 = vpop.f32.mrf.mxu1  ;;  %v1723_v46 = vadd.f32 %v16925_v33, %v1722_v56 }
 0x116   : > { %v2002_v60 = vadd.f32 %v2000_v52, %v16919_v13  ;;  %15983 = vpow2.f32 %v13673_v50  ;;  %v1986_v50 = vadd.f32 %v16930_v61, %v1985_v49  ;;  %v16936_v57 = vadd.f32 %v16832_v4, %v16845_v10  ;;  %v16944_v4 = vpop.permute.xlu0 %1749 }
 0x118   : > { %v13678_v53 = vmul.f32 -1.442695, %v2002_v60 }
 0x11b   : > { %v15980_v63 = vpop.eup %15979 }
 0x11c   : > { %v1730_v6 = vadd.f32 1.0, %v15980_v63 }
 0x11e   : > { %15985 = vrcp.f32 %v1730_v6  ;;  %v2010_v6 = vrot.slane %v1986_v50, 4 }
 0x11f   : > { %15987 = vpow2.f32 %v13678_v53 }
 0x122   : > { %v15982_v12 = vpop.eup %15981 }
 0x123   : > { %v1996_v44 = vadd.f32 1.0, %v15982_v12  ;;  %v15984_v43 = vpop.eup %15983 }
 0x124   : > { %v1737_v38 = vadd.f32 1.0, %v15984_v43 }
 0x125   : > { %15989 = vrcp.f32 %v1996_v44  ;;  %v16941_v44 = vadd.f32 %v16876_v39, %v16864_v31 }
 0x126   : > { %15991 = vrcp.f32 %v1737_v38 }
 0x12b   : > { %v15986_v48 = vpop.eup %15985 }
 0x12c   : > { %v15988_v52 = vpop.eup %15987  ;;  %v1740_v60 = vmul.f32 %v15986_v48, %v1723_v46 }
 0x12d   : > { %v2006_v53 = vadd.f32 1.0, %v15988_v52 }
 0x12e   : > { %v1741_v63 = vadd.f32 %v1740_v60, %v16936_v57  ;;  %v16946_v60 = vpop.permute.xlu1 %2021 }
 0x130   : > { %15993 = vtanh.f32 %v1741_v63  ;;  %v16948_v63 = vpop.permute.xlu0 %1756 }
 0x131   : > { %15995 = vrcp.f32 %v2006_v53  ;;  %v1759_v53 = vmul.f32 0.0, %v16948_v63 }
 0x132   : > { %v15990_v12 = vpop.eup %15989  ;;  %v16954_v37 = vpop.permute.xlu1 %2028 }
 0x133   : > { %v2012_v56 = vmul.f32 %v15990_v12, %v2010_v6  ;;  %v15992_v43 = vpop.eup %15991 }
 0x134   : > { %v1743_v10 = vsub.f32 1.0, %v15992_v43  ;;  %v1745_v48 = vmul.f32 0.0, %v15992_v43 }
 0x135   : > { %v2013_v49 = vadd.f32 %v2012_v56, %v16941_v44 }
 0x137   : > { %15997 = vtanh.f32 %v2013_v49 }
 0x13d   : > { %v15994_v38 = vpop.eup %15993 }
 0x13e   : > { %v1744_v46 = vmul.f32 %v15994_v38, %v1743_v10  ;;  %v15996_v52 = vpop.eup %15995  ;;  %v2031_v10 = vmul.f32 0.0, %v16954_v37  ;;  %v19908_v38 = vmov 0.0  }
 0x13f   : > { %v2015_v6 = vsub.f32 1.0, %v15996_v52  ;;  %v2017_v17 = vmul.f32 0.0, %v15996_v52 }
 0x140   : > { %v1746_v50 = vadd.f32 %v1745_v48, %v1744_v46 }
 0x142   : > { %v1752_v39 = vmul.f32 %v16944_v4, %v1746_v50 }
 0x144   : > { %v15998_v12 = vpop.eup %15997  ;;  %v16952_v56 = vadd.f32 %v1759_v53, %v1752_v39 }
 0x145   : > { %v2016_v49 = vmul.f32 %v15998_v12, %v2015_v6 }
 0x146   : > { %14727 = vmatmul.mubr.msk.f32.vlgmr.msra.gmra.mxu0 %vm889_vm0, %v16952_v56  ;;  %14734 = vmatmul.mubr.msk.f32.vlgmr.msra.gmra.mxu1 %vm889_vm0, %v16952_v56 }
 0x147   : > { %v2018_v43 = vadd.f32 %v2017_v17, %v2016_v49  ;;  %14737 = vmatpush3.msra.mxu0 %v16698_v22  ;;  %14740 = vmatprep.mubr.msk.f32.mxu0 %vm16418_vm1, %v19908_v38 }
 0x148   : > { %14738 = vmatprep.subr.mxu0 %v19908_v38  ;;  %14744 = vmatpush3.msra.mxu1 %v16703_v23 }
 0x149   : > { %v2024_v46 = vmul.f32 %v16946_v60, %v2018_v43  ;;  %14739 = vmatpush3.msra.mxu0 %v16712_v24  ;;  %14745 = vmatprep.subr.mxu1 %v19908_v38 }
 0x14a   : > { %14741 = vmatmul.mubr.msk.f32.vlgmr.msra.gmra.mxu0 %vm889_vm0, %v16952_v56  ;;  %14750 = vmatprep.subr.mxu0 %v19908_v38 }
 0x14b   : > { %v2032_v17 = vadd.f32 %v2031_v10, %v2024_v46  ;;  %14751 = vmatpush3.msra.mxu0 %v16732_v26  ;;  %14746 = vmatpush3.msra.mxu1 %v16719_v25 }
 0x14c   : > { %14752 = vmatprep.subr.mxu0 %v19908_v38  ;;  %14747 = vmatprep.mubr.msk.f32.mxu1 %vm16418_vm1, %v19908_v38 }
 0x14d   : > { %v16977_v48 = vrot.slane %v2032_v17, 4  ;;  %14753 = vmatpush3.msra.mxu0 %v16752_v28  ;;  %14754 = vmatprep.mubr.msk.f32.mxu0 %vm16418_vm1, %v19908_v38 }
 0x14e   : > { %14757 = vmatprep.subr.mxu1 %v19908_v38  ;;  %14764 = vmatprep.subr.mxu0 %v19908_v38 }
 0x14f   : > { %14748 = vmatmul.mubr.msk.f32.vlgmr.msra.gmra.mxu1 %vm889_vm0, %v16977_v48  ;;  %14755 = vmatmul.mubr.msk.f32.vlgmr.msra.gmra.mxu0 %vm889_vm0, %v16977_v48 }
 0x150   : > { %14758 = vmatpush3.msra.mxu1 %v16739_v27  ;;  %14761 = vmatprep.mubr.msk.f32.mxu1 %vm16418_vm1, %v19908_v38 }
 0x151   : > { %14759 = vmatprep.subr.mxu1 %v19908_v38  ;;  %14765 = vmatpush3.msra.mxu0 %v16661_v18 }
 0x152   : > { %14760 = vmatpush3.msra.mxu1 %v16761_v29  ;;  %14766 = vmatprep.subr.mxu0 %v19908_v38 }
 0x153   : > { %14762 = vmatmul.mubr.msk.f32.vlgmr.msra.gmra.mxu1 %vm889_vm0, %v16977_v48  ;;  %14771 = vmatprep.subr.mxu1 %v19908_v38 }
 0x154   : > { %14772 = vmatpush3.msra.mxu1 %v16667_v19  ;;  %14767 = vmatpush3.msra.mxu0 %v16678_v20 }
 0x155   : > { %14773 = vmatprep.subr.mxu1 %v19908_v38  ;;  %14768 = vmatprep.mubr.msk.f32.mxu0 %vm16418_vm1, %v19908_v38 }
 0x156   : > { %14774 = vmatpush3.msra.mxu1 %v16685_v21  ;;  %14775 = vmatprep.mubr.msk.f32.mxu1 %vm16418_vm1, %v19908_v38 }
 0x157   : > { %14778 = vmatprep.subr.mxu0 %v19908_v38  ;;  %14785 = vmatprep.subr.mxu1 %v19908_v38 }
 0x206   : > { %v2102_v52 = vpop.f32.mrf.mxu0  ;;  %v2172_v50 = vpop.f32.mrf.mxu1 }
 0x207   : > { %v2103_v39 = vadd.f32 %v16885_v42, %v2102_v52  ;;  %v2173_v49 = vadd.f32 %v16894_v47, %v2172_v50 }
 0x208   : > { %v14728_v53 = vpop.f32.mrf.mxu0  ;;  %v14735_v6 = vpop.f32.mrf.mxu1 }
 0x209   : > { %v2247_v12 = vrot.slane %v2103_v39, 4  ;;  %v2257_v14 = vrot.slane %v2173_v49, 4 }
 0x20a   : > { %v2242_v43 = vpop.f32.mrf.mxu0 }
 0x20b   : > { %v2249_v10 = vadd.f32 %v2247_v12, %v16888_v45  ;;  %v2259_v0 = vadd.f32 %v2257_v14, %v16905_v62 }
 0x20c   : > { %v14742_v46 = vpop.f32.mrf.mxu0 }
 0x20d   : > { %v13682_v17 = vmul.f32 -1.442695, %v2249_v10  ;;  %v13683_v15 = vmul.f32 -1.442695, %v2259_v0 }
 0x20f   : > { %15999 = vpow2.f32 %v13682_v17  ;;  %v2351_v36 = vpop.f32.mrf.mxu1  ;;  %v2421_v1 = vpop.f32.mrf.mxu0 }
 0x210   : > { %v2352_v11 = vadd.f32 %v16900_v51, %v2351_v36  ;;  %v2422_v50 = vadd.f32 %v16913_v32, %v2421_v1 }
 0x211   : > { %v14749_v35 = vpop.f32.mrf.mxu1  ;;  %v14756_v52 = vpop.f32.mrf.mxu0 }
 0x212   : > { %v2495_v53 = vadd.f32 %v2352_v11, %v16908_v7  ;;  %v2502_v12 = vadd.f32 %v2422_v50, %v16919_v13  ;;  %v2243_v11 = vadd.f32 %v16925_v33, %v2242_v43  ;;  %v2274_v43 = vrot.slane %v16952_v56, 4 }
 0x213   : > { %v2491_v39 = vpop.f32.mrf.mxu1  ;;  %v2518_v56 = vmul.f32 %v16977_v48, %v16954_v37 }
 0x214   : > { %v13687_v6 = vmul.f32 -1.442695, %v2495_v53  ;;  %v13688_v10 = vmul.f32 -1.442695, %v2502_v12  ;;  %v2267_v7 = vrot.slane %v2243_v11, 4  ;;  %v2492_v52 = vadd.f32 %v16930_v61, %v2491_v39 }
 0x215   : > { %v14763_v45 = vpop.f32.mrf.mxu1 }
 0x216   : > { %16001 = vpow2.f32 %v13687_v6 }
 0x217   : > { %16003 = vpow2.f32 %v13683_v15 }
 0x21c   : > { %v16000_v49 = vpop.eup %15999 }
 0x21d   : > { %v2253_v46 = vadd.f32 1.0, %v16000_v49 }
 0x21f   : > { %16005 = vrcp.f32 %v2253_v46 }
 0x220   : > { %16007 = vpow2.f32 %v13688_v10 }
 0x223   : > { %v16002_v14 = vpop.eup %16001 }
 0x224   : > { %v2499_v35 = vadd.f32 1.0, %v16002_v14  ;;  %v16004_v36 = vpop.eup %16003 }
 0x225   : > { %v2263_v62 = vadd.f32 1.0, %v16004_v36 }
 0x226   : > { %16009 = vrcp.f32 %v2499_v35 }
 0x227   : > { %16011 = vrcp.f32 %v2263_v62 }
 0x22c   : > { %v16006_v1 = vpop.eup %16005 }
 0x22d   : > { %v16008_v0 = vpop.eup %16007  ;;  %v2269_v17 = vmul.f32 %v16006_v1, %v2267_v7 }
 0x22e   : > { %v2506_v15 = vadd.f32 1.0, %v16008_v0 }
 0x22f   : > { %v2270_v13 = vadd.f32 %v2269_v17, %v16936_v57  ;;  %v2279_v57 = vmul.f32 %v2274_v43, %v16948_v63 }
 0x231   : > { %16013 = vtanh.f32 %v2270_v13 }
 0x232   : > { %16015 = vrcp.f32 %v2506_v15 }
 0x233   : > { %v16010_v53 = vpop.eup %16009 }
 0x234   : > { %v2509_v6 = vmul.f32 %v16010_v53, %v2492_v52  ;;  %v16012_v45 = vpop.eup %16011 }
 0x235   : > { %v2272_v12 = vsub.f32 1.0, %v16012_v45  ;;  %v2276_v46 = vmul.f32 %v16012_v45, %v2274_v43 }
 0x236   : > { %v2510_v50 = vadd.f32 %v2509_v6, %v16941_v44 }
 0x238   : > { %16017 = vtanh.f32 %v2510_v50 }
 0x23e   : > { %v16014_v49 = vpop.eup %16013 }
 0x23f   : > { %v2273_v10 = vmul.f32 %v16014_v49, %v2272_v12  ;;  %v16016_v14 = vpop.eup %16015 }
 0x240   : > { %v2512_v39 = vsub.f32 1.0, %v16016_v14  ;;  %v2515_v44 = vmul.f32 %v16016_v14, %v16977_v48 }
 0x241   : > { %v2277_v35 = vadd.f32 %v2276_v46, %v2273_v10 }
 0x243   : > { %v2278_v36 = vmul.f32 %v2277_v35, %v16944_v4  ;;  %v17085_v35 = vadd.f32 %v16837_v5, %v16854_v16 }
 0x245   : > { %v16018_v11 = vpop.eup %16017  ;;  %v2280_v62 = vadd.f32 %v2279_v57, %v2278_v36 }
 0x246   : > { %v2513_v7 = vmul.f32 %v16018_v11, %v2512_v39 }
 0x247   : > { %v17024_v1 = vrot.slane %v2280_v62, 4 }
 0x248   : > { %v2516_v0 = vadd.f32 %v2515_v44, %v2513_v7 }
 0x249   : > { %14769 = vmatmul.mubr.msk.f32.vlgmr.msra.gmra.mxu0 %vm889_vm0, %v17024_v1  ;;  %14776 = vmatmul.mubr.msk.f32.vlgmr.msra.gmra.mxu1 %vm889_vm0, %v17024_v1 }
 0x24a   : > { %14779 = vmatpush3.msra.mxu0 %v16698_v22  ;;  %14786 = vmatpush3.msra.mxu1 %v16703_v23  ;;  %v2517_v17 = vmul.f32 %v2516_v0, %v16946_v60 }
 0x24b   : > { %14780 = vmatprep.subr.mxu0 %v19908_v38  ;;  %14787 = vmatprep.subr.mxu1 %v19908_v38 }
 0x24c   : > { %14781 = vmatpush3.msra.mxu0 %v16712_v24  ;;  %14782 = vmatprep.mubr.msk.f32.mxu0 %vm16418_vm1, %v19908_v38  ;;  %v17040_v13 = vadd.f32 %v2518_v56, %v2517_v17 }
 0x24d   : > { %14788 = vmatpush3.msra.mxu1 %v16719_v25  ;;  %14789 = vmatprep.mubr.msk.f32.mxu1 %vm16418_vm1, %v19908_v38 }
 0x24e   : > { %14783 = vmatmul.mubr.msk.f32.vlgmr.msra.gmra.mxu0 %vm889_vm0, %v17024_v1  ;;  %14790 = vmatmul.mubr.msk.f32.vlgmr.msra.gmra.mxu1 %vm889_vm0, %v17040_v13 }
 0x24f   : > { %14792 = vmatprep.subr.mxu0 %v19908_v38  ;;  %14799 = vmatprep.subr.mxu1 %v19908_v38 }
 0x250   : > { %14793 = vmatpush3.msra.mxu0 %v16732_v26  ;;  %14800 = vmatpush3.msra.mxu1 %v16739_v27 }
 0x251   : > { %14794 = vmatprep.subr.mxu0 %v19908_v38  ;;  %14801 = vmatprep.subr.mxu1 %v19908_v38 }
 0x252   : > { %14795 = vmatpush3.msra.mxu0 %v16752_v28  ;;  %14796 = vmatprep.mubr.msk.f32.mxu0 %vm16418_vm1, %v19908_v38 }
 0x253   : > { %14802 = vmatpush3.msra.mxu1 %v16761_v29  ;;  %14803 = vmatprep.mubr.msk.f32.mxu1 %vm16418_vm1, %v19908_v38 }
 0x254   : > { %14797 = vmatmul.mubr.msk.f32.vlgmr.msra.gmra.mxu0 %vm889_vm0, %v17040_v13  ;;  %14804 = vmatmul.mubr.msk.f32.vlgmr.msra.gmra.mxu1 %vm889_vm0, %v17040_v13 }
 0x255   : > { %14806 = vmatprep.subr.mxu0 %v19908_v38  ;;  %14813 = vmatprep.subr.mxu1 %v19908_v38 }
 0x256   : > { %14807 = vmatpush3.msra.mxu0 %v16661_v18  ;;  %14814 = vmatpush3.msra.mxu1 %v16667_v19 }
 0x257   : > { %14808 = vmatprep.subr.mxu0 %v19908_v38  ;;  %14815 = vmatprep.subr.mxu1 %v19908_v38 }
 0x258   : > { %14809 = vmatpush3.msra.mxu0 %v16678_v20  ;;  %14810 = vmatprep.mubr.msk.f32.mxu0 %vm16418_vm1, %v19908_v38 }
 0x259   : > { %14816 = vmatpush3.msra.mxu1 %v16685_v21  ;;  %14817 = vmatprep.mubr.msk.f32.mxu1 %vm16418_vm1, %v19908_v38 }
 0x25a   : > { %14820 = vmatprep.subr.mxu0 %v19908_v38  ;;  %14827 = vmatprep.subr.mxu1 %v19908_v38 }
 0x309   : > { %v2590_v48 = vpop.f32.mrf.mxu0  ;;  %v2660_v15 = vpop.f32.mrf.mxu1 }
 0x30a   : > { %v2591_v52 = vadd.f32 %v16885_v42, %v2590_v48  ;;  %v2661_v43 = vadd.f32 %v16894_v47, %v2660_v15  ;;  %v17092_v48 = vadd.f32 %v16859_v30, %v16878_v40 }
 0x30b   : > { %v14770_v53 = vpop.f32.mrf.mxu0  ;;  %v14777_v6 = vpop.f32.mrf.mxu1 }
 0x30c   : > { %v2734_v50 = vadd.f32 %v2591_v52, %v16814_v58  ;;  %v2741_v36 = vadd.f32 %v2661_v43, %v16817_v59 }
 0x30e   : > { %v13692_v45 = vmul.f32 -1.442695, %v2734_v50  ;;  %v2730_v12 = vpop.f32.mrf.mxu0  ;;  %v2839_v49 = vpop.f32.mrf.mxu1  ;;  %v13693_v0 = vmul.f32 -1.442695, %v2741_v36 }
 0x30f   : > { %v2840_v10 = vadd.f32 %v16900_v51, %v2839_v49  ;;  %v2731_v49 = vadd.f32 %v16925_v33, %v2730_v12 }
 0x310   : > { %16019 = vpow2.f32 %v13692_v45  ;;  %v14784_v46 = vpop.f32.mrf.mxu0  ;;  %v14791_v14 = vpop.f32.mrf.mxu1 }
 0x311   : > { %v2984_v57 = vrot.slane %v2840_v10, 4 }
 0x313   : > { %v2986_v39 = vadd.f32 %v2984_v57, %v17085_v35 }
 0x314   : > { %v2909_v11 = vpop.f32.mrf.mxu0  ;;  %v2979_v62 = vpop.f32.mrf.mxu1 }
 0x315   : > { %v13697_v7 = vmul.f32 -1.442695, %v2986_v39  ;;  %v2910_v44 = vadd.f32 %v16913_v32, %v2909_v11  ;;  %v2980_v46 = vadd.f32 %v16930_v61, %v2979_v62  ;;  %v17100_v11 = vadd.f32 %v16864_v31, %v16880_v41 }
 0x316   : > { %v14798_v56 = vpop.f32.mrf.mxu0  ;;  %v14805_v17 = vpop.f32.mrf.mxu1 }
 0x317   : > { %16021 = vpow2.f32 %v13697_v7  ;;  %v2994_v5 = vrot.slane %v2910_v44, 4  ;;  %v3004_v36 = vrot.slane %v2980_v46, 4 }
 0x318   : > { %16023 = vpow2.f32 %v13693_v0 }
 0x319   : > { %v2996_v16 = vadd.f32 %v2994_v5, %v17092_v48 }
 0x31b   : > { %v13698_v52 = vmul.f32 -1.442695, %v2996_v16 }
 0x31d   : > { %v16020_v15 = vpop.eup %16019 }
 0x31e   : > { %v2738_v53 = vadd.f32 1.0, %v16020_v15  ;;  %v17104_v15 = vpop.permute.xlu0 %2758 }
 0x320   : > { %16025 = vrcp.f32 %v2738_v53 }
 0x321   : > { %16027 = vpow2.f32 %v13698_v52  ;;  %v17106_v52 = vpop.permute.xlu1 %2765 }
 0x322   : > { %v2768_v41 = vmul.f32 %v17106_v52, %v17024_v1 }
 0x324   : > { %v16022_v6 = vpop.eup %16021 }
 0x325   : > { %v2990_v50 = vadd.f32 1.0, %v16022_v6  ;;  %v16024_v45 = vpop.eup %16023  ;;  %v3011_v6 = vrot.slane %v17040_v13, 4  ;;  %v17123_v13 = vpop.permute.xlu1 %3024 }
 0x326   : > { %v2745_v43 = vadd.f32 1.0, %v16024_v45 }
 0x327   : > { %16029 = vrcp.f32 %v2990_v50 }
 0x328   : > { %16031 = vrcp.f32 %v2745_v43 }
 0x32d   : > { %v16026_v10 = vpop.eup %16025 }
 0x32e   : > { %v16028_v30 = vpop.eup %16027  ;;  %v2748_v40 = vmul.f32 %v16026_v10, %v2731_v49  ;;  %v17121_v10 = vpop.permute.xlu0 %3017 }
 0x32f   : > { %v3000_v57 = vadd.f32 1.0, %v16028_v30 }
 0x330   : > { %v2749_v14 = vadd.f32 %v2748_v40, %v16840_v8 }
 0x332   : > { %16033 = vtanh.f32 %v2749_v14 }
 0x333   : > { %16035 = vrcp.f32 %v3000_v57 }
 0x334   : > { %v16030_v39 = vpop.eup %16029 }
 0x335   : > { %v3006_v7 = vmul.f32 %v16030_v39, %v3004_v36  ;;  %v16032_v44 = vpop.eup %16031 }
 0x336   : > { %v2751_v0 = vsub.f32 1.0, %v16032_v44  ;;  %v2754_v62 = vmul.f32 %v16032_v44, %v17024_v1 }
 0x337   : > { %v3007_v12 = vadd.f32 %v3006_v7, %v17100_v11 }
 0x339   : > { %16037 = vtanh.f32 %v3007_v12 }
 0x33f   : > { %v16034_v56 = vpop.eup %16033 }
 0x340   : > { %v2752_v17 = vmul.f32 %v16034_v56, %v2751_v0  ;;  %v16036_v5 = vpop.eup %16035 }
 0x341   : > { %v3009_v53 = vsub.f32 1.0, %v16036_v5  ;;  %v3013_v49 = vmul.f32 %v16036_v5, %v3011_v6 }
 0x342   : > { %v2755_v16 = vadd.f32 %v2754_v62, %v2752_v17 }
 0x344   : > { %v2761_v31 = vmul.f32 %v17104_v15, %v2755_v16 }
 0x346   : > { %v16038_v50 = vpop.eup %16037  ;;  %v17112_v45 = vadd.f32 %v2768_v41, %v2761_v31 }
 0x347   : > { %v3010_v43 = vmul.f32 %v16038_v50, %v3009_v53 }
 0x348   : > { %14811 = vmatmul.mubr.msk.f32.vlgmr.msra.gmra.mxu0 %vm889_vm0, %v17112_v45  ;;  %14818 = vmatmul.mubr.msk.f32.vlgmr.msra.gmra.mxu1 %vm889_vm0, %v17112_v45 }
 0x349   : > { %14821 = vmatpush3.msra.mxu0 %v16698_v22  ;;  %14824 = vmatprep.mubr.msk.f32.mxu0 %vm16418_vm1, %v19908_v38  ;;  %v3014_v1 = vadd.f32 %v3013_v49, %v3010_v43  ;;  %v3027_v22 = vmul.f32 %v17123_v13, %v3011_v6 }
 0x34a   : > { %14822 = vmatprep.subr.mxu0 %v19908_v38  ;;  %14828 = vmatpush3.msra.mxu1 %v16703_v23 }
 0x34b   : > { %14823 = vmatpush3.msra.mxu0 %v16712_v24  ;;  %14829 = vmatprep.subr.mxu1 %v19908_v38  ;;  %v3020_v30 = vmul.f32 %v17121_v10, %v3014_v1 }
 0x34c   : > { %14825 = vmatmul.mubr.msk.f32.vlgmr.msra.gmra.mxu0 %vm889_vm0, %v17112_v45  ;;  %14834 = vmatprep.subr.mxu0 %v19908_v38 }
 0x34d   : > { %14835 = vmatpush3.msra.mxu0 %v16732_v26  ;;  %14830 = vmatpush3.msra.mxu1 %v16719_v25  ;;  %v3028_v40 = vadd.f32 %v3027_v22, %v3020_v30 }
 0x34e   : > { %14836 = vmatprep.subr.mxu0 %v19908_v38  ;;  %14831 = vmatprep.mubr.msk.f32.mxu1 %vm16418_vm1, %v19908_v38 }
 0x34f   : > { %14837 = vmatpush3.msra.mxu0 %v16752_v28  ;;  %14838 = vmatprep.mubr.msk.f32.mxu0 %vm16418_vm1, %v19908_v38  ;;  %v17142_v23 = vrot.slane %v3028_v40, 4 }
 0x350   : > { %14841 = vmatprep.subr.mxu1 %v19908_v38  ;;  %14848 = vmatprep.subr.mxu0 %v19908_v38 }
 0x351   : > { %14832 = vmatmul.mubr.msk.f32.vlgmr.msra.gmra.mxu1 %vm889_vm0, %v17142_v23  ;;  %14839 = vmatmul.mubr.msk.f32.vlgmr.msra.gmra.mxu0 %vm889_vm0, %v17142_v23 }
 0x352   : > { %14842 = vmatpush3.msra.mxu1 %v16739_v27  ;;  %14845 = vmatprep.mubr.msk.f32.mxu1 %vm16418_vm1, %v19908_v38 }
 0x353   : > { %14843 = vmatprep.subr.mxu1 %v19908_v38  ;;  %14849 = vmatpush3.msra.mxu0 %v16661_v18 }
 0x354   : > { %14844 = vmatpush3.msra.mxu1 %v16761_v29  ;;  %14850 = vmatprep.subr.mxu0 %v19908_v38 }
 0x355   : > { %14846 = vmatmul.mubr.msk.f32.vlgmr.msra.gmra.mxu1 %vm889_vm0, %v17142_v23  ;;  %14855 = vmatprep.subr.mxu1 %v19908_v38 }
 0x356   : > { %14856 = vmatpush3.msra.mxu1 %v16667_v19  ;;  %14851 = vmatpush3.msra.mxu0 %v16678_v20 }
 0x357   : > { %14857 = vmatprep.subr.mxu1 %v19908_v38  ;;  %14852 = vmatprep.mubr.msk.f32.mxu0 %vm16418_vm1, %v19908_v38 }
 0x358   : > { %14858 = vmatpush3.msra.mxu1 %v16685_v21  ;;  %14859 = vmatprep.mubr.msk.f32.mxu1 %vm16418_vm1, %v19908_v38 }
 0x359   : > { %14862 = vmatprep.subr.mxu0 %v19908_v38  ;;  %14869 = vmatprep.subr.mxu1 %v19908_v38 }
 0x408   : > { %v3098_v18 = vpop.f32.mrf.mxu0  ;;  %v3168_v24 = vpop.f32.mrf.mxu1 }
 0x409   : > { %v3099_v19 = vadd.f32 %v16885_v42, %v3098_v18  ;;  %v3169_v27 = vadd.f32 %v16894_v47, %v3168_v24 }
 0x40a   : > { %v14812_v25 = vpop.f32.mrf.mxu0  ;;  %v14819_v20 = vpop.f32.mrf.mxu1 }
 0x40b   : > { %v3243_v26 = vrot.slane %v3099_v19, 4  ;;  %v3253_v14 = vrot.slane %v3169_v27, 4  ;;  %v3270_v27 = vrot.slane %v17112_v45, 4  ;;  %v17195_v45 = vld [vmem:[%s19894_s9 + $0x28] sm:$0xff] }
 0x40c   : > { %v3238_v28 = vpop.f32.mrf.mxu0 }
 0x40d   : > { %v3245_v29 = vadd.f32 %v3243_v26, %v16814_v58  ;;  %v3255_v7 = vadd.f32 %v3253_v14, %v16817_v59 }
 0x40e   : > { %v14826_v21 = vpop.f32.mrf.mxu0 }
 0x40f   : > { %v13702_v46 = vmul.f32 -1.442695, %v3245_v29  ;;  %v13703_v5 = vmul.f32 -1.442695, %v3255_v7 }
 0x411   : > { %16039 = vpow2.f32 %v13702_v46  ;;  %v3347_v57 = vpop.f32.mrf.mxu1  ;;  %v3417_v36 = vpop.f32.mrf.mxu0 }
 0x412   : > { %v3348_v39 = vadd.f32 %v16900_v51, %v3347_v57  ;;  %v3418_v62 = vadd.f32 %v16913_v32, %v3417_v36  ;;  %v3275_v57 = vmul.f32 %v3270_v27, %v17106_v52 }
 0x413   : > { %v14833_v12 = vpop.f32.mrf.mxu1  ;;  %v14840_v44 = vpop.f32.mrf.mxu0 }
 0x414   : > { %v3491_v0 = vadd.f32 %v3348_v39, %v17085_v35  ;;  %v3498_v16 = vadd.f32 %v3418_v62, %v17092_v48  ;;  %v3239_v35 = vadd.f32 %v16925_v33, %v3238_v28  ;;  %v3514_v62 = vmul.f32 %v17142_v23, %v17123_v13 }
 0x415   : > { %v3487_v56 = vpop.f32.mrf.mxu1 }
 0x416   : > { %v13707_v17 = vmul.f32 -1.442695, %v3491_v0  ;;  %v13708_v41 = vmul.f32 -1.442695, %v3498_v16  ;;  %v3263_v49 = vrot.slane %v3239_v35, 4  ;;  %v3488_v18 = vadd.f32 %v16930_v61, %v3487_v56  ;;  %v17201_v56 = vld [vmem:[%s19894_s9 + $0x38] sm:$0xff] }
 0x417   : > { %v14847_v58 = vpop.f32.mrf.mxu1  ;;  %v17236_v16 = vld [vmem:[%s19894_s9 + $0x48] sm:$0xff]  ;;  %v17294_v35 = vld [vmem:[%s19894_s9 + $0x10] sm:$0xff] }
 0x418   : > { %16041 = vpow2.f32 %v13707_v17 }
 0x419   : > { %16043 = vpow2.f32 %v13703_v5  ;;  %v17212_v5 = vld [vmem:[%s19894_s9 + $0x20] sm:$0xff] }
 0x41e   : > { %v16040_v31 = vpop.eup %16039 }
 0x41f   : > { %v3249_v53 = vadd.f32 1.0, %v16040_v31  ;;  %v17242_v31 = vld [vmem:[%s19894_s9 + $0x58] sm:$0xff] }
 0x421   : > { %16045 = vrcp.f32 %v3249_v53  ;;  %v17258_v53 = vld [vmem:[%s19894_s9 + $0x50] sm:$0xff] }
 0x422   : > { %16047 = vpow2.f32 %v13708_v41  ;;  %v17250_v41 = vld [vmem:[%s19894_s9 + $0x40] sm:$0xff] }
 0x425   : > { %v16042_v59 = vpop.eup %16041 }
 0x426   : > { %v3495_v6 = vadd.f32 1.0, %v16042_v59  ;;  %v16044_v50 = vpop.eup %16043  ;;  %v17272_v59 = vld [vmem:[%s19894_s9 + $0x8] sm:$0xff] }
 0x427   : > { %v3259_v43 = vadd.f32 1.0, %v16044_v50  ;;  %v17286_v50 = vld [vmem:[%s19894_s9] sm:$0xff] }
 0x428   : > { %16049 = vrcp.f32 %v3495_v6  ;;  %v17278_v6 = vld [vmem:[%s19894_s9 + $0x18] sm:$0xff] }
 0x429   : > { %16051 = vrcp.f32 %v3259_v43 }
 0x42e   : > { %v16046_v1 = vpop.eup %16045 }
 0x42f   : > { %v16048_v30 = vpop.eup %16047  ;;  %v3265_v22 = vmul.f32 %v16046_v1, %v3263_v49  ;;  %v17303_v1 = vadd.f32 %v16806_v54, %v16825_v2 }
 0x430   : > { %v3502_v40 = vadd.f32 1.0, %v16048_v30 }
 0x431   : > { %v3266_v48 = vadd.f32 %v3265_v22, %v16840_v8 }
 0x433   : > { %16053 = vtanh.f32 %v3266_v48 }
 0x434   : > { %16055 = vrcp.f32 %v3502_v40 }
 0x435   : > { %v16050_v24 = vpop.eup %16049 }
 0x436   : > { %v3505_v19 = vmul.f32 %v16050_v24, %v3488_v18  ;;  %v16052_v20 = vpop.eup %16051 }
 0x437   : > { %v3268_v26 = vsub.f32 1.0, %v16052_v20  ;;  %v3272_v21 = vmul.f32 %v16052_v20, %v3270_v27 }
 0x438   : > { %v3506_v25 = vadd.f32 %v3505_v19, %v17100_v11 }
 0x43a   : > { %16057 = vtanh.f32 %v3506_v25 }
 0x440   : > { %v16054_v28 = vpop.eup %16053 }
 0x441   : > { %v3269_v29 = vmul.f32 %v16054_v28, %v3268_v26  ;;  %v16056_v46 = vpop.eup %16055  ;;  %v17311_v26 = vadd.f32 %v16811_v55, %v16827_v3 }
 0x442   : > { %v3508_v36 = vsub.f32 1.0, %v16056_v46  ;;  %v3511_v11 = vmul.f32 %v16056_v46, %v17142_v23  ;;  %v17222_v23 = vld [vmem:[%s19894_s9 + $0x30] sm:$0xff]  ;;  %s830_s9 = sand.u32 1, %s16406_s26  }
 0x443   : > { %v3273_v14 = vadd.f32 %v3272_v21, %v3269_v29  ;;  %s19586_s1 = sshll.u32 %s830_s9, 2  ;;  %s13412_s7 = scalar_lea.sflag [#allocation3], %s830_s9 }
 0x445   : > { %v3274_v8 = vmul.f32 %v3273_v14, %v17104_v15 }
 0x447   : > { %v16058_v39 = vpop.eup %16057  ;;  %v3276_v7 = vadd.f32 %v3275_v57, %v3274_v8 }
 0x448   : > { %v3509_v12 = vmul.f32 %v16058_v39, %v3508_v36 }
 0x449   : > { %v17186_v44 = vrot.slane %v3276_v7, 4 }
 0x44a   : > { %v3512_v0 = vadd.f32 %v3511_v11, %v3509_v12 }
 0x44b   : > { %14853 = vmatmul.mubr.msk.f32.vlgmr.msra.gmra.mxu0 %vm889_vm0, %v17186_v44  ;;  %14860 = vmatmul.mubr.msk.f32.vlgmr.msra.gmra.mxu1 %vm889_vm0, %v17186_v44 }
 0x44c   : > { %14863 = vmatpush3.msra.mxu0 %v17195_v45  ;;  %14870 = vmatpush3.msra.mxu1 %v17201_v56  ;;  %v3513_v17 = vmul.f32 %v3512_v0, %v17121_v10 }
 0x44d   : > { %14864 = vmatprep.subr.mxu0 %v19908_v38  ;;  %14871 = vmatprep.subr.mxu1 %v19908_v38 }
 0x44e   : > { %14865 = vmatpush3.msra.mxu0 %v17212_v5  ;;  %14866 = vmatprep.mubr.msk.f32.mxu0 %vm16418_vm1, %v19908_v38  ;;  %v17217_v58 = vadd.f32 %v3514_v62, %v3513_v17 }
 0x44f   : > { %14872 = vmatpush3.msra.mxu1 %v17222_v23  ;;  %14873 = vmatprep.mubr.msk.f32.mxu1 %vm16418_vm1, %v19908_v38 }
 0x450   : > { %14867 = vmatmul.mubr.msk.f32.vlgmr.msra.gmra.mxu0 %vm889_vm0, %v17186_v44  ;;  %14874 = vmatmul.mubr.msk.f32.vlgmr.msra.gmra.mxu1 %vm889_vm0, %v17217_v58 }
 0x451   : > { %14876 = vmatprep.subr.mxu0 %v19908_v38  ;;  %14883 = vmatprep.subr.mxu1 %v19908_v38 }
 0x452   : > { %14877 = vmatpush3.msra.mxu0 %v17236_v16  ;;  %14884 = vmatpush3.msra.mxu1 %v17242_v31 }
 0x453   : > { %14878 = vmatprep.subr.mxu0 %v19908_v38  ;;  %14885 = vmatprep.subr.mxu1 %v19908_v38 }
 0x454   : > { %14879 = vmatpush3.msra.mxu0 %v17250_v41  ;;  %14880 = vmatprep.mubr.msk.f32.mxu0 %vm16418_vm1, %v19908_v38 }
 0x455   : > { %14886 = vmatpush3.msra.mxu1 %v17258_v53  ;;  %14887 = vmatprep.mubr.msk.f32.mxu1 %vm16418_vm1, %v19908_v38 }
 0x456   : > { %14881 = vmatmul.mubr.msk.f32.vlgmr.msra.gmra.mxu0 %vm889_vm0, %v17217_v58  ;;  %14888 = vmatmul.mubr.msk.f32.vlgmr.msra.gmra.mxu1 %vm889_vm0, %v17217_v58 }
 0x457   : > { %14890 = vmatprep.subr.mxu0 %v19908_v38  ;;  %14897 = vmatprep.subr.mxu1 %v19908_v38 }
 0x458   : > { %14891 = vmatpush3.msra.mxu0 %v17272_v59  ;;  %14898 = vmatpush3.msra.mxu1 %v17278_v6 }
 0x459   : > { %14892 = vmatprep.subr.mxu0 %v19908_v38  ;;  %14899 = vmatprep.subr.mxu1 %v19908_v38 }
 0x45a   : > { %14893 = vmatpush3.msra.mxu0 %v17286_v50  ;;  %14894 = vmatprep.mubr.msk.f32.mxu0 %vm16418_vm1, %v19908_v38 }
 0x45b   : > { %14900 = vmatpush3.msra.mxu1 %v17294_v35  ;;  %14901 = vmatprep.mubr.msk.f32.mxu1 %vm16418_vm1, %v19908_v38 }
 0x45c   : > { %14904 = vmatprep.subr.mxu0 %v19908_v38  ;;  %14911 = vmatprep.subr.mxu1 %v19908_v38 }
 0x50b   : > { %v3586_v43 = vpop.f32.mrf.mxu0  ;;  %v3656_v49 = vpop.f32.mrf.mxu1 }
 0x50c   : > { %v3587_v30 = vadd.f32 %v16885_v42, %v3586_v43  ;;  %v3657_v24 = vadd.f32 %v16894_v47, %v3656_v49  ;;  %v16275_v43 = vld [vmem:[%s19898_s10 + $0x2] ss:$0 sm:$0xff]  ;;  %v19909_v49 = vld [vmem:[#allocation14_spill] sm:$0xff] }
 0x50d   : > { %v14854_v22 = vpop.f32.mrf.mxu0  ;;  %v14861_v48 = vpop.f32.mrf.mxu1 }
 0x50e   : > { %v3730_v40 = vadd.f32 %v3587_v30, %v17303_v1  ;;  %v3737_v42 = vadd.f32 %v3657_v24, %v17311_v26  ;;  %v17322_v30 = vadd.f32 %v16275_v43, %v19909_v49  ;;  %v17395_v43 = vld [vmem:[%s19907_s11 + $0x1] ss:$0 sm:$0xff] }
 0x510   : > { %v13712_v18 = vmul.f32 -1.442695, %v3730_v40  ;;  %v3726_v19 = vpop.f32.mrf.mxu0  ;;  %v3824_v25 = vpop.f32.mrf.mxu1  ;;  %v13713_v14 = vmul.f32 -1.442695, %v3737_v42 }
 0x511   : > { %v3825_v20 = vadd.f32 %v16900_v51, %v3824_v25 }
 0x512   : > { %16059 = vpow2.f32 %v13712_v18  ;;  %v14868_v54 = vpop.f32.mrf.mxu0  ;;  %v14875_v2 = vpop.f32.mrf.mxu1 }
 0x513   : > { %v3969_v27 = vrot.slane %v3825_v20, 4 }
 0x515   : > { %v3971_v28 = vadd.f32 %v3969_v27, %v16843_v9 }
 0x516   : > { %v3894_v29 = vpop.f32.mrf.mxu0  ;;  %v3964_v21 = vpop.f32.mrf.mxu1 }
 0x517   : > { %v13717_v46 = vmul.f32 -1.442695, %v3971_v28  ;;  %v3895_v47 = vadd.f32 %v16913_v32, %v3894_v29  ;;  %v3727_v32 = vadd.f32 %v16925_v33, %v3726_v19  ;;  %v3965_v48 = vadd.f32 %v16930_v61, %v3964_v21  ;;  %v19910_v19 = vld [vmem:[#allocation15_spill] sm:$0xff] }
 0x518   : > { %v14882_v8 = vpop.f32.mrf.mxu0  ;;  %v14889_v51 = vpop.f32.mrf.mxu1  ;;  %v3753_v21 = vmul.f32 %v17186_v44, %v17123_v13 }
 0x519   : > { %16061 = vpow2.f32 %v13717_v46  ;;  %v3979_v57 = vrot.slane %v3895_v47, 4  ;;  %v3989_v24 = vrot.slane %v3965_v48, 4 }
 0x51a   : > { %16063 = vpow2.f32 %v13713_v14  ;;  %v3996_v14 = vrot.slane %v17217_v58, 4 }
 0x51b   : > { %v3981_v55 = vadd.f32 %v3979_v57, %v16867_v34 }
 0x51d   : > { %v13718_v36 = vmul.f32 -1.442695, %v3981_v55 }
 0x51f   : > { %v16060_v3 = vpop.eup %16059 }
 0x520   : > { %v3734_v39 = vadd.f32 1.0, %v16060_v3  ;;  %v4001_v3 = vmul.f32 %v3996_v14, %v17106_v52 }
 0x522   : > { %16065 = vrcp.f32 %v3734_v39 }
 0x523   : > { %16067 = vpow2.f32 %v13718_v36 }
 0x526   : > { %v16062_v7 = vpop.eup %16061 }
 0x527   : > { %v3975_v12 = vadd.f32 1.0, %v16062_v7  ;;  %v16064_v11 = vpop.eup %16063 }
 0x528   : > { %v3741_v0 = vadd.f32 1.0, %v16064_v11  ;;  %v17389_v11 = vld [vmem:[%s19907_s11] ss:$0 sm:$0xff] }
 0x529   : > { %16069 = vrcp.f32 %v3975_v12 }
 0x52a   : > { %16071 = vrcp.f32 %v3741_v0 }
 0x52f   : > { %v16066_v17 = vpop.eup %16065 }
 0x530   : > { %v16068_v62 = vpop.eup %16067  ;;  %v3744_v22 = vmul.f32 %v16066_v17, %v3727_v32 }
 0x531   : > { %v3985_v18 = vadd.f32 1.0, %v16068_v62 }
 0x532   : > { %v3745_v40 = vadd.f32 %v3744_v22, %v17322_v30 }
 0x534   : > { %16073 = vtanh.f32 %v3745_v40 }
 0x535   : > { %16075 = vrcp.f32 %v3985_v18 }
 0x536   : > { %v16070_v25 = vpop.eup %16069 }
 0x537   : > { %v3991_v33 = vmul.f32 %v16070_v25, %v3989_v24  ;;  %v16072_v54 = vpop.eup %16071 }
 0x538   : > { %v3747_v2 = vsub.f32 1.0, %v16072_v54  ;;  %v3750_v28 = vmul.f32 %v16072_v54, %v17186_v44 }
 0x539   : > { %v3992_v20 = vadd.f32 %v3991_v33, %v19910_v19 }
 0x53b   : > { %16077 = vtanh.f32 %v3992_v20  ;;  %v17402_v20 = vld [vmem:[%s19907_s11 + $0x3] ss:$0 sm:$0xff] }
 0x541   : > { %v16074_v27 = vpop.eup %16073 }
 0x542   : > { %v3748_v42 = vmul.f32 %v16074_v27, %v3747_v2  ;;  %v16076_v29 = vpop.eup %16075 }
 0x543   : > { %v3994_v47 = vsub.f32 1.0, %v16076_v29  ;;  %v3998_v55 = vmul.f32 %v16076_v29, %v3996_v14 }
 0x544   : > { %v3751_v46 = vadd.f32 %v3750_v28, %v3748_v42 }
 0x546   : > { %v3752_v61 = vmul.f32 %v3751_v46, %v17121_v10  ;;  %v17410_v46 = vld [vmem:[%s19907_s11 + $0x4] ss:$0 sm:$0xff] }
 0x548   : > { %v16078_v8 = vpop.eup %16077  ;;  %v17332_v51 = vadd.f32 %v3753_v21, %v3752_v61 }
 0x549   : > { %v3995_v57 = vmul.f32 %v16078_v8, %v3994_v47 }
 0x54a   : > { %14895 = vmatmul.mubr.msk.f32.vlgmr.msra.gmra.mxu0 %vm889_vm0, %v17332_v51  ;;  %14902 = vmatmul.mubr.msk.f32.vlgmr.msra.gmra.mxu1 %vm889_vm0, %v17332_v51 }
 0x54b   : > { %14905 = vmatpush3.msra.mxu0 %v17195_v45  ;;  %14908 = vmatprep.mubr.msk.f32.mxu0 %vm16418_vm1, %v19908_v38  ;;  %v3999_v44 = vadd.f32 %v3998_v55, %v3995_v57 }
 0x54c   : > { %14906 = vmatprep.subr.mxu0 %v19908_v38  ;;  %14912 = vmatpush3.msra.mxu1 %v17201_v56 }
 0x54d   : > { %14907 = vmatpush3.msra.mxu0 %v17212_v5  ;;  %14913 = vmatprep.subr.mxu1 %v19908_v38  ;;  %v4000_v58 = vmul.f32 %v3999_v44, %v17104_v15 }
 0x54e   : > { %14909 = vmatmul.mubr.msk.f32.vlgmr.msra.gmra.mxu0 %vm889_vm0, %v17332_v51  ;;  %14918 = vmatprep.subr.mxu0 %v19908_v38 }
 0x54f   : > { %14919 = vmatpush3.msra.mxu0 %v17236_v16  ;;  %14914 = vmatpush3.msra.mxu1 %v17222_v23  ;;  %v4002_v36 = vadd.f32 %v4001_v3, %v4000_v58  ;;  %v17417_v58 = vld [vmem:[%s19907_s11 + $0x2] ss:$0 sm:$0xff] }
 0x550   : > { %14920 = vmatprep.subr.mxu0 %v19908_v38  ;;  %14915 = vmatprep.mubr.msk.f32.mxu1 %vm16418_vm1, %v19908_v38 }
 0x551   : > { %14921 = vmatpush3.msra.mxu0 %v17250_v41  ;;  %14922 = vmatprep.mubr.msk.f32.mxu0 %vm16418_vm1, %v19908_v38  ;;  %v17358_v39 = vrot.slane %v4002_v36, 4 }
 0x552   : > { %14925 = vmatprep.subr.mxu1 %v19908_v38  ;;  %14932 = vmatprep.subr.mxu0 %v19908_v38 }
 0x553   : > { %14916 = vmatmul.mubr.msk.f32.vlgmr.msra.gmra.mxu1 %vm889_vm0, %v17358_v39  ;;  %14923 = vmatmul.mubr.msk.f32.vlgmr.msra.gmra.mxu0 %vm889_vm0, %v17358_v39 }
 0x554   : > { %14926 = vmatpush3.msra.mxu1 %v17242_v31  ;;  %14929 = vmatprep.mubr.msk.f32.mxu1 %vm16418_vm1, %v19908_v38 }
 0x555   : > { %14927 = vmatprep.subr.mxu1 %v19908_v38  ;;  %14933 = vmatpush3.msra.mxu0 %v17272_v59 }
 0x556   : > { %14928 = vmatpush3.msra.mxu1 %v17258_v53  ;;  %14934 = vmatprep.subr.mxu0 %v19908_v38 }
 0x557   : > { %14930 = vmatmul.mubr.msk.f32.vlgmr.msra.gmra.mxu1 %vm889_vm0, %v17358_v39  ;;  %14939 = vmatprep.subr.mxu1 %v19908_v38 }
 0x558   : > { %14940 = vmatpush3.msra.mxu1 %v17278_v6  ;;  %14935 = vmatpush3.msra.mxu0 %v17286_v50 }
 0x559   : > { %14941 = vmatprep.subr.mxu1 %v19908_v38  ;;  %14936 = vmatprep.mubr.msk.f32.mxu0 %vm16418_vm1, %v19908_v38 }
 0x55a   : > { %14942 = vmatpush3.msra.mxu1 %v17294_v35  ;;  %14943 = vmatprep.mubr.msk.f32.mxu1 %vm16418_vm1, %v19908_v38 }
 0x55b   : > { %14946 = vmatprep.subr.mxu0 %v19908_v38  ;;  %14953 = vmatprep.subr.mxu1 %v19908_v38 }
 0x60a   : > { %v4072_v7 = vpop.f32.mrf.mxu0  ;;  %v4142_v12 = vpop.f32.mrf.mxu1 }
 0x60b   : > { %v4073_v0 = vadd.f32 %v17389_v11, %v4072_v7  ;;  %v4143_v49 = vadd.f32 %v17395_v43, %v4142_v12 }
 0x60c   : > { %v14896_v32 = vpop.f32.mrf.mxu0  ;;  %v14903_v17 = vpop.f32.mrf.mxu1 }
 0x60d   : > { %v4217_v62 = vrot.slane %v4073_v0, 4  ;;  %v4227_v24 = vrot.slane %v4143_v49, 4 }
 0x60e   : > { %v4212_v22 = vpop.f32.mrf.mxu0 }
 0x60f   : > { %v4219_v48 = vadd.f32 %v4217_v62, %v17303_v1  ;;  %v4229_v2 = vadd.f32 %v4227_v24, %v17311_v26  ;;  %v4213_v3 = vadd.f32 %v17417_v58, %v4212_v22  ;;  %v17424_v62 = vld [vmem:[%s19907_s11 + $0x5] ss:$0 sm:$0xff] }
 0x610   : > { %v14910_v40 = vpop.f32.mrf.mxu0 }
 0x611   : > { %v13722_v18 = vmul.f32 -1.442695, %v4219_v48  ;;  %v13723_v21 = vmul.f32 -1.442695, %v4229_v2  ;;  %v4237_v7 = vrot.slane %v4213_v3, 4 }
 0x613   : > { %16079 = vpow2.f32 %v13722_v18  ;;  %v4321_v25 = vpop.f32.mrf.mxu1  ;;  %v4391_v33 = vpop.f32.mrf.mxu0 }
 0x614   : > { %v4322_v54 = vadd.f32 %v17402_v20, %v4321_v25  ;;  %v4392_v61 = vadd.f32 %v17410_v46, %v4391_v33  ;;  %v4244_v25 = vrot.slane %v17332_v51, 4 }
 0x615   : > { %v14917_v27 = vpop.f32.mrf.mxu1  ;;  %v14924_v42 = vpop.f32.mrf.mxu0 }
 0x616   : > { %v4465_v28 = vadd.f32 %v4322_v54, %v16843_v9  ;;  %v4472_v14 = vadd.f32 %v4392_v61, %v16867_v34 }
 0x617   : > { %v4461_v1 = vpop.f32.mrf.mxu1 }
 0x618   : > { %v13727_v29 = vmul.f32 -1.442695, %v4465_v28  ;;  %v13728_v8 = vmul.f32 -1.442695, %v4472_v14  ;;  %v4462_v49 = vadd.f32 %v17424_v62, %v4461_v1  ;;  %v4249_v28 = vmul.f32 %v4244_v25, %v17123_v13 }
 0x619   : > { %v14931_v47 = vpop.f32.mrf.mxu1  ;;  %v4488_v13 = vmul.f32 %v17358_v39, %v17106_v52 }
 0x61a   : > { %16081 = vpow2.f32 %v13727_v29 }
 0x61b   : > { %16083 = vpow2.f32 %v13723_v21 }
 0x620   : > { %v16080_v26 = vpop.eup %16079 }
 0x621   : > { %v4223_v57 = vadd.f32 1.0, %v16080_v26  ;;  %v19911_v26 = vld [vmem:[#allocation10_spill] sm:$0xff] }
 0x623   : > { %16085 = vrcp.f32 %v4223_v57 }
 0x624   : > { %16087 = vpow2.f32 %v13728_v8 }
 0x627   : > { %v16082_v9 = vpop.eup %16081 }
 0x628   : > { %v4469_v55 = vadd.f32 1.0, %v16082_v9  ;;  %v16084_v44 = vpop.eup %16083 }
 0x629   : > { %v4233_v36 = vadd.f32 1.0, %v16084_v44 }
 0x62a   : > { %16089 = vrcp.f32 %v4469_v55 }
 0x62b   : > { %16091 = vrcp.f32 %v4233_v36  ;;  %v16282_v36 = vld [vmem:[%s19898_s10 + $0x3] ss:$0 sm:$0xff] }
 0x630   : > { %v16086_v34 = vpop.eup %16085 }
 0x631   : > { %v16088_v12 = vpop.eup %16087  ;;  %v4239_v0 = vmul.f32 %v16086_v34, %v4237_v7  ;;  %v19912_v7 = vld [vmem:[#allocation12_spill] sm:$0xff] }
 0x632   : > { %v4476_v17 = vadd.f32 1.0, %v16088_v12  ;;  %v17495_v34 = vadd.f32 %v16282_v36, %v19912_v7 }
 0x633   : > { %v4240_v32 = vadd.f32 %v4239_v0, %v17322_v30  ;;  %v19913_v0 = vld [vmem:[#allocation11_spill] sm:$0xff] }
 0x635   : > { %16093 = vtanh.f32 %v4240_v32 }
 0x636   : > { %16095 = vrcp.f32 %v4476_v17 }
 0x637   : > { %v16090_v48 = vpop.eup %16089 }
 0x638   : > { %v4479_v22 = vmul.f32 %v16090_v48, %v4462_v49  ;;  %v16092_v18 = vpop.eup %16091 }
 0x639   : > { %v4242_v24 = vsub.f32 1.0, %v16092_v18  ;;  %v4246_v54 = vmul.f32 %v16092_v18, %v4244_v25 }
 0x63a   : > { %v4480_v40 = vadd.f32 %v4479_v22, %v19910_v19 }
 0x63c   : > { %16097 = vtanh.f32 %v4480_v40 }
 0x642   : > { %v16094_v30 = vpop.eup %16093 }
 0x643   : > { %v4243_v33 = vmul.f32 %v16094_v30, %v4242_v24  ;;  %v16096_v2 = vpop.eup %16095  ;;  %v16283_v30 = vld [vmem:[%s19898_s10 + $0x4] ss:$0 sm:$0xff] }
 0x644   : > { %v4482_v1 = vsub.f32 1.0, %v16096_v2  ;;  %v4485_v19 = vmul.f32 %v16096_v2, %v17358_v39 }
 0x645   : > { %v4247_v27 = vadd.f32 %v4246_v54, %v4243_v33  ;;  %v19914_v33 = vld [vmem:[#allocation16_spill] sm:$0xff] }
 0x646   : > { %v17504_v54 = vadd.f32 %v16283_v30, %v19914_v33 }
 0x647   : > { %v4248_v42 = vmul.f32 %v4247_v27, %v17121_v10 }
 0x649   : > { %v16098_v29 = vpop.eup %16097  ;;  %v4250_v61 = vadd.f32 %v4249_v28, %v4248_v42 }
 0x64a   : > { %v4483_v21 = vmul.f32 %v16098_v29, %v4482_v1 }
 0x64b   : > { %v17432_v47 = vrot.slane %v4250_v61, 4 }
 0x64c   : > { %v4486_v14 = vadd.f32 %v4485_v19, %v4483_v21 }
 0x64d   : > { %14937 = vmatmul.mubr.msk.f32.vlgmr.msra.gmra.mxu0 %vm889_vm0, %v17432_v47  ;;  %14944 = vmatmul.mubr.msk.f32.vlgmr.msra.gmra.mxu1 %vm889_vm0, %v17432_v47 }
 0x64e   : > { %14947 = vmatpush3.msra.mxu0 %v17195_v45  ;;  %14954 = vmatpush3.msra.mxu1 %v17201_v56  ;;  %v4487_v10 = vmul.f32 %v4486_v14, %v17104_v15 }
 0x64f   : > { %14948 = vmatprep.subr.mxu0 %v19908_v38  ;;  %14955 = vmatprep.subr.mxu1 %v19908_v38 }
 0x650   : > { %14949 = vmatpush3.msra.mxu0 %v17212_v5  ;;  %14950 = vmatprep.mubr.msk.f32.mxu0 %vm16418_vm1, %v19908_v38  ;;  %v17448_v51 = vadd.f32 %v4488_v13, %v4487_v10 }
 0x651   : > { %14956 = vmatpush3.msra.mxu1 %v17222_v23  ;;  %14957 = vmatprep.mubr.msk.f32.mxu1 %vm16418_vm1, %v19908_v38 }
 0x652   : > { %14951 = vmatmul.mubr.msk.f32.vlgmr.msra.gmra.mxu0 %vm889_vm0, %v17432_v47  ;;  %14958 = vmatmul.mubr.msk.f32.vlgmr.msra.gmra.mxu1 %vm889_vm0, %v17448_v51 }
 0x653   : > { %14960 = vmatprep.subr.mxu0 %v19908_v38  ;;  %14967 = vmatprep.subr.mxu1 %v19908_v38 }
 0x654   : > { %14961 = vmatpush3.msra.mxu0 %v17236_v16  ;;  %14968 = vmatpush3.msra.mxu1 %v17242_v31 }
 0x655   : > { %14962 = vmatprep.subr.mxu0 %v19908_v38  ;;  %14969 = vmatprep.subr.mxu1 %v19908_v38 }
 0x656   : > { %14963 = vmatpush3.msra.mxu0 %v17250_v41  ;;  %14964 = vmatprep.mubr.msk.f32.mxu0 %vm16418_vm1, %v19908_v38 }
 0x657   : > { %14970 = vmatpush3.msra.mxu1 %v17258_v53  ;;  %14971 = vmatprep.mubr.msk.f32.mxu1 %vm16418_vm1, %v19908_v38 }
 0x658   : > { %14965 = vmatmul.mubr.msk.f32.vlgmr.msra.gmra.mxu0 %vm889_vm0, %v17448_v51  ;;  %14972 = vmatmul.mubr.msk.f32.vlgmr.msra.gmra.mxu1 %vm889_vm0, %v17448_v51 }
 0x659   : > { %14974 = vmatprep.subr.mxu0 %v19908_v38  ;;  %14981 = vmatprep.subr.mxu1 %v19908_v38 }
 0x65a   : > { %14975 = vmatpush3.msra.mxu0 %v17272_v59  ;;  %14982 = vmatpush3.msra.mxu1 %v17278_v6 }
 0x65b   : > { %14976 = vmatprep.subr.mxu0 %v19908_v38  ;;  %14983 = vmatprep.subr.mxu1 %v19908_v38 }
 0x65c   : > { %14977 = vmatpush3.msra.mxu0 %v17286_v50  ;;  %14978 = vmatprep.mubr.msk.f32.mxu0 %vm16418_vm1, %v19908_v38 }
 0x65d   : > { %14984 = vmatpush3.msra.mxu1 %v17294_v35  ;;  %14985 = vmatprep.mubr.msk.f32.mxu1 %vm16418_vm1, %v19908_v38 }
 0x65e   : > { %14988 = vmatprep.subr.mxu0 %v19908_v38  ;;  %14995 = vmatprep.subr.mxu1 %v19908_v38 }
 0x70d   : > { %v4560_v15 = vpop.f32.mrf.mxu0  ;;  %v4630_v52 = vpop.f32.mrf.mxu1 }
 0x70e   : > { %v4561_v59 = vadd.f32 %v17389_v11, %v4560_v15  ;;  %v4631_v57 = vadd.f32 %v17395_v43, %v4630_v52 }
 0x70f   : > { %v14938_v6 = vpop.f32.mrf.mxu0  ;;  %v14945_v39 = vpop.f32.mrf.mxu1 }
 0x710   : > { %v4704_v50 = vadd.f32 %v4561_v59, %v19911_v26  ;;  %v4711_v32 = vadd.f32 %v4631_v57, %v19913_v0  ;;  %v19915_v59 = vld [vmem:[#allocation13_spill] sm:$0xff] }
 0x711   : > { %v16284_v57 = vld [vmem:[%s19898_s10 + $0x5] ss:$0 sm:$0xff]  ;;  %s832_s10 = scalar_lea.vmem [#allocation2], %s19586_s1 }
 0x712   : > { %v13732_v8 = vmul.f32 -1.442695, %v4704_v50  ;;  %v4700_v9 = vpop.f32.mrf.mxu0  ;;  %v4798_v35 = vpop.f32.mrf.mxu1  ;;  %v13733_v18 = vmul.f32 -1.442695, %v4711_v32 }
 0x713   : > { %v4799_v55 = vadd.f32 %v17402_v20, %v4798_v35  ;;  %v4701_v14 = vadd.f32 %v17417_v58, %v4700_v9  ;;  %v19916_v35 = vld [vmem:[#allocation17_spill] sm:$0xff] }
 0x714   : > { %16099 = vpow2.f32 %v13732_v8  ;;  %v14952_v44 = vpop.f32.mrf.mxu0  ;;  %v14959_v3 = vpop.f32.mrf.mxu1 }
 0x715   : > { %v4943_v12 = vrot.slane %v4799_v55, 4  ;;  %v17514_v55 = vadd.f32 %v16284_v57, %v19916_v35 }
 0x717   : > { %v4945_v17 = vadd.f32 %v4943_v12, %v17495_v34 }
 0x718   : > { %v4868_v49 = vpop.f32.mrf.mxu0  ;;  %v4938_v48 = vpop.f32.mrf.mxu1 }
 0x719   : > { %v13737_v22 = vmul.f32 -1.442695, %v4945_v17  ;;  %v4869_v40 = vadd.f32 %v17410_v46, %v4868_v49  ;;  %v4939_v52 = vadd.f32 %v17424_v62, %v4938_v48 }
 0x71a   : > { %v14966_v24 = vpop.f32.mrf.mxu0  ;;  %v14973_v25 = vpop.f32.mrf.mxu1 }
 0x71b   : > { %16101 = vpow2.f32 %v13737_v22  ;;  %v4953_v2 = vrot.slane %v4869_v40, 4  ;;  %v4963_v50 = vrot.slane %v4939_v52, 4  ;;  %v4727_v22 = vmul.f32 %v17432_v47, %v16954_v37 }
 0x71c   : > { %16103 = vpow2.f32 %v13733_v18  ;;  %v4970_v18 = vrot.slane %v17448_v51, 4 }
 0x71d   : > { %v4955_v27 = vadd.f32 %v4953_v2, %v17504_v54 }
 0x71e   : > { %v4975_v2 = vmul.f32 %v4970_v18, %v16948_v63 }
 0x71f   : > { %v13738_v28 = vmul.f32 -1.442695, %v4955_v27 }
 0x721   : > { %v16100_v42 = vpop.eup %16099 }
 0x722   : > { %v4708_v1 = vadd.f32 1.0, %v16100_v42 }
 0x724   : > { %16105 = vrcp.f32 %v4708_v1 }
 0x725   : > { %16107 = vpow2.f32 %v13738_v28 }
 0x728   : > { %v16102_v29 = vpop.eup %16101 }
 0x729   : > { %v4949_v61 = vadd.f32 1.0, %v16102_v29  ;;  %v16104_v21 = vpop.eup %16103 }
 0x72a   : > { %v4715_v19 = vadd.f32 1.0, %v16104_v21 }
 0x72b   : > { %16109 = vrcp.f32 %v4949_v61 }
 0x72c   : > { %16111 = vrcp.f32 %v4715_v19 }
 0x731   : > { %v16106_v10 = vpop.eup %16105 }
 0x732   : > { %v16108_v13 = vpop.eup %16107  ;;  %v4718_v15 = vmul.f32 %v16106_v10, %v4701_v14 }
 0x733   : > { %v4959_v39 = vadd.f32 1.0, %v16108_v13 }
 0x734   : > { %v4719_v6 = vadd.f32 %v4718_v15, %v19915_v59 }
 0x736   : > { %16113 = vtanh.f32 %v4719_v6 }
 0x737   : > { %16115 = vrcp.f32 %v4959_v39 }
 0x738   : > { %v16110_v8 = vpop.eup %16109 }
 0x739   : > { %v4965_v9 = vmul.f32 %v16110_v8, %v4963_v50  ;;  %v16112_v3 = vpop.eup %16111 }
 0x73a   : > { %v4721_v36 = vsub.f32 1.0, %v16112_v3  ;;  %v4724_v32 = vmul.f32 %v16112_v3, %v17432_v47 }
 0x73b   : > { %v4966_v44 = vadd.f32 %v4965_v9, %v17514_v55 }
 0x73d   : > { %16117 = vtanh.f32 %v4966_v44 }
 0x743   : > { %v16114_v7 = vpop.eup %16113 }
 0x744   : > { %v4722_v12 = vmul.f32 %v16114_v7, %v4721_v36  ;;  %v16116_v17 = vpop.eup %16115 }
 0x745   : > { %v4968_v40 = vsub.f32 1.0, %v16116_v17  ;;  %v4972_v33 = vmul.f32 %v16116_v17, %v4970_v18 }
 0x746   : > { %v4725_v49 = vadd.f32 %v4724_v32, %v4722_v12 }
 0x748   : > { %v4726_v48 = vmul.f32 %v4725_v49, %v16946_v60 }
 0x74a   : > { %v16118_v24 = vpop.eup %16117  ;;  %v17522_v25 = vadd.f32 %v4727_v22, %v4726_v48 }
 0x74b   : > { %v4969_v30 = vmul.f32 %v16118_v24, %v4968_v40 }
 0x74c   : > { %14979 = vmatmul.mubr.msk.f32.vlgmr.msra.gmra.mxu0 %vm889_vm0, %v17522_v25  ;;  %14986 = vmatmul.mubr.msk.f32.vlgmr.msra.gmra.mxu1 %vm889_vm0, %v17522_v25 }
 0x74d   : > { %14989 = vmatpush3.msra.mxu0 %v17195_v45  ;;  %14992 = vmatprep.mubr.msk.f32.mxu0 %vm16418_vm1, %v19908_v38  ;;  %v4973_v47 = vadd.f32 %v4972_v33, %v4969_v30 }
 0x74e   : > { %14990 = vmatprep.subr.mxu0 %v19908_v38  ;;  %14996 = vmatpush3.msra.mxu1 %v17201_v56 }
 0x74f   : > { %14991 = vmatpush3.msra.mxu0 %v17212_v5  ;;  %14997 = vmatprep.subr.mxu1 %v19908_v38  ;;  %v4974_v51 = vmul.f32 %v4973_v47, %v16944_v4  ;;  %v5465_v5 = vld [vmem:[%s19762_s12 + $0x8] sm:$0xff] }
 0x750   : > { %14993 = vmatmul.mubr.msk.f32.vlgmr.msra.gmra.mxu0 %vm889_vm0, %v17522_v25  ;;  %15002 = vmatprep.subr.mxu0 %v19908_v38 }
 0x751   : > { %15003 = vmatpush3.msra.mxu0 %v17236_v16  ;;  %14998 = vmatpush3.msra.mxu1 %v17222_v23  ;;  %v4976_v45 = vadd.f32 %v4975_v2, %v4974_v51  ;;  %v5464_v23 = vld [vmem:[%s19762_s12] sm:$0xff]  ;;  %v13750_v16 = vld [vmem:[%s19762_s12 + $0x18] sm:$0xff] }
 0x752   : > { %15004 = vmatprep.subr.mxu0 %v19908_v38  ;;  %14999 = vmatprep.mubr.msk.f32.mxu1 %vm16418_vm1, %v19908_v38 }
 0x753   : > { %15005 = vmatpush3.msra.mxu0 %v17250_v41  ;;  %15006 = vmatprep.mubr.msk.f32.mxu0 %vm16418_vm1, %v19908_v38  ;;  %v17548_v56 = vrot.slane %v4976_v45, 4 }
 0x754   : > { %15009 = vmatprep.subr.mxu1 %v19908_v38  ;;  %15016 = vmatprep.subr.mxu0 %v19908_v38 }
 0x755   : > { %15000 = vmatmul.mubr.msk.f32.vlgmr.msra.gmra.mxu1 %vm889_vm0, %v17548_v56  ;;  %15007 = vmatmul.mubr.msk.f32.vlgmr.msra.gmra.mxu0 %vm889_vm0, %v17548_v56 }
 0x756   : > { %15010 = vmatpush3.msra.mxu1 %v17242_v31  ;;  %15013 = vmatprep.mubr.msk.f32.mxu1 %vm16418_vm1, %v19908_v38  ;;  %v13749_v31 = vld [vmem:[%s19762_s12 + $0x10] sm:$0xff] }
 0x757   : > { %15011 = vmatprep.subr.mxu1 %v19908_v38  ;;  %15020 = vmatprep.mubr.msk.f32.mxu0 %vm16418_vm1, %v19908_v38 }
 0x758   : > { %15012 = vmatpush3.msra.mxu1 %v17258_v53  ;;  %15017 = vmatpush3.msra.mxu0 %v13750_v16 }
 0x759   : > { %15014 = vmatmul.mubr.msk.f32.vlgmr.msra.gmra.mxu1 %vm889_vm0, %v17548_v56  ;;  %15023 = vmatprep.subr.mxu1 %v19908_v38 }
 0x75a   : > { %15027 = vmatprep.mubr.msk.f32.mxu1 %vm16418_vm1, %v19908_v38  ;;  %15024 = vmatpush3.msra.mxu1 %v5465_v5 }
 0x75b   : > { %15025 = vmatprep.subr.mxu1 %v19908_v38  ;;  %15018 = vmatprep.subr.mxu0 %v19908_v38 }
 0x75c   : > { %15026 = vmatpush3.msra.mxu1 %v5464_v23  ;;  %15019 = vmatpush3.msra.mxu0 %v13749_v31 }
 0x75d   : > { %15037 = vmatprep.subr.mxu1 %v19908_v38  ;;  %15030 = vmatprep.subr.mxu0 %v19908_v38 }
 0x80c   : > { %v5046_v41 = vpop.f32.mrf.mxu0  ;;  %v5116_v53 = vpop.f32.mrf.mxu1 }
 0x80d   : > { %v5047_v27 = vadd.f32 %v17389_v11, %v5046_v41  ;;  %v5117_v29 = vadd.f32 %v17395_v43, %v5116_v53 }
 0x80e   : > { %v14980_v42 = vpop.f32.mrf.mxu0  ;;  %v14987_v28 = vpop.f32.mrf.mxu1 }
 0x80f   : > { %v5191_v1 = vrot.slane %v5047_v27, 4  ;;  %v5201_v10 = vrot.slane %v5117_v29, 4  ;;  %v13763_v28 = vld [vmem:[%s19762_s12 + $0x48] sm:$0xff]  ;;  %v13757_v29 = vld [vmem:[%s19762_s12 + $0x38] sm:$0xff] }
 0x810   : > { %v5186_v61 = vpop.f32.mrf.mxu0 }
 0x811   : > { %v5193_v21 = vadd.f32 %v5191_v1, %v19911_v26  ;;  %v5203_v6 = vadd.f32 %v5201_v10, %v19913_v0  ;;  %v13779_v10 = vld [vmem:[%s19762_s12 + $0x88] sm:$0xff] }
 0x812   : > { %v14994_v19 = vpop.f32.mrf.mxu0 }
 0x813   : > { %v13742_v14 = vmul.f32 -1.442695, %v5193_v21  ;;  %v13743_v35 = vmul.f32 -1.442695, %v5203_v6  ;;  %v13764_v21 = vld [vmem:[%s19762_s12 + $0x50] sm:$0xff]  ;;  %v13770_v19 = vld [vmem:[%s19762_s12 + $0x60] sm:$0xff] }
 0x814   : > { %v13787_v6 = vld [vmem:[%s19762_s12 + $0xa8] sm:$0xff] }
 0x815   : > { %16119 = vpow2.f32 %v13742_v14  ;;  %v5295_v13 = vpop.f32.mrf.mxu1  ;;  %v5365_v15 = vpop.f32.mrf.mxu0  ;;  %v13773_v14 = vld [vmem:[%s19762_s12 + $0x78] sm:$0xff] }
 0x816   : > { %v5296_v52 = vadd.f32 %v17402_v20, %v5295_v13  ;;  %v5366_v43 = vadd.f32 %v17410_v46, %v5365_v15  ;;  %v13772_v13 = vld [vmem:[%s19762_s12 + $0x70] sm:$0xff]  ;;  %v13778_v15 = vld [vmem:[%s19762_s12 + $0x80] sm:$0xff] }
 0x817   : > { %v15001_v39 = vpop.f32.mrf.mxu1  ;;  %v15008_v11 = vpop.f32.mrf.mxu0 }
 0x818   : > { %v5439_v50 = vadd.f32 %v5296_v52, %v17495_v34  ;;  %v5446_v9 = vadd.f32 %v5366_v43, %v17504_v54  ;;  %v5187_v34 = vadd.f32 %v17417_v58, %v5186_v61  ;;  %v5218_v58 = vrot.slane %v17522_v25, 4  ;;  %v13755_v25 = vld [vmem:[%s19762_s12 + $0x28] sm:$0xff]  ;;  %v13781_v52 = vld [vmem:[%s19762_s12 + $0x98] sm:$0xff]  ;;  %v13780_v39 = vld [vmem:[%s19762_s12 + $0x90] sm:$0xff] }
 0x819   : > { %v5435_v8 = vpop.f32.mrf.mxu1  ;;  %v13771_v61 = vld [vmem:[%s19762_s12 + $0x68] sm:$0xff]  ;;  %v13786_v11 = vld [vmem:[%s19762_s12 + $0xa0] sm:$0xff] }
 0x81a   : > { %v13747_v57 = vmul.f32 -1.442695, %v5439_v50  ;;  %v13748_v3 = vmul.f32 -1.442695, %v5446_v9  ;;  %v5211_v32 = vrot.slane %v5187_v34, 4  ;;  %v5436_v22 = vadd.f32 %v17424_v62, %v5435_v8  ;;  %v13789_v50 = vld [vmem:[%s19762_s12 + $0xb8] sm:$0xff] }
 0x81b   : > { %v15015_v26 = vpop.f32.mrf.mxu1  ;;  %v13795_v8 = vld [vmem:[%s19762_s12 + $0xc8] sm:$0xff]  ;;  %v13794_v43 = vld [vmem:[%s19762_s12 + $0xc0] sm:$0xff]  ;;  %v13796_v9 = vld [vmem:[%s19762_s12 + $0xd0] sm:$0xff] }
 0x81c   : > { %16121 = vpow2.f32 %v13747_v57  ;;  %v13788_v57 = vld [vmem:[%s19762_s12 + $0xb0] sm:$0xff]  ;;  %v13803_v26 = vld [vmem:[%s19762_s12 + $0xe8] sm:$0xff] }
 0x81d   : > { %16123 = vpow2.f32 %v13743_v35  ;;  %v13797_v35 = vld [vmem:[%s19762_s12 + $0xd8] sm:$0xff]  ;;  %v13812_v34 = vld [vmem:[%s19762_s12 + $0x110] sm:$0xff] }
 0x822   : > { %v16120_v44 = vpop.eup %16119 }
 0x823   : > { %v5197_v36 = vadd.f32 1.0, %v16120_v44  ;;  %v13802_v44 = vld [vmem:[%s19762_s12 + $0xe0] sm:$0xff] }
 0x825   : > { %16125 = vrcp.f32 %v5197_v36  ;;  %v13811_v36 = vld [vmem:[%s19762_s12 + $0x108] sm:$0xff] }
 0x826   : > { %16127 = vpow2.f32 %v13748_v3  ;;  %v13805_v3 = vld [vmem:[%s19762_s12 + $0xf8] sm:$0xff] }
 0x829   : > { %v16122_v20 = vpop.eup %16121 }
 0x82a   : > { %v5443_v0 = vadd.f32 1.0, %v16122_v20  ;;  %v16124_v7 = vpop.eup %16123  ;;  %v13804_v20 = vld [vmem:[%s19762_s12 + $0xf0] sm:$0xff] }
 0x82b   : > { %v5207_v12 = vadd.f32 1.0, %v16124_v7  ;;  %v13813_v7 = vld [vmem:[%s19762_s12 + $0x118] sm:$0xff] }
 0x82c   : > { %16129 = vrcp.f32 %v5443_v0  ;;  %v13810_v0 = vld [vmem:[%s19762_s12 + $0x100] sm:$0xff] }
 0x82d   : > { %16131 = vrcp.f32 %v5207_v12  ;;  %v7034_v12 = vld [vmem:[%s17800_s25] sm:$0x1] }
 0x832   : > { %v16126_v46 = vpop.eup %16125 }
 0x833   : > { %v16128_v17 = vpop.eup %16127  ;;  %v5213_v49 = vmul.f32 %v16126_v46, %v5211_v32  ;;  %v6956_v32 = vld [vmem:[%s17817_s29] sm:$0x1]  ;;  %v17840_v46 = vld [vmem:[%s19763_s13 + $0x18] sm:$0xff] }
 0x834   : > { %v5450_v48 = vadd.f32 1.0, %v16128_v17  ;;  %v17845_v17 = vld [vmem:[%s19763_s13 + $0x38] sm:$0xff] }
 0x835   : > { %v5214_v54 = vadd.f32 %v5213_v49, %v19915_v59  ;;  %v5223_v59 = vmul.f32 %v5218_v58, %v16954_v37  ;;  %v13754_v37 = vld [vmem:[%s19762_s12 + $0x20] sm:$0xff]  ;;  %v17850_v49 = vld [vmem:[%s19763_s13 + $0x10] sm:$0xff] }
 0x837   : > { %16133 = vtanh.f32 %v5214_v54  ;;  %v17857_v54 = vld [vmem:[%s19763_s13 + $0x30] sm:$0xff] }
 0x838   : > { %16135 = vrcp.f32 %v5450_v48  ;;  %v17868_v48 = vld [vmem:[%s19763_s13 + $0x8] sm:$0xff] }
 0x839   : > { %v16130_v40 = vpop.eup %16129 }
 0x83a   : > { %v5453_v18 = vmul.f32 %v16130_v40, %v5436_v22  ;;  %v16132_v30 = vpop.eup %16131  ;;  %v17873_v22 = vld [vmem:[%s19763_s13 + $0x28] sm:$0xff]  ;;  %v17880_v40 = vld [vmem:[%s19763_s13] sm:$0xff] }
 0x83b   : > { %v5216_v33 = vsub.f32 1.0, %v16132_v30  ;;  %v5220_v51 = vmul.f32 %v16132_v30, %v5218_v58 }
 0x83c   : > { %v5454_v24 = vadd.f32 %v5453_v18, %v17514_v55  ;;  %v17885_v18 = vld [vmem:[%s19763_s13 + $0x20] sm:$0xff] }
 0x83e   : > { %16137 = vtanh.f32 %v5454_v24 }
 0x844   : > { %v16134_v47 = vpop.eup %16133 }
 0x845   : > { %v5217_v2 = vmul.f32 %v16134_v47, %v5216_v33  ;;  %v16136_v45 = vpop.eup %16135 }
 0x846   : > { %v5456_v62 = vsub.f32 1.0, %v16136_v45  ;;  %v5459_v55 = vmul.f32 %v16136_v45, %v17548_v56 }
 0x847   : > { %v5221_v5 = vadd.f32 %v5220_v51, %v5217_v2 }
 0x849   : > { %v5222_v23 = vmul.f32 %v5221_v5, %v16946_v60  ;;  %v5462_v60 = vmul.f32 %v17548_v56, %v16948_v63  ;;  %v13762_v63 = vld [vmem:[%s19762_s12 + $0x40] sm:$0xff]  ;;  %v13765_v56 = vld [vmem:[%s19762_s12 + $0x58] sm:$0xff] }
 0x84b   : > { %v16138_v16 = vpop.eup %16137  ;;  %v17599_v31 = vadd.f32 %v5223_v59, %v5222_v23 }
 0x84c   : > { %v5457_v41 = vmul.f32 %v16138_v16, %v5456_v62 }
 0x84d   : > { %19917 = vst [vmem:[#allocation14_spill] sm:$0xff] %v17599_v31  ;;  %v17603_v53 = vrot.slane %v17599_v31, 4  ;;  %v18261_v31 = vld [vmem:[%s19764_s14 + $0xa0] sm:$0xff] }
 0x84e   : > { %v5460_v27 = vadd.f32 %v5459_v55, %v5457_v41  ;;  %19937 = vst [vmem:[#allocation28_spill] sm:$0xff] %v18261_v31 }
 0x84f   : > { %19918 = vst [vmem:[#allocation15_spill] sm:$0xff] %v17603_v53  ;;  %15028 = vmatmul.mubr.msk.f32.vlgmr.msra.gmra.mxu1 %vm889_vm0, %v17603_v53 }
 0x850   : > { %v5461_v42 = vmul.f32 %v5460_v27, %v16944_v4  ;;  %15038 = vmatpush3.msra.mxu1 %v13755_v25  ;;  %15041 = vmatprep.mubr.msk.f32.mxu1 %vm16418_vm1, %v19908_v38  ;;  %v13756_v4 = vld [vmem:[%s19762_s12 + $0x30] sm:$0xff] }
 0x851   : > { %15039 = vmatprep.subr.mxu1 %v19908_v38 }
 0x852   : > { %v17622_v1 = vadd.f32 %v5462_v60, %v5461_v42  ;;  %15040 = vmatpush3.msra.mxu1 %v13754_v37 }
 0x853   : > { %15042 = vmatmul.mubr.msk.f32.vlgmr.msra.gmra.mxu1 %vm889_vm0, %v17603_v53  ;;  %15051 = vmatprep.subr.mxu1 %v19908_v38 }
 0x854   : > { %19919 = vst [vmem:[#allocation10_spill] sm:$0xff] %v17622_v1  ;;  %15021 = vmatmul.mubr.msk.f32.vlgmr.msra.gmra.mxu0 %vm889_vm0, %v17622_v1  ;;  %15052 = vmatpush3.msra.mxu1 %v13763_v28 }
 0x855   : > { %15031 = vmatpush3.msra.mxu0 %v13757_v29  ;;  %15053 = vmatprep.subr.mxu1 %v19908_v38 }
 0x856   : > { %15032 = vmatprep.subr.mxu0 %v19908_v38  ;;  %15034 = vmatprep.mubr.msk.f32.mxu0 %vm16418_vm1, %v19908_v38 }
 0x857   : > { %15033 = vmatpush3.msra.mxu0 %v13756_v4  ;;  %15054 = vmatpush3.msra.mxu1 %v13762_v63 }
 0x858   : > { %15055 = vmatprep.mubr.msk.f32.mxu1 %vm16418_vm1, %v19908_v38  ;;  %15035 = vmatmul.mubr.msk.f32.vlgmr.msra.gmra.mxu0 %vm889_vm0, %v17622_v1 }
 0x859   : > { %15044 = vmatprep.subr.mxu0 %v19908_v38  ;;  %15056 = vmatmul.mubr.msk.f32.vlgmr.msra.gmra.mxu1 %vm889_vm0, %v17603_v53 }
 0x85a   : > { %15065 = vmatprep.subr.mxu1 %v19908_v38  ;;  %15045 = vmatpush3.msra.mxu0 %v13765_v56 }
 0x85b   : > { %15066 = vmatpush3.msra.mxu1 %v13771_v61  ;;  %15046 = vmatprep.subr.mxu0 %v19908_v38 }
 0x85c   : > { %15067 = vmatprep.subr.mxu1 %v19908_v38  ;;  %15047 = vmatpush3.msra.mxu0 %v13764_v21 }
 0x85d   : > { %15048 = vmatprep.mubr.msk.f32.mxu0 %vm16418_vm1, %v19908_v38  ;;  %15068 = vmatpush3.msra.mxu1 %v13770_v19  ;;  %v8233_v19 = vlaneseq }
 0x85e   : > { %15069 = vmatprep.mubr.msk.f32.mxu1 %vm16418_vm1, %v19908_v38  ;;  %15049 = vmatmul.mubr.msk.f32.vlgmr.msra.gmra.mxu0 %vm889_vm0, %v17622_v1 }
 0x85f   : > { %15058 = vmatprep.subr.mxu0 %v19908_v38  ;;  %15070 = vmatmul.mubr.msk.f32.vlgmr.msra.gmra.mxu1 %vm889_vm0, %v17603_v53 }
 0x860   : > { %15079 = vmatprep.subr.mxu1 %v19908_v38  ;;  %15059 = vmatpush3.msra.mxu0 %v13773_v14 }
 0x861   : > { %15080 = vmatpush3.msra.mxu1 %v13779_v10  ;;  %15060 = vmatprep.subr.mxu0 %v19908_v38 }
 0x862   : > { %15081 = vmatprep.subr.mxu1 %v19908_v38  ;;  %15061 = vmatpush3.msra.mxu0 %v13772_v13 }
 0x863   : > { %15062 = vmatprep.mubr.msk.f32.mxu0 %vm16418_vm1, %v19908_v38  ;;  %15082 = vmatpush3.msra.mxu1 %v13778_v15 }
 0x864   : > { %15083 = vmatprep.mubr.msk.f32.mxu1 %vm16418_vm1, %v19908_v38  ;;  %15063 = vmatmul.mubr.msk.f32.vlgmr.msra.gmra.mxu0 %vm889_vm0, %v17622_v1 }
 0x865   : > { %15072 = vmatprep.subr.mxu0 %v19908_v38  ;;  %15084 = vmatmul.mubr.msk.f32.vlgmr.msra.gmra.mxu1 %vm889_vm0, %v17603_v53 }
 0x866   : > { %15093 = vmatprep.subr.mxu1 %v19908_v38  ;;  %15073 = vmatpush3.msra.mxu0 %v13781_v52 }
 0x867   : > { %15094 = vmatpush3.msra.mxu1 %v13787_v6  ;;  %15074 = vmatprep.subr.mxu0 %v19908_v38  ;;  %v17905_v6 = vshrl.u32 %v8233_v19, 7 }
 0x868   : > { %15095 = vmatprep.subr.mxu1 %v19908_v38  ;;  %15075 = vmatpush3.msra.mxu0 %v13780_v39 }
 0x869   : > { %15076 = vmatprep.mubr.msk.f32.mxu0 %vm16418_vm1, %v19908_v38  ;;  %15096 = vmatpush3.msra.mxu1 %v13786_v11  ;;  %v13801_v11 = vld [vmem:[%s19765_s15 + $0x6] ss:$0 sm:$0xff] }
 0x86a   : > { %15097 = vmatprep.mubr.msk.f32.mxu1 %vm16418_vm1, %v19908_v38  ;;  %15077 = vmatmul.mubr.msk.f32.vlgmr.msra.gmra.mxu0 %vm889_vm0, %v17622_v1 }
 0x86b   : > { %15086 = vmatprep.subr.mxu0 %v19908_v38  ;;  %15098 = vmatmul.mubr.msk.f32.vlgmr.msra.gmra.mxu1 %vm889_vm0, %v17603_v53 }
 0x86c   : > { %15107 = vmatprep.subr.mxu1 %v19908_v38  ;;  %15087 = vmatpush3.msra.mxu0 %v13789_v50 }
 0x86d   : > { %15108 = vmatpush3.msra.mxu1 %v13795_v8  ;;  %15088 = vmatprep.subr.mxu0 %v19908_v38 }
 0x86e   : > { %15109 = vmatprep.subr.mxu1 %v19908_v38  ;;  %15089 = vmatpush3.msra.mxu0 %v13788_v57  ;;  %v17911_v57 = vsub.s32 1, %v17905_v6 }
 0x86f   : > { %15090 = vmatprep.mubr.msk.f32.mxu0 %vm16418_vm1, %v19908_v38  ;;  %15110 = vmatpush3.msra.mxu1 %v13794_v43  ;;  %v17914_v43 = vsub.s32 2, %v17905_v6 }
 0x870   : > { %15111 = vmatprep.mubr.msk.f32.mxu1 %vm16418_vm1, %v19908_v38  ;;  %15091 = vmatmul.mubr.msk.f32.vlgmr.msra.gmra.mxu0 %vm889_vm0, %v17622_v1  ;;  %19922 = vst [vmem:[#allocation12_spill] sm:$0xff] %v17911_v57  ;;  %v18290_v57 = vld [vmem:[%s19764_s14 + $0xd0] sm:$0xff] }
 0x871   : > { %15100 = vmatprep.subr.mxu0 %v19908_v38  ;;  %15112 = vmatmul.mubr.msk.f32.vlgmr.msra.gmra.mxu1 %vm889_vm0, %v17603_v53  ;;  %19923 = vst [vmem:[#allocation11_spill] sm:$0xff] %v17914_v43  ;;  %v18279_v43 = vld [vmem:[%s19764_s14 + $0xf8] sm:$0xff]  ;;  %19940 = vst [vmem:[#allocation31_spill] sm:$0xff] %v18290_v57 }
 0x872   : > { %15121 = vmatprep.subr.mxu1 %v19908_v38  ;;  %15101 = vmatpush3.msra.mxu0 %v13797_v35  ;;  %v17917_v35 = vsub.s32 3, %v17905_v6  ;;  %19939 = vst [vmem:[#allocation30_spill] sm:$0xff] %v18279_v43 }
 0x873   : > { %15122 = vmatpush3.msra.mxu1 %v13803_v26  ;;  %15102 = vmatprep.subr.mxu0 %v19908_v38 }
 0x874   : > { %15123 = vmatprep.subr.mxu1 %v19908_v38  ;;  %15103 = vmatpush3.msra.mxu0 %v13796_v9  ;;  %19924 = vst [vmem:[#allocation16_spill] sm:$0xff] %v17917_v35  ;;  %v18254_v35 = vld [vmem:[%s19764_s14 + $0x80] sm:$0xff] }
 0x875   : > { %15104 = vmatprep.mubr.msk.f32.mxu0 %vm16418_vm1, %v19908_v38  ;;  %15124 = vmatpush3.msra.mxu1 %v13802_v44  ;;  %19936 = vst [vmem:[#allocation27_spill] sm:$0xff] %v18254_v35 }
 0x876   : > { %15125 = vmatprep.mubr.msk.f32.mxu1 %vm16418_vm1, %v19908_v38  ;;  %15105 = vmatmul.mubr.msk.f32.vlgmr.msra.gmra.mxu0 %vm889_vm0, %v17622_v1 }
 0x877   : > { %15114 = vmatprep.subr.mxu0 %v19908_v38  ;;  %15126 = vmatmul.mubr.msk.f32.vlgmr.msra.gmra.mxu1 %vm889_vm0, %v17603_v53 }
 0x878   : > { %15135 = vmatprep.subr.mxu1 %v19908_v38  ;;  %15115 = vmatpush3.msra.mxu0 %v13805_v3  ;;  %v18240_v3 = vld [vmem:[%s19764_s14 + $0x88] sm:$0xff] }
 0x879   : > { %15136 = vmatpush3.msra.mxu1 %v13811_v36  ;;  %15116 = vmatprep.subr.mxu0 %v19908_v38  ;;  %v18215_v36 = vld [vmem:[%s19764_s14 + $0xb8] sm:$0xff]  ;;  %19934 = vst [vmem:[#allocation25_spill] sm:$0xff] %v18240_v3 }
 0x87a   : > { %15137 = vmatprep.subr.mxu1 %v19908_v38  ;;  %15117 = vmatpush3.msra.mxu0 %v13804_v20  ;;  %v18190_v20 = vld [vmem:[%s19763_s13 + $0xa0] sm:$0xff]  ;;  %19931 = vst [vmem:[#allocation22_spill] sm:$0xff] %v18215_v36 }
 0x87b   : > { %15118 = vmatprep.mubr.msk.f32.mxu0 %vm16418_vm1, %v19908_v38  ;;  %15138 = vmatpush3.msra.mxu1 %v13810_v0  ;;  %19928 = vst [vmem:[#allocation19_spill] sm:$0xff] %v18190_v20 }
 0x87c   : > { %15139 = vmatprep.mubr.msk.f32.mxu1 %vm16418_vm1, %v19908_v38  ;;  %15119 = vmatmul.mubr.msk.f32.vlgmr.msra.gmra.mxu0 %vm889_vm0, %v17622_v1 }
 0x87d   : > { %15128 = vmatprep.subr.mxu0 %v19908_v38  ;;  %15140 = vmatmul.mubr.msk.f32.vlgmr.msra.gmra.mxu1 %vm889_vm0, %v17603_v53  ;;  %v18274_v53 = vld [vmem:[%s19764_s14 + $0xd8] sm:$0xff] }
 0x87e   : > { %15129 = vmatpush3.msra.mxu0 %v13813_v7  ;;  %15147 = vmatprep.subr.mxu1 %v19908_v38  ;;  %v13809_v7 = vld [vmem:[%s19765_s15 + $0x7] ss:$0 sm:$0xff]  ;;  %19938 = vst [vmem:[#allocation29_spill] sm:$0xff] %v18274_v53 }
 0x87f   : > { %15130 = vmatprep.subr.mxu0 %v19908_v38  ;;  %15132 = vmatprep.mubr.msk.f32.mxu0 %vm16418_vm1, %v19908_v38 }
 0x880   : > { %15131 = vmatpush3.msra.mxu0 %v13812_v34  ;;  %15148 = vmatpush3.msra.mxu1 %v19908_v38 }
 0x881   : > { %15149 = vmatprep.mubr.msk.f32.mxu1 %vm16418_vm1, %v19908_v38  ;;  %15133 = vmatmul.mubr.msk.f32.vlgmr.msra.gmra.mxu0 %vm889_vm0, %v17622_v1  ;;  %v18245_v1 = vld [vmem:[%s19764_s14 + $0xa8] sm:$0xff] }
 0x882   : > { %15150 = vmatmul.mubr.msk.f32.vlgmr.msra.gmra.mxu1 %vm6957_vm2, %v7034_v12  ;;  %15142 = vmatprep.subr.mxu0 %v19908_v38  ;;  %19935 = vst [vmem:[#allocation26_spill] sm:$0xff] %v18245_v1 }
 0x883   : > { %15143 = vmatpush3.msra.mxu0 %v19908_v38  ;;  %15144 = vmatprep.mubr.msk.f32.mxu0 %vm16418_vm1, %v19908_v38 }
 0x884   : > { %15152 = vmatprep.subr.mxu0 %v19908_v38  ;;  %15163 = vmatprep.subr.mxu1 %v19908_v38 }
 0x885   : > { %15145 = vmatmul.mubr.msk.f32.vlgmr.msra.gmra.mxu0 %vm6957_vm2, %v6956_v32  ;;  %15171 = vmatprep.mubr.msk.f32.mxu1 %vm16418_vm1, %v19908_v38 }
 0x886   : > { %15160 = vmatprep.mubr.msk.f32.mxu0 %vm16418_vm1, %v19908_v38  ;;  %15153 = vmatpush3.msra.mxu0 %v17840_v46 }
 0x887   : > { %15164 = vmatpush3.msra.mxu1 %v17845_v17  ;;  %15154 = vmatprep.subr.mxu0 %v19908_v38 }
 0x888   : > { %15165 = vmatprep.subr.mxu1 %v19908_v38  ;;  %15155 = vmatpush3.msra.mxu0 %v17850_v49 }
 0x889   : > { %15166 = vmatpush3.msra.mxu1 %v17857_v54  ;;  %15156 = vmatprep.subr.mxu0 %v19908_v38 }
 0x88a   : > { %15167 = vmatprep.subr.mxu1 %v19908_v38  ;;  %15157 = vmatpush3.msra.mxu0 %v17868_v48 }
 0x88b   : > { %15168 = vmatpush3.msra.mxu1 %v17873_v22  ;;  %15158 = vmatprep.subr.mxu0 %v19908_v38 }
 0x88c   : > { %15169 = vmatprep.subr.mxu1 %v19908_v38  ;;  %15159 = vmatpush3.msra.mxu0 %v17880_v40 }
 0x88d   : > { %15170 = vmatpush3.msra.mxu1 %v17885_v18  ;;  %15174 = vmatprep.subr.mxu0 %v19908_v38 }
 0x88e   : > { %15185 = vmatprep.subr.mxu1 %v19908_v38 }
 0x90f   : > { %v5612_v24 = vpop.f32.mrf.mxu1 }
 0x911   : > { %v15029_v30 = vpop.f32.mrf.mxu1 }
 0x913   : > { %v5766_v58 = vpop.f32.mrf.mxu1 }
 0x914   : > { %v5538_v33 = vpop.f32.mrf.mxu0 }
 0x915   : > { %v17893_v47 = vadd.f32 %v5612_v24, %v5538_v33  ;;  %v15043_v51 = vpop.f32.mrf.mxu1  ;;  %v13817_v33 = vld [vmem:[%s19765_s15 + $0x8] ss:$0 sm:$0xff] }
 0x916   : > { %v15022_v2 = vpop.f32.mrf.mxu0  ;;  %v17938_v51 = vld [vmem:[%s19763_s13 + $0x58] sm:$0xff] }
 0x917   : > { %v17943_v2 = vld [vmem:[%s19764_s14 + $0x18] sm:$0xff] }
 0x918   : > { %v5696_v45 = vpop.f32.mrf.mxu0 }
 0x919   : > { %v17895_v5 = vadd.f32 %v5766_v58, %v5696_v45  ;;  %v5921_v59 = vpop.f32.mrf.mxu1  ;;  %v18231_v45 = vld [vmem:[%s19764_s14 + $0xb0] sm:$0xff] }
 0x91a   : > { %v15036_v23 = vpop.f32.mrf.mxu0  ;;  %19933 = vst [vmem:[#allocation24_spill] sm:$0xff] %v18231_v45 }
 0x91b   : > { %v15057_v62 = vpop.f32.mrf.mxu1  ;;  %v18181_v23 = vld [vmem:[%s19764_s14 + $0x68] sm:$0xff] }
 0x91c   : > { %19927 = vst [vmem:[#allocation18_spill] sm:$0xff] %v18181_v23 }
 0x91e   : > { %v5851_v16 = vpop.f32.mrf.mxu0 }
 0x91f   : > { %v17897_v55 = vadd.f32 %v5921_v59, %v5851_v16  ;;  %v6076_v41 = vpop.f32.mrf.mxu1  ;;  %v18210_v59 = vld [vmem:[%s19764_s14 + $0x98] sm:$0xff] }
 0x920   : > { %v15050_v25 = vpop.f32.mrf.mxu0  ;;  %19930 = vst [vmem:[#allocation21_spill] sm:$0xff] %v18210_v59 }
 0x921   : > { %v15071_v27 = vpop.f32.mrf.mxu1  ;;  %v17960_v25 = vld [vmem:[%s19763_s13 + $0x50] sm:$0xff] }
 0x922   : > { %v17965_v27 = vld [vmem:[%s19764_s14 + $0x10] sm:$0xff] }
 0x924   : > { %v6006_v37 = vpop.f32.mrf.mxu0 }
 0x925   : > { %v17899_v60 = vadd.f32 %v6076_v41, %v6006_v37  ;;  %v6231_v42 = vpop.f32.mrf.mxu1 }
 0x926   : > { %v15064_v28 = vpop.f32.mrf.mxu0 }
 0x927   : > { %v15085_v29 = vpop.f32.mrf.mxu1  ;;  %v17976_v28 = vld [vmem:[%s19763_s13 + $0x48] sm:$0xff] }
 0x928   : > { %v17981_v29 = vld [vmem:[%s19764_s14 + $0x8] sm:$0xff] }
 0x92a   : > { %v6161_v4 = vpop.f32.mrf.mxu0 }
 0x92b   : > { %v17901_v63 = vadd.f32 %v6231_v42, %v6161_v4  ;;  %v6386_v56 = vpop.f32.mrf.mxu1 }
 0x92c   : > { %v15078_v61 = vpop.f32.mrf.mxu0 }
 0x92d   : > { %v15099_v21 = vpop.f32.mrf.mxu1  ;;  %v18197_v61 = vld [vmem:[%s19764_s14 + $0x60] sm:$0xff] }
 0x92e   : > { %v17996_v21 = vld [vmem:[%s19763_s13 + $0x40] sm:$0xff]  ;;  %19929 = vst [vmem:[#allocation20_spill] sm:$0xff] %v18197_v61 }
 0x930   : > { %v6316_v14 = vpop.f32.mrf.mxu0 }
 0x931   : > { %v17903_v10 = vadd.f32 %v6386_v56, %v6316_v14  ;;  %v6541_v13 = vpop.f32.mrf.mxu1  ;;  %v18176_v14 = vld [vmem:[%s19763_s13 + $0xa8] sm:$0xff]  ;;  %v18226_v56 = vld [vmem:[%s19764_s14 + $0x90] sm:$0xff] }
 0x932   : > { %v15092_v15 = vpop.f32.mrf.mxu0  ;;  %19932 = vst [vmem:[#allocation23_spill] sm:$0xff] %v18226_v56 }
 0x933   : > { %v15113_v52 = vpop.f32.mrf.mxu1  ;;  %v18018_v15 = vld [vmem:[%s19764_s14 + $0x38] sm:$0xff] }
 0x934   : > { %v18023_v52 = vld [vmem:[%s19764_s14 + $0x58] sm:$0xff] }
 0x936   : > { %v6471_v39 = vpop.f32.mrf.mxu0 }
 0x937   : > { %v6542_v50 = vadd.f32 %v6541_v13, %v6471_v39  ;;  %v6696_v8 = vpop.f32.mrf.mxu1  ;;  %v18005_v13 = vld [vmem:[%s19764_s14] sm:$0xff]  ;;  %v18034_v39 = vld [vmem:[%s19764_s14 + $0x30] sm:$0xff] }
 0x938   : > { %v15106_v26 = vpop.f32.mrf.mxu0 }
 0x939   : > { %v17919_v9 = vadd.f32 %v13801_v11, %v6542_v50  ;;  %v15127_v44 = vpop.f32.mrf.mxu1  ;;  %v18039_v11 = vld [vmem:[%s19764_s14 + $0x50] sm:$0xff]  ;;  %v18048_v50 = vld [vmem:[%s19764_s14 + $0x28] sm:$0xff]  ;;  %v18062_v26 = vld [vmem:[%s19764_s14 + $0x20] sm:$0xff] }
 0x93a   : > { %v18069_v44 = vld [vmem:[%s19764_s14 + $0x40] sm:$0xff] }
 0x93b   : > { %19925 = vst [vmem:[#allocation13_spill] sm:$0xff] %v17919_v9 }
 0x93c   : > { %v6626_v0 = vpop.f32.mrf.mxu0 }
 0x93d   : > { %v6697_v34 = vadd.f32 %v6696_v8, %v6626_v0  ;;  %v6851_v12 = vpop.f32.mrf.mxu1  ;;  %v18053_v8 = vld [vmem:[%s19764_s14 + $0x48] sm:$0xff]  ;;  %v18082_v0 = vld [vmem:[%s19763_s13 + $0x78] sm:$0xff] }
 0x93e   : > { %v15120_v32 = vpop.f32.mrf.mxu0 }
 0x93f   : > { %v17930_v24 = vadd.f32 %v13809_v7, %v6697_v34  ;;  %v15141_v30 = vpop.f32.mrf.mxu1  ;;  %v18087_v7 = vld [vmem:[%s19763_s13 + $0x98] sm:$0xff]  ;;  %v18098_v34 = vld [vmem:[%s19763_s13 + $0x70] sm:$0xff]  ;;  %v18112_v32 = vld [vmem:[%s19763_s13 + $0x68] sm:$0xff] }
 0x940   : > { %v18117_v30 = vld [vmem:[%s19763_s13 + $0x88] sm:$0xff] }
 0x941   : > { %19926 = vst [vmem:[#allocation17_spill] sm:$0xff] %v17930_v24  ;;  %v6781_v58 = vpop.f32.mrf.mxu0 }
 0x942   : > { %v6852_v62 = vadd.f32 %v6851_v12, %v6781_v58  ;;  %v17951_v16 = vpop.f32.mrf.mxu1  ;;  %v18103_v12 = vld [vmem:[%s19763_s13 + $0x90] sm:$0xff]  ;;  %v18126_v58 = vld [vmem:[%s19763_s13 + $0x60] sm:$0xff] }
 0x943   : > { %15161 = vmatmul.mubr.msk.f32.vlgmr.msra.gmra.mxu0 %vm7108_vm3, %v17951_v16  ;;  %15172 = vmatmul.mubr.msk.f32.vlgmr.msra.gmra.mxu1 %vm7108_vm3, %v17951_v16  ;;  %v15134_v41 = vpop.f32.mrf.mxu0 }
 0x944   : > { %v17967_v37 = vadd.f32 %v13817_v33, %v6852_v62  ;;  %15175 = vmatpush3.msra.mxu0 %v17938_v51  ;;  %15186 = vmatpush3.msra.mxu1 %v17943_v2  ;;  %v15151_v42 = vpop.f32.mrf.mxu1  ;;  %v18133_v33 = vld [vmem:[%s19763_s13 + $0x80] sm:$0xff]  ;;  %v18146_v62 = vld [vmem:[%s19763_s13 + $0xb8] sm:$0xff] }
 0x945   : > { %15176 = vmatprep.subr.mxu0 %v19908_v38  ;;  %15187 = vmatprep.subr.mxu1 %v19908_v38  ;;  %v17983_v4 = vpop.f32.mrf.mxu0  ;;  %v18151_v41 = vld [vmem:[%s19764_s14 + $0x78] sm:$0xff]  ;;  %v18162_v42 = vld [vmem:[%s19763_s13 + $0xb0] sm:$0xff] }
 0x946   : > { %15177 = vmatpush3.msra.mxu0 %v17960_v25  ;;  %15188 = vmatpush3.msra.mxu1 %v17965_v27 }
 0x947   : > { %15178 = vmatprep.subr.mxu0 %v19908_v38  ;;  %15189 = vmatprep.subr.mxu1 %v19908_v38  ;;  %v15146_v19 = vpop.f32.mrf.mxu0 }
 0x948   : > { %15179 = vmatpush3.msra.mxu0 %v17976_v28  ;;  %15190 = vmatpush3.msra.mxu1 %v17981_v29  ;;  %v18167_v19 = vld [vmem:[%s19764_s14 + $0x70] sm:$0xff] }
 0x949   : > { %15180 = vmatprep.subr.mxu0 %v19908_v38  ;;  %15191 = vmatprep.subr.mxu1 %v19908_v38 }
 0x94a   : > { %15181 = vmatpush3.msra.mxu0 %v17996_v21  ;;  %15182 = vmatprep.mubr.msk.f32.mxu0 %vm16418_vm1, %v19908_v38 }
 0x94b   : > { %15192 = vmatpush3.msra.mxu1 %v18005_v13  ;;  %15193 = vmatprep.mubr.msk.f32.mxu1 %vm16418_vm1, %v19908_v38 }
 0x94c   : > { %15183 = vmatmul.mubr.msk.f32.vlgmr.msra.gmra.mxu0 %vm7108_vm3, %v17951_v16  ;;  %15194 = vmatmul.mubr.msk.f32.vlgmr.msra.gmra.mxu1 %vm7108_vm3, %v17983_v4 }
 0x94d   : > { %15196 = vmatprep.subr.mxu0 %v19908_v38  ;;  %15207 = vmatprep.subr.mxu1 %v19908_v38 }
 0x94e   : > { %15197 = vmatpush3.msra.mxu0 %v18018_v15  ;;  %15208 = vmatpush3.msra.mxu1 %v18023_v52 }
 0x94f   : > { %15198 = vmatprep.subr.mxu0 %v19908_v38  ;;  %15209 = vmatprep.subr.mxu1 %v19908_v38 }
 0x950   : > { %15199 = vmatpush3.msra.mxu0 %v18034_v39  ;;  %15210 = vmatpush3.msra.mxu1 %v18039_v11 }
 0x951   : > { %15200 = vmatprep.subr.mxu0 %v19908_v38  ;;  %15211 = vmatprep.subr.mxu1 %v19908_v38 }
 0x952   : > { %15201 = vmatpush3.msra.mxu0 %v18048_v50  ;;  %15212 = vmatpush3.msra.mxu1 %v18053_v8 }
 0x953   : > { %15202 = vmatprep.subr.mxu0 %v19908_v38  ;;  %15213 = vmatprep.subr.mxu1 %v19908_v38 }
 0x954   : > { %15203 = vmatpush3.msra.mxu0 %v18062_v26  ;;  %15204 = vmatprep.mubr.msk.f32.mxu0 %vm16418_vm1, %v19908_v38 }
 0x955   : > { %15214 = vmatpush3.msra.mxu1 %v18069_v44  ;;  %15215 = vmatprep.mubr.msk.f32.mxu1 %vm16418_vm1, %v19908_v38 }
 0x956   : > { %15205 = vmatmul.mubr.msk.f32.vlgmr.msra.gmra.mxu0 %vm7108_vm3, %v17983_v4  ;;  %15216 = vmatmul.mubr.msk.f32.vlgmr.msra.gmra.mxu1 %vm7108_vm3, %v17983_v4 }
 0x957   : > { %15218 = vmatprep.subr.mxu0 %v19908_v38  ;;  %15229 = vmatprep.subr.mxu1 %v19908_v38 }
 0x958   : > { %15219 = vmatpush3.msra.mxu0 %v18082_v0  ;;  %15230 = vmatpush3.msra.mxu1 %v18087_v7 }
 0x959   : > { %15220 = vmatprep.subr.mxu0 %v19908_v38  ;;  %15231 = vmatprep.subr.mxu1 %v19908_v38 }
 0x95a   : > { %15221 = vmatpush3.msra.mxu0 %v18098_v34  ;;  %15232 = vmatpush3.msra.mxu1 %v18103_v12 }
 0x95b   : > { %15222 = vmatprep.subr.mxu0 %v19908_v38  ;;  %15233 = vmatprep.subr.mxu1 %v19908_v38 }
 0x95c   : > { %15223 = vmatpush3.msra.mxu0 %v18112_v32  ;;  %15234 = vmatpush3.msra.mxu1 %v18117_v30 }
 0x95d   : > { %15224 = vmatprep.subr.mxu0 %v19908_v38  ;;  %15235 = vmatprep.subr.mxu1 %v19908_v38 }
 0x95e   : > { %15225 = vmatpush3.msra.mxu0 %v18126_v58  ;;  %15226 = vmatprep.mubr.msk.f32.mxu0 %vm16418_vm1, %v19908_v38 }
 0x95f   : > { %15236 = vmatpush3.msra.mxu1 %v18133_v33  ;;  %15237 = vmatprep.mubr.msk.f32.mxu1 %vm16418_vm1, %v19908_v38 }
 0x960   : > { %15227 = vmatmul.mubr.msk.f32.vlgmr.msra.gmra.mxu0 %vm7108_vm3, %v17983_v4  ;;  %15238 = vmatmul.mubr.msk.f32.vlgmr.msra.gmra.mxu1 %vm7108_vm3, %v17983_v4 }
 0x961   : > { %15240 = vmatprep.subr.mxu0 %v19908_v38  ;;  %15251 = vmatprep.subr.mxu1 %v19908_v38 }
 0x962   : > { %15241 = vmatpush3.msra.mxu0 %v18146_v62  ;;  %15252 = vmatpush3.msra.mxu1 %v18151_v41 }
 0x963   : > { %15242 = vmatprep.subr.mxu0 %v19908_v38  ;;  %15253 = vmatprep.subr.mxu1 %v19908_v38 }
 0x964   : > { %15243 = vmatpush3.msra.mxu0 %v18162_v42  ;;  %15254 = vmatpush3.msra.mxu1 %v18167_v19 }
 0x965   : > { %15244 = vmatprep.subr.mxu0 %v19908_v38  ;;  %15255 = vmatprep.subr.mxu1 %v19908_v38 }
 0x966   : > { %15245 = vmatpush3.msra.mxu0 %v18176_v14  ;;  %15256 = vmatpush3.msra.mxu1 %v18181_v23 }
 0x967   : > { %15246 = vmatprep.subr.mxu0 %v19908_v38  ;;  %15257 = vmatprep.subr.mxu1 %v19908_v38 }
 0x968   : > { %15247 = vmatpush3.msra.mxu0 %v18190_v20  ;;  %15248 = vmatprep.mubr.msk.f32.mxu0 %vm16418_vm1, %v19908_v38 }
 0x969   : > { %15258 = vmatpush3.msra.mxu1 %v18197_v61  ;;  %15259 = vmatprep.mubr.msk.f32.mxu1 %vm16418_vm1, %v19908_v38 }
 0x96a   : > { %15249 = vmatmul.mubr.msk.f32.vlgmr.msra.gmra.mxu0 %vm7108_vm3, %v17983_v4  ;;  %15260 = vmatmul.mubr.msk.f32.vlgmr.msra.gmra.mxu1 %vm7108_vm3, %v17951_v16 }
 0x96b   : > { %15262 = vmatprep.subr.mxu0 %v19908_v38  ;;  %15273 = vmatprep.subr.mxu1 %v19908_v38 }
 0x96c   : > { %15263 = vmatpush3.msra.mxu0 %v18210_v59  ;;  %15274 = vmatpush3.msra.mxu1 %v18215_v36  ;;  %v13761_v36 = vld [vmem:[%s19765_s15 + $0x1] ss:$0 sm:$0xff] }
 0x96d   : > { %15264 = vmatprep.subr.mxu0 %v19908_v38  ;;  %15275 = vmatprep.subr.mxu1 %v19908_v38 }
 0x96e   : > { %15265 = vmatpush3.msra.mxu0 %v18226_v56  ;;  %15276 = vmatpush3.msra.mxu1 %v18231_v45 }
 0x96f   : > { %15266 = vmatprep.subr.mxu0 %v19908_v38  ;;  %15277 = vmatprep.subr.mxu1 %v19908_v38 }
 0x970   : > { %15267 = vmatpush3.msra.mxu0 %v18240_v3  ;;  %15278 = vmatpush3.msra.mxu1 %v18245_v1  ;;  %v18309_v1 = vld [vmem:[%s19764_s14 + $0xe8] sm:$0xff] }
 0x971   : > { %15268 = vmatprep.subr.mxu0 %v19908_v38  ;;  %15279 = vmatprep.subr.mxu1 %v19908_v38  ;;  %19943 = vst [vmem:[#allocation34_spill] sm:$0xff] %v18309_v1 }
 0x972   : > { %15269 = vmatpush3.msra.mxu0 %v18254_v35  ;;  %15270 = vmatprep.mubr.msk.f32.mxu0 %vm16418_vm1, %v19908_v38  ;;  %v18304_v35 = vld [vmem:[%s19764_s14 + $0xc8] sm:$0xff] }
 0x973   : > { %15280 = vmatpush3.msra.mxu1 %v18261_v31  ;;  %15281 = vmatprep.mubr.msk.f32.mxu1 %vm16418_vm1, %v19908_v38  ;;  %v18295_v31 = vld [vmem:[%s19764_s14 + $0xf0] sm:$0xff]  ;;  %19942 = vst [vmem:[#allocation33_spill] sm:$0xff] %v18304_v35 }
 0x974   : > { %15271 = vmatmul.mubr.msk.f32.vlgmr.msra.gmra.mxu0 %vm7108_vm3, %v17951_v16  ;;  %15282 = vmatmul.mubr.msk.f32.vlgmr.msra.gmra.mxu1 %vm7108_vm3, %v17951_v16  ;;  %19941 = vst [vmem:[#allocation32_spill] sm:$0xff] %v18295_v31 }
 0x975   : > { %15284 = vmatprep.subr.mxu0 %v19908_v38  ;;  %15295 = vmatprep.subr.mxu1 %v19908_v38 }
 0x976   : > { %15285 = vmatpush3.msra.mxu0 %v18274_v53  ;;  %15296 = vmatpush3.msra.mxu1 %v18279_v43  ;;  %v18318_v43 = vld [vmem:[%s19764_s14 + $0xc0] sm:$0xff] }
 0x977   : > { %15286 = vmatprep.subr.mxu0 %v19908_v38  ;;  %15297 = vmatprep.subr.mxu1 %v19908_v38  ;;  %19944 = vst [vmem:[#allocation35_spill] sm:$0xff] %v18318_v43  ;;  %v18325_v53 = vld [vmem:[%s19764_s14 + $0xe0] sm:$0xff] }
 0x978   : > { %15287 = vmatpush3.msra.mxu0 %v18290_v57  ;;  %15298 = vmatpush3.msra.mxu1 %v18295_v31  ;;  %19945 = vst [vmem:[#allocation36_spill] sm:$0xff] %v18325_v53 }
 0x979   : > { %15288 = vmatprep.subr.mxu0 %v19908_v38  ;;  %15299 = vmatprep.subr.mxu1 %v19908_v38 }
 0x97a   : > { %15289 = vmatpush3.msra.mxu0 %v18304_v35  ;;  %15300 = vmatpush3.msra.mxu1 %v18309_v1  ;;  %v18338_v1 = vld [vmem:[%s19764_s14 + $0x118] sm:$0xff]  ;;  %v13753_v35 = vld [vmem:[%s19765_s15] ss:$0 sm:$0xff] }
 0x97b   : > { %15290 = vmatprep.subr.mxu0 %v19908_v38  ;;  %15301 = vmatprep.subr.mxu1 %v19908_v38  ;;  %19946 = vst [vmem:[#allocation37_spill] sm:$0xff] %v18338_v1 }
 0x97c   : > { %15291 = vmatpush3.msra.mxu0 %v18318_v43  ;;  %15292 = vmatprep.mubr.msk.f32.mxu0 %vm16418_vm1, %v19908_v38  ;;  %v18346_v43 = vld [vmem:[%s19764_s14 + $0x110] sm:$0xff] }
 0x97d   : > { %15302 = vmatpush3.msra.mxu1 %v18325_v53  ;;  %15303 = vmatprep.mubr.msk.f32.mxu1 %vm16418_vm1, %v19908_v38  ;;  %19947 = vst [vmem:[#allocation38_spill] sm:$0xff] %v18346_v43  ;;  %v18356_v53 = vld [vmem:[%s19764_s14 + $0x108] sm:$0xff] }
 0x97e   : > { %15293 = vmatmul.mubr.f32.vlgmr.msra.gmra.mxu0 %v19908_v38  ;;  %15304 = vmatmul.mubr.f32.vlgmr.msra.gmra.mxu1 %v19908_v38  ;;  %19948 = vst [vmem:[#allocation39_spill] sm:$0xff] %v18356_v53 }
 0x97f   : > { %15306 = vmatprep.subr.mxu0 %v19908_v38  ;;  %15314 = vmatprep.mubr.msk.f32.mxu0 %vm16418_vm1, %v19908_v38 }
 0x980   : > { %15307 = vmatpush3.msra.mxu0 %v18338_v1  ;;  %15317 = vmatprep.subr.mxu1 %v19908_v38  ;;  %v18365_v1 = vld [vmem:[%s19764_s14 + $0x100] sm:$0xff] }
 0x981   : > { %15308 = vmatprep.subr.mxu0 %v19908_v38  ;;  %15319 = vmatprep.mubr.msk.f32.mxu1 %vm16418_vm1, %v19908_v38  ;;  %19949 = vst [vmem:[#allocation40_spill] sm:$0xff] %v18365_v1 }
 0x982   : > { %15309 = vmatpush3.msra.mxu0 %v18346_v43 }
 0x983   : > { %15310 = vmatprep.subr.mxu0 %v19908_v38 }
 0x984   : > { %15311 = vmatpush3.msra.mxu0 %v18356_v53 }
 0x985   : > { %15312 = vmatprep.subr.mxu0 %v19908_v38 }
 0x986   : > { %15313 = vmatpush3.msra.mxu0 %v18365_v1 }
 0x987   : > { %15315 = vmatmul.mubr.f32.vlgmr.msra.gmra.mxu0 %v19908_v38  ;;  %15327 = vmatprep.subr.mxu0 %v19908_v38 }
 0x988   : > { %15328 = vmatpush3.msra.mxu0 %v17840_v46  ;;  %15335 = vmatprep.mubr.msk.f32.mxu0 %vm16418_vm1, %v19908_v38 }
 0x989   : > { %15329 = vmatprep.subr.mxu0 %v19908_v38 }
 0x98a   : > { %15330 = vmatpush3.msra.mxu0 %v17850_v49  ;;  %v18388_v49 = vld [vmem:[%s19766_s16] sm:$0x1] }
 0x98b   : > { %15331 = vmatprep.subr.mxu0 %v19908_v38  ;;  %19950 = vst [vmem:[#allocation41_spill] sm:$0xff] %v18388_v49 }
 0x98c   : > { %15332 = vmatpush3.msra.mxu0 %v17868_v48  ;;  %v18391_v48 = vadd.f32 %v13753_v35, %v17893_v47  ;;  %v18401_v47 = vld [vmem:[%s19766_s16 + $0x1] sm:$0x1]  ;;  %v18404_v35 = vadd.f32 %v13761_v36, %v17895_v5  ;;  %v13777_v5 = vld [vmem:[%s19765_s15 + $0x3] ss:$0 sm:$0xff] }
 0x98d   : > { %15333 = vmatprep.subr.mxu0 %v19908_v38  ;;  %v18417_v36 = vadd.f32 %v13777_v5, %v17899_v60 }
 0x98e   : > { %15334 = vmatpush3.msra.mxu0 %v17880_v40  ;;  %19951 = vst [vmem:[#allocation42_spill] sm:$0xff] %v18391_v48  ;;  %19952 = vst [vmem:[#allocation43_spill] sm:$0xff] %v18404_v35 }
 0x98f   : > { %15349 = vmatprep.subr.mxu0 %v19908_v38  ;;  %19954 = vst [vmem:[#allocation45_spill] sm:$0xff] %v18417_v36 }
 0xa03   : > { %v7178_v1 = vpop.f32.mrf.mxu0  ;;  %v7249_v53 = vpop.f32.mrf.mxu1 }
 0xa04   : > { %v7182_v57 = vadd.f32 %v7178_v1, %v18391_v48 }
 0xa05   : > { %v15162_v46 = vpop.f32.mrf.mxu0  ;;  %v15173_v43 = vpop.f32.mrf.mxu1 }
 0xa0c   : > { %v7320_v31 = vpop.f32.mrf.mxu0  ;;  %v7394_v40 = vpop.f32.mrf.mxu1 }
 0xa0d   : > { %v7395_v3 = vadd.f32 %v7394_v40, %v18388_v49  ;;  %v7253_v40 = vadd.f32 %v7249_v53, %v18404_v35  ;;  %v18414_v53 = vld [vmem:[%s19766_s16 + $0x3] sm:$0x1]  ;;  %v13785_v35 = vld [vmem:[%s19765_s15 + $0x4] ss:$0 sm:$0xff] }
 0xa0e   : > { %v15184_v46 = vpop.f32.mrf.mxu0  ;;  %v15195_v43 = vpop.f32.mrf.mxu1  ;;  %19953 = vst [vmem:[#allocation44_spill] sm:$0xff] %v18414_v53 }
 0xa0f   : > { %v7538_v45 = vadd.f32 %v7395_v3, %v7182_v57 }
 0xa11   : > { %v13886_v56 = vmul.f32 -1.442695, %v7538_v45 }
 0xa13   : > { %16139 = vpow2.f32 %v13886_v56 }
 0xa16   : > { %v7464_v1 = vpop.f32.mrf.mxu0  ;;  %v7534_v48 = vpop.f32.mrf.mxu1 }
 0xa17   : > { %v7465_v57 = vadd.f32 %v18401_v47, %v7464_v1 }
 0xa18   : > { %v15206_v3 = vpop.f32.mrf.mxu0  ;;  %v15217_v45 = vpop.f32.mrf.mxu1 }
 0xa19   : > { %v7545_v46 = vadd.f32 %v7465_v57, %v7253_v40  ;;  %v18429_v45 = vld [vmem:[%s19766_s16 + $0x2] sm:$0x1] }
 0xa1b   : > { %v13887_v43 = vmul.f32 -1.442695, %v7545_v46 }
 0xa1d   : > { %16141 = vpow2.f32 %v13887_v43 }
 0xa20   : > { %v16140_v56 = vpop.eup %16139  ;;  %v7625_v49 = vpop.f32.mrf.mxu0 }
 0xa21   : > { %v7696_v59 = vpop.f32.mrf.mxu1  ;;  %v7542_v61 = vadd.f32 1.0, %v16140_v56 }
 0xa22   : > { %v15228_v20 = vpop.f32.mrf.mxu0 }
 0xa23   : > { %v15239_v23 = vpop.f32.mrf.mxu1  ;;  %16143 = vrcp.f32 %v7542_v61  ;;  %v7629_v20 = vadd.f32 %v7625_v49, %v18417_v36  ;;  %v13769_v61 = vld [vmem:[%s19765_s15 + $0x2] ss:$0 sm:$0xff]  ;;  %v7535_v49 = vadd.f32 %v18429_v45, %v7534_v48 }
 0xa24   : > { %v18432_v56 = vadd.f32 %v13769_v61, %v17897_v55 }
 0xa26   : > { %19955 = vst [vmem:[#allocation46_spill] sm:$0xff] %v18432_v56  ;;  %v7324_v36 = vadd.f32 %v7320_v31, %v18432_v56 }
 0xa2a   : > { %v16142_v1 = vpop.eup %16141  ;;  %v18419_v40 = vpop.f32.mrf.mxu0 }
 0xa2b   : > { %v7838_v57 = vpop.f32.mrf.mxu1  ;;  %v7549_v3 = vadd.f32 1.0, %v16142_v1 }
 0xa2c   : > { %v7839_v23 = vadd.f32 %v18414_v53, %v7838_v57  ;;  %v15250_v60 = vpop.f32.mrf.mxu0 }
 0xa2d   : > { %v15261_v46 = vpop.f32.mrf.mxu1  ;;  %16145 = vrcp.f32 %v7549_v3  ;;  %v18445_v3 = vadd.f32 %v13785_v35, %v17901_v63  ;;  %v18450_v60 = vsub.s32 0, %v17905_v6  ;;  %v18463_v6 = vld [vmem:[%s19766_s16 + $0x7] ss:$0 sm:$0xff] }
 0xa2e   : > { %v7982_v43 = vadd.f32 %v7839_v23, %v7629_v20  ;;  %v18442_v20 = vld [vmem:[%s19766_s16 + $0x4] sm:$0x1]  ;;  %v18455_v46 = vld [vmem:[%s19766_s16 + $0x6] ss:$0 sm:$0xff] }
 0xa2f   : > { %19956 = vst [vmem:[#allocation47_spill] sm:$0xff] %v18442_v20  ;;  %19957 = vst [vmem:[#allocation48_spill] sm:$0xff] %v18445_v3 }
 0xa30   : > { %v13894_v5 = vmul.f32 -1.442695, %v7982_v43  ;;  %v16144_v57 = vpop.eup %16143  ;;  %19958 = vst [vmem:[#allocation49_spill] sm:$0xff] %v18450_v60  ;;  %19959 = vst [vmem:[#allocation50_spill] sm:$0xff] %v18455_v46 }
 0xa31   : > { %v7552_v53 = vmul.f32 %v16144_v57, %v7535_v49 }
 0xa32   : > { %16147 = vpow2.f32 %v13894_v5 }
 0xa33   : > { %v7553_v1 = vadd.f32 %v7552_v53, %v7324_v36  ;;  %v7700_v53 = vadd.f32 %v7696_v59, %v18445_v3  ;;  %v8236_v59 = vrot.slane %v17919_v9, %v18450_v60  ;;  %v8247_v9 = vrot.slane %v17930_v24, %v18450_v60 }
 0xa34   : > { %v7908_v55 = vpop.f32.mrf.mxu0  ;;  %v7978_v23 = vpop.f32.mrf.mxu1 }
 0xa35   : > { %16149 = vtanh.f32 %v7553_v1  ;;  %v7909_v31 = vadd.f32 %v18442_v20, %v7908_v55 }
 0xa36   : > { %v15272_v48 = vpop.f32.mrf.mxu0  ;;  %v15283_v61 = vpop.f32.mrf.mxu1 }
 0xa37   : > { %v7989_v36 = vadd.f32 %v7909_v31, %v7700_v53 }
 0xa39   : > { %v13895_v63 = vmul.f32 -1.442695, %v7989_v36 }
 0xa3a   : > { %v16146_v43 = vpop.eup %16145 }
 0xa3b   : > { %v7555_v61 = vsub.f32 1.0, %v16146_v43  ;;  %v7557_v3 = vmul.f32 %v16146_v43, %v17983_v4  ;;  %v13793_v43 = vld [vmem:[%s19765_s15 + $0x5] ss:$0 sm:$0xff] }
 0xa3e   : > { %v8077_v5 = vpop.f32.mrf.mxu0  ;;  %v8153_v57 = vpop.f32.mrf.mxu1 }
 0xa3f   : > { %v16148_v49 = vpop.eup %16147  ;;  %v8078_v35 = vadd.f32 %v18455_v46, %v8077_v5  ;;  %v8154_v5 = vadd.f32 %v18463_v6, %v8153_v57 }
 0xa40   : > { %v7986_v1 = vadd.f32 1.0, %v16148_v49  ;;  %v15294_v55 = vpop.f32.mrf.mxu0  ;;  %v15305_v48 = vpop.f32.mrf.mxu1 }
 0xa41   : > { %v8237_v31 = vadd.f32 %v8236_v59, %v8078_v35  ;;  %v8248_v20 = vadd.f32 %v8247_v9, %v8154_v5 }
 0xa42   : > { %16151 = vrcp.f32 %v7986_v1  ;;  %v16150_v53 = vpop.eup %16149  ;;  %v18472_v1 = vld [vmem:[%s19766_s16 + $0x5] sm:$0x1] }
 0xa43   : > { %v7556_v49 = vmul.f32 %v16150_v53, %v7555_v61  ;;  %16153 = vpow2.f32 %v13895_v63  ;;  %v13899_v36 = vmul.f32 -1.442695, %v8237_v31  ;;  %v13900_v48 = vmul.f32 -1.442695, %v8248_v20 }
 0xa44   : > { %v18479_v63 = vadd.f32 %v13793_v43, %v17903_v10 }
 0xa45   : > { %v7558_v46 = vadd.f32 %v7557_v3, %v7556_v49  ;;  %16155 = vpow2.f32 %v13899_v36  ;;  %v7979_v3 = vadd.f32 %v18472_v1, %v7978_v23  ;;  %v18486_v23 = vld [vmem:[%s19766_s16 + $0x8] ss:$0 sm:$0xff] }
 0xa46   : > { %16157 = vpow2.f32 %v13900_v48  ;;  %19960 = vst [vmem:[#allocation51_spill] sm:$0xff] %v18479_v63  ;;  %v7771_v20 = vadd.f32 %v18419_v40, %v18479_v63  ;;  %v8259_v40 = vrot.slane %v17967_v37, %v18450_v60 }
 0xa47   : > { %v8229_v56 = vpop.f32.mrf.mxu0 }
 0xa48   : > { %v8230_v10 = vadd.f32 %v18486_v23, %v8229_v56  ;;  %v8269_v56 = vpop.permute.xlu0 %8268 }
 0xa49   : > { %v15316_v55 = vpop.f32.mrf.mxu0 }
 0xa4f   : > { %v16152_v4 = vpop.eup %16151 }
 0xa50   : > { %v16154_v57 = vpop.eup %16153  ;;  %v7996_v9 = vmul.f32 %v16152_v4, %v7979_v3 }
 0xa51   : > { %v7993_v59 = vadd.f32 1.0, %v16154_v57 }
 0xa52   : > { %v16156_v35 = vpop.eup %16155  ;;  %v7997_v31 = vadd.f32 %v7996_v9, %v7771_v20 }
 0xa53   : > { %v8241_v61 = vadd.f32 1.0, %v16156_v35  ;;  %v16158_v53 = vpop.eup %16157 }
 0xa54   : > { %v8252_v49 = vadd.f32 1.0, %v16158_v53  ;;  %v8279_v53 = vpop.permute.xlu1 %8278 }
 0xa55   : > { %16159 = vrcp.f32 %v8241_v61  ;;  %v8274_v61 = vrot.slane %v7558_v46, %v18450_v60  ;;  %v13906_v46 = vld [vmem:[%s17800_s25 + $0x1] sm:$0x1] }
 0xa56   : > { %16161 = vrcp.f32 %v7993_v59 }
 0xa57   : > { %16163 = vtanh.f32 %v7997_v31 }
 0xa58   : > { %16165 = vrcp.f32 %v8252_v49 }
 0xa62   : > { %v16160_v36 = vpop.eup %16159 }
 0xa63   : > { %v8255_v5 = vmul.f32 %v16160_v36, %v8230_v10  ;;  %v16162_v55 = vpop.eup %16161 }
 0xa64   : > { %v16164_v4 = vpop.eup %16163  ;;  %v7999_v43 = vsub.f32 1.0, %v16162_v55  ;;  %v8001_v57 = vmul.f32 %v16162_v55, %v17951_v16 }
 0xa65   : > { %v8260_v48 = vadd.f32 %v8259_v40, %v8255_v5  ;;  %v16166_v35 = vpop.eup %16165  ;;  %v8275_v40 = vmul.f32 %v8274_v61, %v8269_v56  ;;  %v19984_v56 = vld [vmem:[#allocation41_spill] sm:$0xff] }
 0xa66   : > { %v8000_v3 = vmul.f32 %v16164_v4, %v7999_v43  ;;  %v8262_v59 = vsub.f32 1.0, %v16166_v35  ;;  %v8264_v49 = vmul.f32 0.0, %v16166_v35  ;;  %v13903_v43 = vld [vmem:[%s17817_s29 + $0x1] sm:$0x1] }
 0xa67   : > { %16167 = vtanh.f32 %v8260_v48  ;;  %v8292_v48 = vpop.permute.xlu0 %8291 }
 0xa68   : > { %v8002_v9 = vadd.f32 %v8001_v57, %v8000_v3 }
 0xa6a   : > { %v8284_v20 = vrot.slane %v8002_v9, %v18450_v60  ;;  %v19135_v60 = vld [vmem:[%s19764_s14 + $0xd0] sm:$0xff] }
 0xa6c   : > { %v8285_v36 = vmul.f32 %v8284_v20, %v8279_v53  ;;  %v19985_v53 = vld [vmem:[#allocation42_spill] sm:$0xff] }
 0xa6e   : > { %v8286_v4 = vadd.f32 %v8285_v36, %v8275_v40 }
 0xa74   : > { %v16168_v31 = vpop.eup %16167 }
 0xa75   : > { %v8263_v10 = vmul.f32 %v16168_v31, %v8262_v59 }
 0xa77   : > { %v8265_v5 = vadd.f32 %v8264_v49, %v8263_v10 }
 0xa79   : > { %v8294_v16 = vmul.f32 %v8292_v48, %v8265_v5 }
 0xa7b   : > { %v18494_v55 = vadd.f32 %v8294_v16, %v8286_v4 }
 0xa7d   : > { %15318 = vmatpush3.msk.msra.mxu1 %vm6961_vm4, %v18494_v55 }
 0xa7e   : > { %15320 = vmatmul.mubr.msk.f32.vlgmr.msra.gmra.mxu1 %vm6957_vm2, %v13903_v43  ;;  %15322 = vmatprep.subr.mxu1 %v19908_v38 }
 0xa7f   : > { %15323 = vmatpush3.msk.msra.mxu1 %vm6961_vm4, %v18494_v55  ;;  %15324 = vmatprep.mubr.msk.f32.mxu1 %vm16418_vm1, %v19908_v38 }
 0xa80   : > { %15338 = vmatprep.subr.mxu1 %v19908_v38 }
 0xa82   : > { %15325 = vmatmul.mubr.msk.f32.vlgmr.msra.gmra.mxu1 %vm6957_vm2, %v13906_v46 }
 0xa83   : > { %15339 = vmatpush3.msra.mxu1 %v17845_v17  ;;  %15346 = vmatprep.mubr.msk.f32.mxu1 %vm16418_vm1, %v19908_v38 }
 0xa84   : > { %15340 = vmatprep.subr.mxu1 %v19908_v38 }
 0xa85   : > { %15341 = vmatpush3.msra.mxu1 %v17857_v54 }
 0xa86   : > { %15342 = vmatprep.subr.mxu1 %v19908_v38 }
 0xa87   : > { %15343 = vmatpush3.msra.mxu1 %v17873_v22  ;;  %v19961_v22 = vld [vmem:[#allocation18_spill] sm:$0xff] }
 0xa88   : > { %15344 = vmatprep.subr.mxu1 %v19908_v38 }
 0xa89   : > { %15345 = vmatpush3.msra.mxu1 %v17885_v18  ;;  %v19962_v18 = vld [vmem:[#allocation19_spill] sm:$0xff] }
 0xa8a   : > { %15360 = vmatprep.subr.mxu1 %v19908_v38 }
 0xb3e   : > { %v18518_v3 = vpop.f32.mrf.mxu1 }
 0xb40   : > { %v15321_v17 = vpop.f32.mrf.mxu1 }
 0xb41   : > { %v19986_v17 = vld [vmem:[#allocation43_spill] sm:$0xff] }
 0xb42   : > { %v18520_v57 = vpop.f32.mrf.mxu1 }
 0xb43   : > { %15336 = vmatmul.mubr.msk.f32.vlgmr.msra.gmra.mxu0 %vm7108_vm3, %v18520_v57  ;;  %15347 = vmatmul.mubr.msk.f32.vlgmr.msra.gmra.mxu1 %vm7108_vm3, %v18520_v57 }
 0xb44   : > { %15350 = vmatpush3.msra.mxu0 %v17938_v51  ;;  %15361 = vmatpush3.msra.mxu1 %v17943_v2  ;;  %v15326_v54 = vpop.f32.mrf.mxu1  ;;  %v19963_v51 = vld [vmem:[#allocation20_spill] sm:$0xff]  ;;  %v19964_v2 = vld [vmem:[#allocation21_spill] sm:$0xff] }
 0xb45   : > { %15351 = vmatprep.subr.mxu0 %v19908_v38  ;;  %15362 = vmatprep.subr.mxu1 %v19908_v38 }
 0xb46   : > { %15352 = vmatpush3.msra.mxu0 %v17960_v25  ;;  %15363 = vmatpush3.msra.mxu1 %v17965_v27  ;;  %v19965_v25 = vld [vmem:[#allocation22_spill] sm:$0xff]  ;;  %v19966_v27 = vld [vmem:[#allocation23_spill] sm:$0xff] }
 0xb47   : > { %15353 = vmatprep.subr.mxu0 %v19908_v38  ;;  %15364 = vmatprep.subr.mxu1 %v19908_v38 }
 0xb48   : > { %15354 = vmatpush3.msra.mxu0 %v17976_v28  ;;  %15365 = vmatpush3.msra.mxu1 %v17981_v29  ;;  %v19967_v28 = vld [vmem:[#allocation24_spill] sm:$0xff]  ;;  %v19968_v29 = vld [vmem:[#allocation25_spill] sm:$0xff] }
 0xb49   : > { %15355 = vmatprep.subr.mxu0 %v19908_v38  ;;  %15366 = vmatprep.subr.mxu1 %v19908_v38 }
 0xb4a   : > { %15356 = vmatpush3.msra.mxu0 %v17996_v21  ;;  %15357 = vmatprep.mubr.msk.f32.mxu0 %vm16418_vm1, %v19908_v38  ;;  %v19969_v21 = vld [vmem:[#allocation26_spill] sm:$0xff] }
 0xb4b   : > { %15367 = vmatpush3.msra.mxu1 %v18005_v13  ;;  %15368 = vmatprep.mubr.msk.f32.mxu1 %vm16418_vm1, %v19908_v38  ;;  %v19971_v13 = vld [vmem:[#allocation28_spill] sm:$0xff] }
 0xb4c   : > { %15358 = vmatmul.mubr.msk.f32.vlgmr.msra.gmra.mxu0 %vm7108_vm3, %v18520_v57  ;;  %15369 = vmatmul.mubr.msk.f32.vlgmr.msra.gmra.mxu1 %vm7108_vm3, %v18518_v3 }
 0xb4d   : > { %15371 = vmatprep.subr.mxu0 %v19908_v38  ;;  %15382 = vmatprep.subr.mxu1 %v19908_v38 }
 0xb4e   : > { %15372 = vmatpush3.msra.mxu0 %v18018_v15  ;;  %15383 = vmatpush3.msra.mxu1 %v18023_v52  ;;  %v19972_v15 = vld [vmem:[#allocation29_spill] sm:$0xff]  ;;  %v19973_v52 = vld [vmem:[#allocation30_spill] sm:$0xff] }
 0xb4f   : > { %15373 = vmatprep.subr.mxu0 %v19908_v38  ;;  %15384 = vmatprep.subr.mxu1 %v19908_v38 }
 0xb50   : > { %15374 = vmatpush3.msra.mxu0 %v18034_v39  ;;  %15385 = vmatpush3.msra.mxu1 %v18039_v11  ;;  %v19974_v39 = vld [vmem:[#allocation31_spill] sm:$0xff]  ;;  %v19975_v11 = vld [vmem:[#allocation32_spill] sm:$0xff] }
 0xb51   : > { %15375 = vmatprep.subr.mxu0 %v19908_v38  ;;  %15386 = vmatprep.subr.mxu1 %v19908_v38 }
 0xb52   : > { %15376 = vmatpush3.msra.mxu0 %v18048_v50  ;;  %15387 = vmatpush3.msra.mxu1 %v18053_v8  ;;  %v19976_v50 = vld [vmem:[#allocation33_spill] sm:$0xff]  ;;  %v19977_v8 = vld [vmem:[#allocation34_spill] sm:$0xff] }
 0xb53   : > { %15377 = vmatprep.subr.mxu0 %v19908_v38  ;;  %15388 = vmatprep.subr.mxu1 %v19908_v38  ;;  %20013 = vst [vmem:[#allocation33_spill] sm:$0xff] %v19135_v60 }
 0xb54   : > { %15378 = vmatpush3.msra.mxu0 %v18062_v26  ;;  %15379 = vmatprep.mubr.msk.f32.mxu0 %vm16418_vm1, %v19908_v38  ;;  %v19978_v26 = vld [vmem:[#allocation35_spill] sm:$0xff] }
 0xb55   : > { %15389 = vmatpush3.msra.mxu1 %v18069_v44  ;;  %15390 = vmatprep.mubr.msk.f32.mxu1 %vm16418_vm1, %v19908_v38  ;;  %v19979_v44 = vld [vmem:[#allocation36_spill] sm:$0xff] }
 0xb56   : > { %15380 = vmatmul.mubr.msk.f32.vlgmr.msra.gmra.mxu0 %vm7108_vm3, %v18518_v3  ;;  %15391 = vmatmul.mubr.msk.f32.vlgmr.msra.gmra.mxu1 %vm7108_vm3, %v18518_v3 }
 0xb57   : > { %15393 = vmatprep.subr.mxu0 %v19908_v38  ;;  %15404 = vmatprep.subr.mxu1 %v19908_v38 }
 0xb58   : > { %15394 = vmatpush3.msra.mxu0 %v18082_v0  ;;  %15405 = vmatpush3.msra.mxu1 %v18087_v7  ;;  %v19980_v0 = vld [vmem:[#allocation37_spill] sm:$0xff]  ;;  %v19981_v7 = vld [vmem:[#allocation38_spill] sm:$0xff] }
 0xb59   : > { %15395 = vmatprep.subr.mxu0 %v19908_v38  ;;  %15406 = vmatprep.subr.mxu1 %v19908_v38 }
 0xb5a   : > { %15396 = vmatpush3.msra.mxu0 %v18098_v34  ;;  %15407 = vmatpush3.msra.mxu1 %v18103_v12  ;;  %v19982_v34 = vld [vmem:[#allocation39_spill] sm:$0xff]  ;;  %v19983_v12 = vld [vmem:[#allocation40_spill] sm:$0xff] }
 0xb5b   : > { %15397 = vmatprep.subr.mxu0 %v19908_v38  ;;  %15408 = vmatprep.subr.mxu1 %v19908_v38 }
 0xb5c   : > { %15398 = vmatpush3.msra.mxu0 %v18112_v32  ;;  %15409 = vmatpush3.msra.mxu1 %v18117_v30  ;;  %v18687_v32 = vld [vmem:[%s19763_s13 + $0x18] sm:$0xff]  ;;  %v18696_v30 = vld [vmem:[%s19763_s13 + $0x10] sm:$0xff] }
 0xb5d   : > { %15399 = vmatprep.subr.mxu0 %v19908_v38  ;;  %15410 = vmatprep.subr.mxu1 %v19908_v38 }
 0xb5e   : > { %15400 = vmatpush3.msra.mxu0 %v18126_v58  ;;  %15401 = vmatprep.mubr.msk.f32.mxu0 %vm16418_vm1, %v19908_v38  ;;  %v18703_v58 = vld [vmem:[%s19763_s13 + $0x8] sm:$0xff] }
 0xb5f   : > { %15411 = vmatpush3.msra.mxu1 %v18133_v33  ;;  %15412 = vmatprep.mubr.msk.f32.mxu1 %vm16418_vm1, %v19908_v38  ;;  %v18710_v33 = vld [vmem:[%s19763_s13] sm:$0xff] }
 0xb60   : > { %15402 = vmatmul.mubr.msk.f32.vlgmr.msra.gmra.mxu0 %vm7108_vm3, %v18518_v3  ;;  %15413 = vmatmul.mubr.msk.f32.vlgmr.msra.gmra.mxu1 %vm7108_vm3, %v18518_v3 }
 0xb61   : > { %15415 = vmatprep.subr.mxu0 %v19908_v38  ;;  %15426 = vmatprep.subr.mxu1 %v19908_v38 }
 0xb62   : > { %15416 = vmatpush3.msra.mxu0 %v18146_v62  ;;  %15427 = vmatpush3.msra.mxu1 %v18151_v41 }
 0xb63   : > { %15417 = vmatprep.subr.mxu0 %v19908_v38  ;;  %15428 = vmatprep.subr.mxu1 %v19908_v38 }
 0xb64   : > { %15418 = vmatpush3.msra.mxu0 %v18162_v42  ;;  %15429 = vmatpush3.msra.mxu1 %v18167_v19 }
 0xb65   : > { %15419 = vmatprep.subr.mxu0 %v19908_v38  ;;  %15430 = vmatprep.subr.mxu1 %v19908_v38 }
 0xb66   : > { %15420 = vmatpush3.msra.mxu0 %v18176_v14  ;;  %15431 = vmatpush3.msra.mxu1 %v19961_v22  ;;  %v19970_v14 = vld [vmem:[#allocation27_spill] sm:$0xff] }
 0xb67   : > { %15421 = vmatprep.subr.mxu0 %v19908_v38  ;;  %15432 = vmatprep.subr.mxu1 %v19908_v38 }
 0xb68   : > { %15422 = vmatpush3.msra.mxu0 %v19962_v18  ;;  %15423 = vmatprep.mubr.msk.f32.mxu0 %vm16418_vm1, %v19908_v38 }
 0xb69   : > { %15433 = vmatpush3.msra.mxu1 %v19963_v51  ;;  %15434 = vmatprep.mubr.msk.f32.mxu1 %vm16418_vm1, %v19908_v38 }
 0xb6a   : > { %15424 = vmatmul.mubr.msk.f32.vlgmr.msra.gmra.mxu0 %vm7108_vm3, %v18518_v3  ;;  %15435 = vmatmul.mubr.msk.f32.vlgmr.msra.gmra.mxu1 %vm7108_vm3, %v18520_v57 }
 0xb6b   : > { %15437 = vmatprep.subr.mxu0 %v19908_v38  ;;  %15448 = vmatprep.subr.mxu1 %v19908_v38 }
 0xb6c   : > { %15438 = vmatpush3.msra.mxu0 %v19964_v2  ;;  %15449 = vmatpush3.msra.mxu1 %v19965_v25 }
 0xb6d   : > { %15439 = vmatprep.subr.mxu0 %v19908_v38  ;;  %15450 = vmatprep.subr.mxu1 %v19908_v38 }
 0xb6e   : > { %15440 = vmatpush3.msra.mxu0 %v19966_v27  ;;  %15451 = vmatpush3.msra.mxu1 %v19967_v28 }
 0xb6f   : > { %15441 = vmatprep.subr.mxu0 %v19908_v38  ;;  %15452 = vmatprep.subr.mxu1 %v19908_v38 }
 0xb70   : > { %15442 = vmatpush3.msra.mxu0 %v19968_v29  ;;  %15453 = vmatpush3.msra.mxu1 %v19969_v21 }
 0xb71   : > { %15443 = vmatprep.subr.mxu0 %v19908_v38  ;;  %15454 = vmatprep.subr.mxu1 %v19908_v38 }
 0xb72   : > { %15444 = vmatpush3.msra.mxu0 %v19970_v14  ;;  %15445 = vmatprep.mubr.msk.f32.mxu0 %vm16418_vm1, %v19908_v38 }
 0xb73   : > { %15455 = vmatpush3.msra.mxu1 %v19971_v13  ;;  %15456 = vmatprep.mubr.msk.f32.mxu1 %vm16418_vm1, %v19908_v38 }
 0xb74   : > { %15446 = vmatmul.mubr.msk.f32.vlgmr.msra.gmra.mxu0 %vm7108_vm3, %v18520_v57  ;;  %15457 = vmatmul.mubr.msk.f32.vlgmr.msra.gmra.mxu1 %vm7108_vm3, %v18520_v57 }
 0xb75   : > { %15459 = vmatprep.subr.mxu0 %v19908_v38  ;;  %15470 = vmatprep.subr.mxu1 %v19908_v38 }
 0xb76   : > { %15460 = vmatpush3.msra.mxu0 %v19972_v15  ;;  %15471 = vmatpush3.msra.mxu1 %v19973_v52 }
 0xb77   : > { %15461 = vmatprep.subr.mxu0 %v19908_v38  ;;  %15472 = vmatprep.subr.mxu1 %v19908_v38 }
 0xb78   : > { %15462 = vmatpush3.msra.mxu0 %v19974_v39  ;;  %15473 = vmatpush3.msra.mxu1 %v19975_v11 }
 0xb79   : > { %15463 = vmatprep.subr.mxu0 %v19908_v38  ;;  %15474 = vmatprep.subr.mxu1 %v19908_v38 }
 0xb7a   : > { %15464 = vmatpush3.msra.mxu0 %v19976_v50  ;;  %15475 = vmatpush3.msra.mxu1 %v19977_v8 }
 0xb7b   : > { %15465 = vmatprep.subr.mxu0 %v19908_v38  ;;  %15476 = vmatprep.subr.mxu1 %v19908_v38 }
 0xb7c   : > { %15466 = vmatpush3.msra.mxu0 %v19978_v26  ;;  %15467 = vmatprep.mubr.msk.f32.mxu0 %vm16418_vm1, %v19908_v38 }
 0xb7d   : > { %15477 = vmatpush3.msra.mxu1 %v19979_v44  ;;  %15478 = vmatprep.mubr.msk.f32.mxu1 %vm16418_vm1, %v19908_v38  ;;  %v19988_v44 = vld [vmem:[#allocation45_spill] sm:$0xff] }
 0xb7e   : > { %15468 = vmatmul.mubr.msk.f32.vlgmr.msra.gmra.mxu0 %vm7108_vm3, %v18494_v55  ;;  %15479 = vmatmul.mubr.msk.f32.vlgmr.msra.gmra.mxu1 %vm7108_vm3, %v18494_v55 }
 0xb7f   : > { %15481 = vmatprep.subr.mxu0 %v19908_v38  ;;  %15489 = vmatprep.mubr.msk.f32.mxu0 %vm16418_vm1, %v19908_v38 }
 0xb80   : > { %15482 = vmatpush3.msra.mxu0 %v19980_v0  ;;  %15492 = vmatprep.subr.mxu1 %v19908_v38 }
 0xb81   : > { %15483 = vmatprep.subr.mxu0 %v19908_v38  ;;  %15494 = vmatprep.mubr.msk.f32.mxu1 %vm16418_vm1, %v19908_v38 }
 0xb82   : > { %15484 = vmatpush3.msra.mxu0 %v19981_v7 }
 0xb83   : > { %15485 = vmatprep.subr.mxu0 %v19908_v38 }
 0xb84   : > { %15486 = vmatpush3.msra.mxu0 %v19982_v34 }
 0xb85   : > { %15487 = vmatprep.subr.mxu0 %v19908_v38 }
 0xb86   : > { %15488 = vmatpush3.msra.mxu0 %v19983_v12 }
 0xb87   : > { %15490 = vmatmul.mubr.msk.f32.vlgmr.msra.gmra.mxu0 %vm7108_vm3, %v18494_v55  ;;  %15502 = vmatprep.subr.mxu0 %v19908_v38 }
 0xb88   : > { %15503 = vmatpush3.msra.mxu0 %v18687_v32  ;;  %15510 = vmatprep.mubr.msk.f32.mxu0 %vm16418_vm1, %v19908_v38 }
 0xb89   : > { %15504 = vmatprep.subr.mxu0 %v19908_v38 }
 0xb8a   : > { %15505 = vmatpush3.msra.mxu0 %v18696_v30 }
 0xb8b   : > { %15506 = vmatprep.subr.mxu0 %v19908_v38 }
 0xb8c   : > { %15507 = vmatpush3.msra.mxu0 %v18703_v58 }
 0xb8d   : > { %15508 = vmatprep.subr.mxu0 %v19908_v38 }
 0xb8e   : > { %15509 = vmatpush3.msra.mxu0 %v18710_v33 }
 0xb8f   : > { %15524 = vmatprep.subr.mxu0 %v19908_v38 }
 0xc03   : > { %v8522_v62 = vpop.f32.mrf.mxu0  ;;  %v8596_v41 = vpop.f32.mrf.mxu1 }
 0xc04   : > { %v8527_v9 = vrot.slane %v8522_v62, 7  ;;  %v8601_v40 = vrot.slane %v8596_v41, 7 }
 0xc05   : > { %v15337_v42 = vpop.f32.mrf.mxu0  ;;  %v15348_v19 = vpop.f32.mrf.mxu1 }
 0xc06   : > { %v8529_v49 = vadd.f32 %v8527_v9, %v19985_v53  ;;  %v8603_v54 = vadd.f32 %v8601_v40, %v19986_v17  ;;  %v19989_v19 = vld [vmem:[#allocation46_spill] sm:$0xff] }
 0xc0c   : > { %v8670_v35 = vpop.f32.mrf.mxu0  ;;  %v8747_v20 = vpop.f32.mrf.mxu1 }
 0xc0d   : > { %v8748_v59 = vadd.f32 %v8747_v20, %v19984_v56  ;;  %v8675_v34 = vrot.slane %v8670_v35, 7 }
 0xc0e   : > { %v15359_v61 = vpop.f32.mrf.mxu0  ;;  %v15370_v31 = vpop.f32.mrf.mxu1 }
 0xc0f   : > { %v8892_v10 = vrot.slane %v8748_v59, 7  ;;  %v8677_v9 = vadd.f32 %v8675_v34, %v19989_v19 }
 0xc11   : > { %v8894_v36 = vadd.f32 %v8892_v10, %v8529_v49  ;;  %v19990_v49 = vld [vmem:[#allocation47_spill] sm:$0xff] }
 0xc13   : > { %v13915_v5 = vmul.f32 -1.442695, %v8894_v36 }
 0xc15   : > { %16169 = vpow2.f32 %v13915_v5  ;;  %v19991_v5 = vld [vmem:[#allocation48_spill] sm:$0xff] }
 0xc16   : > { %v8817_v48 = vpop.f32.mrf.mxu0  ;;  %v8887_v4 = vpop.f32.mrf.mxu1 }
 0xc17   : > { %v8818_v16 = vadd.f32 %v18401_v47, %v8817_v48  ;;  %v19987_v47 = vld [vmem:[#allocation44_spill] sm:$0xff]  ;;  %v8888_v26 = vadd.f32 %v18429_v45, %v8887_v4  ;;  %v8919_v4 = vrot.slane %v18518_v3, 7 }
 0xc18   : > { %v15381_v43 = vpop.f32.mrf.mxu0  ;;  %v15392_v46 = vpop.f32.mrf.mxu1 }
 0xc19   : > { %v8902_v22 = vrot.slane %v8818_v16, 7  ;;  %v8912_v62 = vrot.slane %v8888_v26, 7 }
 0xc1b   : > { %v8904_v18 = vadd.f32 %v8902_v22, %v8603_v54 }
 0xc1d   : > { %v13916_v51 = vmul.f32 -1.442695, %v8904_v18  ;;  %v19992_v18 = vld [vmem:[#allocation50_spill] sm:$0xff] }
 0xc1f   : > { %16171 = vpow2.f32 %v13916_v51 }
 0xc20   : > { %v8989_v2 = vpop.f32.mrf.mxu0  ;;  %v9063_v25 = vpop.f32.mrf.mxu1 }
 0xc21   : > { %v8994_v14 = vrot.slane %v8989_v2, 7  ;;  %v9068_v56 = vrot.slane %v9063_v25, 7 }
 0xc22   : > { %v16170_v27 = vpop.eup %16169  ;;  %v15403_v28 = vpop.f32.mrf.mxu0 }
 0xc23   : > { %v15414_v29 = vpop.f32.mrf.mxu1  ;;  %v8898_v21 = vadd.f32 1.0, %v16170_v27  ;;  %v8996_v0 = vadd.f32 %v8994_v14, %v19988_v44  ;;  %v9070_v35 = vadd.f32 %v9068_v56, %v19991_v5 }
 0xc24   : > { %v19993_v29 = vld [vmem:[#allocation13_spill] sm:$0xff] }
 0xc25   : > { %16173 = vrcp.f32 %v8898_v21  ;;  %v19994_v21 = vld [vmem:[#allocation12_spill] sm:$0xff] }
 0xc26   : > { %v19995_v14 = vrot.slane %v19993_v29, %v19994_v21  ;;  %v19996_v26 = vrot.slane %v17930_v24, %v19994_v21 }
 0xc2a   : > { %v18718_v13 = vpop.f32.mrf.mxu0  ;;  %v9211_v15 = vpop.f32.mrf.mxu1 }
 0xc2b   : > { %v9212_v52 = vadd.f32 %v19987_v47, %v9211_v15 }
 0xc2c   : > { %v16172_v39 = vpop.eup %16171  ;;  %v15425_v11 = vpop.f32.mrf.mxu0 }
 0xc2d   : > { %v15436_v50 = vpop.f32.mrf.mxu1  ;;  %v8908_v8 = vadd.f32 1.0, %v16172_v39  ;;  %v9356_v7 = vrot.slane %v9212_v52, 7 }
 0xc2f   : > { %16175 = vrcp.f32 %v8908_v8  ;;  %v9358_v12 = vadd.f32 %v9356_v7, %v8996_v0 }
 0xc31   : > { %v13923_v41 = vmul.f32 -1.442695, %v9358_v12 }
 0xc32   : > { %v16174_v42 = vpop.eup %16173 }
 0xc33   : > { %v8914_v20 = vmul.f32 %v16174_v42, %v8912_v62  ;;  %16177 = vpow2.f32 %v13923_v41  ;;  %v9142_v42 = vrot.slane %v18718_v13, 7 }
 0xc34   : > { %v9281_v59 = vpop.f32.mrf.mxu0  ;;  %v9351_v61 = vpop.f32.mrf.mxu1 }
 0xc35   : > { %v8915_v31 = vadd.f32 %v8914_v20, %v8677_v9  ;;  %v9282_v10 = vadd.f32 %v19990_v49, %v9281_v59  ;;  %v9352_v62 = vadd.f32 %v18472_v1, %v9351_v61  ;;  %v9144_v56 = vadd.f32 %v9142_v42, %v18479_v63 }
 0xc36   : > { %v15447_v45 = vpop.f32.mrf.mxu0  ;;  %v15458_v36 = vpop.f32.mrf.mxu1  ;;  %v9383_v1 = vrot.slane %v18520_v57, 7 }
 0xc37   : > { %16179 = vtanh.f32 %v8915_v31  ;;  %v9366_v40 = vrot.slane %v9282_v10, 7  ;;  %v9376_v20 = vrot.slane %v9352_v62, 7  ;;  %v18801_v62 = vld [vmem:[%s19763_s13 + $0x58] sm:$0xff] }
 0xc39   : > { %v9368_v48 = vadd.f32 %v9366_v40, %v9070_v35 }
 0xc3b   : > { %v13924_v16 = vmul.f32 -1.442695, %v9368_v48 }
 0xc3c   : > { %v16176_v43 = vpop.eup %16175 }
 0xc3d   : > { %v8921_v46 = vmul.f32 %v16176_v43, %v8919_v4  ;;  %16181 = vpow2.f32 %v13924_v16  ;;  %v8917_v47 = vsub.f32 1.0, %v16176_v43 }
 0xc3e   : > { %v9455_v54 = vpop.f32.mrf.mxu0  ;;  %v9525_v22 = vpop.f32.mrf.mxu1 }
 0xc3f   : > { %v9456_v51 = vadd.f32 %v19992_v18, %v9455_v54  ;;  %v9526_v39 = vadd.f32 %v18463_v6, %v9525_v22  ;;  %v19997_v54 = vrot.slane %v17967_v37, %v19994_v21 }
 0xc40   : > { %v16178_v2 = vpop.eup %16177  ;;  %v15469_v25 = vpop.f32.mrf.mxu0 }
 0xc41   : > { %v15480_v27 = vpop.f32.mrf.mxu1  ;;  %v9362_v28 = vadd.f32 1.0, %v16178_v2  ;;  %v9603_v15 = vadd.f32 %v19995_v14, %v9456_v51  ;;  %v9614_v0 = vadd.f32 %v19996_v26, %v9526_v39  ;;  %v9645_v51 = vpop.permute.xlu0 %9644  ;;  %v18779_v26 = vld [vmem:[%s19763_s13 + $0x28] sm:$0xff] }
 0xc42   : > { %v9635_v2 = vpop.permute.xlu1 %9634 }
 0xc43   : > { %16183 = vrcp.f32 %v9362_v28  ;;  %v13928_v52 = vmul.f32 -1.442695, %v9603_v15  ;;  %v13929_v41 = vmul.f32 -1.442695, %v9614_v0  ;;  %v18786_v0 = vld [vmem:[%s19763_s13 + $0x20] sm:$0xff] }
 0xc44   : > { %v16180_v3 = vpop.eup %16179 }
 0xc45   : > { %v8918_v11 = vmul.f32 %v16180_v3, %v8917_v47  ;;  %16185 = vpow2.f32 %v13928_v52 }
 0xc46   : > { %16187 = vpow2.f32 %v13929_v41  ;;  %v9658_v3 = vpop.permute.xlu1 %9657  ;;  %v18807_v41 = vld [vmem:[%s19764_s14 + $0x18] sm:$0xff] }
 0xc47   : > { %v8922_v50 = vadd.f32 %v8921_v46, %v8918_v11  ;;  %v9595_v8 = vpop.f32.mrf.mxu0 }
 0xc48   : > { %v9596_v40 = vadd.f32 %v18486_v23, %v9595_v8  ;;  %v18772_v8 = vld [vmem:[%s19763_s13 + $0x30] sm:$0xff] }
 0xc49   : > { %v15491_v7 = vpop.f32.mrf.mxu0  ;;  %v9640_v34 = vrot.slane %v8922_v50, %v19994_v21  ;;  %v18763_v50 = vld [vmem:[%s19763_s13 + $0x38] sm:$0xff] }
 0xc4a   : > { %v16182_v12 = vpop.eup %16181 }
 0xc4b   : > { %v9372_v9 = vadd.f32 1.0, %v16182_v12  ;;  %v9641_v57 = vmul.f32 %v9640_v34, %v9635_v2  ;;  %v19007_v2 = vld [vmem:[%s19763_s13 + $0xb0] sm:$0xff] }
 0xc4d   : > { %16189 = vrcp.f32 %v9372_v9  ;;  %v18815_v9 = vld [vmem:[%s19763_s13 + $0x50] sm:$0xff] }
 0xc50   : > { %v16184_v6 = vpop.eup %16183 }
 0xc51   : > { %v9378_v59 = vmul.f32 %v16184_v6, %v9376_v20  ;;  %v18821_v20 = vld [vmem:[%s19764_s14 + $0x10] sm:$0xff]  ;;  %v18829_v6 = vld [vmem:[%s19763_s13 + $0x48] sm:$0xff] }
 0xc52   : > { %v16186_v31 = vpop.eup %16185 }
 0xc53   : > { %v9379_v49 = vadd.f32 %v9378_v59, %v9144_v56  ;;  %v9607_v10 = vadd.f32 1.0, %v16186_v31  ;;  %v16188_v45 = vpop.eup %16187  ;;  %v18835_v56 = vld [vmem:[%s19764_s14 + $0x8] sm:$0xff]  ;;  %v18843_v59 = vld [vmem:[%s19763_s13 + $0x40] sm:$0xff] }
 0xc54   : > { %v9618_v35 = vadd.f32 1.0, %v16188_v45  ;;  %v18851_v31 = vld [vmem:[%s19764_s14] sm:$0xff]  ;;  %v18879_v45 = vld [vmem:[%s19764_s14 + $0x30] sm:$0xff] }
 0xc55   : > { %16191 = vtanh.f32 %v9379_v49  ;;  %v18865_v49 = vld [vmem:[%s19764_s14 + $0x38] sm:$0xff] }
 0xc56   : > { %16193 = vrcp.f32 %v9607_v10  ;;  %v18871_v10 = vld [vmem:[%s19764_s14 + $0x58] sm:$0xff] }
 0xc57   : > { %16195 = vrcp.f32 %v9618_v35  ;;  %v18893_v35 = vld [vmem:[%s19764_s14 + $0x28] sm:$0xff] }
 0xc5a   : > { %v16190_v36 = vpop.eup %16189 }
 0xc5b   : > { %v9381_v61 = vsub.f32 1.0, %v16190_v36  ;;  %v9385_v4 = vmul.f32 %v16190_v36, %v9383_v1  ;;  %v18885_v36 = vld [vmem:[%s19764_s14 + $0x50] sm:$0xff]  ;;  %v18899_v1 = vld [vmem:[%s19764_s14 + $0x48] sm:$0xff] }
 0xc62   : > { %v16192_v13 = vpop.eup %16191 }
 0xc63   : > { %v16194_v48 = vpop.eup %16193  ;;  %v9382_v16 = vmul.f32 %v16192_v13, %v9381_v61  ;;  %v18907_v61 = vld [vmem:[%s19764_s14 + $0x20] sm:$0xff] }
 0xc64   : > { %v9621_v43 = vmul.f32 %v16194_v48, %v9596_v40  ;;  %v16196_v23 = vpop.eup %16195  ;;  %v18915_v13 = vld [vmem:[%s19764_s14 + $0x40] sm:$0xff]  ;;  %v18929_v40 = vld [vmem:[%s19763_s13 + $0x78] sm:$0xff] }
 0xc65   : > { %v9386_v46 = vadd.f32 %v9385_v4, %v9382_v16  ;;  %v9628_v28 = vsub.f32 1.0, %v16196_v23  ;;  %v9630_v15 = vmul.f32 %v16196_v23, %v18494_v55  ;;  %v13935_v55 = vld [vmem:[%s17800_s25 + $0x2] sm:$0x1]  ;;  %v18935_v48 = vld [vmem:[%s19763_s13 + $0x98] sm:$0xff]  ;;  %v18943_v4 = vld [vmem:[%s19763_s13 + $0x70] sm:$0xff] }
 0xc66   : > { %v9626_v22 = vadd.f32 %v19997_v54, %v9621_v43  ;;  %v18949_v16 = vld [vmem:[%s19763_s13 + $0x90] sm:$0xff]  ;;  %v18957_v43 = vld [vmem:[%s19763_s13 + $0x68] sm:$0xff]  ;;  %v18971_v54 = vld [vmem:[%s19763_s13 + $0x60] sm:$0xff] }
 0xc67   : > { %v9650_v18 = vrot.slane %v9386_v46, %v19994_v21  ;;  %v13932_v21 = vld [vmem:[%s17817_s29 + $0x2] sm:$0x1]  ;;  %v18963_v46 = vld [vmem:[%s19763_s13 + $0x88] sm:$0xff] }
 0xc68   : > { %16197 = vtanh.f32 %v9626_v22  ;;  %v18979_v22 = vld [vmem:[%s19763_s13 + $0x80] sm:$0xff] }
 0xc69   : > { %v9651_v25 = vmul.f32 %v9650_v18, %v9645_v51  ;;  %v18993_v18 = vld [vmem:[%s19763_s13 + $0xb8] sm:$0xff]  ;;  %v19035_v23 = vld [vmem:[%s19763_s13 + $0xa0] sm:$0xff] }
 0xc6a   : > { %v18999_v51 = vld [vmem:[%s19764_s14 + $0x78] sm:$0xff]  ;;  %20001 = vst [vmem:[#allocation21_spill] sm:$0xff] %v19035_v23 }
 0xc6b   : > { %v9652_v27 = vadd.f32 %v9651_v25, %v9641_v57  ;;  %v19013_v57 = vld [vmem:[%s19764_s14 + $0x70] sm:$0xff]  ;;  %v19021_v25 = vld [vmem:[%s19763_s13 + $0xa8] sm:$0xff] }
 0xc6c   : > { %19998 = vst [vmem:[#allocation18_spill] sm:$0xff] %v19013_v57  ;;  %19999 = vst [vmem:[#allocation19_spill] sm:$0xff] %v19021_v25 }
 0xc75   : > { %v16198_v14 = vpop.eup %16197 }
 0xc76   : > { %v9629_v47 = vmul.f32 %v16198_v14, %v9628_v28  ;;  %v19043_v28 = vld [vmem:[%s19764_s14 + $0x60] sm:$0xff]  ;;  %v19057_v14 = vld [vmem:[%s19764_s14 + $0x98] sm:$0xff] }
 0xc77   : > { %20002 = vst [vmem:[#allocation22_spill] sm:$0xff] %v19043_v28  ;;  %20003 = vst [vmem:[#allocation23_spill] sm:$0xff] %v19057_v14 }
 0xc78   : > { %v9631_v52 = vadd.f32 %v9630_v15, %v9629_v47  ;;  %v19063_v15 = vld [vmem:[%s19764_s14 + $0xb8] sm:$0xff]  ;;  %v19071_v47 = vld [vmem:[%s19764_s14 + $0x90] sm:$0xff] }
 0xc79   : > { %20004 = vst [vmem:[#allocation24_spill] sm:$0xff] %v19063_v15  ;;  %20005 = vst [vmem:[#allocation25_spill] sm:$0xff] %v19071_v47 }
 0xc7a   : > { %v9660_v39 = vmul.f32 %v9658_v3, %v9631_v52  ;;  %v19077_v52 = vld [vmem:[%s19764_s14 + $0xb0] sm:$0xff]  ;;  %v19085_v3 = vld [vmem:[%s19764_s14 + $0x88] sm:$0xff] }
 0xc7b   : > { %20006 = vst [vmem:[#allocation26_spill] sm:$0xff] %v19077_v52  ;;  %20007 = vst [vmem:[#allocation27_spill] sm:$0xff] %v19085_v3 }
 0xc7c   : > { %v18746_v11 = vadd.f32 %v9660_v39, %v9652_v27  ;;  %v19027_v27 = vld [vmem:[%s19764_s14 + $0x68] sm:$0xff] }
 0xc7d   : > { %20000 = vst [vmem:[#allocation20_spill] sm:$0xff] %v19027_v27  ;;  %v19091_v39 = vld [vmem:[%s19764_s14 + $0xa8] sm:$0xff] }
 0xc7e   : > { %15493 = vmatpush3.msk.msra.mxu1 %vm6961_vm4, %v18746_v11  ;;  %20008 = vst [vmem:[#allocation28_spill] sm:$0xff] %v19091_v39 }
 0xc7f   : > { %15495 = vmatmul.mubr.msk.f32.vlgmr.msra.gmra.mxu1 %vm6957_vm2, %v13932_v21  ;;  %15497 = vmatprep.subr.mxu1 %v19908_v38  ;;  %v19099_v21 = vld [vmem:[%s19764_s14 + $0x80] sm:$0xff] }
 0xc80   : > { %15498 = vmatpush3.msk.msra.mxu1 %vm6961_vm4, %v18746_v11  ;;  %15499 = vmatprep.mubr.msk.f32.mxu1 %vm16418_vm1, %v19908_v38  ;;  %20009 = vst [vmem:[#allocation29_spill] sm:$0xff] %v19099_v21 }
 0xc81   : > { %15513 = vmatprep.subr.mxu1 %v19908_v38 }
 0xc83   : > { %15500 = vmatmul.mubr.msk.f32.vlgmr.msra.gmra.mxu1 %vm6957_vm2, %v13935_v55  ;;  %v19107_v55 = vld [vmem:[%s19764_s14 + $0xa0] sm:$0xff] }
 0xc84   : > { %15514 = vmatpush3.msra.mxu1 %v18763_v50  ;;  %15521 = vmatprep.mubr.msk.f32.mxu1 %vm16418_vm1, %v19908_v38  ;;  %20010 = vst [vmem:[#allocation30_spill] sm:$0xff] %v19107_v55 }
 0xc85   : > { %15515 = vmatprep.subr.mxu1 %v19908_v38 }
 0xc86   : > { %15516 = vmatpush3.msra.mxu1 %v18772_v8 }
 0xc87   : > { %15517 = vmatprep.subr.mxu1 %v19908_v38 }
 0xc88   : > { %15518 = vmatpush3.msra.mxu1 %v18779_v26 }
 0xc89   : > { %15519 = vmatprep.subr.mxu1 %v19908_v38 }
 0xc8a   : > { %15520 = vmatpush3.msra.mxu1 %v18786_v0 }
 0xc8b   : > { %15535 = vmatprep.subr.mxu1 %v19908_v38 }
 0xd3f   : > { %v18790_v7 = vpop.f32.mrf.mxu1 }
 0xd41   : > { %v15496_v34 = vpop.f32.mrf.mxu1 }
 0xd42   : > { %v19121_v34 = vld [vmem:[%s19764_s14 + $0xd8] sm:$0xff] }
 0xd43   : > { %v18792_v12 = vpop.f32.mrf.mxu1  ;;  %20011 = vst [vmem:[#allocation31_spill] sm:$0xff] %v19121_v34 }
 0xd44   : > { %15511 = vmatmul.mubr.msk.f32.vlgmr.msra.gmra.mxu0 %vm7108_vm3, %v18792_v12  ;;  %15522 = vmatmul.mubr.msk.f32.vlgmr.msra.gmra.mxu1 %vm7108_vm3, %v18792_v12 }
 0xd45   : > { %15525 = vmatpush3.msra.mxu0 %v18801_v62  ;;  %15536 = vmatpush3.msra.mxu1 %v18807_v41  ;;  %v15501_v42 = vpop.f32.mrf.mxu1 }
 0xd46   : > { %15526 = vmatprep.subr.mxu0 %v19908_v38  ;;  %15537 = vmatprep.subr.mxu1 %v19908_v38  ;;  %v19127_v42 = vld [vmem:[%s19764_s14 + $0xf8] sm:$0xff] }
 0xd47   : > { %15527 = vmatpush3.msra.mxu0 %v18815_v9  ;;  %15538 = vmatpush3.msra.mxu1 %v18821_v20  ;;  %20012 = vst [vmem:[#allocation32_spill] sm:$0xff] %v19127_v42 }
 0xd48   : > { %15528 = vmatprep.subr.mxu0 %v19908_v38  ;;  %15539 = vmatprep.subr.mxu1 %v19908_v38 }
 0xd49   : > { %15529 = vmatpush3.msra.mxu0 %v18829_v6  ;;  %15540 = vmatpush3.msra.mxu1 %v18835_v56 }
 0xd4a   : > { %15530 = vmatprep.subr.mxu0 %v19908_v38  ;;  %15541 = vmatprep.subr.mxu1 %v19908_v38 }
 0xd4b   : > { %15531 = vmatpush3.msra.mxu0 %v18843_v59  ;;  %15532 = vmatprep.mubr.msk.f32.mxu0 %vm16418_vm1, %v19908_v38 }
 0xd4c   : > { %15542 = vmatpush3.msra.mxu1 %v18851_v31  ;;  %15543 = vmatprep.mubr.msk.f32.mxu1 %vm16418_vm1, %v19908_v38 }
 0xd4d   : > { %15533 = vmatmul.mubr.msk.f32.vlgmr.msra.gmra.mxu0 %vm7108_vm3, %v18792_v12  ;;  %15544 = vmatmul.mubr.msk.f32.vlgmr.msra.gmra.mxu1 %vm7108_vm3, %v18790_v7 }
 0xd4e   : > { %15546 = vmatprep.subr.mxu0 %v19908_v38  ;;  %15557 = vmatprep.subr.mxu1 %v19908_v38 }
 0xd4f   : > { %15547 = vmatpush3.msra.mxu0 %v18865_v49  ;;  %15558 = vmatpush3.msra.mxu1 %v18871_v10 }
 0xd50   : > { %15548 = vmatprep.subr.mxu0 %v19908_v38  ;;  %15559 = vmatprep.subr.mxu1 %v19908_v38 }
 0xd51   : > { %15549 = vmatpush3.msra.mxu0 %v18879_v45  ;;  %15560 = vmatpush3.msra.mxu1 %v18885_v36 }
 0xd52   : > { %15550 = vmatprep.subr.mxu0 %v19908_v38  ;;  %15561 = vmatprep.subr.mxu1 %v19908_v38 }
 0xd53   : > { %15551 = vmatpush3.msra.mxu0 %v18893_v35  ;;  %15562 = vmatpush3.msra.mxu1 %v18899_v1 }
 0xd54   : > { %15552 = vmatprep.subr.mxu0 %v19908_v38  ;;  %15563 = vmatprep.subr.mxu1 %v19908_v38 }
 0xd55   : > { %15553 = vmatpush3.msra.mxu0 %v18907_v61  ;;  %15554 = vmatprep.mubr.msk.f32.mxu0 %vm16418_vm1, %v19908_v38 }
 0xd56   : > { %15564 = vmatpush3.msra.mxu1 %v18915_v13  ;;  %15565 = vmatprep.mubr.msk.f32.mxu1 %vm16418_vm1, %v19908_v38 }
 0xd57   : > { %15555 = vmatmul.mubr.msk.f32.vlgmr.msra.gmra.mxu0 %vm7108_vm3, %v18790_v7  ;;  %15566 = vmatmul.mubr.msk.f32.vlgmr.msra.gmra.mxu1 %vm7108_vm3, %v18790_v7 }
 0xd58   : > { %15568 = vmatprep.subr.mxu0 %v19908_v38  ;;  %15579 = vmatprep.subr.mxu1 %v19908_v38 }
 0xd59   : > { %15569 = vmatpush3.msra.mxu0 %v18929_v40  ;;  %15580 = vmatpush3.msra.mxu1 %v18935_v48 }
 0xd5a   : > { %15570 = vmatprep.subr.mxu0 %v19908_v38  ;;  %15581 = vmatprep.subr.mxu1 %v19908_v38 }
 0xd5b   : > { %15571 = vmatpush3.msra.mxu0 %v18943_v4  ;;  %15582 = vmatpush3.msra.mxu1 %v18949_v16 }
 0xd5c   : > { %15572 = vmatprep.subr.mxu0 %v19908_v38  ;;  %15583 = vmatprep.subr.mxu1 %v19908_v38 }
 0xd5d   : > { %15573 = vmatpush3.msra.mxu0 %v18957_v43  ;;  %15584 = vmatpush3.msra.mxu1 %v18963_v46 }
 0xd5e   : > { %15574 = vmatprep.subr.mxu0 %v19908_v38  ;;  %15585 = vmatprep.subr.mxu1 %v19908_v38 }
 0xd5f   : > { %15575 = vmatpush3.msra.mxu0 %v18971_v54  ;;  %15576 = vmatprep.mubr.msk.f32.mxu0 %vm16418_vm1, %v19908_v38 }
 0xd60   : > { %15586 = vmatpush3.msra.mxu1 %v18979_v22  ;;  %15587 = vmatprep.mubr.msk.f32.mxu1 %vm16418_vm1, %v19908_v38 }
 0xd61   : > { %15577 = vmatmul.mubr.msk.f32.vlgmr.msra.gmra.mxu0 %vm7108_vm3, %v18790_v7  ;;  %15588 = vmatmul.mubr.msk.f32.vlgmr.msra.gmra.mxu1 %vm7108_vm3, %v18790_v7 }
 0xd62   : > { %15590 = vmatprep.subr.mxu0 %v19908_v38  ;;  %15601 = vmatprep.subr.mxu1 %v19908_v38 }
 0xd63   : > { %15591 = vmatpush3.msra.mxu0 %v18993_v18  ;;  %15602 = vmatpush3.msra.mxu1 %v18999_v51 }
 0xd64   : > { %15592 = vmatprep.subr.mxu0 %v19908_v38  ;;  %15603 = vmatprep.subr.mxu1 %v19908_v38 }
 0xd65   : > { %15593 = vmatpush3.msra.mxu0 %v19007_v2  ;;  %15604 = vmatpush3.msra.mxu1 %v19013_v57 }
 0xd66   : > { %15594 = vmatprep.subr.mxu0 %v19908_v38  ;;  %15605 = vmatprep.subr.mxu1 %v19908_v38 }
 0xd67   : > { %15595 = vmatpush3.msra.mxu0 %v19021_v25  ;;  %15606 = vmatpush3.msra.mxu1 %v19027_v27 }
 0xd68   : > { %15596 = vmatprep.subr.mxu0 %v19908_v38  ;;  %15607 = vmatprep.subr.mxu1 %v19908_v38 }
 0xd69   : > { %15597 = vmatpush3.msra.mxu0 %v19035_v23  ;;  %15598 = vmatprep.mubr.msk.f32.mxu0 %vm16418_vm1, %v19908_v38 }
 0xd6a   : > { %15608 = vmatpush3.msra.mxu1 %v19043_v28  ;;  %15609 = vmatprep.mubr.msk.f32.mxu1 %vm16418_vm1, %v19908_v38 }
 0xd6b   : > { %15599 = vmatmul.mubr.msk.f32.vlgmr.msra.gmra.mxu0 %vm7108_vm3, %v18790_v7  ;;  %15610 = vmatmul.mubr.msk.f32.vlgmr.msra.gmra.mxu1 %vm7108_vm3, %v18792_v12 }
 0xd6c   : > { %15612 = vmatprep.subr.mxu0 %v19908_v38  ;;  %15623 = vmatprep.subr.mxu1 %v19908_v38 }
 0xd6d   : > { %15613 = vmatpush3.msra.mxu0 %v19057_v14  ;;  %15624 = vmatpush3.msra.mxu1 %v19063_v15 }
 0xd6e   : > { %15614 = vmatprep.subr.mxu0 %v19908_v38  ;;  %15625 = vmatprep.subr.mxu1 %v19908_v38 }
 0xd6f   : > { %15615 = vmatpush3.msra.mxu0 %v19071_v47  ;;  %15626 = vmatpush3.msra.mxu1 %v19077_v52 }
 0xd70   : > { %15616 = vmatprep.subr.mxu0 %v19908_v38  ;;  %15627 = vmatprep.subr.mxu1 %v19908_v38 }
 0xd71   : > { %15617 = vmatpush3.msra.mxu0 %v19085_v3  ;;  %15628 = vmatpush3.msra.mxu1 %v19091_v39 }
 0xd72   : > { %15618 = vmatprep.subr.mxu0 %v19908_v38  ;;  %15629 = vmatprep.subr.mxu1 %v19908_v38 }
 0xd73   : > { %15619 = vmatpush3.msra.mxu0 %v19099_v21  ;;  %15620 = vmatprep.mubr.msk.f32.mxu0 %vm16418_vm1, %v19908_v38 }
 0xd74   : > { %15630 = vmatpush3.msra.mxu1 %v19107_v55  ;;  %15631 = vmatprep.mubr.msk.f32.mxu1 %vm16418_vm1, %v19908_v38 }
 0xd75   : > { %15621 = vmatmul.mubr.msk.f32.vlgmr.msra.gmra.mxu0 %vm7108_vm3, %v18792_v12  ;;  %15632 = vmatmul.mubr.msk.f32.vlgmr.msra.gmra.mxu1 %vm7108_vm3, %v18792_v12 }
 0xd76   : > { %15634 = vmatprep.subr.mxu0 %v19908_v38  ;;  %15645 = vmatprep.subr.mxu1 %v19908_v38 }
 0xd77   : > { %15635 = vmatpush3.msra.mxu0 %v19121_v34  ;;  %15646 = vmatpush3.msra.mxu1 %v19127_v42  ;;  %v19141_v34 = vld [vmem:[%s19764_s14 + $0xf0] sm:$0xff]  ;;  %v19149_v42 = vld [vmem:[%s19764_s14 + $0xc8] sm:$0xff] }
 0xd78   : > { %15636 = vmatprep.subr.mxu0 %v19908_v38  ;;  %15647 = vmatprep.subr.mxu1 %v19908_v38  ;;  %20014 = vst [vmem:[#allocation34_spill] sm:$0xff] %v19141_v34  ;;  %20015 = vst [vmem:[#allocation35_spill] sm:$0xff] %v19149_v42 }
 0xd79   : > { %15637 = vmatpush3.msra.mxu0 %v19135_v60  ;;  %15648 = vmatpush3.msra.mxu1 %v19141_v34  ;;  %v19155_v60 = vld [vmem:[%s19764_s14 + $0xe8] sm:$0xff]  ;;  %v19163_v34 = vld [vmem:[%s19764_s14 + $0xc0] sm:$0xff] }
 0xd7a   : > { %15638 = vmatprep.subr.mxu0 %v19908_v38  ;;  %15649 = vmatprep.subr.mxu1 %v19908_v38  ;;  %20016 = vst [vmem:[#allocation36_spill] sm:$0xff] %v19155_v60  ;;  %20017 = vst [vmem:[#allocation37_spill] sm:$0xff] %v19163_v34 }
 0xd7b   : > { %15639 = vmatpush3.msra.mxu0 %v19149_v42  ;;  %15650 = vmatpush3.msra.mxu1 %v19155_v60  ;;  %v19171_v42 = vld [vmem:[%s19764_s14 + $0xe0] sm:$0xff] }
 0xd7c   : > { %15640 = vmatprep.subr.mxu0 %v19908_v38  ;;  %15651 = vmatprep.subr.mxu1 %v19908_v38  ;;  %20018 = vst [vmem:[#allocation38_spill] sm:$0xff] %v19171_v42  ;;  %v19210_v60 = vld [vmem:[%s19764_s14 + $0x100] sm:$0xff] }
 0xd7d   : > { %15641 = vmatpush3.msra.mxu0 %v19163_v34  ;;  %15642 = vmatprep.mubr.msk.f32.mxu0 %vm16418_vm1, %v19908_v38  ;;  %v19186_v34 = vld [vmem:[%s19764_s14 + $0x118] sm:$0xff]  ;;  %20022 = vst [vmem:[#allocation44_spill] sm:$0xff] %v19210_v60 }
 0xd7e   : > { %15652 = vmatpush3.msra.mxu1 %v19171_v42  ;;  %15653 = vmatprep.mubr.msk.f32.mxu1 %vm16418_vm1, %v19908_v38  ;;  %20019 = vst [vmem:[#allocation39_spill] sm:$0xff] %v19186_v34  ;;  %v19196_v42 = vld [vmem:[%s19764_s14 + $0x110] sm:$0xff] }
 0xd7f   : > { %15643 = vmatmul.mubr.msk.f32.vlgmr.msra.gmra.mxu0 %vm7108_vm3, %v18746_v11  ;;  %15654 = vmatmul.mubr.msk.f32.vlgmr.msra.gmra.mxu1 %vm7108_vm3, %v18746_v11  ;;  %20020 = vst [vmem:[#allocation40_spill] sm:$0xff] %v19196_v42 }
 0xd80   : > { %15656 = vmatprep.subr.mxu0 %v19908_v38  ;;  %15664 = vmatprep.mubr.msk.f32.mxu0 %vm16418_vm1, %v19908_v38 }
 0xd81   : > { %15657 = vmatpush3.msra.mxu0 %v19186_v34  ;;  %15667 = vmatprep.subr.mxu1 %v19908_v38  ;;  %v19203_v34 = vld [vmem:[%s19764_s14 + $0x108] sm:$0xff] }
 0xd82   : > { %15658 = vmatprep.subr.mxu0 %v19908_v38  ;;  %15669 = vmatprep.mubr.msk.f32.mxu1 %vm16418_vm1, %v19908_v38  ;;  %20021 = vst [vmem:[#allocation41_spill] sm:$0xff] %v19203_v34 }
 0xd83   : > { %15659 = vmatpush3.msra.mxu0 %v19196_v42 }
 0xd84   : > { %15660 = vmatprep.subr.mxu0 %v19908_v38 }
 0xd85   : > { %15661 = vmatpush3.msra.mxu0 %v19203_v34 }
 0xd86   : > { %15662 = vmatprep.subr.mxu0 %v19908_v38 }
 0xd87   : > { %15663 = vmatpush3.msra.mxu0 %v19210_v60 }
 0xd88   : > { %15665 = vmatmul.mubr.msk.f32.vlgmr.msra.gmra.mxu0 %vm7108_vm3, %v18746_v11  ;;  %15677 = vmatprep.subr.mxu0 %v19908_v38 }
 0xd89   : > { %15678 = vmatpush3.msra.mxu0 %v18687_v32  ;;  %15685 = vmatprep.mubr.msk.f32.mxu0 %vm16418_vm1, %v19908_v38 }
 0xd8a   : > { %15679 = vmatprep.subr.mxu0 %v19908_v38 }
 0xd8b   : > { %15680 = vmatpush3.msra.mxu0 %v18696_v30  ;;  %v19229_v30 = vld [vmem:[%s19766_s16] sm:$0x1] }
 0xd8c   : > { %15681 = vmatprep.subr.mxu0 %v19908_v38  ;;  %20023 = vst [vmem:[#allocation45_spill] sm:$0xff] %v19229_v30 }
 0xd8d   : > { %15682 = vmatpush3.msra.mxu0 %v18703_v58 }
 0xd8e   : > { %15683 = vmatprep.subr.mxu0 %v19908_v38 }
 0xd8f   : > { %15684 = vmatpush3.msra.mxu0 %v18710_v33 }
 0xd90   : > { %15699 = vmatprep.subr.mxu0 %v19908_v38 }
 0xe04   : > { %v9888_v60 = vpop.f32.mrf.mxu0  ;;  %v9962_v34 = vpop.f32.mrf.mxu1 }
 0xe05   : > { %v9893_v55 = vrot.slane %v9888_v60, 6  ;;  %v9967_v28 = vrot.slane %v9962_v34, 6 }
 0xe06   : > { %v15512_v32 = vpop.f32.mrf.mxu0  ;;  %v15523_v42 = vpop.f32.mrf.mxu1 }
 0xe07   : > { %v9895_v33 = vadd.f32 %v9893_v55, %v19985_v53  ;;  %v19236_v32 = vld [vmem:[%s19766_s16 + $0x1] sm:$0x1] }
 0xe08   : > { %20024 = vst [vmem:[#allocation46_spill] sm:$0xff] %v19236_v32 }
 0xe0d   : > { %v10036_v21 = vpop.f32.mrf.mxu0  ;;  %v10113_v39 = vpop.f32.mrf.mxu1 }
 0xe0e   : > { %v10114_v58 = vadd.f32 %v19229_v30, %v10113_v39 }
 0xe0f   : > { %v15534_v3 = vpop.f32.mrf.mxu0  ;;  %v15545_v52 = vpop.f32.mrf.mxu1 }
 0xe10   : > { %v10258_v47 = vrot.slane %v10114_v58, 6  ;;  %v9969_v52 = vadd.f32 %v9967_v28, %v19986_v17 }
 0xe12   : > { %v10260_v15 = vadd.f32 %v10258_v47, %v9895_v33 }
 0xe14   : > { %v13944_v14 = vmul.f32 -1.442695, %v10260_v15 }
 0xe16   : > { %16199 = vpow2.f32 %v13944_v14 }
 0xe17   : > { %v10183_v42 = vpop.f32.mrf.mxu0  ;;  %v10253_v60 = vpop.f32.mrf.mxu1 }
 0xe18   : > { %v10184_v23 = vadd.f32 %v19236_v32, %v10183_v42 }
 0xe19   : > { %v15556_v27 = vpop.f32.mrf.mxu0  ;;  %v15567_v39 = vpop.f32.mrf.mxu1 }
 0xe1a   : > { %v10268_v3 = vrot.slane %v10184_v23, 6  ;;  %v19245_v27 = vld [vmem:[%s19766_s16 + $0x3] sm:$0x1] }
 0xe1b   : > { %20025 = vst [vmem:[#allocation47_spill] sm:$0xff] %v19245_v27 }
 0xe1c   : > { %v10270_v55 = vadd.f32 %v10268_v3, %v9969_v52  ;;  %v19251_v3 = vld [vmem:[%s19766_s16 + $0x2] sm:$0x1] }
 0xe1e   : > { %v13945_v58 = vmul.f32 -1.442695, %v10270_v55 }
 0xe20   : > { %16201 = vpow2.f32 %v13945_v58 }
 0xe21   : > { %v10355_v15 = vpop.f32.mrf.mxu0  ;;  %v10429_v47 = vpop.f32.mrf.mxu1 }
 0xe22   : > { %v10360_v30 = vrot.slane %v10355_v15, 6  ;;  %v10041_v15 = vrot.slane %v10036_v21, 6 }
 0xe23   : > { %v16200_v14 = vpop.eup %16199  ;;  %v15578_v34 = vpop.f32.mrf.mxu0 }
 0xe24   : > { %v15589_v33 = vpop.f32.mrf.mxu1  ;;  %v10264_v53 = vadd.f32 1.0, %v16200_v14  ;;  %v10362_v55 = vadd.f32 %v10360_v30, %v19988_v44 }
 0xe26   : > { %16203 = vrcp.f32 %v10264_v53  ;;  %v10254_v53 = vadd.f32 %v19251_v3, %v10253_v60  ;;  %v19259_v60 = vld [vmem:[%s19766_s16 + $0x4] sm:$0x1] }
 0xe28   : > { %v10278_v34 = vrot.slane %v10254_v53, 6 }
 0xe2b   : > { %v19240_v25 = vpop.f32.mrf.mxu0  ;;  %v10577_v57 = vpop.f32.mrf.mxu1 }
 0xe2c   : > { %v10578_v23 = vadd.f32 %v19245_v27, %v10577_v57 }
 0xe2d   : > { %v16202_v28 = vpop.eup %16201  ;;  %v15600_v42 = vpop.f32.mrf.mxu0 }
 0xe2e   : > { %v15611_v39 = vpop.f32.mrf.mxu1  ;;  %v10274_v52 = vadd.f32 1.0, %v16202_v28  ;;  %v10722_v58 = vrot.slane %v10578_v23, 6  ;;  %v10043_v42 = vadd.f32 %v10041_v15, %v19989_v19  ;;  %v10434_v28 = vrot.slane %v10429_v47, 6 }
 0xe2f   : > { %v10285_v47 = vrot.slane %v18790_v7, 6 }
 0xe30   : > { %16205 = vrcp.f32 %v10274_v52  ;;  %v10724_v14 = vadd.f32 %v10722_v58, %v10362_v55  ;;  %v10436_v52 = vadd.f32 %v10434_v28, %v19991_v5 }
 0xe32   : > { %v13952_v33 = vmul.f32 -1.442695, %v10724_v14 }
 0xe33   : > { %v16204_v57 = vpop.eup %16203 }
 0xe34   : > { %v10280_v39 = vmul.f32 %v16204_v57, %v10278_v34  ;;  %16207 = vpow2.f32 %v13952_v33  ;;  %v19267_v57 = vld [vmem:[%s19766_s16 + $0x6] ss:$0 sm:$0xff] }
 0xe35   : > { %v10647_v27 = vpop.f32.mrf.mxu0  ;;  %v10717_v17 = vpop.f32.mrf.mxu1 }
 0xe36   : > { %v10281_v32 = vadd.f32 %v10280_v39, %v10043_v42  ;;  %v10648_v21 = vadd.f32 %v19259_v60, %v10647_v27 }
 0xe37   : > { %v15622_v30 = vpop.f32.mrf.mxu0  ;;  %v15633_v23 = vpop.f32.mrf.mxu1 }
 0xe38   : > { %16209 = vtanh.f32 %v10281_v32  ;;  %v10732_v53 = vrot.slane %v10648_v21, 6  ;;  %v20026_v21 = vld [vmem:[#allocation11_spill] sm:$0xff] }
 0xe39   : > { %v20027_v7 = vrot.slane %v19993_v29, %v20026_v21 }
 0xe3a   : > { %v10734_v55 = vadd.f32 %v10732_v53, %v10436_v52 }
 0xe3c   : > { %v13953_v58 = vmul.f32 -1.442695, %v10734_v55  ;;  %v19276_v55 = vld [vmem:[%s19766_s16 + $0x7] ss:$0 sm:$0xff] }
 0xe3d   : > { %v16206_v15 = vpop.eup %16205  ;;  %20028 = vst [vmem:[#allocation48_spill] sm:$0xff] %v19276_v55 }
 0xe3e   : > { %v10287_v14 = vmul.f32 %v16206_v15, %v10285_v47  ;;  %16211 = vpow2.f32 %v13953_v58  ;;  %v10283_v23 = vsub.f32 1.0, %v16206_v15 }
 0xe3f   : > { %v10821_v34 = vpop.f32.mrf.mxu0  ;;  %v10891_v33 = vpop.f32.mrf.mxu1 }
 0xe40   : > { %v10822_v27 = vadd.f32 %v19267_v57, %v10821_v34  ;;  %v10892_v47 = vadd.f32 %v19276_v55, %v10891_v33 }
 0xe41   : > { %v16208_v32 = vpop.eup %16207  ;;  %v15644_v42 = vpop.f32.mrf.mxu0 }
 0xe42   : > { %v15655_v39 = vpop.f32.mrf.mxu1  ;;  %v10728_v28 = vadd.f32 1.0, %v16208_v32  ;;  %v10969_v30 = vadd.f32 %v20027_v7, %v10822_v27  ;;  %v20029_v32 = vrot.slane %v17930_v24, %v20026_v21  ;;  %v19286_v7 = vld [vmem:[%s19766_s16 + $0x5] sm:$0x1] }
 0xe44   : > { %16213 = vrcp.f32 %v10728_v28  ;;  %v13957_v52 = vmul.f32 -1.442695, %v10969_v30  ;;  %v10980_v39 = vadd.f32 %v20029_v32, %v10892_v47  ;;  %v10718_v30 = vadd.f32 %v19286_v7, %v10717_v17 }
 0xe45   : > { %v16210_v53 = vpop.eup %16209  ;;  %v10749_v17 = vrot.slane %v18792_v12, 6 }
 0xe46   : > { %v10284_v58 = vmul.f32 %v16210_v53, %v10283_v23  ;;  %16215 = vpow2.f32 %v13957_v52  ;;  %v13958_v33 = vmul.f32 -1.442695, %v10980_v39  ;;  %v10508_v23 = vrot.slane %v19240_v25, 6 }
 0xe47   : > { %v10742_v52 = vrot.slane %v10718_v30, 6 }
 0xe48   : > { %v10288_v34 = vadd.f32 %v10287_v14, %v10284_v58  ;;  %v10961_v42 = vpop.f32.mrf.mxu0  ;;  %16217 = vpow2.f32 %v13958_v33  ;;  %v10510_v47 = vadd.f32 %v10508_v23, %v18479_v63 }
 0xe4a   : > { %v15666_v27 = vpop.f32.mrf.mxu0  ;;  %v11006_v15 = vrot.slane %v10288_v34, %v20026_v21 }
 0xe4b   : > { %v16212_v28 = vpop.eup %16211 }
 0xe4c   : > { %v10738_v14 = vadd.f32 1.0, %v16212_v28  ;;  %v19295_v28 = vld [vmem:[%s19766_s16 + $0x8] ss:$0 sm:$0xff] }
 0xe4d   : > { %v10962_v30 = vadd.f32 %v19295_v28, %v10961_v42 }
 0xe4e   : > { %16219 = vrcp.f32 %v10738_v14 }
 0xe51   : > { %v16214_v53 = vpop.eup %16213 }
 0xe52   : > { %v10744_v58 = vmul.f32 %v16214_v53, %v10742_v52 }
 0xe53   : > { %v16216_v34 = vpop.eup %16215 }
 0xe54   : > { %v10745_v32 = vadd.f32 %v10744_v58, %v10510_v47  ;;  %v10973_v27 = vadd.f32 1.0, %v16216_v34  ;;  %v11001_v58 = vpop.permute.xlu0 %11000  ;;  %v11011_v34 = vpop.permute.xlu1 %11010 }
 0xe55   : > { %v16218_v24 = vpop.eup %16217 }
 0xe56   : > { %16221 = vtanh.f32 %v10745_v32  ;;  %v10984_v29 = vadd.f32 1.0, %v16218_v24  ;;  %v20030_v24 = vrot.slane %v17967_v37, %v20026_v21  ;;  %v11007_v32 = vmul.f32 %v11006_v15, %v11001_v58  ;;  %v14009_v58 = vld [vmem:[%s19767_s17 + $0x68] sm:$0xff] }
 0xe57   : > { %16223 = vrcp.f32 %v10973_v27 }
 0xe58   : > { %16225 = vrcp.f32 %v10984_v29 }
 0xe5b   : > { %v16220_v55 = vpop.eup %16219 }
 0xe5c   : > { %v10747_v39 = vsub.f32 1.0, %v16220_v55  ;;  %v10751_v23 = vmul.f32 %v16220_v55, %v10749_v17 }
 0xe63   : > { %v16222_v25 = vpop.eup %16221 }
 0xe64   : > { %v16224_v33 = vpop.eup %16223  ;;  %v10748_v14 = vmul.f32 %v16222_v25, %v10747_v39 }
 0xe65   : > { %v10987_v52 = vmul.f32 %v16224_v33, %v10962_v30  ;;  %v16226_v42 = vpop.eup %16225  ;;  %v11024_v30 = vpop.permute.xlu0 %11023 }
 0xe66   : > { %v10752_v53 = vadd.f32 %v10751_v23, %v10748_v14  ;;  %v10994_v55 = vsub.f32 1.0, %v16226_v42  ;;  %v10996_v29 = vmul.f32 %v16226_v42, %v18746_v11  ;;  %v13964_v11 = vld [vmem:[%s17800_s25 + $0x3] sm:$0x1]  ;;  %s20071_s25 = sld [smem:[#allocation58_spill]] }
 0xe67   : > { %v10992_v47 = vadd.f32 %v20030_v24, %v10987_v52  ;;  %v13996_v14 = vld [vmem:[%s19767_s17 + $0x20] sm:$0xff]  ;;  %v20057_v52 = vld [vmem:[#allocation14_spill] sm:$0xff] }
 0xe68   : > { %v11016_v12 = vrot.slane %v10752_v53, %v20026_v21  ;;  %v13961_v21 = vld [vmem:[%s17817_s29 + $0x3] sm:$0x1]  ;;  %v12698_v53 = vrot.slane %v20057_v52, 5  ;;  %v14003_v24 = vld [vmem:[%s19767_s17 + $0x48] sm:$0xff] }
 0xe69   : > { %16227 = vtanh.f32 %v10992_v47  ;;  %v14002_v47 = vld [vmem:[%s19767_s17 + $0x40] sm:$0xff] }
 0xe6a   : > { %v11017_v27 = vmul.f32 %v11016_v12, %v11011_v34  ;;  %v12852_v12 = vrot.slane %v20057_v52, 6  ;;  %v14008_v34 = vld [vmem:[%s19767_s17 + $0x60] sm:$0xff] }
 0xe6c   : > { %v11018_v63 = vadd.f32 %v11017_v27, %v11007_v32  ;;  %v13006_v32 = vrot.slane %v20057_v52, 7  ;;  %s863_s29 = scalar_lea.vmem %s20071_s25, %s16607_s8  ;;  %s13428_s25 = sshll.u32 %s832_s10, 4  ;;  %s13429_s25 = int_to_ptr.vmem [resolvable:$true] %s13428_s25 }
 0xe6d   : > { %s16419_s8 = smov [#allocation2]  }
 0xe6e   : > { %s16358_s30 = sshll.u32 %s16419_s8, 4  ;;  %s16359_s30 = int_to_ptr.vmem [resolvable:$false] %s16358_s30 }
 0xe6f   : > { %s16360_s11 = scalar_lea.vmem %s16359_s30, 128  ;;  %p16361_p0 = scmp.lt.s32.totalorder %s13429_s25, %s16359_s30 }
 0xe76   : > { %v16228_v17 = vpop.eup %16227 }
 0xe77   : > { %v10995_v39 = vmul.f32 %v16228_v17, %v10994_v55 }
 0xe79   : > { %v10997_v25 = vadd.f32 %v10996_v29, %v10995_v39 }
 0xe7b   : > { %v11026_v33 = vmul.f32 %v11024_v30, %v10997_v25  ;;  %v20058_v30 = vld [vmem:[#allocation45_spill] sm:$0xff] }
 0xe7d   : > { %v19303_v23 = vadd.f32 %v11026_v33, %v11018_v63 }
 0xe7f   : > { %15668 = vmatpush3.msk.msra.mxu1 %vm6961_vm4, %v19303_v23 }
 0xe80   : > { %15670 = vmatmul.mubr.msk.f32.vlgmr.msra.gmra.mxu1 %vm6957_vm2, %v13961_v21  ;;  %15672 = vmatprep.subr.mxu1 %v19908_v38 }
 0xe81   : > { %15673 = vmatpush3.msk.msra.mxu1 %vm6961_vm4, %v19303_v23  ;;  %15674 = vmatprep.mubr.msk.f32.mxu1 %vm16418_vm1, %v19908_v38 }
 0xe82   : > { %15688 = vmatprep.subr.mxu1 %v19908_v38 }
 0xe84   : > { %15675 = vmatmul.mubr.msk.f32.vlgmr.msra.gmra.mxu1 %vm6957_vm2, %v13964_v11 }
 0xe85   : > { %15689 = vmatpush3.msra.mxu1 %v18763_v50  ;;  %15696 = vmatprep.mubr.msk.f32.mxu1 %vm16418_vm1, %v19908_v38 }
 0xe86   : > { %15690 = vmatprep.subr.mxu1 %v19908_v38 }
 0xe87   : > { %15691 = vmatpush3.msra.mxu1 %v18772_v8 }
 0xe88   : > { %15692 = vmatprep.subr.mxu1 %v19908_v38 }
 0xe89   : > { %15693 = vmatpush3.msra.mxu1 %v18779_v26  ;;  %v20031_v26 = vld [vmem:[#allocation18_spill] sm:$0xff] }
 0xe8a   : > { %15694 = vmatprep.subr.mxu1 %v19908_v38 }
 0xe8b   : > { %15695 = vmatpush3.msra.mxu1 %v18786_v0  ;;  %v20032_v0 = vld [vmem:[#allocation19_spill] sm:$0xff] }
 0xe8c   : > { %15710 = vmatprep.subr.mxu1 %v19908_v38 }
 0xf40   : > { %v19327_v63 = vpop.f32.mrf.mxu1 }
 0xf42   : > { %v15671_v50 = vpop.f32.mrf.mxu1 }
 0xf43   : > { %v20059_v50 = vld [vmem:[#allocation42_spill] sm:$0xff] }
 0xf44   : > { %v19329_v15 = vpop.f32.mrf.mxu1 }
 0xf45   : > { %15686 = vmatmul.mubr.msk.f32.vlgmr.msra.gmra.mxu0 %vm7108_vm3, %v19329_v15  ;;  %15697 = vmatmul.mubr.msk.f32.vlgmr.msra.gmra.mxu1 %vm7108_vm3, %v19329_v15 }
 0xf46   : > { %15700 = vmatpush3.msra.mxu0 %v18801_v62  ;;  %15711 = vmatpush3.msra.mxu1 %v18807_v41  ;;  %v15676_v8 = vpop.f32.mrf.mxu1  ;;  %v20033_v62 = vld [vmem:[#allocation20_spill] sm:$0xff]  ;;  %v20034_v41 = vld [vmem:[#allocation21_spill] sm:$0xff] }
 0xf47   : > { %15701 = vmatprep.subr.mxu0 %v19908_v38  ;;  %15712 = vmatprep.subr.mxu1 %v19908_v38 }
 0xf48   : > { %15702 = vmatpush3.msra.mxu0 %v18815_v9  ;;  %15713 = vmatpush3.msra.mxu1 %v18821_v20  ;;  %v20035_v9 = vld [vmem:[#allocation22_spill] sm:$0xff]  ;;  %v20036_v20 = vld [vmem:[#allocation23_spill] sm:$0xff] }
 0xf49   : > { %15703 = vmatprep.subr.mxu0 %v19908_v38  ;;  %15714 = vmatprep.subr.mxu1 %v19908_v38 }
 0xf4a   : > { %15704 = vmatpush3.msra.mxu0 %v18829_v6  ;;  %15715 = vmatpush3.msra.mxu1 %v18835_v56  ;;  %v20037_v6 = vld [vmem:[#allocation24_spill] sm:$0xff]  ;;  %v20038_v56 = vld [vmem:[#allocation25_spill] sm:$0xff] }
 0xf4b   : > { %15705 = vmatprep.subr.mxu0 %v19908_v38  ;;  %15716 = vmatprep.subr.mxu1 %v19908_v38 }
 0xf4c   : > { %15706 = vmatpush3.msra.mxu0 %v18843_v59  ;;  %15707 = vmatprep.mubr.msk.f32.mxu0 %vm16418_vm1, %v19908_v38  ;;  %v20039_v59 = vld [vmem:[#allocation26_spill] sm:$0xff] }
 0xf4d   : > { %15717 = vmatpush3.msra.mxu1 %v18851_v31  ;;  %15718 = vmatprep.mubr.msk.f32.mxu1 %vm16418_vm1, %v19908_v38  ;;  %v20040_v31 = vld [vmem:[#allocation27_spill] sm:$0xff] }
 0xf4e   : > { %15708 = vmatmul.mubr.msk.f32.vlgmr.msra.gmra.mxu0 %vm7108_vm3, %v19329_v15  ;;  %15719 = vmatmul.mubr.msk.f32.vlgmr.msra.gmra.mxu1 %vm7108_vm3, %v19327_v63 }
 0xf4f   : > { %15721 = vmatprep.subr.mxu0 %v19908_v38  ;;  %15732 = vmatprep.subr.mxu1 %v19908_v38 }
 0xf50   : > { %15722 = vmatpush3.msra.mxu0 %v18865_v49  ;;  %15733 = vmatpush3.msra.mxu1 %v18871_v10  ;;  %v20041_v49 = vld [vmem:[#allocation28_spill] sm:$0xff]  ;;  %v20042_v10 = vld [vmem:[#allocation29_spill] sm:$0xff] }
 0xf51   : > { %15723 = vmatprep.subr.mxu0 %v19908_v38  ;;  %15734 = vmatprep.subr.mxu1 %v19908_v38 }
 0xf52   : > { %15724 = vmatpush3.msra.mxu0 %v18879_v45  ;;  %15735 = vmatpush3.msra.mxu1 %v18885_v36  ;;  %v20043_v45 = vld [vmem:[#allocation30_spill] sm:$0xff]  ;;  %v20044_v36 = vld [vmem:[#allocation31_spill] sm:$0xff] }
 0xf53   : > { %15725 = vmatprep.subr.mxu0 %v19908_v38  ;;  %15736 = vmatprep.subr.mxu1 %v19908_v38 }
 0xf54   : > { %15726 = vmatpush3.msra.mxu0 %v18893_v35  ;;  %15737 = vmatpush3.msra.mxu1 %v18899_v1  ;;  %v20045_v35 = vld [vmem:[#allocation32_spill] sm:$0xff]  ;;  %v20046_v1 = vld [vmem:[#allocation33_spill] sm:$0xff] }
 0xf55   : > { %15727 = vmatprep.subr.mxu0 %v19908_v38  ;;  %15738 = vmatprep.subr.mxu1 %v19908_v38 }
 0xf56   : > { %15728 = vmatpush3.msra.mxu0 %v18907_v61  ;;  %15729 = vmatprep.mubr.msk.f32.mxu0 %vm16418_vm1, %v19908_v38  ;;  %v20047_v61 = vld [vmem:[#allocation34_spill] sm:$0xff] }
 0xf57   : > { %15739 = vmatpush3.msra.mxu1 %v18915_v13  ;;  %15740 = vmatprep.mubr.msk.f32.mxu1 %vm16418_vm1, %v19908_v38  ;;  %v20048_v13 = vld [vmem:[#allocation35_spill] sm:$0xff] }
 0xf58   : > { %15730 = vmatmul.mubr.msk.f32.vlgmr.msra.gmra.mxu0 %vm7108_vm3, %v19327_v63  ;;  %15741 = vmatmul.mubr.msk.f32.vlgmr.msra.gmra.mxu1 %vm7108_vm3, %v19327_v63 }
 0xf59   : > { %15743 = vmatprep.subr.mxu0 %v19908_v38  ;;  %15754 = vmatprep.subr.mxu1 %v19908_v38 }
 0xf5a   : > { %15744 = vmatpush3.msra.mxu0 %v18929_v40  ;;  %15755 = vmatpush3.msra.mxu1 %v18935_v48  ;;  %v20049_v40 = vld [vmem:[#allocation36_spill] sm:$0xff]  ;;  %v20050_v48 = vld [vmem:[#allocation37_spill] sm:$0xff] }
 0xf5b   : > { %15745 = vmatprep.subr.mxu0 %v19908_v38  ;;  %15756 = vmatprep.subr.mxu1 %v19908_v38 }
 0xf5c   : > { %15746 = vmatpush3.msra.mxu0 %v18943_v4  ;;  %15757 = vmatpush3.msra.mxu1 %v18949_v16  ;;  %v20051_v4 = vld [vmem:[#allocation38_spill] sm:$0xff]  ;;  %v20052_v16 = vld [vmem:[#allocation39_spill] sm:$0xff] }
 0xf5d   : > { %15747 = vmatprep.subr.mxu0 %v19908_v38  ;;  %15758 = vmatprep.subr.mxu1 %v19908_v38 }
 0xf5e   : > { %15748 = vmatpush3.msra.mxu0 %v18957_v43  ;;  %15759 = vmatpush3.msra.mxu1 %v18963_v46  ;;  %v20053_v43 = vld [vmem:[#allocation40_spill] sm:$0xff]  ;;  %v20054_v46 = vld [vmem:[#allocation41_spill] sm:$0xff] }
 0xf5f   : > { %15749 = vmatprep.subr.mxu0 %v19908_v38  ;;  %15760 = vmatprep.subr.mxu1 %v19908_v38 }
 0xf60   : > { %15750 = vmatpush3.msra.mxu0 %v18971_v54  ;;  %15751 = vmatprep.mubr.msk.f32.mxu0 %vm16418_vm1, %v19908_v38  ;;  %v12549_v54 = vld [vmem:[%s19767_s17 + $0x8] sm:$0xff] }
 0xf61   : > { %15761 = vmatpush3.msra.mxu1 %v18979_v22  ;;  %15762 = vmatprep.mubr.msk.f32.mxu1 %vm16418_vm1, %v19908_v38  ;;  %v20055_v22 = vld [vmem:[#allocation44_spill] sm:$0xff] }
 0xf62   : > { %15752 = vmatmul.mubr.msk.f32.vlgmr.msra.gmra.mxu0 %vm7108_vm3, %v19327_v63  ;;  %15763 = vmatmul.mubr.msk.f32.vlgmr.msra.gmra.mxu1 %vm7108_vm3, %v19327_v63 }
 0xf63   : > { %15765 = vmatprep.subr.mxu0 %v19908_v38  ;;  %15776 = vmatprep.subr.mxu1 %v19908_v38 }
 0xf64   : > { %15766 = vmatpush3.msra.mxu0 %v18993_v18  ;;  %15777 = vmatpush3.msra.mxu1 %v18999_v51  ;;  %v12548_v18 = vld [vmem:[%s19767_s17] sm:$0xff]  ;;  %v13997_v51 = vld [vmem:[%s19767_s17 + $0x28] sm:$0xff] }
 0xf65   : > { %15767 = vmatprep.subr.mxu0 %v19908_v38  ;;  %15778 = vmatprep.subr.mxu1 %v19908_v38 }
 0xf66   : > { %15768 = vmatpush3.msra.mxu0 %v19007_v2  ;;  %15779 = vmatpush3.msra.mxu1 %v20031_v26  ;;  %v20056_v2 = vld [vmem:[#allocation15_spill] sm:$0xff] }
 0xf67   : > { %15769 = vmatprep.subr.mxu0 %v19908_v38  ;;  %15780 = vmatprep.subr.mxu1 %v19908_v38 }
 0xf68   : > { %15770 = vmatpush3.msra.mxu0 %v20032_v0  ;;  %15781 = vmatpush3.msra.mxu1 %v20033_v62 }
 0xf69   : > { %15771 = vmatprep.subr.mxu0 %v19908_v38  ;;  %15782 = vmatprep.subr.mxu1 %v19908_v38 }
 0xf6a   : > { %15772 = vmatpush3.msra.mxu0 %v20034_v41  ;;  %15773 = vmatprep.mubr.msk.f32.mxu0 %vm16418_vm1, %v19908_v38 }
 0xf6b   : > { %15783 = vmatpush3.msra.mxu1 %v20035_v9  ;;  %15784 = vmatprep.mubr.msk.f32.mxu1 %vm16418_vm1, %v19908_v38 }
 0xf6c   : > { %15774 = vmatmul.mubr.msk.f32.vlgmr.msra.gmra.mxu0 %vm7108_vm3, %v19327_v63  ;;  %15785 = vmatmul.mubr.msk.f32.vlgmr.msra.gmra.mxu1 %vm7108_vm3, %v19329_v15 }
 0xf6d   : > { %15787 = vmatprep.subr.mxu0 %v19908_v38  ;;  %15798 = vmatprep.subr.mxu1 %v19908_v38 }
 0xf6e   : > { %15788 = vmatpush3.msra.mxu0 %v20036_v20  ;;  %15799 = vmatpush3.msra.mxu1 %v20037_v6  ;;  %v20060_v6 = vld [vmem:[#allocation46_spill] sm:$0xff] }
 0xf6f   : > { %15789 = vmatprep.subr.mxu0 %v19908_v38  ;;  %15800 = vmatprep.subr.mxu1 %v19908_v38 }
 0xf70   : > { %15790 = vmatpush3.msra.mxu0 %v20038_v56  ;;  %15801 = vmatpush3.msra.mxu1 %v20039_v59 }
 0xf71   : > { %15791 = vmatprep.subr.mxu0 %v19908_v38  ;;  %15802 = vmatprep.subr.mxu1 %v19908_v38 }
 0xf72   : > { %15792 = vmatpush3.msra.mxu0 %v20040_v31  ;;  %15803 = vmatpush3.msra.mxu1 %v20041_v49  ;;  %v20061_v49 = vld [vmem:[#allocation43_spill] sm:$0xff] }
 0xf73   : > { %15793 = vmatprep.subr.mxu0 %v19908_v38  ;;  %15804 = vmatprep.subr.mxu1 %v19908_v38 }
 0xf74   : > { %15794 = vmatpush3.msra.mxu0 %v20042_v10  ;;  %15795 = vmatprep.mubr.msk.f32.mxu0 %vm16418_vm1, %v19908_v38 }
 0xf75   : > { %15805 = vmatpush3.msra.mxu1 %v20043_v45  ;;  %15806 = vmatprep.mubr.msk.f32.mxu1 %vm16418_vm1, %v19908_v38 }
 0xf76   : > { %15796 = vmatmul.mubr.msk.f32.vlgmr.msra.gmra.mxu0 %vm7108_vm3, %v19329_v15  ;;  %15807 = vmatmul.mubr.msk.f32.vlgmr.msra.gmra.mxu1 %vm7108_vm3, %v19329_v15 }
 0xf77   : > { %15809 = vmatprep.subr.mxu0 %v19908_v38  ;;  %15820 = vmatprep.subr.mxu1 %v19908_v38 }
 0xf78   : > { %15810 = vmatpush3.msra.mxu0 %v20044_v36  ;;  %15821 = vmatpush3.msra.mxu1 %v20045_v35 }
 0xf79   : > { %15811 = vmatprep.subr.mxu0 %v19908_v38  ;;  %15822 = vmatprep.subr.mxu1 %v19908_v38 }
 0xf7a   : > { %15812 = vmatpush3.msra.mxu0 %v20046_v1  ;;  %15823 = vmatpush3.msra.mxu1 %v20047_v61 }
 0xf7b   : > { %15813 = vmatprep.subr.mxu0 %v19908_v38  ;;  %15824 = vmatprep.subr.mxu1 %v19908_v38 }
 0xf7c   : > { %15814 = vmatpush3.msra.mxu0 %v20048_v13  ;;  %15825 = vmatpush3.msra.mxu1 %v20049_v40 }
 0xf7d   : > { %15815 = vmatprep.subr.mxu0 %v19908_v38  ;;  %15826 = vmatprep.subr.mxu1 %v19908_v38 }
 0xf7e   : > { %15816 = vmatpush3.msra.mxu0 %v20050_v48  ;;  %15817 = vmatprep.mubr.msk.f32.mxu0 %vm16418_vm1, %v19908_v38 }
 0xf7f   : > { %15827 = vmatpush3.msra.mxu1 %v20051_v4  ;;  %15828 = vmatprep.mubr.msk.f32.mxu1 %vm16418_vm1, %v19908_v38 }
 0xf80   : > { %15818 = vmatmul.mubr.msk.f32.vlgmr.msra.gmra.mxu0 %vm7108_vm3, %v19303_v23  ;;  %15829 = vmatmul.mubr.msk.f32.vlgmr.msra.gmra.mxu1 %vm7108_vm3, %v19303_v23 }
 0xf81   : > { %15831 = vmatprep.subr.mxu0 %v19908_v38  ;;  %15839 = vmatprep.mubr.msk.f32.mxu0 %vm16418_vm1, %v19908_v38 }
 0xf82   : > { %15832 = vmatpush3.msra.mxu0 %v20052_v16  ;;  %15842 = vmatprep.subr.mxu1 %v19908_v38 }
 0xf83   : > { %15833 = vmatprep.subr.mxu0 %v19908_v38  ;;  %15844 = vmatprep.mubr.msk.f32.mxu1 %vm16418_vm1, %v19908_v38 }
 0xf84   : > { %15834 = vmatpush3.msra.mxu0 %v20053_v43 }
 0xf85   : > { %15835 = vmatprep.subr.mxu0 %v19908_v38 }
 0xf86   : > { %15836 = vmatpush3.msra.mxu0 %v20054_v46 }
 0xf87   : > { %15837 = vmatprep.subr.mxu0 %v19908_v38 }
 0xf88   : > { %15838 = vmatpush3.msra.mxu0 %v20055_v22 }
 0xf89   : > { %15840 = vmatmul.mubr.msk.f32.vlgmr.msra.gmra.mxu0 %vm7108_vm3, %v19303_v23  ;;  %15852 = vmatprep.subr.mxu0 %v19908_v38 }
 0xf8a   : > { %15853 = vmatpush3.msra.mxu0 %v12549_v54  ;;  %15856 = vmatprep.mubr.msk.f32.mxu0 %vm16418_vm1, %v19908_v38  ;;  %v20062_v54 = vld [vmem:[#allocation47_spill] sm:$0xff] }
 0xf8b   : > { %15854 = vmatprep.subr.mxu0 %v19908_v38 }
 0xf8c   : > { %15855 = vmatpush3.msra.mxu0 %v12548_v18 }
 0xf8d   : > { %15857 = vmatmul.mubr.msk.f32.vlgmr.msra.gmra.mxu0 %vm889_vm0, %v20056_v2  ;;  %15866 = vmatprep.subr.mxu0 %v19908_v38 }
 0xf8e   : > { %15867 = vmatpush3.msra.mxu0 %v13997_v51  ;;  %15870 = vmatprep.mubr.msk.f32.mxu0 %vm16418_vm1, %v19908_v38 }
 0xf8f   : > { %15868 = vmatprep.subr.mxu0 %v19908_v38 }
 0xf90   : > { %15869 = vmatpush3.msra.mxu0 %v13996_v14 }
 0xf91   : > { %15871 = vmatmul.mubr.msk.f32.vlgmr.msra.gmra.mxu0 %vm889_vm0, %v12698_v53  ;;  %15880 = vmatprep.subr.mxu0 %v19908_v38 }
 0xf92   : > { %15881 = vmatpush3.msra.mxu0 %v14003_v24  ;;  %15884 = vmatprep.mubr.msk.f32.mxu0 %vm16418_vm1, %v19908_v38 }
 0xf93   : > { %15882 = vmatprep.subr.mxu0 %v19908_v38 }
 0xf94   : > { %15883 = vmatpush3.msra.mxu0 %v14002_v47 }
 0xf95   : > { %15885 = vmatmul.mubr.msk.f32.vlgmr.msra.gmra.mxu0 %vm889_vm0, %v12852_v12  ;;  %15894 = vmatprep.subr.mxu0 %v19908_v38 }
 0xf96   : > { %15895 = vmatpush3.msra.mxu0 %v14009_v58  ;;  %15898 = vmatprep.mubr.msk.f32.mxu0 %vm16418_vm1, %v19908_v38 }
 0xf97   : > { %15896 = vmatprep.subr.mxu0 %v19908_v38 }
 0xf98   : > { %15897 = vmatpush3.msra.mxu0 %v14008_v34 }
 0xf99   : > { %15899 = vmatmul.mubr.msk.f32.vlgmr.msra.gmra.mxu0 %vm889_vm0, %v13006_v32  ;;  %15908 = vmatprep.subr.mxu0 %v19908_v38 }
 0xf9a   : > { %15916 = vmatprep.mubr.msk.f32.mxu0 %vm16418_vm1, %v19908_v38 }
0x1005   : > { %v11254_v27 = vpop.f32.mrf.mxu0  ;;  %v11328_v42 = vpop.f32.mrf.mxu1 }
0x1006   : > { %v11259_v29 = vrot.slane %v11254_v27, 5  ;;  %v11333_v41 = vrot.slane %v11328_v42, 5 }
0x1007   : > { %v15687_v55 = vpop.f32.mrf.mxu0  ;;  %v15698_v17 = vpop.f32.mrf.mxu1 }
0x1008   : > { %v11261_v8 = vadd.f32 %v11259_v29, %v20059_v50  ;;  %v11335_v10 = vadd.f32 %v11333_v41, %v20061_v49 }
0x100e   : > { %v11402_v39 = vpop.f32.mrf.mxu0  ;;  %v11479_v25 = vpop.f32.mrf.mxu1 }
0x100f   : > { %v11480_v33 = vadd.f32 %v20058_v30, %v11479_v25  ;;  %v11407_v47 = vrot.slane %v11402_v39, 5 }
0x1010   : > { %v15709_v21 = vpop.f32.mrf.mxu0  ;;  %v15720_v11 = vpop.f32.mrf.mxu1 }
0x1011   : > { %v11624_v26 = vrot.slane %v11480_v33, 5  ;;  %v11409_v27 = vadd.f32 %v11407_v47, %v19989_v19  ;;  %v11651_v11 = vrot.slane %v19327_v63, 5 }
0x1013   : > { %v11626_v0 = vadd.f32 %v11624_v26, %v11261_v8 }
0x1015   : > { %v13973_v62 = vmul.f32 -1.442695, %v11626_v0 }
0x1017   : > { %16229 = vpow2.f32 %v13973_v62 }
0x1018   : > { %v11549_v9 = vpop.f32.mrf.mxu0  ;;  %v11619_v20 = vpop.f32.mrf.mxu1 }
0x1019   : > { %v11550_v56 = vadd.f32 %v20060_v6, %v11549_v9  ;;  %v11620_v52 = vadd.f32 %v19251_v3, %v11619_v20  ;;  %v20063_v6 = vld [vmem:[#allocation13_spill] sm:$0xff] }
0x101a   : > { %v15731_v59 = vpop.f32.mrf.mxu0  ;;  %v15742_v31 = vpop.f32.mrf.mxu1 }
0x101b   : > { %v11634_v45 = vrot.slane %v11550_v56, 5  ;;  %v11644_v58 = vrot.slane %v11620_v52, 5  ;;  %v20064_v56 = vld [vmem:[#allocation16_spill] sm:$0xff] }
0x101c   : > { %v20065_v59 = vrot.slane %v20063_v6, %v20064_v56 }
0x101d   : > { %v11636_v36 = vadd.f32 %v11634_v45, %v11335_v10  ;;  %v20066_v10 = vld [vmem:[#allocation48_spill] sm:$0xff] }
0x101f   : > { %v13974_v35 = vmul.f32 -1.442695, %v11636_v36 }
0x1021   : > { %16231 = vpow2.f32 %v13974_v35 }
0x1022   : > { %v11721_v1 = vpop.f32.mrf.mxu0  ;;  %v11795_v61 = vpop.f32.mrf.mxu1 }
0x1023   : > { %v11726_v16 = vrot.slane %v11721_v1, 5  ;;  %v11800_v55 = vrot.slane %v11795_v61, 5  ;;  %v20067_v61 = vld [vmem:[#allocation17_spill] sm:$0xff] }
0x1024   : > { %v16230_v13 = vpop.eup %16229  ;;  %v15753_v40 = vpop.f32.mrf.mxu0 }
0x1025   : > { %v15764_v48 = vpop.f32.mrf.mxu1  ;;  %v11630_v4 = vadd.f32 1.0, %v16230_v13  ;;  %v11728_v53 = vadd.f32 %v11726_v16, %v19988_v44  ;;  %v11802_v44 = vadd.f32 %v11800_v55, %v19991_v5 }
0x1027   : > { %16233 = vrcp.f32 %v11630_v4 }
0x102c   : > { %v19547_v43 = vpop.f32.mrf.mxu0  ;;  %v11943_v46 = vpop.f32.mrf.mxu1 }
0x102d   : > { %v11944_v22 = vadd.f32 %v20062_v54, %v11943_v46 }
0x102e   : > { %v16232_v18 = vpop.eup %16231  ;;  %v15775_v51 = vpop.f32.mrf.mxu0 }
0x102f   : > { %v15786_v2 = vpop.f32.mrf.mxu1  ;;  %v11640_v14 = vadd.f32 1.0, %v16232_v18  ;;  %v12088_v24 = vrot.slane %v11944_v22, 5  ;;  %v11874_v22 = vrot.slane %v19547_v43, 5 }
0x1031   : > { %16235 = vrcp.f32 %v11640_v14  ;;  %v12090_v12 = vadd.f32 %v12088_v24, %v11728_v53  ;;  %v20069_v53 = vld [vmem:[#allocation51_spill] sm:$0xff] }
0x1032   : > { %v11876_v24 = vadd.f32 %v11874_v22, %v20069_v53  ;;  %v13159_v22 = vld [vmem:[%s19769_s19 + $0x8] sm:$0xff]  ;;  %v14014_v53 = vld [vmem:[%s19769_s19 + $0x20] sm:$0xff] }
0x1033   : > { %v13981_v34 = vmul.f32 -1.442695, %v12090_v12 }
0x1034   : > { %v16234_v32 = vpop.eup %16233 }
0x1035   : > { %v11646_v42 = vmul.f32 %v16234_v32, %v11644_v58  ;;  %16237 = vpow2.f32 %v13981_v34 }
0x1036   : > { %v12013_v17 = vpop.f32.mrf.mxu0  ;;  %v12083_v29 = vpop.f32.mrf.mxu1 }
0x1037   : > { %v11647_v25 = vadd.f32 %v11646_v42, %v11409_v27  ;;  %v12014_v30 = vadd.f32 %v19259_v60, %v12013_v17  ;;  %v12084_v16 = vadd.f32 %v19286_v7, %v12083_v29 }
0x1038   : > { %v15797_v3 = vpop.f32.mrf.mxu0  ;;  %v15808_v33 = vpop.f32.mrf.mxu1 }
0x1039   : > { %16239 = vtanh.f32 %v11647_v25  ;;  %v12098_v39 = vrot.slane %v12014_v30, 5  ;;  %v12108_v2 = vrot.slane %v12084_v16, 5  ;;  %v12115_v25 = vrot.slane %v19329_v15, 5  ;;  %v12377_v15 = vpop.permute.xlu0 %12376  ;;  %v13161_v16 = vld [vmem:[%s19769_s19 + $0x18] sm:$0xff] }
0x103b   : > { %v12100_v21 = vadd.f32 %v12098_v39, %v11802_v44 }
0x103d   : > { %v13982_v50 = vmul.f32 -1.442695, %v12100_v21 }
0x103e   : > { %v16236_v8 = vpop.eup %16235 }
0x103f   : > { %16241 = vpow2.f32 %v13982_v50  ;;  %v11653_v19 = vmul.f32 %v16236_v8, %v11651_v11  ;;  %v11649_v31 = vsub.f32 1.0, %v16236_v8  ;;  %v20070_v8 = vrot.slane %v17967_v37, %v20064_v56 }
0x1040   : > { %v12187_v26 = vpop.f32.mrf.mxu0  ;;  %v12257_v0 = vpop.f32.mrf.mxu1 }
0x1041   : > { %v12188_v62 = vadd.f32 %v19267_v57, %v12187_v26  ;;  %v12258_v45 = vadd.f32 %v20066_v10, %v12257_v0  ;;  %v20068_v57 = vrot.slane %v20067_v61, %v20064_v56  ;;  %v12367_v0 = vpop.permute.xlu1 %12366  ;;  %v13993_v10 = vld [vmem:[%s19767_s17 + $0x10] sm:$0xff]  ;;  %v14006_v61 = vld [vmem:[%s19767_s17 + $0x58] sm:$0xff] }
0x1042   : > { %v16238_v41 = vpop.eup %16237  ;;  %v15819_v9 = vpop.f32.mrf.mxu0 }
0x1043   : > { %v15830_v60 = vpop.f32.mrf.mxu1  ;;  %v12094_v20 = vadd.f32 1.0, %v16238_v41  ;;  %v12335_v5 = vadd.f32 %v20065_v59, %v12188_v62  ;;  %v12346_v13 = vadd.f32 %v20068_v57, %v12258_v45  ;;  %v14000_v45 = vld [vmem:[%s19767_s17 + $0x38] sm:$0xff]  ;;  %v14005_v57 = vld [vmem:[%s19767_s17 + $0x50] sm:$0xff] }
0x1045   : > { %16243 = vrcp.f32 %v12094_v20  ;;  %v13986_v49 = vmul.f32 -1.442695, %v12335_v5  ;;  %v13987_v54 = vmul.f32 -1.442695, %v12346_v13 }
0x1046   : > { %v16240_v63 = vpop.eup %16239 }
0x1047   : > { %v11650_v36 = vmul.f32 %v16240_v63, %v11649_v31  ;;  %16245 = vpow2.f32 %v13986_v49  ;;  %v12396_v49 = vld [vmem:[%s863_s29] sm:$0x1]  ;;  %v13994_v63 = vld [vmem:[%s19767_s17 + $0x18] sm:$0xff] }
0x1048   : > { %16247 = vpow2.f32 %v13987_v54  ;;  %v13160_v54 = vld [vmem:[%s19769_s19 + $0x10] sm:$0xff] }
0x1049   : > { %v12327_v35 = vpop.f32.mrf.mxu0  ;;  %v11654_v1 = vadd.f32 %v11653_v19, %v11650_v36  ;;  %v20073_v36 = vld [vmem:[#allocation10_spill] sm:$0xff] }
0x104a   : > { %v12328_v33 = vadd.f32 %v19295_v28, %v12327_v35  ;;  %v13999_v35 = vld [vmem:[%s19767_s17 + $0x30] sm:$0xff]  ;;  %v12929_v13 = vrot.slane %v20073_v36, 2 }
0x104b   : > { %v15841_v40 = vpop.f32.mrf.mxu0  ;;  %v12372_v48 = vrot.slane %v11654_v1, %v20064_v56  ;;  %v12775_v1 = vrot.slane %v20073_v36, 1 }
0x104c   : > { %v16242_v4 = vpop.eup %16241  ;;  %v14012_v40 = vld [vmem:[%s19767_s17 + $0x78] sm:$0xff] }
0x104d   : > { %v19566_v46 = vpop.f32.mrf.mxu0  ;;  %v12104_v18 = vadd.f32 1.0, %v16242_v4  ;;  %v12373_v62 = vmul.f32 %v12372_v48, %v12367_v0  ;;  %v14011_v48 = vld [vmem:[%s19767_s17 + $0x70] sm:$0xff]  ;;  %v13083_v4 = vrot.slane %v20073_v36, 3 }
0x104f   : > { %v15858_v51 = vpop.f32.mrf.mxu0  ;;  %16249 = vrcp.f32 %v12104_v18  ;;  %v13158_v18 = vld [vmem:[%s19769_s19] sm:$0xff] }
0x1050   : > { %v14017_v51 = vld [vmem:[%s19769_s19 + $0x38] sm:$0xff] }
0x1051   : > { %v19569_v14 = vpop.f32.mrf.mxu0  ;;  %15909 = vmatpush3.msra.mxu0 %v14017_v51 }
0x1052   : > { %v16244_v52 = vpop.eup %16243  ;;  %15910 = vmatprep.subr.mxu0 %v19908_v38 }
0x1053   : > { %v12110_v47 = vmul.f32 %v16244_v52, %v12108_v2  ;;  %v15872_v12 = vpop.f32.mrf.mxu0  ;;  %v14016_v2 = vld [vmem:[%s19769_s19 + $0x30] sm:$0xff]  ;;  %v14015_v52 = vld [vmem:[%s19769_s19 + $0x28] sm:$0xff] }
0x1054   : > { %v16246_v58 = vpop.eup %16245  ;;  %15911 = vmatpush3.msra.mxu0 %v14016_v2  ;;  %v12547_v12 = vld [vmem:[%s19768_s18] sm:$0x1] }
0x1055   : > { %v12111_v34 = vadd.f32 %v12110_v47, %v11876_v24  ;;  %v12339_v7 = vadd.f32 1.0, %v16246_v58  ;;  %v19572_v32 = vpop.f32.mrf.mxu0  ;;  %v16248_v55 = vpop.eup %16247  ;;  %15912 = vmatprep.subr.mxu0 %v19908_v38 }
0x1056   : > { %v12350_v29 = vadd.f32 1.0, %v16248_v55  ;;  %15913 = vmatpush3.msra.mxu0 %v14015_v52 }
0x1057   : > { %16251 = vtanh.f32 %v12111_v34  ;;  %v15886_v27 = vpop.f32.mrf.mxu0  ;;  %15914 = vmatprep.subr.mxu0 %v19908_v38 }
0x1058   : > { %16253 = vrcp.f32 %v12339_v7  ;;  %15915 = vmatpush3.msra.mxu0 %v14014_v53  ;;  %v12620_v7 = vadd.f32 %v19566_v46, %v12547_v12 }
0x1059   : > { %v19574_v43 = vpop.f32.mrf.mxu0  ;;  %16255 = vrcp.f32 %v12350_v29  ;;  %15930 = vmatprep.subr.mxu0 %v19908_v38 }
0x105b   : > { %v15900_v42 = vpop.f32.mrf.mxu0 }
0x105c   : > { %v16250_v17 = vpop.eup %16249 }
0x105d   : > { %v12113_v30 = vsub.f32 1.0, %v16250_v17  ;;  %v12117_v21 = vmul.f32 %v16250_v17, %v12115_v25 }
0x1064   : > { %v16252_v3 = vpop.eup %16251 }
0x1065   : > { %v16254_v44 = vpop.eup %16253  ;;  %v12114_v39 = vmul.f32 %v16252_v3, %v12113_v30 }
0x1066   : > { %v12353_v11 = vmul.f32 %v16254_v44, %v12328_v33  ;;  %v16256_v9 = vpop.eup %16255 }
0x1067   : > { %v12118_v50 = vadd.f32 %v12117_v21, %v12114_v39  ;;  %v12360_v60 = vsub.f32 1.0, %v16256_v9  ;;  %v12362_v59 = vmul.f32 %v16256_v9, %v19303_v23  ;;  %v12473_v23 = vld [vmem:[%s867_s5] sm:$0x7]  ;;  %s16354_s5 = scalar_lea.vmem %s13429_s25, 64 }
0x1068   : > { %v12358_v19 = vadd.f32 %v20070_v8, %v12353_v11  ;;  %p16355_p11 = scmp.ne.s32.totalorder %s13429_s25, %s16354_s5  ;;  %p16362_p1 = scmp.lt.s32.totalorder %s16360_s11, %s16354_s5 }
0x1069   : > { %v12382_v26 = vrot.slane %v12118_v50, %v20064_v56  ;;  %v12390_v56 = vpop.permute.xlu1 %12389 }
0x106a   : > { %16257 = vtanh.f32 %v12358_v19  ;;  %p16356_p12 = pnand %p16355_p11, %p16583_p5  ;;  %p16363_p2 = por %p16362_p1, %p16361_p0 }
0x106b   : > { %v12383_v28 = vmul.f32 %v12382_v26, %v12377_v15 }
0x106c   : > { %p16357_p13 = pneg %p16356_p12 }
0x106d   : > { %v12384_v41 = vadd.f32 %v12383_v28, %v12373_v62  ;;  %v20074_v28 = vld [vmem:[#allocation49_spill] sm:$0xff] }
0x106e   : > { %p16364_p3 = pnand %p16363_p2, %p16357_p13 }
0x1077   : > { %v16258_v20 = vpop.eup %16257 }
0x1078   : > { %v12361_v6 = vmul.f32 %v16258_v20, %v12360_v60  ;;  %v13325_v60 = vld [vmem:[%s19771_s21] sm:$0x7] }
0x107a   : > { %v12363_v37 = vadd.f32 %v12362_v59, %v12361_v6 }
0x107c   : > { %v12392_v5 = vmul.f32 %v12390_v56, %v12363_v37 }
0x107e   : > { %v12393_v31 = vadd.f32 %v12392_v5, %v12384_v41 }
0x1080   : > { %15843 = vmatpush3.msk.msra.mxu1 %vm6961_vm4, %v12393_v31  ;;  %12395 = vst.msk [vmem:[%s832_s10] sm:$0xf] %vm12394_vm5, %v12393_v31 }
0x1081   : > { %15845 = vmatmul.mubr.msk.f32.vlgmr.msra.gmra.mxu1 %vm6957_vm2, %v12396_v49  ;;  %15847 = vmatprep.subr.mxu1 %v19908_v38 }
0x1082   : > { %15848 = vmatpush3.msk.msra.mxu1 %vm6961_vm4, %v12393_v31  ;;  %15849 = vmatprep.mubr.msk.f32.mxu1 %vm16418_vm1, %v19908_v38 }
0x1083   : > { %15859 = vmatprep.subr.mxu1 %v19908_v38 }
0x1085   : > { %15850 = vmatmul.mubr.msk.f32.vlgmr.msra.gmra.mxu1 %vm6957_vm2, %v12473_v23 }
0x1086   : > { %15860 = vmatpush3.msra.mxu1 %v13994_v63  ;;  %15863 = vmatprep.mubr.msk.f32.mxu1 %vm16418_vm1, %v19908_v38 }
0x1087   : > { %15861 = vmatprep.subr.mxu1 %v19908_v38 }
0x1088   : > { %15862 = vmatpush3.msra.mxu1 %v13993_v10 }
0x1089   : > { %15864 = vmatmul.mubr.msk.f32.vlgmr.msra.gmra.mxu1 %vm889_vm0, %v20073_v36  ;;  %15873 = vmatprep.subr.mxu1 %v19908_v38 }
0x108a   : > { %15874 = vmatpush3.msra.mxu1 %v14000_v45  ;;  %15877 = vmatprep.mubr.msk.f32.mxu1 %vm16418_vm1, %v19908_v38 }
0x108b   : > { %15875 = vmatprep.subr.mxu1 %v19908_v38 }
0x108c   : > { %15876 = vmatpush3.msra.mxu1 %v13999_v35 }
0x108d   : > { %15878 = vmatmul.mubr.msk.f32.vlgmr.msra.gmra.mxu1 %vm889_vm0, %v12775_v1  ;;  %15887 = vmatprep.subr.mxu1 %v19908_v38 }
0x108e   : > { %15888 = vmatpush3.msra.mxu1 %v14006_v61  ;;  %15891 = vmatprep.mubr.msk.f32.mxu1 %vm16418_vm1, %v19908_v38 }
0x108f   : > { %15889 = vmatprep.subr.mxu1 %v19908_v38 }
0x1090   : > { %15890 = vmatpush3.msra.mxu1 %v14005_v57 }
0x1091   : > { %15892 = vmatmul.mubr.msk.f32.vlgmr.msra.gmra.mxu1 %vm889_vm0, %v12929_v13  ;;  %15901 = vmatprep.subr.mxu1 %v19908_v38 }
0x1092   : > { %15902 = vmatpush3.msra.mxu1 %v14012_v40  ;;  %15905 = vmatprep.mubr.msk.f32.mxu1 %vm16418_vm1, %v19908_v38 }
0x1093   : > { %15903 = vmatprep.subr.mxu1 %v19908_v38 }
0x1094   : > { %15904 = vmatpush3.msra.mxu1 %v14011_v48 }
0x1095   : > { %15906 = vmatmul.mubr.msk.f32.vlgmr.msra.gmra.mxu1 %vm889_vm0, %v13083_v4  ;;  %15919 = vmatprep.subr.mxu1 %v19908_v38 }
0x1096   : > { %15920 = vmatpush3.msra.mxu1 %v13161_v16  ;;  %15927 = vmatprep.mubr.msk.f32.mxu1 %vm16418_vm1, %v19908_v38 }
0x1097   : > { %15921 = vmatprep.subr.mxu1 %v19908_v38 }
0x1098   : > { %15922 = vmatpush3.msra.mxu1 %v13160_v54 }
0x1099   : > { %15923 = vmatprep.subr.mxu1 %v19908_v38 }
0x109a   : > { %15924 = vmatpush3.msra.mxu1 %v13159_v22 }
0x109b   : > { %15925 = vmatprep.subr.mxu1 %v19908_v38 }
0x109c   : > { %15926 = vmatpush3.msra.mxu1 %v13158_v18 }
0x1141   : > { %v12469_v24 = vpop.f32.mrf.mxu1 }
0x1142   : > { %15928 = vmatmul.mubr.msk.f32.vlgmr.msra.gmra.mxu1 %vm7108_vm3, %v12469_v24 }
0x1143   : > { %v15846_v47 = vpop.f32.mrf.mxu1 }
0x1145   : > { %v12543_v58 = vpop.f32.mrf.mxu1 }
0x1147   : > { %v15851_v34 = vpop.f32.mrf.mxu1 }
0x1149   : > { %v12690_v27 = vpop.f32.mrf.mxu1 }
0x114a   : > { %v12694_v42 = vadd.f32 %v12690_v27, %v12620_v7 }
0x114b   : > { %v15865_v55 = vpop.f32.mrf.mxu1 }
0x114c   : > { %v12771_v17 = vadd.f32 %v19569_v14, %v12694_v42 }
0x114d   : > { %v12844_v29 = vpop.f32.mrf.mxu1 }
0x114e   : > { %v12848_v25 = vadd.f32 %v12844_v29, %v12771_v17 }
0x114f   : > { %v15879_v30 = vpop.f32.mrf.mxu1 }
0x1150   : > { %v12925_v3 = vadd.f32 %v19572_v32, %v12848_v25  ;;  %v13313_v32 = vld [vmem:[%s19770_s20] sm:$0x1] }
0x1151   : > { %v12998_v33 = vpop.f32.mrf.mxu1 }
0x1152   : > { %v13002_v44 = vadd.f32 %v12998_v33, %v12925_v3 }
0x1153   : > { %v15893_v39 = vpop.f32.mrf.mxu1 }
0x1154   : > { %v13079_v21 = vadd.f32 %v19574_v43, %v13002_v44 }
0x1155   : > { %v13152_v11 = vpop.f32.mrf.mxu1 }
0x1156   : > { %v13156_v50 = vadd.f32 %v13152_v11, %v13079_v21 }
0x1157   : > { %v15907_v8 = vpop.f32.mrf.mxu1 }
0x1158   : > { %16259 = vtanh.f32 %v13156_v50 }
0x1165   : > { %v16260_v46 = vpop.eup %16259 }
0x1166   : > { %15917 = vmatmul.mubr.msk.f32.vlgmr.msra.gmra.mxu0 %vm7108_vm3, %v16260_v46 }
0x1167   : > { %15932 = vmatprep.mubr.msk.f32.mxu0 %vm16418_vm1, %v19908_v38 }
0x1202   : > { %v13309_v14 = vpop.f32.mrf.mxu1 }
0x1204   : > { %v15929_v19 = vpop.f32.mrf.mxu1 }
0x1226   : > { %v13236_v26 = vpop.f32.mrf.mxu0 }
0x1227   : > { %v13310_v15 = vadd.f32 %v13309_v14, %v13236_v26 }
0x1228   : > { %v15918_v43 = vpop.f32.mrf.mxu0 }
0x1229   : > { %v13314_v0 = vadd.f32 %v13313_v32, %v13310_v15 }
0x122b   : > { %16261 = vtanh.f32 %v13314_v0 }
0x1238   : > { %v16262_v62 = vpop.eup %16261 }
0x1239   : > { %v13319_v41 = vrot.slane %v16262_v62, %v20074_v28 }
0x123b   : > { %v13320_v9 = vmul.f32 %v13319_v41, %v12543_v58 }
0x123d   : > { %v13322_v38 = vsel %vm13321_vm6, %v13320_v9, 0.0 }
0x123e   : > { %13323 = vadd.xlane.f32.xlu0 %v13322_v38 }
0x12c7   : > { %v13324_v20 = vpop.xlane.xlu0 %13323 }
0x12c8   : > { %15931 = vmatpush3.msk.msra.mxu0 %vm13331_vm7, %v13324_v20 }
0x12c9   : > { %15933 = vmatmul.mubr.msk.f32.vlgmr.msra.gmra.mxu0 %vm13327_vm8, %v13325_v60 }
0x12ca   : > { %16367 = shalt.err (!%p16364_p3)
}
0x12cb   : > { %s16368_s10 = scalar_lea.hbm %s13426_s27, 64  ;;  %s16372_s1 = scalar_lea.hbm %s19774_s24, 128 }
0x12cc   : > { %p16369_p4 = scmp.ne.s32.totalorder %s13426_s27, %s16368_s10  ;;  %p16373_p9 = scmp.lt.s32.totalorder %s13426_s27, %s19774_s24 }
0x12cd   : > { %p16374_p10 = scmp.lt.s32.totalorder %s16372_s1, %s16368_s10 }
0x12ce   : > { %p16370_p7 = pnand %p16369_p4, %p16583_p5 }
0x12cf   : > { %p16375_p11 = por %p16374_p10, %p16373_p9 }
0x12d0   : > { %p16371_p8 = pneg %p16370_p7 }
0x12d2   : > { %p16376_p12 = pnand %p16375_p11, %p16371_p8 }
0x12d4   : > { %16379 = shalt.err (!%p16376_p12)
}
0x12d5   : > { %15935 = dma.vmem_to_hbm [thread:$0]  (%p16583_p5), %s13429_s25, 64, %s13426_s27, %s13412_s7   ;;  %v13326_v6 = vld [vmem:[%s19772_s22] sm:$0x7]  ;;  %vm13405_vm9 = vcmask 2048  }
0x12d6   : > { %s871_s30 = scalar_lea.vmem %s19773_s23, %s17784_s0 }
0x1389   : > { %v13401_v59 = vpop.f32.mrf.mxu0 }
0x138a   : > { %v13402_v37 = vadd.f32 %v13401_v59, %v13326_v6 }
0x138b   : > { %v15934_v56 = vpop.f32.mrf.mxu0 }
0x138c   : > { %13406 = vst.msk [vmem:[%s871_s30] sm:$0x7] %vm13405_vm9, %v13402_v37 }
0x138d PF: > { %s20075_s10 = sld [smem:[#allocation5_spill]]  ;;  %p15941_p13 = scmp.ge.s32.totalorder %s16414_s28, 2 }
0x138f   : > { %p15938_p5 = pnand %p15941_p13, %p16587_p6 }
0x1391   : > { %p15939_p0 = pneg %p15938_p5 }
0x1393   : > { %s13447_s3 = sand.u32 1, %s20075_s10  }
0x1394   : > { %s13448_s25 = scalar_lea.sflag [#allocation3], %s13447_s3 }
0x1395   : > { %16397 = dma.done.wait (%p15939_p0), %s13448_s25, 64  }
0x1396   : > { %16399 = vsyncadd (%p15939_p0), %s13448_s25, 4294967232  ;;  %s20077_s28 = sld [smem:[#allocation7_spill]]  ;;  %s20080_s5 = smov %s16406_s26 }
0x1397   : > { %s20078_s0 = sld [smem:[#allocation6_spill]] }
0x1398   : > { %s20079_s27 = sld [smem:[#allocation8_spill]] }
0x139c   : > { %p35_p1 = scmp.ge.s32.totalorder %s20077_s28, 4  }
0x139d   : > { %s20081_s26 = smov %s20078_s0 }
0x139e   :  { %37 = sbr.rel (!%p35_p1) target bundleno = 16 (0x10), region = 266 }
0x13a3   :  { %13453 = vsyncpa [#allocation3], 1 }
0x13a4   :  { %13455 = vsyncpa [#allocation3 + $0x1], 1 }

</bundles_post_ra>
